<compile_context>
chip_gen: v6e
topology: v6e:2x2x1
jax: 0.10.0
libtpu: 0.0.40
codegen_flags: <defaults>
</compile_context>

<pallas_src>
import jax
import jax.numpy as jnp
from jax import lax
from jax.experimental import pallas as pl
from jax.experimental.pallas import tpu as pltpu


# ---------------------------------------------------------------------------
# Helpers
# ---------------------------------------------------------------------------
def _vmem_budget_bytes():
    """Generation-aware scoped-VMEM budget (headroom below physical capacity)."""
    try:
        cap = int(pltpu.get_tpu_info().vmem_capacity_bytes)
    except Exception:
        cap = 64 * 1024 * 1024
    return max(32 * 1024 * 1024, int(cap * 0.6))


def _fold_bn(gamma, beta, mean, var, eps):
    """Fold BatchNorm (eval / running stats) into a per-channel scale & bias."""
    inv = lax.rsqrt(var.astype(jnp.float32) + eps)
    scale = gamma.astype(jnp.float32) * inv
    bias = beta.astype(jnp.float32) - mean.astype(jnp.float32) * scale
    return scale, bias


# ---------------------------------------------------------------------------
# Kernel 1: fused 1x1 conv (matmul) + BatchNorm (folded) + SiLU
# ---------------------------------------------------------------------------
def _conv_bn_silu_kernel(x_ref, w_ref, scale_ref, bias_ref, o_ref):
    # x: (TM, Cin), w: (Cin, Cout), scale/bias: (1, Cout) f32
    y = jnp.dot(x_ref[...], w_ref[...], preferred_element_type=jnp.float32)
    y = y * scale_ref[...] + bias_ref[...]                      # folded BN (eval)
    o_ref[...] = (y * jax.nn.sigmoid(y)).astype(o_ref.dtype)    # SiLU


def _pick_row_tile(n, cin, cout, in_isz, out_isz, w_isz, budget, n_in_bufs=3):
    """Largest row tile whose pipelined blocks (+ resident weight) fit the budget."""
    if n <= 1024:
        return n                                   # full extent: always legal
    fixed = 2 * cin * cout * w_isz + 4 * cout * 4  # weight bufs + scale/bias
    per_row = n_in_bufs * cin * in_isz + 2 * cout * out_isz
    tm = (budget - fixed) // per_row
    tm = min(int(tm), n, 4096)
    tm -= tm % 256                                 # MXU / sublane friendly
    return max(tm, 256)


def conv1x1_bn_silu(x_nhwc, w, gamma, beta, mean, var, eps=1e-3,
                    matmul_dtype=jnp.bfloat16, out_dtype=None):
    """Fused 1x1 conv (matmul) + BatchNorm(running stats) + SiLU, NHWC layout."""
    B, H, W, Cin = x_nhwc.shape
    Cout = w.shape[1]
    out_dtype = x_nhwc.dtype if out_dtype is None else out_dtype
    scale, bias = _fold_bn(gamma, beta, mean, var, eps)
    scale = scale.reshape(1, Cout)
    bias = bias.reshape(1, Cout)

    N = B * H * W
    # NOTE: the f32->bf16 cast fuses with the NCHW->NHWC transpose copy in XLA;
    # if profiling shows it materialized separately, cast per-tile in-kernel.
    x2d = x_nhwc.reshape(N, Cin)
    if matmul_dtype is not None:
        x2d = x2d.astype(matmul_dtype)
        w = w.astype(matmul_dtype)

    budget = _vmem_budget_bytes()
    tm = _pick_row_tile(N, Cin, Cout,
                        jnp.dtype(x2d.dtype).itemsize,
                        jnp.dtype(out_dtype).itemsize,
                        jnp.dtype(w.dtype).itemsize,
                        budget, n_in_bufs=3)
    n_steps = pl.cdiv(N, tm)

    # 3-deep activation pipelining only when there are enough grid steps.
    x_spec = pl.BlockSpec((tm, Cin), lambda i: (i, 0))
    if n_steps > 2:
        try:
            x_spec = pl.BlockSpec((tm, Cin), lambda i: (i, 0),
                                  pipeline_mode=pl.Buffered(3))
        except TypeError:     # older jax without pipeline_mode kwarg
            pass

    # TODO(synk): pad Cout to a multiple of 128 for lane-dense output stores when
    # real model channel counts aren't already (demo Cout is tiny on purpose).
    out = pl.pallas_call(
        _conv_bn_silu_kernel,
        out_shape=jax.ShapeDtypeStruct((N, Cout), out_dtype),
        grid=(n_steps,),
        in_specs=[
            x_spec,
            pl.BlockSpec((Cin, Cout), lambda i: (0, 0)),
            pl.BlockSpec((1, Cout), lambda i: (0, 0)),
            pl.BlockSpec((1, Cout), lambda i: (0, 0)),
        ],
        out_specs=pl.BlockSpec((tm, Cout), lambda i: (i, 0)),
        compiler_params=pltpu.CompilerParams(
            dimension_semantics=("parallel",),
            vmem_limit_bytes=budget),
    )(x2d, w, scale, bias)
    return out.reshape(B, H, W, Cout)


# ---------------------------------------------------------------------------
# Kernel 2: fused SPP stage (cascaded max pools, concat kept in VMEM) +
#           second 1x1 conv + BatchNorm + SiLU.
# Grid = (batch, channel_group); the channel group is the conv2 contraction
# axis (accumulated in an f32 scratch), so the concat tensor never hits HBM.
# ---------------------------------------------------------------------------
def _make_spp_conv2_kernel(H, W, cg, stage_ks, stage_from_prev, neg,
                           matmul_dtype, n_cg):
    def kernel(y_ref, w_ref, scale_ref, bias_ref, o_ref, pad_buf, acc_ref):
        g = pl.program_id(1)

        @pl.when(g == 0)
        def _init():
            acc_ref[...] = jnp.zeros_like(acc_ref)

        def accum(stage_idx, v):                       # v: (H, W, cg)
            a = v.reshape(H * W, cg)
            if matmul_dtype is not None:
                a = a.astype(matmul_dtype)
            wblk = w_ref[0, stage_idx * cg:(stage_idx + 1) * cg, :]
            acc_ref[...] += jnp.dot(a, wblk, preferred_element_type=jnp.float32)

        x = y_ref[0]                                   # identity branch of concat
        accum(0, x)

        cur = x
        filled_pad = -1
        for s, (ks, from_prev) in enumerate(zip(stage_ks, stage_from_prev)):
            pad = ks // 2
            Hp, Wp = H + 2 * pad, W + 2 * pad
            if pad != filled_pad:
                # -inf border strips only; the interior is overwritten each stage.
                pad_buf[0:pad, 0:Wp, :] = jnp.full((pad, Wp, cg), neg, pad_buf.dtype)
                pad_buf[pad + H:Hp, 0:Wp, :] = jnp.full((pad, Wp, cg), neg, pad_buf.dtype)
                pad_buf[pad:pad + H, 0:pad, :] = jnp.full((H, pad, cg), neg, pad_buf.dtype)
                pad_buf[pad:pad + H, pad + W:Wp, :] = jnp.full((H, pad, cg), neg, pad_buf.dtype)
                filled_pad = pad
            pad_buf[pad:pad + H, pad:pad + W, :] = cur if from_prev else x
            # Horizontal ks-tap max: shifted windows loaded straight from VMEM
            # (shifts land on load slots, not extra VPU/XLU value copies).
            c = pad_buf[0:Hp, 0:W, :]
            for dx in range(1, ks):
                c = jnp.maximum(c, pad_buf[0:Hp, dx:dx + W, :])
            # Vertical ks-tap max: major-axis value offsets (cheap).
            p = c[0:H]
            for dy in range(1, ks):
                p = jnp.maximum(p, c[dy:dy + H])
            cur = p
            accum(s + 1, cur)

        @pl.when(g == n_cg - 1)
        def _finalize():
            yv = acc_ref[...] * scale_ref[...] + bias_ref[...]   # folded BN
            yv = yv * jax.nn.sigmoid(yv)                         # SiLU
            o_ref[0] = yv.reshape(H, W, yv.shape[-1]).astype(o_ref.dtype)

    return kernel


def spp_pool_conv2_bn_silu(y_nhwc, w2, gamma, beta, mean, var,
                           kernel_sizes=(5, 9, 13), eps=1e-3,
                           matmul_dtype=jnp.bfloat16, out_dtype=jnp.float32):
    """Fused SPP (max pools + concat in VMEM) + 1x1 conv + BN + SiLU."""
    B, H, W, C = y_nhwc.shape
    n_pool = len(kernel_sizes)
    n_stage = n_pool + 1
    Cout = w2.shape[1]
    assert w2.shape[0] == n_stage * C

    # Cascade 5 -> 9 -> 13 style pyramids: pool_k(pool_k(x)) == pool_{2k-1}(x).
    base = kernel_sizes[0]
    cascade = all(k == base + i * (base - 1) for i, k in enumerate(kernel_sizes))
    if cascade:
        stage_ks = (base,) * n_pool
        stage_from_prev = (False,) + (True,) * (n_pool - 1)
    else:
        stage_ks = tuple(kernel_sizes)
        stage_from_prev = (False,) * n_pool
    max_pad = max(k // 2 for k in stage_ks)

    act_dt = y_nhwc.dtype
    neg = (float("-inf") if jnp.issubdtype(act_dt, jnp.floating)
           else int(jnp.iinfo(act_dt).min))

    # Channel-group reduction axis for the conv2 contraction (pooling is
    # per-channel independent, so groups need no halo).
    cg = 128 if (C > 128 and C % 128 == 0) else C
    n_cg = C // cg

    # Reorder w2 so group g's mini-concat [x_g | p1_g | ... | pP_g] maps onto a
    # contiguous (n_stage*cg, Cout) block: (stage, group, cg, Cout) -> (group, ...).
    w2r = (w2.reshape(n_stage, n_cg, cg, Cout)
             .transpose(1, 0, 2, 3)
             .reshape(n_cg, n_stage * cg, Cout))
    if matmul_dtype is not None:
        w2r = w2r.astype(matmul_dtype)

    scale, bias = _fold_bn(gamma, beta, mean, var, eps)
    scale = scale.reshape(1, Cout)
    bias = bias.reshape(1, Cout)

    budget = _vmem_budget_bytes()
    kernel = _make_spp_conv2_kernel(H, W, cg, stage_ks, stage_from_prev, neg,
                                    matmul_dtype, n_cg)
    # TODO(synk): for very large H*W add a row-block grid axis with a max_pad-row
    # halo so B==1 inference still feeds both v7x TensorCores.
    return pl.pallas_call(
        kernel,
        out_shape=jax.ShapeDtypeStruct((B, H, W, Cout), out_dtype),
        grid=(B, n_cg),
        in_specs=[
            pl.BlockSpec((1, H, W, cg), lambda b, g: (b, 0, 0, g)),
            pl.BlockSpec((1, n_stage * cg, Cout), lambda b, g: (g, 0, 0)),
            pl.BlockSpec((1, Cout), lambda b, g: (0, 0)),
            pl.BlockSpec((1, Cout), lambda b, g: (0, 0)),
        ],
        out_specs=pl.BlockSpec((1, H, W, Cout), lambda b, g: (b, 0, 0, 0)),
        scratch_shapes=[
            pltpu.VMEM((H + 2 * max_pad, W + 2 * max_pad, cg), act_dt),  # pad buf
            pltpu.VMEM((H * W, Cout), jnp.float32),                      # conv2 acc
        ],
        compiler_params=pltpu.CompilerParams(
            dimension_semantics=("parallel", "arbitrary"),
            vmem_limit_bytes=budget),
    )(y_nhwc, w2r, scale, bias)


# ---------------------------------------------------------------------------
# SPPBottleneck forward (NCHW in / NCHW out, matching the PyTorch module)
# ---------------------------------------------------------------------------
def spp_bottleneck(x_nchw, params, kernel_sizes=(5, 9, 13),
                   matmul_dtype=jnp.bfloat16):
    x = jnp.transpose(x_nchw, (0, 2, 3, 1))            # NCHW -> NHWC
    act_dtype = matmul_dtype if matmul_dtype is not None else x_nchw.dtype
    y = conv1x1_bn_silu(x, params["w1"], params["g1"], params["b1"],
                        params["m1"], params["v1"],
                        matmul_dtype=matmul_dtype, out_dtype=act_dtype)
    out = spp_pool_conv2_bn_silu(y, params["w2"], params["g2"], params["b2"],
                                 params["m2"], params["v2"],
                                 kernel_sizes=kernel_sizes,
                                 matmul_dtype=matmul_dtype,
                                 out_dtype=x_nchw.dtype)
    return jnp.transpose(out, (0, 3, 1, 2))            # NHWC -> NCHW


def init_params(key, in_channels, out_channels, kernel_sizes=(5, 9, 13)):
    mid = in_channels // 2
    conv2_ch = mid * (len(kernel_sizes) + 1)
    ks = jax.random.split(key, 6)
    # Conv weights stored as (Cin, Cout) (== transpose of PyTorch (Cout,Cin,1,1)).
    w1 = jax.random.normal(ks[0], (in_channels, mid), jnp.float32) * 0.1
    w2 = jax.random.normal(ks[1], (conv2_ch, out_channels), jnp.float32) * 0.1
    # BatchNorm params / running stats (inference mode), eps=1e-3 as in module.
    g1 = 1.0 + 0.1 * jax.random.normal(ks[2], (mid,), jnp.float32)
    b1 = 0.1 * jax.random.normal(ks[3], (mid,), jnp.float32)
    m1 = 0.05 * jax.random.normal(ks[4], (mid,), jnp.float32)
    v1 = jnp.abs(1.0 + 0.1 * jax.random.normal(ks[5], (mid,), jnp.float32))
    g2 = jnp.ones((out_channels,), jnp.float32)
    b2 = jnp.zeros((out_channels,), jnp.float32)
    m2 = jnp.zeros((out_channels,), jnp.float32)
    v2 = jnp.ones((out_channels,), jnp.float32)
    return dict(w1=w1, g1=g1, b1=b1, m1=m1, v1=v1,
                w2=w2, g2=g2, b2=b2, m2=m2, v2=v2)


# ---------------------------------------------------------------------------
# Pure-JAX f32 reference (for a loose correctness check of the bf16 kernels)
# ---------------------------------------------------------------------------
def _reference_spp_bottleneck(x, params, kernel_sizes=(5, 9, 13), eps=1e-3):
    def conv_bn_silu(z, w, g, b, m, v):
        y = jnp.einsum("bchw,cd->bdhw", z, w, precision="highest")
        s = g * lax.rsqrt(v + eps)
        y = y * s[None, :, None, None] + (b - m * s)[None, :, None, None]
        return y * jax.nn.sigmoid(y)

    y = conv_bn_silu(x, params["w1"], params["g1"], params["b1"],
                     params["m1"], params["v1"])
    feats = [y]
    for ks in kernel_sizes:
        pad = ks // 2
        feats.append(lax.reduce_window(
            y, -jnp.inf, lax.max, (1, 1, ks, ks), (1, 1, 1, 1),
            ((0, 0), (0, 0), (pad, pad), (pad, pad))))
    cat = jnp.concatenate(feats, axis=1)
    return conv_bn_silu(cat, params["w2"], params["g2"], params["b2"],
                        params["m2"], params["v2"])


if __name__ == "__main__":
    in_channels, out_channels = 4, 8
    B, H, W = 2, 16, 16
    key = jax.random.PRNGKey(0)
    kx, kp = jax.random.split(key)
    x = jax.random.normal(kx, (B, in_channels, H, W), jnp.float32)
    params = init_params(kp, in_channels, out_channels)

    fwd = jax.jit(spp_bottleneck)
    out = jax.block_until_ready(fwd(x, params))
    assert out.shape == (B, out_channels, H, W), out.shape
    assert bool(jnp.all(jnp.isfinite(out)))

    ref = _reference_spp_bottleneck(x, params)
    err = float(jnp.max(jnp.abs(out - ref)))
    assert err < 5e-2, f"max abs err vs f32 reference: {err}"
    print("KERNEL_OK")
</pallas_src>

<mosaic_0001>
module attributes {stable_mosaic.version = 11 : i64} {
  func.func @_conv_bn_silu_kernel(%arg0: i32, %arg1: memref<512x4xbf16, #tpu.memory_space<vmem>>, %arg2: memref<4x2xbf16, #tpu.memory_space<vmem>>, %arg3: memref<1x2xf32, #tpu.memory_space<vmem>>, %arg4: memref<1x2xf32, #tpu.memory_space<vmem>>, %arg5: memref<512x2xbf16, #tpu.memory_space<vmem>>) attributes {dimension_semantics = [#tpu.dimension_semantics<parallel>], iteration_bounds = array<i64: 1>, scalar_prefetch = 0 : i64, scratch_operands = 0 : i64, tpu.core_type = #tpu.core_type<tc>, window_params = [{transform_indices = @transform_0, window_bounds = array<i64: 512, 4>}, {pipeline_mode = #tpu.pipeline_mode<synchronous>, transform_indices = @transform_1, window_bounds = array<i64: 4, 2>}, {pipeline_mode = #tpu.pipeline_mode<synchronous>, transform_indices = @transform_2, window_bounds = array<i64: 1, 2>}, {pipeline_mode = #tpu.pipeline_mode<synchronous>, transform_indices = @transform_3, window_bounds = array<i64: 1, 2>}, {transform_indices = @transform_4, window_bounds = array<i64: 512, 2>}]} {
    %c0 = arith.constant 0 : index
    %c0_0 = arith.constant 0 : index
    %0 = vector.load %arg1[%c0, %c0_0] : memref<512x4xbf16, #tpu.memory_space<vmem>>, vector<512x4xbf16>
    %c0_1 = arith.constant 0 : index
    %c0_2 = arith.constant 0 : index
    %1 = vector.load %arg2[%c0_1, %c0_2] : memref<4x2xbf16, #tpu.memory_space<vmem>>, vector<4x2xbf16>
    %cst = arith.constant dense<0.000000e+00> : vector<512x2xf32>
    %2 = tpu.matmul %0, %1, %cst {dimension_numbers = #tpu.dot_dimension_numbers<[1], [0], [0], [1], [0, 0, 1, 1], [], []>} : vector<512x4xbf16>, vector<4x2xbf16>, vector<512x2xf32> -> vector<512x2xf32>
    %c0_3 = arith.constant 0 : index
    %c0_4 = arith.constant 0 : index
    %3 = vector.load %arg3[%c0_3, %c0_4] : memref<1x2xf32, #tpu.memory_space<vmem>>, vector<1x2xf32>
    %4 = vector.broadcast %3 : vector<1x2xf32> to vector<512x2xf32>
    %5 = arith.mulf %2, %4 : vector<512x2xf32>
    %c0_5 = arith.constant 0 : index
    %c0_6 = arith.constant 0 : index
    %6 = vector.load %arg4[%c0_5, %c0_6] : memref<1x2xf32, #tpu.memory_space<vmem>>, vector<1x2xf32>
    %7 = vector.broadcast %6 : vector<1x2xf32> to vector<512x2xf32>
    %8 = arith.addf %5, %7 : vector<512x2xf32>
    %9 = arith.negf %8 : vector<512x2xf32>
    %10 = math.exp %9 : vector<512x2xf32>
    %cst_7 = arith.constant 1.000000e+00 : f32
    %11 = vector.broadcast %cst_7 : f32 to vector<512x2xf32>
    %12 = arith.addf %11, %10 : vector<512x2xf32>
    %13 = arith.divf %11, %12 : vector<512x2xf32>
    %14 = arith.mulf %8, %13 : vector<512x2xf32>
    %15 = arith.truncf %14 : vector<512x2xf32> to vector<512x2xbf16>
    %c0_8 = arith.constant 0 : index
    %c0_9 = arith.constant 0 : index
    %16 = vector.load %arg5[%c0_8, %c0_9] : memref<512x2xbf16, #tpu.memory_space<vmem>>, vector<512x2xbf16>
    tpu.vector_store %arg5[%c0_8, %c0_9], %15 {strides = array<i32>} : memref<512x2xbf16, #tpu.memory_space<vmem>>, vector<512x2xbf16>,
    return
  }
  func.func @transform_0(%arg0: i32) -> (i32, i32) {
    %c0_i32 = arith.constant 0 : i32
    %c0_i32_0 = arith.constant 0 : i32
    return %arg0, %c0_i32 : i32, i32
  }
  func.func @transform_1(%arg0: i32) -> (i32, i32) {
    %c0_i32 = arith.constant 0 : i32
    %c0_i32_0 = arith.constant 0 : i32
    %c0_i32_1 = arith.constant 0 : i32
    return %c0_i32, %c0_i32_0 : i32, i32
  }
  func.func @transform_2(%arg0: i32) -> (i32, i32) {
    %c0_i32 = arith.constant 0 : i32
    %c0_i32_0 = arith.constant 0 : i32
    %c0_i32_1 = arith.constant 0 : i32
    return %c0_i32, %c0_i32_0 : i32, i32
  }
  func.func @transform_3(%arg0: i32) -> (i32, i32) {
    %c0_i32 = arith.constant 0 : i32
    %c0_i32_0 = arith.constant 0 : i32
    %c0_i32_1 = arith.constant 0 : i32
    return %c0_i32, %c0_i32_0 : i32, i32
  }
  func.func @transform_4(%arg0: i32) -> (i32, i32) {
    %c0_i32 = arith.constant 0 : i32
    %c0_i32_0 = arith.constant 0 : i32
    return %arg0, %c0_i32 : i32, i32
  }
}

module attributes {stable_mosaic.version = 11 : i64} {
  func.func @kernel(%arg0: i32, %arg1: i32, %arg2: memref<1x16x16x2xbf16, #tpu.memory_space<vmem>>, %arg3: memref<1x8x8xbf16, #tpu.memory_space<vmem>>, %arg4: memref<1x8xf32, #tpu.memory_space<vmem>>, %arg5: memref<1x8xf32, #tpu.memory_space<vmem>>, %arg6: memref<1x16x16x8xf32, #tpu.memory_space<vmem>>, %arg7: memref<20x20x2xbf16, #tpu.memory_space<vmem>>, %arg8: memref<256x8xf32, #tpu.memory_space<vmem>>) attributes {dimension_semantics = [#tpu.dimension_semantics<parallel>, #tpu.dimension_semantics<arbitrary>], iteration_bounds = array<i64: 2, 1>, scalar_prefetch = 0 : i64, scratch_operands = 2 : i64, tpu.core_type = #tpu.core_type<tc>, window_params = [{transform_indices = @transform_0, window_bounds = array<i64: 1, 16, 16, 2>}, {transform_indices = @transform_1, window_bounds = array<i64: 1, 8, 8>}, {pipeline_mode = #tpu.pipeline_mode<synchronous>, transform_indices = @transform_2, window_bounds = array<i64: 1, 8>}, {pipeline_mode = #tpu.pipeline_mode<synchronous>, transform_indices = @transform_3, window_bounds = array<i64: 1, 8>}, {transform_indices = @transform_4, window_bounds = array<i64: 1, 16, 16, 8>}]} {
    %c0_i32 = arith.constant 0 : i32
    %0 = arith.cmpi eq, %arg1, %c0_i32 : i32
    %1 = arith.extui %0 : i1 to i32
    %c0_i32_0 = arith.constant 0 : i32
    %2 = arith.cmpi ne, %1, %c0_i32_0 : i32
    scf.if %2 {
      %cst_101 = arith.constant 0.000000e+00 : f32
      %101 = vector.broadcast %cst_101 : f32 to vector<256x8xf32>
      %c0_102 = arith.constant 0 : index
      %c0_103 = arith.constant 0 : index
      %102 = vector.load %arg8[%c0_102, %c0_103] : memref<256x8xf32, #tpu.memory_space<vmem>>, vector<256x8xf32>
      tpu.vector_store %arg8[%c0_102, %c0_103], %101 {strides = array<i32>} : memref<256x8xf32, #tpu.memory_space<vmem>>, vector<256x8xf32>,
    } else {
    }
    %c0 = arith.constant 0 : index
    %c0_1 = arith.constant 0 : index
    %c0_2 = arith.constant 0 : index
    %c0_3 = arith.constant 0 : index
    %3 = vector.load %arg2[%c0, %c0_1, %c0_2, %c0_3] : memref<1x16x16x2xbf16, #tpu.memory_space<vmem>>, vector<1x16x16x2xbf16>
    %4 = vector.shape_cast %3 : vector<1x16x16x2xbf16> to vector<16x16x2xbf16>
    %5 = vector.shape_cast %4 : vector<16x16x2xbf16> to vector<256x2xbf16>
    %c0_4 = arith.constant 0 : index
    %c0_5 = arith.constant 0 : index
    %c0_6 = arith.constant 0 : index
    %6 = vector.load %arg3[%c0_4, %c0_5, %c0_6] : memref<1x8x8xbf16, #tpu.memory_space<vmem>>, vector<1x2x8xbf16>
    %7 = vector.shape_cast %6 : vector<1x2x8xbf16> to vector<2x8xbf16>
    %c0_7 = arith.constant 0 : index
    %c0_8 = arith.constant 0 : index
    %8 = vector.load %arg8[%c0_7, %c0_8] : memref<256x8xf32, #tpu.memory_space<vmem>>, vector<256x8xf32>
    %cst = arith.constant dense<0.000000e+00> : vector<256x8xf32>
    %9 = tpu.matmul %5, %7, %cst {dimension_numbers = #tpu.dot_dimension_numbers<[1], [0], [0], [1], [0, 0, 1, 1], [], []>} : vector<256x2xbf16>, vector<2x8xbf16>, vector<256x8xf32> -> vector<256x8xf32>
    %10 = arith.addf %8, %9 : vector<256x8xf32>
    %c0_9 = arith.constant 0 : index
    %c0_10 = arith.constant 0 : index
    %11 = vector.load %arg8[%c0_9, %c0_10] : memref<256x8xf32, #tpu.memory_space<vmem>>, vector<256x8xf32>
    tpu.vector_store %arg8[%c0_9, %c0_10], %10 {strides = array<i32>} : memref<256x8xf32, #tpu.memory_space<vmem>>, vector<256x8xf32>,
    %cst_11 = arith.constant 0xFF80 : bf16
    %12 = vector.broadcast %cst_11 : bf16 to vector<2x20x2xbf16>
    %c0_12 = arith.constant 0 : index
    %c0_13 = arith.constant 0 : index
    %c0_14 = arith.constant 0 : index
    %13 = vector.load %arg7[%c0_12, %c0_13, %c0_14] : memref<20x20x2xbf16, #tpu.memory_space<vmem>>, vector<2x20x2xbf16>
    tpu.vector_store %arg7[%c0_12, %c0_13, %c0_14], %12 {strides = array<i32>} : memref<20x20x2xbf16, #tpu.memory_space<vmem>>, vector<2x20x2xbf16>,
    %cst_15 = arith.constant 0xFF80 : bf16
    %14 = vector.broadcast %cst_15 : bf16 to vector<2x20x2xbf16>
    %c18 = arith.constant 18 : index
    %c0_16 = arith.constant 0 : index
    %c0_17 = arith.constant 0 : index
    %15 = vector.load %arg7[%c18, %c0_16, %c0_17] : memref<20x20x2xbf16, #tpu.memory_space<vmem>>, vector<2x20x2xbf16>
    tpu.vector_store %arg7[%c18, %c0_16, %c0_17], %14 {strides = array<i32>} : memref<20x20x2xbf16, #tpu.memory_space<vmem>>, vector<2x20x2xbf16>,
    %cst_18 = arith.constant 0xFF80 : bf16
    %16 = vector.broadcast %cst_18 : bf16 to vector<16x2x2xbf16>
    %c2 = arith.constant 2 : index
    %c0_19 = arith.constant 0 : index
    %c0_20 = arith.constant 0 : index
    %17 = vector.load %arg7[%c2, %c0_19, %c0_20] : memref<20x20x2xbf16, #tpu.memory_space<vmem>>, vector<16x2x2xbf16>
    tpu.vector_store %arg7[%c2, %c0_19, %c0_20], %16 {strides = array<i32>} : memref<20x20x2xbf16, #tpu.memory_space<vmem>>, vector<16x2x2xbf16>,
    %cst_21 = arith.constant 0xFF80 : bf16
    %18 = vector.broadcast %cst_21 : bf16 to vector<16x2x2xbf16>
    %c2_22 = arith.constant 2 : index
    %c18_23 = arith.constant 18 : index
    %c0_24 = arith.constant 0 : index
    %19 = vector.load %arg7[%c2_22, %c18_23, %c0_24] : memref<20x20x2xbf16, #tpu.memory_space<vmem>>, vector<16x2x2xbf16>
    tpu.vector_store %arg7[%c2_22, %c18_23, %c0_24], %18 {strides = array<i32>} : memref<20x20x2xbf16, #tpu.memory_space<vmem>>, vector<16x2x2xbf16>,
    %c2_25 = arith.constant 2 : index
    %c2_26 = arith.constant 2 : index
    %c0_27 = arith.constant 0 : index
    %20 = vector.load %arg7[%c2_25, %c2_26, %c0_27] : memref<20x20x2xbf16, #tpu.memory_space<vmem>>, vector<16x16x2xbf16>
    tpu.vector_store %arg7[%c2_25, %c2_26, %c0_27], %4 {strides = array<i32>} : memref<20x20x2xbf16, #tpu.memory_space<vmem>>, vector<16x16x2xbf16>,
    %c0_28 = arith.constant 0 : index
    %c0_29 = arith.constant 0 : index
    %c0_30 = arith.constant 0 : index
    %21 = vector.load %arg7[%c0_28, %c0_29, %c0_30] : memref<20x20x2xbf16, #tpu.memory_space<vmem>>, vector<20x16x2xbf16>
    %c0_31 = arith.constant 0 : index
    %c1 = arith.constant 1 : index
    %c0_32 = arith.constant 0 : index
    %22 = vector.load %arg7[%c0_31, %c1, %c0_32] : memref<20x20x2xbf16, #tpu.memory_space<vmem>>, vector<20x16x2xbf16>
    %23 = arith.maximumf %21, %22 : vector<20x16x2xbf16>
    %c0_33 = arith.constant 0 : index
    %c2_34 = arith.constant 2 : index
    %c0_35 = arith.constant 0 : index
    %24 = vector.load %arg7[%c0_33, %c2_34, %c0_35] : memref<20x20x2xbf16, #tpu.memory_space<vmem>>, vector<20x16x2xbf16>
    %25 = arith.maximumf %23, %24 : vector<20x16x2xbf16>
    %c0_36 = arith.constant 0 : index
    %c3 = arith.constant 3 : index
    %c0_37 = arith.constant 0 : index
    %26 = vector.load %arg7[%c0_36, %c3, %c0_37] : memref<20x20x2xbf16, #tpu.memory_space<vmem>>, vector<20x16x2xbf16>
    %27 = arith.maximumf %25, %26 : vector<20x16x2xbf16>
    %c0_38 = arith.constant 0 : index
    %c4 = arith.constant 4 : index
    %c0_39 = arith.constant 0 : index
    %28 = vector.load %arg7[%c0_38, %c4, %c0_39] : memref<20x20x2xbf16, #tpu.memory_space<vmem>>, vector<20x16x2xbf16>
    %29 = arith.maximumf %27, %28 : vector<20x16x2xbf16>
    %30 = vector.extract_strided_slice %29 {offsets = [0, 0, 0], sizes = [16, 16, 2], strides = [1, 1, 1]} : vector<20x16x2xbf16> to vector<16x16x2xbf16>
    %31 = vector.extract_strided_slice %29 {offsets = [1, 0, 0], sizes = [16, 16, 2], strides = [1, 1, 1]} : vector<20x16x2xbf16> to vector<16x16x2xbf16>
    %32 = arith.maximumf %30, %31 : vector<16x16x2xbf16>
    %33 = vector.extract_strided_slice %29 {offsets = [2, 0, 0], sizes = [16, 16, 2], strides = [1, 1, 1]} : vector<20x16x2xbf16> to vector<16x16x2xbf16>
    %34 = arith.maximumf %32, %33 : vector<16x16x2xbf16>
    %35 = vector.extract_strided_slice %29 {offsets = [3, 0, 0], sizes = [16, 16, 2], strides = [1, 1, 1]} : vector<20x16x2xbf16> to vector<16x16x2xbf16>
    %36 = arith.maximumf %34, %35 : vector<16x16x2xbf16>
    %37 = vector.extract_strided_slice %29 {offsets = [4, 0, 0], sizes = [16, 16, 2], strides = [1, 1, 1]} : vector<20x16x2xbf16> to vector<16x16x2xbf16>
    %38 = arith.maximumf %36, %37 : vector<16x16x2xbf16>
    %39 = vector.shape_cast %38 : vector<16x16x2xbf16> to vector<256x2xbf16>
    %c0_40 = arith.constant 0 : index
    %c2_41 = arith.constant 2 : index
    %c0_42 = arith.constant 0 : index
    %40 = vector.load %arg3[%c0_40, %c2_41, %c0_42] : memref<1x8x8xbf16, #tpu.memory_space<vmem>>, vector<1x2x8xbf16>
    %41 = vector.shape_cast %40 : vector<1x2x8xbf16> to vector<2x8xbf16>
    %c0_43 = arith.constant 0 : index
    %c0_44 = arith.constant 0 : index
    %42 = vector.load %arg8[%c0_43, %c0_44] : memref<256x8xf32, #tpu.memory_space<vmem>>, vector<256x8xf32>
    %cst_45 = arith.constant dense<0.000000e+00> : vector<256x8xf32>
    %43 = tpu.matmul %39, %41, %cst_45 {dimension_numbers = #tpu.dot_dimension_numbers<[1], [0], [0], [1], [0, 0, 1, 1], [], []>} : vector<256x2xbf16>, vector<2x8xbf16>, vector<256x8xf32> -> vector<256x8xf32>
    %44 = arith.addf %42, %43 : vector<256x8xf32>
    %c0_46 = arith.constant 0 : index
    %c0_47 = arith.constant 0 : index
    %45 = vector.load %arg8[%c0_46, %c0_47] : memref<256x8xf32, #tpu.memory_space<vmem>>, vector<256x8xf32>
    tpu.vector_store %arg8[%c0_46, %c0_47], %44 {strides = array<i32>} : memref<256x8xf32, #tpu.memory_space<vmem>>, vector<256x8xf32>,
    %c2_48 = arith.constant 2 : index
    %c2_49 = arith.constant 2 : index
    %c0_50 = arith.constant 0 : index
    %46 = vector.load %arg7[%c2_48, %c2_49, %c0_50] : memref<20x20x2xbf16, #tpu.memory_space<vmem>>, vector<16x16x2xbf16>
    tpu.vector_store %arg7[%c2_48, %c2_49, %c0_50], %38 {strides = array<i32>} : memref<20x20x2xbf16, #tpu.memory_space<vmem>>, vector<16x16x2xbf16>,
    %c0_51 = arith.constant 0 : index
    %c0_52 = arith.constant 0 : index
    %c0_53 = arith.constant 0 : index
    %47 = vector.load %arg7[%c0_51, %c0_52, %c0_53] : memref<20x20x2xbf16, #tpu.memory_space<vmem>>, vector<20x16x2xbf16>
    %c0_54 = arith.constant 0 : index
    %c1_55 = arith.constant 1 : index
    %c0_56 = arith.constant 0 : index
    %48 = vector.load %arg7[%c0_54, %c1_55, %c0_56] : memref<20x20x2xbf16, #tpu.memory_space<vmem>>, vector<20x16x2xbf16>
    %49 = arith.maximumf %47, %48 : vector<20x16x2xbf16>
    %c0_57 = arith.constant 0 : index
    %c2_58 = arith.constant 2 : index
    %c0_59 = arith.constant 0 : index
    %50 = vector.load %arg7[%c0_57, %c2_58, %c0_59] : memref<20x20x2xbf16, #tpu.memory_space<vmem>>, vector<20x16x2xbf16>
    %51 = arith.maximumf %49, %50 : vector<20x16x2xbf16>
    %c0_60 = arith.constant 0 : index
    %c3_61 = arith.constant 3 : index
    %c0_62 = arith.constant 0 : index
    %52 = vector.load %arg7[%c0_60, %c3_61, %c0_62] : memref<20x20x2xbf16, #tpu.memory_space<vmem>>, vector<20x16x2xbf16>
    %53 = arith.maximumf %51, %52 : vector<20x16x2xbf16>
    %c0_63 = arith.constant 0 : index
    %c4_64 = arith.constant 4 : index
    %c0_65 = arith.constant 0 : index
    %54 = vector.load %arg7[%c0_63, %c4_64, %c0_65] : memref<20x20x2xbf16, #tpu.memory_space<vmem>>, vector<20x16x2xbf16>
    %55 = arith.maximumf %53, %54 : vector<20x16x2xbf16>
    %56 = vector.extract_strided_slice %55 {offsets = [0, 0, 0], sizes = [16, 16, 2], strides = [1, 1, 1]} : vector<20x16x2xbf16> to vector<16x16x2xbf16>
    %57 = vector.extract_strided_slice %55 {offsets = [1, 0, 0], sizes = [16, 16, 2], strides = [1, 1, 1]} : vector<20x16x2xbf16> to vector<16x16x2xbf16>
    %58 = arith.maximumf %56, %57 : vector<16x16x2xbf16>
    %59 = vector.extract_strided_slice %55 {offsets = [2, 0, 0], sizes = [16, 16, 2], strides = [1, 1, 1]} : vector<20x16x2xbf16> to vector<16x16x2xbf16>
    %60 = arith.maximumf %58, %59 : vector<16x16x2xbf16>
    %61 = vector.extract_strided_slice %55 {offsets = [3, 0, 0], sizes = [16, 16, 2], strides = [1, 1, 1]} : vector<20x16x2xbf16> to vector<16x16x2xbf16>
    %62 = arith.maximumf %60, %61 : vector<16x16x2xbf16>
    %63 = vector.extract_strided_slice %55 {offsets = [4, 0, 0], sizes = [16, 16, 2], strides = [1, 1, 1]} : vector<20x16x2xbf16> to vector<16x16x2xbf16>
    %64 = arith.maximumf %62, %63 : vector<16x16x2xbf16>
    %65 = vector.shape_cast %64 : vector<16x16x2xbf16> to vector<256x2xbf16>
    %c0_66 = arith.constant 0 : index
    %c4_67 = arith.constant 4 : index
    %c0_68 = arith.constant 0 : index
    %66 = vector.load %arg3[%c0_66, %c4_67, %c0_68] : memref<1x8x8xbf16, #tpu.memory_space<vmem>>, vector<1x2x8xbf16>
    %67 = vector.shape_cast %66 : vector<1x2x8xbf16> to vector<2x8xbf16>
    %c0_69 = arith.constant 0 : index
    %c0_70 = arith.constant 0 : index
    %68 = vector.load %arg8[%c0_69, %c0_70] : memref<256x8xf32, #tpu.memory_space<vmem>>, vector<256x8xf32>
    %cst_71 = arith.constant dense<0.000000e+00> : vector<256x8xf32>
    %69 = tpu.matmul %65, %67, %cst_71 {dimension_numbers = #tpu.dot_dimension_numbers<[1], [0], [0], [1], [0, 0, 1, 1], [], []>} : vector<256x2xbf16>, vector<2x8xbf16>, vector<256x8xf32> -> vector<256x8xf32>
    %70 = arith.addf %68, %69 : vector<256x8xf32>
    %c0_72 = arith.constant 0 : index
    %c0_73 = arith.constant 0 : index
    %71 = vector.load %arg8[%c0_72, %c0_73] : memref<256x8xf32, #tpu.memory_space<vmem>>, vector<256x8xf32>
    tpu.vector_store %arg8[%c0_72, %c0_73], %70 {strides = array<i32>} : memref<256x8xf32, #tpu.memory_space<vmem>>, vector<256x8xf32>,
    %c2_74 = arith.constant 2 : index
    %c2_75 = arith.constant 2 : index
    %c0_76 = arith.constant 0 : index
    %72 = vector.load %arg7[%c2_74, %c2_75, %c0_76] : memref<20x20x2xbf16, #tpu.memory_space<vmem>>, vector<16x16x2xbf16>
    tpu.vector_store %arg7[%c2_74, %c2_75, %c0_76], %64 {strides = array<i32>} : memref<20x20x2xbf16, #tpu.memory_space<vmem>>, vector<16x16x2xbf16>,
    %c0_77 = arith.constant 0 : index
    %c0_78 = arith.constant 0 : index
    %c0_79 = arith.constant 0 : index
    %73 = vector.load %arg7[%c0_77, %c0_78, %c0_79] : memref<20x20x2xbf16, #tpu.memory_space<vmem>>, vector<20x16x2xbf16>
    %c0_80 = arith.constant 0 : index
    %c1_81 = arith.constant 1 : index
    %c0_82 = arith.constant 0 : index
    %74 = vector.load %arg7[%c0_80, %c1_81, %c0_82] : memref<20x20x2xbf16, #tpu.memory_space<vmem>>, vector<20x16x2xbf16>
    %75 = arith.maximumf %73, %74 : vector<20x16x2xbf16>
    %c0_83 = arith.constant 0 : index
    %c2_84 = arith.constant 2 : index
    %c0_85 = arith.constant 0 : index
    %76 = vector.load %arg7[%c0_83, %c2_84, %c0_85] : memref<20x20x2xbf16, #tpu.memory_space<vmem>>, vector<20x16x2xbf16>
    %77 = arith.maximumf %75, %76 : vector<20x16x2xbf16>
    %c0_86 = arith.constant 0 : index
    %c3_87 = arith.constant 3 : index
    %c0_88 = arith.constant 0 : index
    %78 = vector.load %arg7[%c0_86, %c3_87, %c0_88] : memref<20x20x2xbf16, #tpu.memory_space<vmem>>, vector<20x16x2xbf16>
    %79 = arith.maximumf %77, %78 : vector<20x16x2xbf16>
    %c0_89 = arith.constant 0 : index
    %c4_90 = arith.constant 4 : index
    %c0_91 = arith.constant 0 : index
    %80 = vector.load %arg7[%c0_89, %c4_90, %c0_91] : memref<20x20x2xbf16, #tpu.memory_space<vmem>>, vector<20x16x2xbf16>
    %81 = arith.maximumf %79, %80 : vector<20x16x2xbf16>
    %82 = vector.extract_strided_slice %81 {offsets = [0, 0, 0], sizes = [16, 16, 2], strides = [1, 1, 1]} : vector<20x16x2xbf16> to vector<16x16x2xbf16>
    %83 = vector.extract_strided_slice %81 {offsets = [1, 0, 0], sizes = [16, 16, 2], strides = [1, 1, 1]} : vector<20x16x2xbf16> to vector<16x16x2xbf16>
    %84 = arith.maximumf %82, %83 : vector<16x16x2xbf16>
    %85 = vector.extract_strided_slice %81 {offsets = [2, 0, 0], sizes = [16, 16, 2], strides = [1, 1, 1]} : vector<20x16x2xbf16> to vector<16x16x2xbf16>
    %86 = arith.maximumf %84, %85 : vector<16x16x2xbf16>
    %87 = vector.extract_strided_slice %81 {offsets = [3, 0, 0], sizes = [16, 16, 2], strides = [1, 1, 1]} : vector<20x16x2xbf16> to vector<16x16x2xbf16>
    %88 = arith.maximumf %86, %87 : vector<16x16x2xbf16>
    %89 = vector.extract_strided_slice %81 {offsets = [4, 0, 0], sizes = [16, 16, 2], strides = [1, 1, 1]} : vector<20x16x2xbf16> to vector<16x16x2xbf16>
    %90 = arith.maximumf %88, %89 : vector<16x16x2xbf16>
    %91 = vector.shape_cast %90 : vector<16x16x2xbf16> to vector<256x2xbf16>
    %c0_92 = arith.constant 0 : index
    %c6 = arith.constant 6 : index
    %c0_93 = arith.constant 0 : index
    %92 = vector.load %arg3[%c0_92, %c6, %c0_93] : memref<1x8x8xbf16, #tpu.memory_space<vmem>>, vector<1x2x8xbf16>
    %93 = vector.shape_cast %92 : vector<1x2x8xbf16> to vector<2x8xbf16>
    %c0_94 = arith.constant 0 : index
    %c0_95 = arith.constant 0 : index
    %94 = vector.load %arg8[%c0_94, %c0_95] : memref<256x8xf32, #tpu.memory_space<vmem>>, vector<256x8xf32>
    %cst_96 = arith.constant dense<0.000000e+00> : vector<256x8xf32>
    %95 = tpu.matmul %91, %93, %cst_96 {dimension_numbers = #tpu.dot_dimension_numbers<[1], [0], [0], [1], [0, 0, 1, 1], [], []>} : vector<256x2xbf16>, vector<2x8xbf16>, vector<256x8xf32> -> vector<256x8xf32>
    %96 = arith.addf %94, %95 : vector<256x8xf32>
    %c0_97 = arith.constant 0 : index
    %c0_98 = arith.constant 0 : index
    %97 = vector.load %arg8[%c0_97, %c0_98] : memref<256x8xf32, #tpu.memory_space<vmem>>, vector<256x8xf32>
    tpu.vector_store %arg8[%c0_97, %c0_98], %96 {strides = array<i32>} : memref<256x8xf32, #tpu.memory_space<vmem>>, vector<256x8xf32>,
    %c0_i32_99 = arith.constant 0 : i32
    %98 = arith.cmpi eq, %arg1, %c0_i32_99 : i32
    %99 = arith.extui %98 : i1 to i32
    %c0_i32_100 = arith.constant 0 : i32
    %100 = arith.cmpi ne, %99, %c0_i32_100 : i32
    scf.if %100 {
      %c0_101 = arith.constant 0 : index
      %c0_102 = arith.constant 0 : index
      %101 = vector.load %arg8[%c0_101, %c0_102] : memref<256x8xf32, #tpu.memory_space<vmem>>, vector<256x8xf32>
      %c0_103 = arith.constant 0 : index
      %c0_104 = arith.constant 0 : index
      %102 = vector.load %arg4[%c0_103, %c0_104] : memref<1x8xf32, #tpu.memory_space<vmem>>, vector<1x8xf32>
      %103 = vector.broadcast %102 : vector<1x8xf32> to vector<256x8xf32>
      %104 = arith.mulf %101, %103 : vector<256x8xf32>
      %c0_105 = arith.constant 0 : index
      %c0_106 = arith.constant 0 : index
      %105 = vector.load %arg5[%c0_105, %c0_106] : memref<1x8xf32, #tpu.memory_space<vmem>>, vector<1x8xf32>
      %106 = vector.broadcast %105 : vector<1x8xf32> to vector<256x8xf32>
      %107 = arith.addf %104, %106 : vector<256x8xf32>
      %108 = arith.negf %107 : vector<256x8xf32>
      %109 = math.exp %108 : vector<256x8xf32>
      %cst_107 = arith.constant 1.000000e+00 : f32
      %110 = vector.broadcast %cst_107 : f32 to vector<256x8xf32>
      %111 = arith.addf %110, %109 : vector<256x8xf32>
      %112 = arith.divf %110, %111 : vector<256x8xf32>
      %113 = arith.mulf %107, %112 : vector<256x8xf32>
      %114 = vector.shape_cast %113 : vector<256x8xf32> to vector<16x16x8xf32>
      %c0_108 = arith.constant 0 : index
      %c0_109 = arith.constant 0 : index
      %c0_110 = arith.constant 0 : index
      %c0_111 = arith.constant 0 : index
      %115 = vector.load %arg6[%c0_108, %c0_109, %c0_110, %c0_111] : memref<1x16x16x8xf32, #tpu.memory_space<vmem>>, vector<1x16x16x8xf32>
      %116 = vector.shape_cast %115 : vector<1x16x16x8xf32> to vector<16x16x8xf32>
      %117 = vector.shape_cast %114 : vector<16x16x8xf32> to vector<1x16x16x8xf32>
      tpu.vector_store %arg6[%c0_108, %c0_109, %c0_110, %c0_111], %117 {strides = array<i32>} : memref<1x16x16x8xf32, #tpu.memory_space<vmem>>, vector<1x16x16x8xf32>,
    } else {
    }
    return
  }
  func.func @transform_0(%arg0: i32, %arg1: i32) -> (i32, i32, i32, i32) {
    %c0_i32 = arith.constant 0 : i32
    %c0_i32_0 = arith.constant 0 : i32
    %c0_i32_1 = arith.constant 0 : i32
    return %arg0, %c0_i32, %c0_i32_0, %arg1 : i32, i32, i32, i32
  }
  func.func @transform_1(%arg0: i32, %arg1: i32) -> (i32, i32, i32) {
    %c0_i32 = arith.constant 0 : i32
    %c0_i32_0 = arith.constant 0 : i32
    %c0_i32_1 = arith.constant 0 : i32
    return %arg1, %c0_i32, %c0_i32_0 : i32, i32, i32
  }
  func.func @transform_2(%arg0: i32, %arg1: i32) -> (i32, i32) {
    %c0_i32 = arith.constant 0 : i32
    %c0_i32_0 = arith.constant 0 : i32
    %c0_i32_1 = arith.constant 0 : i32
    return %c0_i32, %c0_i32_0 : i32, i32
  }
  func.func @transform_3(%arg0: i32, %arg1: i32) -> (i32, i32) {
    %c0_i32 = arith.constant 0 : i32
    %c0_i32_0 = arith.constant 0 : i32
    %c0_i32_1 = arith.constant 0 : i32
    return %c0_i32, %c0_i32_0 : i32, i32
  }
  func.func @transform_4(%arg0: i32, %arg1: i32) -> (i32, i32, i32, i32) {
    %c0_i32 = arith.constant 0 : i32
    %c0_i32_0 = arith.constant 0 : i32
    %c0_i32_1 = arith.constant 0 : i32
    %c0_i32_2 = arith.constant 0 : i32
    return %arg0, %c0_i32, %c0_i32_0, %c0_i32_1 : i32, i32, i32, i32
  }
}

</mosaic_0001>

<bundles_post_ra>
// kernel: spp_bottleneck.2
= control target key start
LH: loop header
LB: loop body
LE: loop exit
PB: predicated region body
PF: predicated region fallthrough
CT: control target
= control target key end

     0   :  { %vm340_vm0 = vcmask 1041408   ;;  %vm243_vm1 = vcmask 31744   ;;  %vm1479_vm2 = vcmask 11264   ;;  %s3090_s1 = inlined_call_operand.vmem [shape: bf16[4,2], index: 1, kind: input, shape index: {}]   ;;  %s3091_s0 = inlined_call_operand.vmem [shape: bf16[512,4], index: 0, kind: input, shape index: {}]   ;;  %s3092_s2 = inlined_call_operand.vmem [shape: f32[1,2], index: 2, kind: input, shape index: {}]   ;;  %s3093_s3 = inlined_call_operand.vmem [shape: f32[1,2], index: 3, kind: input, shape index: {}]   ;;  %s3094_s4 = inlined_call_operand.vmem [shape: bf16[512,2], index: 4, kind: output, shape index: {}]  }
   0x1   :  { %v82_v0 = vld [vmem:[%s3090_s1] sm:$0x3]  ;;  %v1911_v4 = vld [vmem:[%s3091_s0 + $0x8] sm:$0xff]   ;;  %v1913_v6 = vld [vmem:[%s3091_s0 + $0x10] sm:$0xff]  }
   0x2   :  { %1907 = vmatprep.subr.msk.bf16.mxu0 %vm340_vm0, %v82_v0  ;;  %1908 = vmatprep.subr.msk.bf16.mxu1 %vm340_vm0, %v82_v0  ;;  %v342_v1 = vsel %vm340_vm0, %v82_v0, 0  ;;  %v1909_v2 = vld [vmem:[%s3091_s0] sm:$0xff]   ;;  %v1912_v5 = vld [vmem:[%s3091_s0 + $0x88] sm:$0xff]   ;;  %v1914_v7 = vld [vmem:[%s3091_s0 + $0x90] sm:$0xff]  }
   0x3   :  { %1840 = vmatpush3.bf16.msra.mxu0 %v342_v1  ;;  %1906 = vmatpush3.bf16.msra.mxu1 %v342_v1  ;;  %v1910_v3 = vld [vmem:[%s3091_s0 + $0x80] sm:$0xff]   ;;  %v1915_v8 = vld [vmem:[%s3091_s0 + $0x18] sm:$0xff]   ;;  %v1919_v12 = vld [vmem:[%s3091_s0 + $0x28] sm:$0xff]  }
   0x4   :  { %1841 = vmatprep.mubr.msk.bf16.mxu0 %vm243_vm1, %v1909_v2  ;;  %1873 = vmatprep.mubr.msk.bf16.mxu1 %vm243_vm1, %v1910_v3  ;;  %v1916_v9 = vld [vmem:[%s3091_s0 + $0x98] sm:$0xff]   ;;  %v1917_v10 = vld [vmem:[%s3091_s0 + $0x20] sm:$0xff]   ;;  %v1920_v13 = vld [vmem:[%s3091_s0 + $0xa8] sm:$0xff]  }
   0x5   :  { %v1918_v11 = vld [vmem:[%s3091_s0 + $0xa0] sm:$0xff]   ;;  %v1921_v14 = vld [vmem:[%s3091_s0 + $0x30] sm:$0xff]   ;;  %v1923_v16 = vld [vmem:[%s3091_s0 + $0x38] sm:$0xff]  }
   0x6   :  { %1842 = vmatmul.mubr.msk.bf16.vlgmr.msra.gmra.mxu0 %vm243_vm1, %v1911_v4  ;;  %1874 = vmatmul.mubr.msk.bf16.vlgmr.msra.gmra.mxu1 %vm243_vm1, %v1912_v5  ;;  %v1922_v15 = vld [vmem:[%s3091_s0 + $0xb0] sm:$0xff]   ;;  %v1924_v17 = vld [vmem:[%s3091_s0 + $0xb8] sm:$0xff]   ;;  %v1925_v18 = vld [vmem:[%s3091_s0 + $0x40] sm:$0xff]  }
   0x7   :  { %1845 = vmatprep.mubr.msk.bf16.mxu0 %vm243_vm1, %v1913_v6  ;;  %1877 = vmatprep.mubr.msk.bf16.mxu1 %vm243_vm1, %v1914_v7  ;;  %v1926_v19 = vld [vmem:[%s3091_s0 + $0xc0] sm:$0xff]   ;;  %v1927_v20 = vld [vmem:[%s3091_s0 + $0x48] sm:$0xff]   ;;  %v1929_v22 = vld [vmem:[%s3091_s0 + $0x50] sm:$0xff]  }
   0x8   :  { %v1928_v21 = vld [vmem:[%s3091_s0 + $0xc8] sm:$0xff]   ;;  %v1930_v23 = vld [vmem:[%s3091_s0 + $0xd0] sm:$0xff]   ;;  %v1931_v24 = vld [vmem:[%s3091_s0 + $0x58] sm:$0xff]  }
   0x9   :  { %v1932_v25 = vld [vmem:[%s3091_s0 + $0xd8] sm:$0xff]   ;;  %v1933_v26 = vld [vmem:[%s3091_s0 + $0x60] sm:$0xff]   ;;  %v1935_v28 = vld [vmem:[%s3091_s0 + $0x68] sm:$0xff]  }
   0xa   :  { %v1934_v27 = vld [vmem:[%s3091_s0 + $0xe0] sm:$0xff]   ;;  %v1936_v29 = vld [vmem:[%s3091_s0 + $0xe8] sm:$0xff]   ;;  %v1937_v30 = vld [vmem:[%s3091_s0 + $0x70] sm:$0xff]  }
   0xb   :  { %v1938_v31 = vld [vmem:[%s3091_s0 + $0xf0] sm:$0xff]   ;;  %v1939_v32 = vld [vmem:[%s3091_s0 + $0x78] sm:$0xff]   ;;  %v2358_v34 = vld [vmem:[%s3092_s2] ss:$0 sm:$0xff] }
   0xc   :  { %v1940_v33 = vld [vmem:[%s3091_s0 + $0xf8] sm:$0xff]   ;;  %v2363_v36 = vld [vmem:[%s3093_s3] ss:$0 sm:$0xff] }
   0xe   :  { %1846 = vmatmul.mubr.msk.bf16.gmra.mxu0 %vm243_vm1, %v1915_v8  ;;  %1878 = vmatmul.mubr.msk.bf16.gmra.mxu1 %vm243_vm1, %v1916_v9 }
   0xf   :  { %1849 = vmatprep.mubr.msk.bf16.mxu0 %vm243_vm1, %v1917_v10  ;;  %1881 = vmatprep.mubr.msk.bf16.mxu1 %vm243_vm1, %v1918_v11 }
  0x16   :  { %1850 = vmatmul.mubr.msk.bf16.gmra.mxu0 %vm243_vm1, %v1919_v12  ;;  %1882 = vmatmul.mubr.msk.bf16.gmra.mxu1 %vm243_vm1, %v1920_v13 }
  0x17   :  { %1853 = vmatprep.mubr.msk.bf16.mxu0 %vm243_vm1, %v1921_v14  ;;  %1885 = vmatprep.mubr.msk.bf16.mxu1 %vm243_vm1, %v1922_v15 }
  0x1e   :  { %1854 = vmatmul.mubr.msk.bf16.gmra.mxu0 %vm243_vm1, %v1923_v16  ;;  %1886 = vmatmul.mubr.msk.bf16.gmra.mxu1 %vm243_vm1, %v1924_v17 }
  0x1f   :  { %1857 = vmatprep.mubr.msk.bf16.mxu0 %vm243_vm1, %v1925_v18  ;;  %1889 = vmatprep.mubr.msk.bf16.mxu1 %vm243_vm1, %v1926_v19 }
  0x26   :  { %1858 = vmatmul.mubr.msk.bf16.gmra.mxu0 %vm243_vm1, %v1927_v20  ;;  %1890 = vmatmul.mubr.msk.bf16.gmra.mxu1 %vm243_vm1, %v1928_v21 }
  0x27   :  { %1861 = vmatprep.mubr.msk.bf16.mxu0 %vm243_vm1, %v1929_v22  ;;  %1893 = vmatprep.mubr.msk.bf16.mxu1 %vm243_vm1, %v1930_v23 }
  0x2e   :  { %1862 = vmatmul.mubr.msk.bf16.gmra.mxu0 %vm243_vm1, %v1931_v24  ;;  %1894 = vmatmul.mubr.msk.bf16.gmra.mxu1 %vm243_vm1, %v1932_v25 }
  0x2f   :  { %1865 = vmatprep.mubr.msk.bf16.mxu0 %vm243_vm1, %v1933_v26  ;;  %1897 = vmatprep.mubr.msk.bf16.mxu1 %vm243_vm1, %v1934_v27 }
  0x36   :  { %1866 = vmatmul.mubr.msk.bf16.gmra.mxu0 %vm243_vm1, %v1935_v28  ;;  %1898 = vmatmul.mubr.msk.bf16.gmra.mxu1 %vm243_vm1, %v1936_v29 }
  0x37   :  { %1869 = vmatprep.mubr.msk.bf16.mxu0 %vm243_vm1, %v1937_v30  ;;  %1901 = vmatprep.mubr.msk.bf16.mxu1 %vm243_vm1, %v1938_v31 }
  0x3e   :  { %1870 = vmatmul.mubr.msk.bf16.gmra.mxu0 %vm243_vm1, %v1939_v32  ;;  %1902 = vmatmul.mubr.msk.bf16.gmra.mxu1 %vm243_vm1, %v1940_v33 }
  0xc6   :  { %v1843_v35 = vpop.f32.mrf.mxu0  ;;  %v1875_v38 = vpop.f32.mrf.mxu1 }
  0xc7   :  { %v642_v37 = vmul.f32 %v1843_v35, %v2358_v34  ;;  %v674_v39 = vmul.f32 %v1875_v38, %v2358_v34 }
  0xc8   :  { %v378_v40 = vpop.f32.mrf.mxu0  ;;  %v506_v43 = vpop.f32.mrf.mxu1 }
  0xc9   :  { %v2368_v41 = vadd.f32 %v2363_v36, %v642_v37  ;;  %v640_v42 = vmul.f32 %v2358_v34, %v378_v40  ;;  %v2372_v44 = vadd.f32 %v2363_v36, %v674_v39  ;;  %v672_v45 = vmul.f32 %v2358_v34, %v506_v43 }
  0xca   :  { %v1844_v46 = vpop.f32.mrf.mxu0  ;;  %v1876_v50 = vpop.f32.mrf.mxu1 }
  0xcb   :  { %v1616_v47 = vmul.f32 -1.442695, %v2368_v41  ;;  %v2377_v48 = vadd.f32 %v2363_v36, %v640_v42  ;;  %v643_v49 = vmul.f32 %v1844_v46, %v2358_v34  ;;  %v1648_v51 = vmul.f32 -1.442695, %v2372_v44 }
  0xcc   :  { %v2382_v52 = vadd.f32 %v2363_v36, %v672_v45  ;;  %v675_v53 = vmul.f32 %v1876_v50, %v2358_v34  ;;  %v381_v54 = vpop.f32.mrf.mxu0  ;;  %v509_v58 = vpop.f32.mrf.mxu1 }
  0xcd   :  { %1941 = vpow2.f32 %v1616_v47  ;;  %v1614_v55 = vmul.f32 -1.442695, %v2377_v48  ;;  %v2387_v56 = vadd.f32 %v2363_v36, %v643_v49  ;;  %v641_v57 = vmul.f32 %v2358_v34, %v381_v54 }
  0xce   :  { %1943 = vpow2.f32 %v1648_v51  ;;  %v1646_v59 = vmul.f32 -1.442695, %v2382_v52  ;;  %v2392_v60 = vadd.f32 %v2363_v36, %v675_v53  ;;  %v673_v61 = vmul.f32 %v2358_v34, %v509_v58  ;;  %v1847_v62 = vpop.f32.mrf.mxu0  ;;  %v1879_v2 = vpop.f32.mrf.mxu1 }
  0xcf   :  { %1945 = vpow2.f32 %v1614_v55  ;;  %v1617_v63 = vmul.f32 -1.442695, %v2387_v56  ;;  %v2397_v0 = vadd.f32 %v2363_v36, %v641_v57  ;;  %v646_v1 = vmul.f32 %v1847_v62, %v2358_v34 }
  0xd0   :  { %1947 = vpow2.f32 %v1646_v59  ;;  %v1649_v3 = vmul.f32 -1.442695, %v2392_v60  ;;  %v2402_v4 = vadd.f32 %v2363_v36, %v673_v61  ;;  %v678_v5 = vmul.f32 %v1879_v2, %v2358_v34  ;;  %v394_v6 = vpop.f32.mrf.mxu0  ;;  %v522_v10 = vpop.f32.mrf.mxu1 }
  0xd1   :  { %1949 = vpow2.f32 %v1617_v63  ;;  %v1615_v7 = vmul.f32 -1.442695, %v2397_v0  ;;  %v2407_v8 = vadd.f32 %v2363_v36, %v646_v1  ;;  %v644_v9 = vmul.f32 %v2358_v34, %v394_v6 }
  0xd2   :  { %1951 = vpow2.f32 %v1649_v3  ;;  %v1647_v11 = vmul.f32 -1.442695, %v2402_v4  ;;  %v2412_v12 = vadd.f32 %v2363_v36, %v678_v5  ;;  %v676_v13 = vmul.f32 %v2358_v34, %v522_v10  ;;  %v1848_v14 = vpop.f32.mrf.mxu0  ;;  %v1880_v18 = vpop.f32.mrf.mxu1 }
  0xd3   :  { %1953 = vpow2.f32 %v1615_v7  ;;  %v1620_v15 = vmul.f32 -1.442695, %v2407_v8  ;;  %v2417_v16 = vadd.f32 %v2363_v36, %v644_v9  ;;  %v647_v17 = vmul.f32 %v1848_v14, %v2358_v34 }
  0xd4   :  { %1955 = vpow2.f32 %v1647_v11  ;;  %v1652_v19 = vmul.f32 -1.442695, %v2412_v12  ;;  %v2422_v20 = vadd.f32 %v2363_v36, %v676_v13  ;;  %v679_v21 = vmul.f32 %v1880_v18, %v2358_v34  ;;  %v397_v22 = vpop.f32.mrf.mxu0  ;;  %v525_v26 = vpop.f32.mrf.mxu1 }
  0xd5   :  { %1957 = vpow2.f32 %v1620_v15  ;;  %v1618_v23 = vmul.f32 -1.442695, %v2417_v16  ;;  %v2427_v24 = vadd.f32 %v2363_v36, %v647_v17  ;;  %v645_v25 = vmul.f32 %v2358_v34, %v397_v22 }
  0xd6   :  { %1959 = vpow2.f32 %v1652_v19  ;;  %v1650_v27 = vmul.f32 -1.442695, %v2422_v20  ;;  %v2432_v28 = vadd.f32 %v2363_v36, %v679_v21  ;;  %v677_v29 = vmul.f32 %v2358_v34, %v525_v26  ;;  %v1851_v30 = vpop.f32.mrf.mxu0  ;;  %v1883_v35 = vpop.f32.mrf.mxu1 }
  0xd7   :  { %1961 = vpow2.f32 %v1618_v23  ;;  %v1621_v31 = vmul.f32 -1.442695, %v2427_v24  ;;  %v2437_v32 = vadd.f32 %v2363_v36, %v645_v25  ;;  %v650_v33 = vmul.f32 %v1851_v30, %v2358_v34 }
  0xd8   :  { %1963 = vpow2.f32 %v1650_v27  ;;  %v1653_v37 = vmul.f32 -1.442695, %v2432_v28  ;;  %v2442_v38 = vadd.f32 %v2363_v36, %v677_v29  ;;  %v682_v39 = vmul.f32 %v1883_v35, %v2358_v34  ;;  %v410_v40 = vpop.f32.mrf.mxu0  ;;  %v538_v45 = vpop.f32.mrf.mxu1 }
  0xd9   :  { %1965 = vpow2.f32 %v1621_v31  ;;  %v1619_v42 = vmul.f32 -1.442695, %v2437_v32  ;;  %v648_v43 = vmul.f32 %v2358_v34, %v410_v40  ;;  %v680_v49 = vmul.f32 %v2358_v34, %v538_v45 }
  0xda   :  { %v1942_v46 = vpop.eup %1941  ;;  %1967 = vpow2.f32 %v1653_v37  ;;  %v1651_v47 = vmul.f32 -1.442695, %v2442_v38  ;;  %v1852_v50 = vpop.f32.mrf.mxu0  ;;  %v2450_v54 = vadd.f32 %v2363_v36, %v650_v33  ;;  %v2453_v59 = vadd.f32 %v2363_v36, %v682_v39 }
  0xdb   :  { %v1944_v51 = vpop.eup %1943  ;;  %v969_v53 = vadd.f32 1.0, %v1942_v46  ;;  %1969 = vpow2.f32 %v1619_v42  ;;  %v1884_v55 = vpop.f32.mrf.mxu1  ;;  %v2456_v1 = vadd.f32 %v2363_v36, %v648_v43  ;;  %v2459_v2 = vadd.f32 %v2363_v36, %v680_v49 }
  0xdc   :  { %v1946_v57 = vpop.eup %1945  ;;  %v1001_v58 = vadd.f32 1.0, %v1944_v51  ;;  %1971 = vpow2.f32 %v1651_v47  ;;  %v413_v61 = vpop.f32.mrf.mxu0  ;;  %v651_v7 = vmul.f32 %v1852_v50, %v2358_v34  ;;  %v683_v9 = vmul.f32 %v1884_v55, %v2358_v34 }
  0xdd   :  { %v1948_v62 = vpop.eup %1947  ;;  %1973 = vrcp.f32 %v969_v53  ;;  %v967_v63 = vadd.f32 1.0, %v1946_v57  ;;  %v541_v3 = vpop.f32.mrf.mxu1  ;;  %v2464_v14 = vmul.f32 -1.442695, %v2450_v54  ;;  %v649_v15 = vmul.f32 %v2358_v34, %v413_v61 }
  0xde   :  { %v1950_v5 = vpop.eup %1949  ;;  %1975 = vrcp.f32 %v1001_v58  ;;  %v999_v6 = vadd.f32 1.0, %v1948_v62  ;;  %v1855_v10 = vpop.f32.mrf.mxu0  ;;  %v2468_v21 = vmul.f32 -1.442695, %v2453_v59  ;;  %v681_v22 = vmul.f32 %v2358_v34, %v541_v3 }
  0xdf   :  { %v1952_v11 = vpop.eup %1951  ;;  %1977 = vrcp.f32 %v967_v63  ;;  %v970_v13 = vadd.f32 1.0, %v1950_v5  ;;  %v1887_v17 = vpop.f32.mrf.mxu1  ;;  %v2472_v26 = vmul.f32 -1.442695, %v2456_v1  ;;  %v2475_v27 = vmul.f32 -1.442695, %v2459_v2 }
  0xe0   :  { %v1954_v18 = vpop.eup %1953  ;;  %1979 = vrcp.f32 %v999_v6  ;;  %v1002_v19 = vadd.f32 1.0, %v1952_v11  ;;  %v2478_v31 = vadd.f32 %v2363_v36, %v651_v7  ;;  %v2481_v33 = vadd.f32 %v2363_v36, %v683_v9  ;;  %v426_v35 = vpop.f32.mrf.mxu0 }
  0xe1   :  { %v1956_v23 = vpop.eup %1955  ;;  %1981 = vrcp.f32 %v970_v13  ;;  %v968_v25 = vadd.f32 1.0, %v1954_v18  ;;  %v2484_v40 = vadd.f32 %v2363_v36, %v649_v15  ;;  %v654_v42 = vmul.f32 %v1855_v10, %v2358_v34  ;;  %v554_v43 = vpop.f32.mrf.mxu1 }
  0xe2   :  { %v1958_v29 = vpop.eup %1957  ;;  %1983 = vrcp.f32 %v1002_v19  ;;  %v1000_v30 = vadd.f32 1.0, %v1956_v23  ;;  %v2488_v47 = vadd.f32 %v2363_v36, %v681_v22  ;;  %v686_v49 = vmul.f32 %v1887_v17, %v2358_v34  ;;  %v1856_v63 = vpop.f32.mrf.mxu0 }
  0xe3   :  { %v1960_v37 = vpop.eup %1959  ;;  %1985 = vrcp.f32 %v968_v25  ;;  %v973_v39 = vadd.f32 1.0, %v1958_v29  ;;  %v2492_v53 = vadd.f32 %v2363_v36, %v654_v42  ;;  %v652_v55 = vmul.f32 %v2358_v34, %v426_v35  ;;  %v1888_v9 = vpop.f32.mrf.mxu1 }
  0xe4   :  { %v1962_v45 = vpop.eup %1961  ;;  %1987 = vrcp.f32 %v1000_v30  ;;  %v1005_v46 = vadd.f32 1.0, %v1960_v37  ;;  %v2496_v61 = vadd.f32 %v2363_v36, %v686_v49  ;;  %v684_v62 = vmul.f32 %v2358_v34, %v554_v43  ;;  %v429_v35 = vpop.f32.mrf.mxu0 }
  0xe5   :  { %v1964_v50 = vpop.eup %1963  ;;  %1989 = vrcp.f32 %v973_v39  ;;  %v971_v51 = vadd.f32 1.0, %v1962_v45  ;;  %v1625_v6 = vmul.f32 -1.442695, %v2478_v31  ;;  %v2501_v7 = vadd.f32 %v2363_v36, %v652_v55  ;;  %v557_v45 = vpop.f32.mrf.mxu1 }
  0xe6   :  { %v1966_v57 = vpop.eup %1965  ;;  %1991 = vrcp.f32 %v1005_v46  ;;  %v1003_v58 = vadd.f32 1.0, %v1964_v50  ;;  %v1657_v13 = vmul.f32 -1.442695, %v2481_v33  ;;  %v2505_v15 = vadd.f32 %v2363_v36, %v684_v62 }
  0xe7   :  { %v1968_v3 = vpop.eup %1967  ;;  %1993 = vrcp.f32 %v971_v51  ;;  %v974_v5 = vadd.f32 1.0, %v1966_v57  ;;  %v1623_v19 = vmul.f32 -1.442695, %v2484_v40  ;;  %v2509_v22 = vmul.f32 -1.442695, %v2488_v47 }
  0xe8   :  { %v1970_v10 = vpop.eup %1969  ;;  %1995 = vrcp.f32 %v1003_v58  ;;  %v1006_v11 = vadd.f32 1.0, %v1968_v3  ;;  %v2512_v29 = vmul.f32 -1.442695, %v2492_v53  ;;  %v2515_v30 = vmul.f32 -1.442695, %v2496_v61 }
  0xe9   :  { %v1972_v17 = vpop.eup %1971  ;;  %1997 = vrcp.f32 %v974_v5  ;;  %v972_v18 = vadd.f32 1.0, %v1970_v10  ;;  %v2519_v42 = vmul.f32 -1.442695, %v2501_v7  ;;  %v655_v43 = vmul.f32 %v1856_v63, %v2358_v34  ;;  %v1859_v5 = vpop.f32.mrf.mxu0 }
  0xea   :  { %v1974_v23 = vpop.eup %1973  ;;  %1999 = vrcp.f32 %v1006_v11  ;;  %v1004_v25 = vadd.f32 1.0, %v1972_v17  ;;  %v2524_v50 = vmul.f32 -1.442695, %v2505_v15  ;;  %v687_v51 = vmul.f32 %v1888_v9, %v2358_v34 }
  0xeb   :  { %v1976_v37 = vpop.eup %1975  ;;  %v1161_v39 = vmul.f32 %v1974_v23, %v2368_v41  ;;  %2001 = vrcp.f32 %v972_v18  ;;  %v653_v58 = vmul.f32 %v2358_v34, %v429_v35  ;;  %v2540_v9 = vadd.f32 %v2363_v36, %v655_v43 }
  0xec   :  { %v1978_v46 = vpop.eup %1977  ;;  %v1193_v49 = vmul.f32 %v1976_v37, %v2372_v44  ;;  %2003 = vrcp.f32 %v1004_v25  ;;  %v685_v44 = vmul.f32 %v2358_v34, %v557_v45  ;;  %v2549_v18 = vadd.f32 %v2363_v36, %v687_v51 }
  0xed   :  { %v1980_v55 = vpop.eup %1979  ;;  %v1744_v57 = vpack.c.bf16 %v1161_v39, %v1161_v39  ;;  %v1159_v41 = vmul.f32 %v1978_v46, %v2377_v48  ;;  %2005 = vpow2.f32 %v2464_v14  ;;  %v2557_v25 = vadd.f32 %v2363_v36, %v653_v58  ;;  %v442_v39 = vpop.f32.mrf.mxu0 }
  0xee   :  { %v1982_v62 = vpop.eup %1981  ;;  %v1776_v63 = vpack.c.bf16 %v1193_v49, %v1193_v49  ;;  %v1191_v3 = vmul.f32 %v1980_v55, %v2382_v52  ;;  %2007 = vpow2.f32 %v2468_v21  ;;  %v1891_v52 = vpop.f32.mrf.mxu1  ;;  %v2565_v37 = vadd.f32 %v2363_v36, %v685_v44 }
  0xef   :  { %v1984_v10 = vpop.eup %1983  ;;  %1482 = vst.msk [vmem:[%s3094_s4 + $0x8] sm:$0xf] %vm1479_vm2, %v1744_v57  ;;  %v1742_v48 = vpack.c.bf16 %v1159_v41, %v1159_v41  ;;  %v1162_v14 = vmul.f32 %v1982_v62, %v2387_v56  ;;  %2009 = vpow2.f32 %v2472_v26  ;;  %v1629_v45 = vmul.f32 -1.442695, %v2540_v9  ;;  %v1860_v62 = vpop.f32.mrf.mxu0 }
  0xf0   :  { %v1986_v11 = vpop.eup %1985  ;;  %1514 = vst.msk [vmem:[%s3094_s4 + $0x88] sm:$0xf] %vm1479_vm2, %v1776_v63  ;;  %v1774_v21 = vpack.c.bf16 %v1191_v3, %v1191_v3  ;;  %v1194_v17 = vmul.f32 %v1984_v10, %v2392_v60  ;;  %2011 = vpow2.f32 %v2475_v27  ;;  %v570_v46 = vpop.f32.mrf.mxu1  ;;  %v1661_v51 = vmul.f32 -1.442695, %v2549_v18 }
  0xf1   :  { %v1988_v56 = vpop.eup %1987  ;;  %1480 = vst.msk [vmem:[%s3094_s4] sm:$0xf] %vm1479_vm2, %v1742_v48  ;;  %v1745_v26 = vpack.c.bf16 %v1162_v14, %v1162_v14  ;;  %v1160_v23 = vmul.f32 %v1986_v11, %v2397_v0  ;;  %2013 = vpow2.f32 %v1625_v6  ;;  %v1627_v57 = vmul.f32 -1.442695, %v2557_v25 }
  0xf2   :  { %v1990_v35 = vpop.eup %1989  ;;  %1512 = vst.msk [vmem:[%s3094_s4 + $0x80] sm:$0xf] %vm1479_vm2, %v1774_v21  ;;  %v1777_v60 = vpack.c.bf16 %v1194_v17, %v1194_v17  ;;  %v1192_v27 = vmul.f32 %v1988_v56, %v2402_v4  ;;  %2015 = vpow2.f32 %v1657_v13  ;;  %v1659_v58 = vmul.f32 -1.442695, %v2565_v37  ;;  %v1892_v44 = vpop.f32.mrf.mxu1 }
  0xf3   :  { %v1992_v43 = vpop.eup %1991  ;;  %1483 = vst.msk [vmem:[%s3094_s4 + $0xc] sm:$0xf] %vm1479_vm2, %v1745_v26  ;;  %v1743_v0 = vpack.c.bf16 %v1160_v23, %v1160_v23  ;;  %v1165_v6 = vmul.f32 %v1990_v35, %v2407_v8  ;;  %2017 = vpow2.f32 %v1623_v19  ;;  %v658_v3 = vmul.f32 %v1859_v5, %v2358_v34  ;;  %v445_v21 = vpop.f32.mrf.mxu0 }
  0xf4   :  { %v1994_v49 = vpop.eup %1993  ;;  %1515 = vst.msk [vmem:[%s3094_s4 + $0x8c] sm:$0xf] %vm1479_vm2, %v1777_v60  ;;  %v1775_v4 = vpack.c.bf16 %v1192_v27, %v1192_v27  ;;  %v1197_v13 = vmul.f32 %v1992_v43, %v2412_v12  ;;  %2019 = vpow2.f32 %v2509_v22  ;;  %v690_v48 = vmul.f32 %v1891_v52, %v2358_v34  ;;  %v573_v23 = vpop.f32.mrf.mxu1 }
  0xf5   :  { %v1996_v55 = vpop.eup %1995  ;;  %1481 = vst.msk [vmem:[%s3094_s4 + $0x4] sm:$0xf] %vm1479_vm2, %v1743_v0  ;;  %v1748_v8 = vpack.c.bf16 %v1165_v6, %v1165_v6  ;;  %v1163_v19 = vmul.f32 %v1994_v49, %v2417_v16  ;;  %2021 = vpow2.f32 %v2512_v29  ;;  %v656_v5 = vmul.f32 %v2358_v34, %v442_v39 }
  0xf6   :  { %v1998_v41 = vpop.eup %1997  ;;  %1513 = vst.msk [vmem:[%s3094_s4 + $0x84] sm:$0xf] %vm1479_vm2, %v1775_v4  ;;  %v1780_v12 = vpack.c.bf16 %v1197_v13, %v1197_v13  ;;  %v1195_v22 = vmul.f32 %v1996_v55, %v2422_v20  ;;  %2023 = vpow2.f32 %v2515_v30  ;;  %v688_v52 = vmul.f32 %v2358_v34, %v570_v46  ;;  %v1863_v13 = vpop.f32.mrf.mxu0 }
  0xf7   :  { %v2000_v63 = vpop.eup %1999  ;;  %1486 = vst.msk [vmem:[%s3094_s4 + $0x18] sm:$0xf] %vm1479_vm2, %v1748_v8  ;;  %v1746_v16 = vpack.c.bf16 %v1163_v19, %v1163_v19  ;;  %v1166_v29 = vmul.f32 %v1998_v41, %v2427_v24  ;;  %2025 = vpow2.f32 %v2519_v42  ;;  %v2625_v26 = vadd.f32 %v2363_v36, %v658_v3 }
  0xf8   :  { %v2002_v20 = vpop.eup %2001  ;;  %1518 = vst.msk [vmem:[%s3094_s4 + $0x98] sm:$0xf] %vm1479_vm2, %v1780_v12  ;;  %v1778_v30 = vpack.c.bf16 %v1195_v22, %v1195_v22  ;;  %v1198_v10 = vmul.f32 %v2000_v63, %v2432_v28  ;;  %2027 = vpow2.f32 %v2524_v50  ;;  %v2632_v27 = vadd.f32 %v2363_v36, %v690_v48 }
  0xf9   :  { %v2004_v14 = vpop.eup %2003  ;;  %1484 = vst.msk [vmem:[%s3094_s4 + $0x10] sm:$0xf] %vm1479_vm2, %v1746_v16  ;;  %v1749_v24 = vpack.c.bf16 %v1166_v29, %v1166_v29  ;;  %v1164_v42 = vmul.f32 %v2002_v20, %v2437_v32  ;;  %2029 = vpow2.f32 %v1629_v45  ;;  %v2639_v0 = vadd.f32 %v2363_v36, %v656_v5 }
  0xfa   :  { %v2006_v11 = vpop.eup %2005  ;;  %1516 = vst.msk [vmem:[%s3094_s4 + $0x90] sm:$0xf] %vm1479_vm2, %v1778_v30  ;;  %v1781_v28 = vpack.c.bf16 %v1198_v10, %v1198_v10  ;;  %v1196_v50 = vmul.f32 %v2004_v14, %v2442_v38  ;;  %2031 = vpow2.f32 %v1661_v51  ;;  %v2642_v6 = vadd.f32 %v2363_v36, %v688_v52  ;;  %v458_v10 = vpop.f32.mrf.mxu0 }
  0xfb   :  { %v2008_v17 = vpop.eup %2007  ;;  %1487 = vst.msk [vmem:[%s3094_s4 + $0x1c] sm:$0xf] %vm1479_vm2, %v1749_v24  ;;  %v1747_v32 = vpack.c.bf16 %v1164_v42, %v1164_v42  ;;  %v977_v56 = vadd.f32 1.0, %v2006_v11  ;;  %2033 = vpow2.f32 %v1627_v57  ;;  %v659_v49 = vmul.f32 %v1860_v62, %v2358_v34  ;;  %v1895_v57 = vpop.f32.mrf.mxu1 }
  0xfc   :  { %v2010_v35 = vpop.eup %2009  ;;  %1519 = vst.msk [vmem:[%s3094_s4 + $0x9c] sm:$0xf] %vm1479_vm2, %v1781_v28  ;;  %v1779_v38 = vpack.c.bf16 %v1196_v50, %v1196_v50  ;;  %v1009_v60 = vadd.f32 1.0, %v2008_v17  ;;  %2035 = vpow2.f32 %v1659_v58  ;;  %v691_v4 = vmul.f32 %v1892_v44, %v2358_v34 }
  0xfd   :  { %v2012_v39 = vpop.eup %2011  ;;  %1485 = vst.msk [vmem:[%s3094_s4 + $0x14] sm:$0xf] %vm1479_vm2, %v1747_v32  ;;  %2037 = vrcp.f32 %v977_v56  ;;  %v975_v43 = vadd.f32 1.0, %v2010_v35  ;;  %v2651_v8 = vmul.f32 -1.442695, %v2625_v26  ;;  %v657_v19 = vmul.f32 %v2358_v34, %v445_v21  ;;  %v586_v5 = vpop.f32.mrf.mxu1 }
  0xfe   :  { %v2014_v45 = vpop.eup %2013  ;;  %1517 = vst.msk [vmem:[%s3094_s4 + $0x94] sm:$0xf] %vm1479_vm2, %v1779_v38  ;;  %2039 = vrcp.f32 %v1009_v60  ;;  %v1007_v46 = vadd.f32 1.0, %v2012_v39  ;;  %v2655_v22 = vmul.f32 -1.442695, %v2632_v27  ;;  %v689_v58 = vmul.f32 %v2358_v34, %v573_v23  ;;  %v1864_v39 = vpop.f32.mrf.mxu0 }
  0xff   :  { %v2016_v51 = vpop.eup %2015  ;;  %2041 = vrcp.f32 %v975_v43  ;;  %v978_v55 = vadd.f32 1.0, %v2014_v45  ;;  %v2659_v16 = vmul.f32 -1.442695, %v2639_v0  ;;  %v2662_v29 = vmul.f32 -1.442695, %v2642_v6 }
 0x100   :  { %v2018_v41 = vpop.eup %2017  ;;  %2043 = vrcp.f32 %v1007_v46  ;;  %v1010_v12 = vadd.f32 1.0, %v2016_v51  ;;  %v2665_v20 = vadd.f32 %v2363_v36, %v659_v49  ;;  %v2668_v30 = vadd.f32 %v2363_v36, %v691_v4  ;;  %v1896_v4 = vpop.f32.mrf.mxu1 }
 0x101   :  { %v2020_v62 = vpop.eup %2019  ;;  %2045 = vrcp.f32 %v978_v55  ;;  %v976_v63 = vadd.f32 1.0, %v2018_v41  ;;  %v2671_v24 = vadd.f32 %v2363_v36, %v657_v19  ;;  %v662_v42 = vmul.f32 %v1863_v13, %v2358_v34 }
 0x102   :  { %v2022_v3 = vpop.eup %2021  ;;  %2047 = vrcp.f32 %v1010_v12  ;;  %v1008_v44 = vadd.f32 1.0, %v2020_v62  ;;  %v2675_v50 = vadd.f32 %v2363_v36, %v689_v58  ;;  %v694_v52 = vmul.f32 %v1895_v57, %v2358_v34 }
 0x103   :  { %v2024_v48 = vpop.eup %2023  ;;  %2049 = vrcp.f32 %v976_v63  ;;  %v981_v14 = vadd.f32 1.0, %v2022_v3  ;;  %v2679_v32 = vadd.f32 %v2363_v36, %v662_v42  ;;  %v660_v56 = vmul.f32 %v2358_v34, %v458_v10  ;;  %v461_v10 = vpop.f32.mrf.mxu0 }
 0x104   :  { %v2026_v11 = vpop.eup %2025  ;;  %2051 = vrcp.f32 %v1008_v44  ;;  %v1013_v28 = vadd.f32 1.0, %v2024_v48  ;;  %v2683_v38 = vadd.f32 %v2363_v36, %v694_v52  ;;  %v692_v60 = vmul.f32 %v2358_v34, %v586_v5 }
 0x105   :  { %v2028_v21 = vpop.eup %2027  ;;  %2053 = vrcp.f32 %v981_v14  ;;  %v979_v17 = vadd.f32 1.0, %v2026_v11  ;;  %v1633_v46 = vmul.f32 -1.442695, %v2665_v20  ;;  %v2688_v49 = vadd.f32 %v2363_v36, %v660_v56  ;;  %v589_v11 = vpop.f32.mrf.mxu1 }
 0x106   :  { %v2030_v23 = vpop.eup %2029  ;;  %2055 = vrcp.f32 %v1013_v28  ;;  %v1011_v35 = vadd.f32 1.0, %v2028_v21  ;;  %v1665_v55 = vmul.f32 -1.442695, %v2668_v30  ;;  %v2692_v19 = vadd.f32 %v2363_v36, %v692_v60 }
 0x107   :  { %v2032_v43 = vpop.eup %2031  ;;  %2057 = vrcp.f32 %v979_v17  ;;  %v982_v45 = vadd.f32 1.0, %v2030_v23  ;;  %v1631_v12 = vmul.f32 -1.442695, %v2671_v24  ;;  %v2696_v58 = vmul.f32 -1.442695, %v2675_v50 }
 0x108   :  { %v2034_v13 = vpop.eup %2033  ;;  %2059 = vrcp.f32 %v1011_v35  ;;  %v1014_v51 = vadd.f32 1.0, %v2032_v43  ;;  %v2699_v3 = vmul.f32 -1.442695, %v2679_v32  ;;  %v2702_v44 = vmul.f32 -1.442695, %v2683_v38 }
 0x109   :  { %v2036_v57 = vpop.eup %2035  ;;  %2061 = vrcp.f32 %v982_v45  ;;  %v980_v41 = vadd.f32 1.0, %v2034_v13  ;;  %v2706_v42 = vmul.f32 -1.442695, %v2688_v49  ;;  %v663_v5 = vmul.f32 %v1864_v39, %v2358_v34  ;;  %v1867_v45 = vpop.f32.mrf.mxu0 }
 0x10a   :  { %v2038_v62 = vpop.eup %2037  ;;  %2063 = vrcp.f32 %v1014_v51  ;;  %v1012_v63 = vadd.f32 1.0, %v2036_v57  ;;  %v2711_v21 = vmul.f32 -1.442695, %v2692_v19  ;;  %v695_v17 = vmul.f32 %v1896_v4, %v2358_v34 }
 0x10b   :  { %v2040_v48 = vpop.eup %2039  ;;  %v1169_v14 = vmul.f32 %v2038_v62, %v2450_v54  ;;  %2065 = vrcp.f32 %v980_v41  ;;  %v661_v35 = vmul.f32 %v2358_v34, %v461_v10  ;;  %v2727_v4 = vadd.f32 %v2363_v36, %v663_v5 }
 0x10c   :  { %v2042_v28 = vpop.eup %2041  ;;  %v1201_v52 = vmul.f32 %v2040_v48, %v2453_v59  ;;  %2067 = vrcp.f32 %v1012_v63  ;;  %v693_v59 = vmul.f32 %v2358_v34, %v589_v11  ;;  %v2736_v41 = vadd.f32 %v2363_v36, %v695_v17 }
 0x10d   :  { %v2044_v56 = vpop.eup %2043  ;;  %v1752_v23 = vpack.c.bf16 %v1169_v14, %v1169_v14  ;;  %v1167_v54 = vmul.f32 %v2042_v28, %v2456_v1  ;;  %2069 = vpow2.f32 %v2651_v8  ;;  %v2744_v63 = vadd.f32 %v2363_v36, %v661_v35  ;;  %v474_v14 = vpop.f32.mrf.mxu0 }
 0x10e   :  { %v2046_v60 = vpop.eup %2045  ;;  %v1784_v39 = vpack.c.bf16 %v1201_v52, %v1201_v52  ;;  %v1199_v43 = vmul.f32 %v2044_v56, %v2459_v2  ;;  %2071 = vpow2.f32 %v2655_v22  ;;  %v1899_v2 = vpop.f32.mrf.mxu1  ;;  %v2752_v48 = vadd.f32 %v2363_v36, %v693_v59 }
 0x10f   :  { %v2048_v13 = vpop.eup %2047  ;;  %1490 = vst.msk [vmem:[%s3094_s4 + $0x28] sm:$0xf] %vm1479_vm2, %v1752_v23  ;;  %v1750_v1 = vpack.c.bf16 %v1167_v54, %v1167_v54  ;;  %v1170_v8 = vmul.f32 %v2046_v60, %v2478_v31  ;;  %2073 = vpow2.f32 %v2659_v16  ;;  %v1637_v11 = vmul.f32 -1.442695, %v2727_v4  ;;  %v1868_v60 = vpop.f32.mrf.mxu0 }
 0x110   :  { %v2050_v51 = vpop.eup %2049  ;;  %1522 = vst.msk [vmem:[%s3094_s4 + $0xa8] sm:$0xf] %vm1479_vm2, %v1784_v39  ;;  %v1782_v22 = vpack.c.bf16 %v1199_v43, %v1199_v43  ;;  %v1202_v57 = vmul.f32 %v2048_v13, %v2481_v33  ;;  %2075 = vpow2.f32 %v2662_v29  ;;  %v602_v28 = vpop.f32.mrf.mxu1  ;;  %v1669_v17 = vmul.f32 -1.442695, %v2736_v41 }
 0x111   :  { %v2052_v31 = vpop.eup %2051  ;;  %1488 = vst.msk [vmem:[%s3094_s4 + $0x20] sm:$0xf] %vm1479_vm2, %v1750_v1  ;;  %v1753_v16 = vpack.c.bf16 %v1170_v8, %v1170_v8  ;;  %v1168_v62 = vmul.f32 %v2050_v51, %v2484_v40  ;;  %2077 = vpow2.f32 %v1633_v46  ;;  %v1635_v23 = vmul.f32 -1.442695, %v2744_v63 }
 0x112   :  { %v2054_v10 = vpop.eup %2053  ;;  %1520 = vst.msk [vmem:[%s3094_s4 + $0xa0] sm:$0xf] %vm1479_vm2, %v1782_v22  ;;  %v1785_v33 = vpack.c.bf16 %v1202_v57, %v1202_v57  ;;  %v1200_v29 = vmul.f32 %v2052_v31, %v2488_v47  ;;  %2079 = vpow2.f32 %v1665_v55  ;;  %v1667_v35 = vmul.f32 -1.442695, %v2752_v48  ;;  %v1900_v59 = vpop.f32.mrf.mxu1 }
 0x113   :  { %v2056_v5 = vpop.eup %2055  ;;  %1491 = vst.msk [vmem:[%s3094_s4 + $0x2c] sm:$0xf] %vm1479_vm2, %v1753_v16  ;;  %v1751_v40 = vpack.c.bf16 %v1168_v62, %v1168_v62  ;;  %v1173_v46 = vmul.f32 %v2054_v10, %v2492_v53  ;;  %2081 = vpow2.f32 %v1631_v12  ;;  %v666_v43 = vmul.f32 %v1867_v45, %v2358_v34  ;;  %v477_v22 = vpop.f32.mrf.mxu0 }
 0x114   :  { %v2058_v52 = vpop.eup %2057  ;;  %1523 = vst.msk [vmem:[%s3094_s4 + $0xac] sm:$0xf] %vm1479_vm2, %v1785_v33  ;;  %v1783_v47 = vpack.c.bf16 %v1200_v29, %v1200_v29  ;;  %v1205_v55 = vmul.f32 %v2056_v5, %v2496_v61  ;;  %2083 = vpow2.f32 %v2696_v58  ;;  %v698_v1 = vmul.f32 %v1899_v2, %v2358_v34  ;;  %v605_v62 = vpop.f32.mrf.mxu1 }
 0x115   :  { %v2060_v56 = vpop.eup %2059  ;;  %1489 = vst.msk [vmem:[%s3094_s4 + $0x24] sm:$0xf] %vm1479_vm2, %v1751_v40  ;;  %v1756_v53 = vpack.c.bf16 %v1173_v46, %v1173_v46  ;;  %v1171_v12 = vmul.f32 %v2058_v52, %v2501_v7  ;;  %2085 = vpow2.f32 %v2699_v3  ;;  %v664_v45 = vmul.f32 %v2358_v34, %v474_v14  ;;  %v1871_v52 = vpop.f32.mrf.mxu0 }
 0x116   :  { %v2062_v54 = vpop.eup %2061  ;;  %1521 = vst.msk [vmem:[%s3094_s4 + $0xa4] sm:$0xf] %vm1479_vm2, %v1783_v47  ;;  %v1788_v61 = vpack.c.bf16 %v1205_v55, %v1205_v55  ;;  %v1203_v58 = vmul.f32 %v2060_v56, %v2505_v15  ;;  %2087 = vpow2.f32 %v2702_v44  ;;  %v696_v2 = vmul.f32 %v2358_v34, %v602_v28 }
 0x117   :  { %v2064_v39 = vpop.eup %2063  ;;  %1494 = vst.msk [vmem:[%s3094_s4 + $0x38] sm:$0xf] %vm1479_vm2, %v1756_v53  ;;  %v1754_v7 = vpack.c.bf16 %v1171_v12, %v1171_v12  ;;  %v1174_v3 = vmul.f32 %v2062_v54, %v2540_v9  ;;  %2089 = vpow2.f32 %v2706_v42  ;;  %v2812_v16 = vadd.f32 %v2363_v36, %v666_v43  ;;  %v1903_v53 = vpop.f32.mrf.mxu1  ;;  %v2853_v43 = vld [vmem:[%s3092_s2] ss:$0 sm:$0xff] }
 0x118   :  { %v2066_v15 = vpop.eup %2065  ;;  %1526 = vst.msk [vmem:[%s3094_s4 + $0xb8] sm:$0xf] %vm1479_vm2, %v1788_v61  ;;  %v1786_v44 = vpack.c.bf16 %v1203_v58, %v1203_v58  ;;  %v1206_v13 = vmul.f32 %v2064_v39, %v2549_v18  ;;  %2091 = vpow2.f32 %v2711_v21  ;;  %v2819_v29 = vadd.f32 %v2363_v36, %v698_v1 }
 0x119   :  { %v2068_v8 = vpop.eup %2067  ;;  %1492 = vst.msk [vmem:[%s3094_s4 + $0x30] sm:$0xf] %vm1479_vm2, %v1754_v7  ;;  %v1757_v9 = vpack.c.bf16 %v1174_v3, %v1174_v3  ;;  %v1172_v42 = vmul.f32 %v2066_v15, %v2557_v25  ;;  %2093 = vpow2.f32 %v1637_v11  ;;  %v2826_v40 = vadd.f32 %v2363_v36, %v664_v45  ;;  %v490_v15 = vpop.f32.mrf.mxu0 }
 0x11a   :  { %v2070_v51 = vpop.eup %2069  ;;  %1524 = vst.msk [vmem:[%s3094_s4 + $0xb0] sm:$0xf] %vm1479_vm2, %v1786_v44  ;;  %v1789_v18 = vpack.c.bf16 %v1206_v13, %v1206_v13  ;;  %v1204_v21 = vmul.f32 %v2068_v8, %v2565_v37  ;;  %2095 = vpow2.f32 %v1669_v17  ;;  %v2833_v28 = vadd.f32 %v2363_v36, %v696_v2 }
 0x11b   :  { %v2072_v57 = vpop.eup %2071  ;;  %1495 = vst.msk [vmem:[%s3094_s4 + $0x3c] sm:$0xf] %vm1479_vm2, %v1757_v9  ;;  %v1755_v25 = vpack.c.bf16 %v1172_v42, %v1172_v42  ;;  %v985_v31 = vadd.f32 1.0, %v2070_v51  ;;  %2097 = vpow2.f32 %v1635_v23  ;;  %v2836_v17 = vmul.f32 -1.442695, %v2812_v16  ;;  %v618_v9 = vpop.f32.mrf.mxu1 }
 0x11c   :  { %v2074_v10 = vpop.eup %2073  ;;  %1527 = vst.msk [vmem:[%s3094_s4 + $0xbc] sm:$0xf] %vm1479_vm2, %v1789_v18  ;;  %v1787_v37 = vpack.c.bf16 %v1204_v21, %v1204_v21  ;;  %v1017_v33 = vadd.f32 1.0, %v2072_v57  ;;  %2099 = vpow2.f32 %v1667_v35  ;;  %v667_v56 = vmul.f32 %v1868_v60, %v2358_v34 }
 0x11d   :  { %v2076_v14 = vpop.eup %2075  ;;  %1493 = vst.msk [vmem:[%s3094_s4 + $0x34] sm:$0xf] %vm1479_vm2, %v1755_v25  ;;  %2101 = vrcp.f32 %v985_v31  ;;  %v983_v5 = vadd.f32 1.0, %v2074_v10  ;;  %v2840_v54 = vmul.f32 -1.442695, %v2819_v29  ;;  %v699_v61 = vmul.f32 %v1900_v59, %v2358_v34 }
 0x11e   :  { %v2078_v46 = vpop.eup %2077  ;;  %1525 = vst.msk [vmem:[%s3094_s4 + $0xb4] sm:$0xf] %vm1479_vm2, %v1787_v37  ;;  %2103 = vrcp.f32 %v1017_v33  ;;  %v1015_v11 = vadd.f32 1.0, %v2076_v14  ;;  %v2844_v35 = vmul.f32 -1.442695, %v2826_v40  ;;  %v665_v39 = vmul.f32 %v2358_v34, %v477_v22 }
 0x11f   :  { %v2080_v47 = vpop.eup %2079  ;;  %2105 = vrcp.f32 %v983_v5  ;;  %v986_v55 = vadd.f32 1.0, %v2078_v46  ;;  %v2848_v3 = vmul.f32 -1.442695, %v2833_v28  ;;  %v697_v59 = vmul.f32 %v2853_v43, %v605_v62  ;;  %v2859_v34 = vld [vmem:[%s3093_s3] ss:$0 sm:$0xff] }
 0x120   :  { %v2082_v12 = vpop.eup %2081  ;;  %2107 = vrcp.f32 %v1015_v11  ;;  %v1018_v23 = vadd.f32 1.0, %v2080_v47  ;;  %v2862_v1 = vadd.f32 %v2859_v34, %v667_v56  ;;  %v670_v8 = vmul.f32 %v2853_v43, %v1871_v52 }
 0x121   :  { %v2084_v36 = vpop.eup %2083  ;;  %2109 = vrcp.f32 %v986_v55  ;;  %v984_v58 = vadd.f32 1.0, %v2082_v12  ;;  %v2866_v51 = vadd.f32 %v2859_v34, %v699_v61  ;;  %v702_v18 = vmul.f32 %v2853_v43, %v1903_v53  ;;  %v1872_v55 = vpop.f32.mrf.mxu0 }
 0x122   :  { %v2086_v7 = vpop.eup %2085  ;;  %2111 = vrcp.f32 %v1018_v23  ;;  %v1016_v60 = vadd.f32 1.0, %v2084_v36  ;;  %v2870_v22 = vadd.f32 %v2859_v34, %v665_v39  ;;  %v668_v57 = vmul.f32 %v2853_v43, %v490_v15  ;;  %v1904_v61 = vpop.f32.mrf.mxu1 }
 0x123   :  { %v2088_v44 = vpop.eup %2087  ;;  %2113 = vrcp.f32 %v984_v58  ;;  %v989_v13 = vadd.f32 1.0, %v2086_v7  ;;  %v2874_v62 = vadd.f32 %v2859_v34, %v697_v59  ;;  %v700_v10 = vmul.f32 %v2853_v43, %v618_v9 }
 0x124   :  { %v2090_v42 = vpop.eup %2089  ;;  %2115 = vrcp.f32 %v1016_v60  ;;  %v1021_v45 = vadd.f32 1.0, %v2088_v44  ;;  %v2878_v14 = vadd.f32 %v2859_v34, %v670_v8  ;;  %v2881_v5 = vadd.f32 %v2859_v34, %v702_v18 }
 0x125   :  { %v2092_v21 = vpop.eup %2091  ;;  %2117 = vrcp.f32 %v989_v13  ;;  %v987_v2 = vadd.f32 1.0, %v2090_v42  ;;  %v1641_v52 = vmul.f32 -1.442695, %v2862_v1  ;;  %v2885_v47 = vadd.f32 %v2859_v34, %v668_v57  ;;  %v621_v57 = vpop.f32.mrf.mxu1 }
 0x126   :  { %v2094_v25 = vpop.eup %2093  ;;  %2119 = vrcp.f32 %v1021_v45  ;;  %v1019_v31 = vadd.f32 1.0, %v2092_v21  ;;  %v1673_v12 = vmul.f32 -1.442695, %v2866_v51  ;;  %v2889_v23 = vadd.f32 %v2859_v34, %v700_v10  ;;  %v493_v45 = vpop.f32.mrf.mxu0 }
 0x127   :  { %v2096_v37 = vpop.eup %2095  ;;  %2121 = vrcp.f32 %v987_v2  ;;  %v990_v33 = vadd.f32 1.0, %v2094_v25  ;;  %v1639_v39 = vmul.f32 -1.442695, %v2870_v22  ;;  %v1671_v7 = vmul.f32 -1.442695, %v2874_v62 }
 0x128   :  { %v2098_v46 = vpop.eup %2097  ;;  %2123 = vrcp.f32 %v1019_v31  ;;  %v1022_v11 = vadd.f32 1.0, %v2096_v37  ;;  %v1644_v15 = vmul.f32 -1.442695, %v2878_v14  ;;  %v2896_v44 = vmul.f32 -1.442695, %v2881_v5 }
 0x129   :  { %v2100_v56 = vpop.eup %2099  ;;  %2125 = vrcp.f32 %v990_v33  ;;  %v988_v53 = vadd.f32 1.0, %v2098_v46  ;;  %v2900_v9 = vmul.f32 -1.442695, %v2885_v47  ;;  %v671_v42 = vmul.f32 %v2853_v43, %v1872_v55 }
 0x12a   :  { %v2102_v36 = vpop.eup %2101  ;;  %2127 = vrcp.f32 %v1022_v11  ;;  %v1020_v58 = vadd.f32 1.0, %v2100_v56  ;;  %v2906_v2 = vmul.f32 -1.442695, %v2889_v23  ;;  %v703_v10 = vmul.f32 %v2853_v43, %v1904_v61 }
 0x12b   :  { %v2104_v60 = vpop.eup %2103  ;;  %v1177_v59 = vmul.f32 %v2102_v36, %v2625_v26  ;;  %2129 = vrcp.f32 %v988_v53  ;;  %v669_v33 = vmul.f32 %v2853_v43, %v493_v45  ;;  %v701_v11 = vmul.f32 %v2853_v43, %v621_v57 }
 0x12c   :  { %v2106_v13 = vpop.eup %2105  ;;  %v1209_v8 = vmul.f32 %v2104_v60, %v2632_v27  ;;  %2131 = vrcp.f32 %v1020_v58  ;;  %v2931_v56 = vadd.f32 %v2859_v34, %v671_v42  ;;  %v2939_v43 = vadd.f32 %v2859_v34, %v703_v10 }
 0x12d   :  { %v2108_v18 = vpop.eup %2107  ;;  %v1760_v21 = vpack.c.bf16 %v1177_v59, %v1177_v59  ;;  %v1175_v26 = vmul.f32 %v2106_v13, %v2639_v0  ;;  %2133 = vpow2.f32 %v2836_v17  ;;  %v2947_v36 = vadd.f32 %v2859_v34, %v669_v33 }
 0x12e   :  { %v2110_v25 = vpop.eup %2109  ;;  %v1792_v31 = vpack.c.bf16 %v1209_v8, %v1209_v8  ;;  %v1207_v27 = vmul.f32 %v2108_v18, %v2642_v6  ;;  %2135 = vpow2.f32 %v2840_v54  ;;  %v2955_v60 = vadd.f32 %v2859_v34, %v701_v11 }
 0x12f   :  { %v2112_v37 = vpop.eup %2111  ;;  %1498 = vst.msk [vmem:[%s3094_s4 + $0x48] sm:$0xf] %vm1479_vm2, %v1760_v21  ;;  %v1758_v0 = vpack.c.bf16 %v1175_v26, %v1175_v26  ;;  %v1178_v17 = vmul.f32 %v2110_v25, %v2665_v20  ;;  %2137 = vpow2.f32 %v2844_v35  ;;  %v1645_v13 = vmul.f32 -1.442695, %v2931_v56 }
 0x130   :  { %v2114_v46 = vpop.eup %2113  ;;  %1530 = vst.msk [vmem:[%s3094_s4 + $0xc8] sm:$0xf] %vm1479_vm2, %v1792_v31  ;;  %v1790_v6 = vpack.c.bf16 %v1207_v27, %v1207_v27  ;;  %v1210_v54 = vmul.f32 %v2112_v37, %v2668_v30  ;;  %2139 = vpow2.f32 %v2848_v3  ;;  %v1643_v45 = vmul.f32 -1.442695, %v2947_v36 }
 0x131   :  { %v2116_v55 = vpop.eup %2115  ;;  %1496 = vst.msk [vmem:[%s3094_s4 + $0x40] sm:$0xf] %vm1479_vm2, %v1758_v0  ;;  %v1761_v20 = vpack.c.bf16 %v1178_v17, %v1178_v17  ;;  %v1176_v35 = vmul.f32 %v2114_v46, %v2671_v24  ;;  %2141 = vpow2.f32 %v1641_v52  ;;  %v1675_v21 = vmul.f32 -1.442695, %v2955_v60 }
 0x132   :  { %v2118_v53 = vpop.eup %2117  ;;  %1528 = vst.msk [vmem:[%s3094_s4 + $0xc0] sm:$0xf] %vm1479_vm2, %v1790_v6  ;;  %v1793_v30 = vpack.c.bf16 %v1210_v54, %v1210_v54  ;;  %v1208_v3 = vmul.f32 %v2116_v55, %v2675_v50  ;;  %2143 = vpow2.f32 %v1673_v12 }
 0x133   :  { %v2120_v61 = vpop.eup %2119  ;;  %1499 = vst.msk [vmem:[%s3094_s4 + $0x4c] sm:$0xf] %vm1479_vm2, %v1761_v20  ;;  %v1759_v24 = vpack.c.bf16 %v1176_v35, %v1176_v35  ;;  %v1181_v52 = vmul.f32 %v2118_v53, %v2679_v32  ;;  %2145 = vpow2.f32 %v1639_v39 }
 0x134   :  { %v2122_v58 = vpop.eup %2121  ;;  %1531 = vst.msk [vmem:[%s3094_s4 + $0xcc] sm:$0xf] %vm1479_vm2, %v1793_v30  ;;  %v1791_v50 = vpack.c.bf16 %v1208_v3, %v1208_v3  ;;  %v1213_v12 = vmul.f32 %v2120_v61, %v2683_v38  ;;  %2147 = vpow2.f32 %v1671_v7  ;;  %v1677_v7 = vmul.f32 -1.442695, %v2939_v43 }
 0x135   :  { %v2124_v59 = vpop.eup %2123  ;;  %1497 = vst.msk [vmem:[%s3094_s4 + $0x44] sm:$0xf] %vm1479_vm2, %v1759_v24  ;;  %v1764_v32 = vpack.c.bf16 %v1181_v52, %v1181_v52  ;;  %v1179_v39 = vmul.f32 %v2122_v58, %v2688_v49  ;;  %2149 = vpow2.f32 %v1644_v15 }
 0x136   :  { %v2126_v8 = vpop.eup %2125  ;;  %1529 = vst.msk [vmem:[%s3094_s4 + $0xc4] sm:$0xf] %vm1479_vm2, %v1791_v50  ;;  %v1796_v38 = vpack.c.bf16 %v1213_v12, %v1213_v12  ;;  %v1211_v34 = vmul.f32 %v2124_v59, %v2692_v19  ;;  %2151 = vpow2.f32 %v2896_v44 }
 0x137   :  { %v2128_v42 = vpop.eup %2127  ;;  %1502 = vst.msk [vmem:[%s3094_s4 + $0x58] sm:$0xf] %vm1479_vm2, %v1764_v32  ;;  %v1762_v49 = vpack.c.bf16 %v1179_v39, %v1179_v39  ;;  %v1182_v15 = vmul.f32 %v2126_v8, %v2727_v4  ;;  %2153 = vpow2.f32 %v2900_v9 }
 0x138   :  { %v2130_v18 = vpop.eup %2129  ;;  %1534 = vst.msk [vmem:[%s3094_s4 + $0xd8] sm:$0xf] %vm1479_vm2, %v1796_v38  ;;  %v1794_v19 = vpack.c.bf16 %v1211_v34, %v1211_v34  ;;  %v1214_v44 = vmul.f32 %v2128_v42, %v2736_v41  ;;  %2155 = vpow2.f32 %v2906_v2 }
 0x139   :  { %v2132_v26 = vpop.eup %2131  ;;  %1500 = vst.msk [vmem:[%s3094_s4 + $0x50] sm:$0xf] %vm1479_vm2, %v1762_v49  ;;  %v1765_v4 = vpack.c.bf16 %v1182_v15, %v1182_v15  ;;  %v1180_v9 = vmul.f32 %v2130_v18, %v2744_v63  ;;  %2157 = vpow2.f32 %v1645_v13 }
 0x13a   :  { %v2134_v57 = vpop.eup %2133  ;;  %1532 = vst.msk [vmem:[%s3094_s4 + $0xd0] sm:$0xf] %vm1479_vm2, %v1794_v19  ;;  %v1797_v41 = vpack.c.bf16 %v1214_v44, %v1214_v44  ;;  %v1212_v2 = vmul.f32 %v2132_v26, %v2752_v48  ;;  %2159 = vpow2.f32 %v1677_v7 }
 0x13b   :  { %v2136_v25 = vpop.eup %2135  ;;  %1503 = vst.msk [vmem:[%s3094_s4 + $0x5c] sm:$0xf] %vm1479_vm2, %v1765_v4  ;;  %v1763_v31 = vpack.c.bf16 %v1180_v9, %v1180_v9  ;;  %v993_v27 = vadd.f32 1.0, %v2134_v57  ;;  %2161 = vpow2.f32 %v1643_v45 }
 0x13c   :  { %v2138_v63 = vpop.eup %2137  ;;  %1535 = vst.msk [vmem:[%s3094_s4 + $0xdc] sm:$0xf] %vm1479_vm2, %v1797_v41  ;;  %v1795_v10 = vpack.c.bf16 %v1212_v2, %v1212_v2  ;;  %v1025_v37 = vadd.f32 1.0, %v2136_v25  ;;  %2163 = vpow2.f32 %v1675_v21 }
 0x13d   :  { %v2140_v48 = vpop.eup %2139  ;;  %1501 = vst.msk [vmem:[%s3094_s4 + $0x54] sm:$0xf] %vm1479_vm2, %v1763_v31  ;;  %2165 = vrcp.f32 %v993_v27  ;;  %v991_v0 = vadd.f32 1.0, %v2138_v63 }
 0x13e   :  { %v2142_v17 = vpop.eup %2141  ;;  %1533 = vst.msk [vmem:[%s3094_s4 + $0xd4] sm:$0xf] %vm1479_vm2, %v1795_v10  ;;  %2167 = vrcp.f32 %v1025_v37  ;;  %v1023_v33 = vadd.f32 1.0, %v2140_v48 }
 0x13f   :  { %v2144_v46 = vpop.eup %2143  ;;  %2169 = vrcp.f32 %v991_v0  ;;  %v994_v6 = vadd.f32 1.0, %v2142_v17 }
 0x140   :  { %v2146_v54 = vpop.eup %2145  ;;  %2171 = vrcp.f32 %v1023_v33  ;;  %v1026_v11 = vadd.f32 1.0, %v2144_v46 }
 0x141   :  { %v2148_v55 = vpop.eup %2147  ;;  %2173 = vrcp.f32 %v994_v6  ;;  %v992_v20 = vadd.f32 1.0, %v2146_v54 }
 0x142   :  { %v2150_v35 = vpop.eup %2149  ;;  %2175 = vrcp.f32 %v1026_v11  ;;  %v1024_v53 = vadd.f32 1.0, %v2148_v55 }
 0x143   :  { %v2152_v30 = vpop.eup %2151  ;;  %2177 = vrcp.f32 %v992_v20  ;;  %v997_v3 = vadd.f32 1.0, %v2150_v35 }
 0x144   :  { %v2154_v61 = vpop.eup %2153  ;;  %2179 = vrcp.f32 %v1024_v53  ;;  %v1029_v24 = vadd.f32 1.0, %v2152_v30 }
 0x145   :  { %v2156_v52 = vpop.eup %2155  ;;  %2181 = vrcp.f32 %v997_v3  ;;  %v995_v58 = vadd.f32 1.0, %v2154_v61 }
 0x146   :  { %v2158_v50 = vpop.eup %2157  ;;  %2183 = vrcp.f32 %v1029_v24  ;;  %v1027_v12 = vadd.f32 1.0, %v2156_v52 }
 0x147   :  { %v2160_v59 = vpop.eup %2159  ;;  %2185 = vrcp.f32 %v995_v58  ;;  %v998_v32 = vadd.f32 1.0, %v2158_v50 }
 0x148   :  { %v2162_v39 = vpop.eup %2161  ;;  %2187 = vrcp.f32 %v1027_v12  ;;  %v1030_v13 = vadd.f32 1.0, %v2160_v59 }
 0x149   :  { %v2164_v8 = vpop.eup %2163  ;;  %2189 = vrcp.f32 %v998_v32  ;;  %v996_v38 = vadd.f32 1.0, %v2162_v39 }
 0x14a   :  { %v2166_v34 = vpop.eup %2165  ;;  %2191 = vrcp.f32 %v1030_v13  ;;  %v1028_v7 = vadd.f32 1.0, %v2164_v8 }
 0x14b   :  { %v2168_v42 = vpop.eup %2167  ;;  %v1185_v49 = vmul.f32 %v2166_v34, %v2812_v16  ;;  %2193 = vrcp.f32 %v996_v38 }
 0x14c   :  { %v2170_v15 = vpop.eup %2169  ;;  %v1217_v45 = vmul.f32 %v2168_v42, %v2819_v29  ;;  %2195 = vrcp.f32 %v1028_v7 }
 0x14d   :  { %v2172_v18 = vpop.eup %2171  ;;  %v1768_v19 = vpack.c.bf16 %v1185_v49, %v1185_v49  ;;  %v1183_v44 = vmul.f32 %v2170_v15, %v2826_v40 }
 0x14e   :  { %v2174_v21 = vpop.eup %2173  ;;  %v1800_v26 = vpack.c.bf16 %v1217_v45, %v1217_v45  ;;  %v1215_v4 = vmul.f32 %v2172_v18, %v2833_v28 }
 0x14f   :  { %v2176_v9 = vpop.eup %2175  ;;  %1506 = vst.msk [vmem:[%s3094_s4 + $0x68] sm:$0xf] %vm1479_vm2, %v1768_v19  ;;  %v1766_v16 = vpack.c.bf16 %v1183_v44, %v1183_v44  ;;  %v1186_v57 = vmul.f32 %v2174_v21, %v2862_v1 }
 0x150   :  { %v2178_v41 = vpop.eup %2177  ;;  %1538 = vst.msk [vmem:[%s3094_s4 + $0xe8] sm:$0xf] %vm1479_vm2, %v1800_v26  ;;  %v1798_v29 = vpack.c.bf16 %v1215_v4, %v1215_v4  ;;  %v1218_v40 = vmul.f32 %v2176_v9, %v2866_v51 }
 0x151   :  { %v2180_v2 = vpop.eup %2179  ;;  %1504 = vst.msk [vmem:[%s3094_s4 + $0x60] sm:$0xf] %vm1479_vm2, %v1766_v16  ;;  %v1769_v28 = vpack.c.bf16 %v1186_v57, %v1186_v57  ;;  %v1184_v25 = vmul.f32 %v2178_v41, %v2870_v22 }
 0x152   :  { %v2182_v31 = vpop.eup %2181  ;;  %1536 = vst.msk [vmem:[%s3094_s4 + $0xe0] sm:$0xf] %vm1479_vm2, %v1798_v29  ;;  %v1801_v1 = vpack.c.bf16 %v1218_v40, %v1218_v40  ;;  %v1216_v27 = vmul.f32 %v2180_v2, %v2874_v62 }
 0x153   :  { %v2184_v63 = vpop.eup %2183  ;;  %1507 = vst.msk [vmem:[%s3094_s4 + $0x6c] sm:$0xf] %vm1479_vm2, %v1769_v28  ;;  %v1767_v51 = vpack.c.bf16 %v1184_v25, %v1184_v25  ;;  %v1189_v10 = vmul.f32 %v2182_v31, %v2878_v14 }
 0x154   :  { %v2186_v37 = vpop.eup %2185  ;;  %1539 = vst.msk [vmem:[%s3094_s4 + $0xec] sm:$0xf] %vm1479_vm2, %v1801_v1  ;;  %v1799_v22 = vpack.c.bf16 %v1216_v27, %v1216_v27  ;;  %v1221_v48 = vmul.f32 %v2184_v63, %v2881_v5 }
 0x155   :  { %v2188_v0 = vpop.eup %2187  ;;  %1505 = vst.msk [vmem:[%s3094_s4 + $0x64] sm:$0xf] %vm1479_vm2, %v1767_v51  ;;  %v1772_v62 = vpack.c.bf16 %v1189_v10, %v1189_v10  ;;  %v1187_v17 = vmul.f32 %v2186_v37, %v2885_v47 }
 0x156   :  { %v2190_v33 = vpop.eup %2189  ;;  %1537 = vst.msk [vmem:[%s3094_s4 + $0xe4] sm:$0xf] %vm1479_vm2, %v1799_v22  ;;  %v1804_v14 = vpack.c.bf16 %v1221_v48, %v1221_v48  ;;  %v1219_v46 = vmul.f32 %v2188_v0, %v2889_v23 }
 0x157   :  { %v2192_v6 = vpop.eup %2191  ;;  %1510 = vst.msk [vmem:[%s3094_s4 + $0x78] sm:$0xf] %vm1479_vm2, %v1772_v62  ;;  %v1770_v5 = vpack.c.bf16 %v1187_v17, %v1187_v17  ;;  %v1190_v54 = vmul.f32 %v2190_v33, %v2931_v56 }
 0x158   :  { %v2194_v11 = vpop.eup %2193  ;;  %1542 = vst.msk [vmem:[%s3094_s4 + $0xf8] sm:$0xf] %vm1479_vm2, %v1804_v14  ;;  %v1802_v47 = vpack.c.bf16 %v1219_v46, %v1219_v46  ;;  %v1222_v55 = vmul.f32 %v2192_v6, %v2939_v43 }
 0x159   :  { %v2196_v20 = vpop.eup %2195  ;;  %1508 = vst.msk [vmem:[%s3094_s4 + $0x70] sm:$0xf] %vm1479_vm2, %v1770_v5  ;;  %v1773_v23 = vpack.c.bf16 %v1190_v54, %v1190_v54  ;;  %v1188_v35 = vmul.f32 %v2194_v11, %v2947_v36 }
 0x15a   :  { %1540 = vst.msk [vmem:[%s3094_s4 + $0xf0] sm:$0xf] %vm1479_vm2, %v1802_v47  ;;  %v1805_v56 = vpack.c.bf16 %v1222_v55, %v1222_v55  ;;  %v1220_v53 = vmul.f32 %v2196_v20, %v2955_v60 }
 0x15b   :  { %1511 = vst.msk [vmem:[%s3094_s4 + $0x7c] sm:$0xf] %vm1479_vm2, %v1773_v23  ;;  %v1771_v43 = vpack.c.bf16 %v1188_v35, %v1188_v35 }
 0x15c   :  { %1543 = vst.msk [vmem:[%s3094_s4 + $0xfc] sm:$0xf] %vm1479_vm2, %v1805_v56  ;;  %v1803_v36 = vpack.c.bf16 %v1220_v53, %v1220_v53 }
 0x15d   :  { %1509 = vst.msk [vmem:[%s3094_s4 + $0x74] sm:$0xf] %vm1479_vm2, %v1771_v43 }
 0x15e   :  { %1541 = vst.msk [vmem:[%s3094_s4 + $0xf4] sm:$0xf] %vm1479_vm2, %v1803_v36 }

// kernel: spp_bottleneck.3
= control target key start
LH: loop header
LB: loop body
LE: loop exit
PB: predicated region body
PF: predicated region fallthrough
CT: control target
= control target key end

     0   :  { %s9323_s15 = smov 0   ;;  %s9325_s16 = smov 0   ;;  %s13392_s0 = inlined_call_operand.vmem [shape: bf16[2,16,16,2], index: 0, kind: input, shape index: {}]   ;;  %s13393_s1 = inlined_call_operand.vmem [shape: bf16[1,8,8], index: 1, kind: input, shape index: {}]   ;;  %s13394_s2 = inlined_call_operand.vmem [shape: f32[1,8], index: 2, kind: input, shape index: {}]   ;;  %s13395_s3 = inlined_call_operand.vmem [shape: f32[1,8], index: 3, kind: input, shape index: {}]   ;;  %s13396_s4 = inlined_call_operand.vmem [shape: f32[2,16,16,8], index: 4, kind: output, shape index: {}]  }
   0x1   :  { %s9327_s17 = smov 0  }
   0x2 LB: > { %s26_s18 = sadd.s32 1, %s9290_s16  ;;  %p8597_p0 = scmp.ge.s32.totalorder %s9294_s17, 1  ;;  %s9294_s17 = sphi %s9327_s17, %s14_s17   ;;  %s9290_s16 = sphi %s9325_s16, %s13641_s16   ;;  %s9286_s15 = sphi %s9323_s15, %s13640_s15  }
   0x3   : > { %p28_p1 = scmp.ge.s32.totalorder %s26_s18, 2  ;;  %p188_p2 = scmp.lt.s32.totalorder %s9294_s17, 3 }
   0x5   : > { %s13643_s18 = smov (%p28_p1, %s26_s18), 0  ;;  %p189_p3 = pnand %p8597_p0, %p188_p2 }
   0x7   : > { %192 = sbr.rel (%p189_p3) target bundleno = 1271 (0x4f7), region = 36 }
   0xc   : > { %v309_v0 = vld [vmem:[%s13393_s1] sm:$0x1]  ;;  %vm471_vm0 = vcmask 1040384   ;;  %p221_p4 = scmp.lt.s32.totalorder %s9286_s15, 1  ;;  %vm701_vm1 = vcmask 11264   ;;  %vm717_vm2 = vcmask 8192  }
   0xd   : > { %9095 = vmatprep.subr.msk.bf16.mxu0 %vm471_vm0, %v309_v0  ;;  %v473_v1 = vsel %vm471_vm0, %v309_v0, 0  ;;  %v9351_v2 = vld [vmem:[%s13393_s1] ss:$0 sps:$4 sm:$0x44]   ;;  %vm704_vm3 = vcmask 9216   ;;  %vm734_vm4 = vcmask 9217  }
   0xe   : > { %8960 = vmatpush3.bf16.msra.mxu0 %v473_v1  ;;  %s13645_s15 = smov (!%p221_p4, %s9286_s15), 1  ;;  %v9356_v3 = vld [vmem:[%s13393_s1] ss:$0 sps:$4 sm:$0x22]   ;;  %v5404_v4 = vrot.slane %v9351_v2, 2  ;;  %vm752_vm5 = vcmask 1044484  }
   0xf   : > { %s8889_s25 = sshll.u32 %s13645_s15, 7  ;;  %v9296_v5 = vmov 4286644096   ;;  %vm422_vm6 = vcmask 15360   ;;  %vm882_vm7 = vcmask 11265   ;;  %v2947_v6 = vrot.slane %v9356_v3, 1  ;;  %vm9424_vm8 = vmor %vm471_vm0, %vm752_vm5 }
  0x10   : > { %702 = vst.msk [vmem:[#allocation2] sm:$0xf] %vm701_vm1, %v9296_v5  ;;  %703 = vst.msk [vmem:[#allocation2 + $0x4] sm:$0xf] %vm701_vm1, %v9296_v5  ;;  %s9393_s28 = scalar_lea.vmem %s13392_s0, %s8889_s25  ;;  %9097 = vmatprep.subr.msk.bf16.mxu0 %vm471_vm0, %v5404_v4  ;;  %v13439_v15 = vmov 0  ;;  %v5454_v20 = vsel %vm471_vm0, %v5404_v4, 0 }
  0x11   : > { %705 = vst.msk [vmem:[#allocation2 + $0x8] sm:$0x3] %vm704_vm3, %v9296_v5  ;;  %708 = vst.msk [vmem:[#allocation2 + $0x14] sm:$0x3] %vm704_vm3, %v9296_v5  ;;  %v277_v7 = vld [vmem:[%s9393_s28] sm:$0xf]  ;;  %9096 = vmatprep.subr.msk.bf16.mxu1 %vm471_vm0, %v2947_v6 }
  0x12   : > { %706 = vst.msk [vmem:[#allocation2 + $0xc] sm:$0xf] %vm701_vm1, %v9296_v5  ;;  %707 = vst.msk [vmem:[#allocation2 + $0x10] sm:$0xf] %vm701_vm1, %v9296_v5  ;;  %v278_v8 = vld [vmem:[%s9393_s28 + $0x4] sm:$0xf] }
  0x13   : > { %718 = vst.msk [vmem:[#allocation2 + $0x18] sm:$0x1] %vm717_vm2, %v9296_v5  ;;  %719 = vst.msk [vmem:[#allocation2 + $0x24] sm:$0x1] %vm717_vm2, %v9296_v5  ;;  %v279_v9 = vld [vmem:[%s9393_s28 + $0x8] sm:$0xf]  ;;  %v8602_v10 = vcombine.low %v277_v7, %v278_v8 }
  0x14   : > { %720 = vst.msk [vmem:[#allocation2 + $0x30] sm:$0x1] %vm717_vm2, %v9296_v5  ;;  %721 = vst.msk [vmem:[#allocation2 + $0x3c] sm:$0x1] %vm717_vm2, %v9296_v5  ;;  %v754_v11 = vrot.slane %v277_v7, 7  ;;  %v756_v12 = vrot.slane %v278_v8, 7 }
  0x15   : > { %710 = vst.msk [vmem:[#allocation2 + $0xd8] sm:$0xf] %vm701_vm1, %v9296_v5  ;;  %711 = vst.msk [vmem:[#allocation2 + $0xdc] sm:$0xf] %vm701_vm1, %v9296_v5  ;;  %v280_v13 = vld [vmem:[%s9393_s28 + $0xc] sm:$0xf]  ;;  %8961 = vmatprep.mubr.msk.bf16.mxu0 %vm422_vm6, %v8602_v10 }
  0x16   : > { %712 = vst.msk [vmem:[#allocation2 + $0xe0] sm:$0x3] %vm704_vm3, %v9296_v5  ;;  %715 = vst.msk [vmem:[#allocation2 + $0xec] sm:$0x3] %vm704_vm3, %v9296_v5  ;;  %v759_v14 = vrot.slane %v279_v9, 7  ;;  %v13440_v15 = vsel %vm9424_vm8, 4294967295, %v13439_v15  ;;  %v8603_v16 = vcombine.low %v279_v9, %v280_v13 }
  0x17   : > { %713 = vst.msk [vmem:[#allocation2 + $0xe4] sm:$0xf] %vm701_vm1, %v9296_v5  ;;  %714 = vst.msk [vmem:[#allocation2 + $0xe8] sm:$0xf] %vm701_vm1, %v9296_v5  ;;  %v761_v17 = vrot.slane %v280_v13, 7  ;;  %v755_v21 = vrot.slane %v754_v11, 4 }
  0x18   : > { %722 = vst.msk [vmem:[#allocation2 + $0x48] sm:$0x1] %vm717_vm2, %v9296_v5  ;;  %723 = vst.msk [vmem:[#allocation2 + $0x54] sm:$0x1] %vm717_vm2, %v9296_v5  ;;  %v281_v18 = vld [vmem:[%s9393_s28 + $0x10] sm:$0xf]  ;;  %8962 = vmatmul.mubr.msk.bf16.vlgmr.msra.gmra.mxu0 %vm422_vm6, %v8603_v16 }
  0x19   : > { %724 = vst.msk [vmem:[#allocation2 + $0x60] sm:$0x1] %vm717_vm2, %v9296_v5  ;;  %725 = vst.msk [vmem:[#allocation2 + $0x6c] sm:$0x1] %vm717_vm2, %v9296_v5  ;;  %v282_v19 = vld [vmem:[%s9393_s28 + $0x14] sm:$0xf]  ;;  %v757_v31 = vsel %vm9424_vm8, %v755_v21, %v756_v12  ;;  %9028 = vmatpush3.bf16.msra.mxu0 %v5454_v20 }
  0x1a   : > { %726 = vst.msk [vmem:[#allocation2 + $0x78] sm:$0x1] %vm717_vm2, %v9296_v5  ;;  %727 = vst.msk [vmem:[#allocation2 + $0x84] sm:$0x1] %vm717_vm2, %v9296_v5  ;;  %v758_v22 = vrot.slane %v756_v12, 4  ;;  %v760_v23 = vrot.slane %v759_v14, 4  ;;  %v8604_v24 = vcombine.low %v281_v18, %v282_v19 }
  0x1b   : > { %728 = vst.msk [vmem:[#allocation2 + $0x90] sm:$0x1] %vm717_vm2, %v9296_v5  ;;  %729 = vst.msk [vmem:[#allocation2 + $0x9c] sm:$0x1] %vm717_vm2, %v9296_v5  ;;  %v283_v25 = vld [vmem:[%s9393_s28 + $0x18] sm:$0xf] }
  0x1c   : > { %730 = vst.msk [vmem:[#allocation2 + $0xa8] sm:$0x1] %vm717_vm2, %v9296_v5  ;;  %731 = vst.msk [vmem:[#allocation2 + $0xb4] sm:$0x1] %vm717_vm2, %v9296_v5  ;;  %v763_v26 = vrot.slane %v761_v17, 4  ;;  %v764_v27 = vrot.slane %v281_v18, 7  ;;  %v762_v32 = vsel %vm9424_vm8, %v760_v23, %v761_v17  ;;  %8965 = vmatprep.mubr.msk.bf16.mxu0 %vm422_vm6, %v8604_v24 }
  0x1d   : > { %732 = vst.msk [vmem:[#allocation2 + $0xc0] sm:$0x1] %vm717_vm2, %v9296_v5  ;;  %733 = vst.msk [vmem:[#allocation2 + $0xcc] sm:$0x1] %vm717_vm2, %v9296_v5  ;;  %v766_v28 = vrot.slane %v282_v19, 7  ;;  %v769_v30 = vrot.slane %v283_v25, 7 }
  0x1e   : > { %735 = vst.msk [vmem:[#allocation2 + $0x20] sm:$0x2] %vm734_vm4, %v9296_v5  ;;  %736 = vst.msk [vmem:[#allocation2 + $0x2c] sm:$0x2] %vm734_vm4, %v9296_v5  ;;  %v284_v29 = vld [vmem:[%s9393_s28 + $0x1c] sm:$0xf] }
  0x1f   : > { %737 = vst.msk [vmem:[#allocation2 + $0x38] sm:$0x2] %vm734_vm4, %v9296_v5  ;;  %738 = vst.msk [vmem:[#allocation2 + $0x44] sm:$0x2] %vm734_vm4, %v9296_v5  ;;  %v771_v33 = vrot.slane %v284_v29, 7  ;;  %v765_v36 = vrot.slane %v764_v27, 4  ;;  %v8605_v46 = vcombine.low %v283_v25, %v284_v29 }
  0x20   : > { %739 = vst.msk [vmem:[#allocation2 + $0x50] sm:$0x2] %vm734_vm4, %v9296_v5  ;;  %740 = vst.msk [vmem:[#allocation2 + $0x5c] sm:$0x2] %vm734_vm4, %v9296_v5  ;;  %v285_v34 = vld [vmem:[%s9393_s28 + $0x20] sm:$0xf] }
  0x21   : > { %741 = vst.msk [vmem:[#allocation2 + $0x68] sm:$0x2] %vm734_vm4, %v9296_v5  ;;  %742 = vst.msk [vmem:[#allocation2 + $0x74] sm:$0x2] %vm734_vm4, %v9296_v5  ;;  %v286_v35 = vld [vmem:[%s9393_s28 + $0x24] sm:$0xf]  ;;  %v767_v45 = vsel %vm9424_vm8, %v765_v36, %v766_v28  ;;  %8966 = vmatmul.mubr.msk.bf16.gmra.mxu0 %vm422_vm6, %v8605_v46 }
  0x22   : > { %743 = vst.msk [vmem:[#allocation2 + $0x80] sm:$0x2] %vm734_vm4, %v9296_v5  ;;  %744 = vst.msk [vmem:[#allocation2 + $0x8c] sm:$0x2] %vm734_vm4, %v9296_v5  ;;  %v768_v37 = vrot.slane %v766_v28, 4  ;;  %v770_v38 = vrot.slane %v769_v30, 4  ;;  %v8606_v51 = vcombine.low %v285_v34, %v286_v35 }
  0x23   : > { %745 = vst.msk [vmem:[#allocation2 + $0x98] sm:$0x2] %vm734_vm4, %v9296_v5  ;;  %746 = vst.msk [vmem:[#allocation2 + $0xa4] sm:$0x2] %vm734_vm4, %v9296_v5  ;;  %v9453_v39 = vld [vmem:[%s9393_s28 + $0x28] sm:$0xf] }
  0x24   : > { %747 = vst.msk [vmem:[#allocation2 + $0xb0] sm:$0x2] %vm734_vm4, %v9296_v5  ;;  %748 = vst.msk [vmem:[#allocation2 + $0xbc] sm:$0x2] %vm734_vm4, %v9296_v5  ;;  %v773_v40 = vrot.slane %v771_v33, 4  ;;  %v774_v41 = vrot.slane %v285_v34, 7  ;;  %v772_v47 = vsel %vm9424_vm8, %v770_v38, %v771_v33  ;;  %8969 = vmatprep.mubr.msk.bf16.mxu0 %vm422_vm6, %v8606_v51 }
  0x25   : > { %749 = vst.msk [vmem:[#allocation2 + $0xc8] sm:$0x2] %vm734_vm4, %v9296_v5  ;;  %750 = vst.msk [vmem:[#allocation2 + $0xd4] sm:$0x2] %vm734_vm4, %v9296_v5  ;;  %v776_v42 = vrot.slane %v286_v35, 7  ;;  %v779_v44 = vrot.slane %v9453_v39, 7 }
  0x26   : > { %13441 = vst [vmem:[#allocation4_spill] sm:$0xff] %v13440_v15  ;;  %883 = vst.msk [vmem:[#allocation2 + $0x18] sm:$0xe] %vm882_vm7, %v754_v11  ;;  %v9456_v43 = vld [vmem:[%s9393_s28 + $0x2c] sm:$0xf]  ;;  %v775_v52 = vrot.slane %v774_v41, 4 }
  0x27   : > { %886 = vst.msk [vmem:[#allocation2 + $0x24] sm:$0xe] %vm882_vm7, %v759_v14  ;;  %889 = vst.msk [vmem:[#allocation2 + $0x30] sm:$0xe] %vm882_vm7, %v764_v27  ;;  %v781_v48 = vrot.slane %v9456_v43, 7  ;;  %v778_v53 = vrot.slane %v776_v42, 4  ;;  %v8607_v13 = vcombine.low %v9453_v39, %v9456_v43 }
  0x28   : > { %885 = vst.msk [vmem:[#allocation2 + $0x20] sm:$0x1] %vm717_vm2, %v758_v22  ;;  %888 = vst.msk [vmem:[#allocation2 + $0x2c] sm:$0x1] %vm717_vm2, %v763_v26  ;;  %v9466_v49 = vld [vmem:[%s9393_s28 + $0x30] sm:$0xf]  ;;  %v777_v61 = vsel %vm9424_vm8, %v775_v52, %v776_v42 }
  0x29   : > { %884 = vst.msk [vmem:[#allocation2 + $0x1c] sm:$0xf] %vm701_vm1, %v757_v31  ;;  %887 = vst.msk [vmem:[#allocation2 + $0x28] sm:$0xf] %vm701_vm1, %v762_v32  ;;  %v9469_v50 = vld [vmem:[%s9393_s28 + $0x34] sm:$0xf]  ;;  %8970 = vmatmul.mubr.msk.bf16.gmra.mxu0 %vm422_vm6, %v8607_v13 }
  0x2a   : > { %892 = vst.msk [vmem:[#allocation2 + $0x3c] sm:$0xe] %vm882_vm7, %v769_v30  ;;  %895 = vst.msk [vmem:[#allocation2 + $0x48] sm:$0xe] %vm882_vm7, %v774_v41  ;;  %v780_v54 = vrot.slane %v779_v44, 4  ;;  %v783_v56 = vrot.slane %v781_v48, 4  ;;  %v8608_v14 = vcombine.low %v9466_v49, %v9469_v50 }
  0x2b   : > { %891 = vst.msk [vmem:[#allocation2 + $0x38] sm:$0x1] %vm717_vm2, %v768_v37  ;;  %894 = vst.msk [vmem:[#allocation2 + $0x44] sm:$0x1] %vm717_vm2, %v773_v40  ;;  %v9477_v55 = vld [vmem:[%s9393_s28 + $0x38] sm:$0xf] }
  0x2c   : > { %890 = vst.msk [vmem:[#allocation2 + $0x34] sm:$0xf] %vm701_vm1, %v767_v45  ;;  %893 = vst.msk [vmem:[#allocation2 + $0x40] sm:$0xf] %vm701_vm1, %v772_v47  ;;  %v784_v57 = vrot.slane %v9466_v49, 7  ;;  %v786_v58 = vrot.slane %v9469_v50, 7  ;;  %v782_v62 = vsel %vm9424_vm8, %v780_v54, %v781_v48  ;;  %8973 = vmatprep.mubr.msk.bf16.mxu0 %vm422_vm6, %v8608_v14 }
  0x2d   : > { %898 = vst.msk [vmem:[#allocation2 + $0x54] sm:$0xe] %vm882_vm7, %v779_v44  ;;  %v9482_v59 = vld [vmem:[%s9393_s28 + $0x3c] sm:$0xf]  ;;  %v789_v60 = vrot.slane %v9477_v55, 7  ;;  %v2997_v5 = vsel %vm471_vm0, %v2947_v6, 0 }
  0x2e   : > { %897 = vst.msk [vmem:[#allocation2 + $0x50] sm:$0x1] %vm717_vm2, %v778_v53  ;;  %v791_v63 = vrot.slane %v9482_v59, 7  ;;  %v9491_v0 = vld [vmem:[#allocation2] sm:$0xf]  ;;  %v785_v1 = vrot.slane %v784_v57, 4  ;;  %8994 = vmatpush3.bf16.msra.mxu1 %v2997_v5  ;;  %v8609_v16 = vcombine.low %v9477_v55, %v9482_v59 }
  0x2f   : > { %896 = vst.msk [vmem:[#allocation2 + $0x4c] sm:$0xf] %vm701_vm1, %v777_v61  ;;  %899 = vst.msk [vmem:[#allocation2 + $0x58] sm:$0xf] %vm701_vm1, %v782_v62  ;;  %v788_v2 = vrot.slane %v786_v58, 4  ;;  %v790_v4 = vrot.slane %v789_v60, 4 }
  0x30   : > { %900 = vst.msk [vmem:[#allocation2 + $0x5c] sm:$0x1] %vm717_vm2, %v783_v56  ;;  %v793_v7 = vrot.slane %v791_v63, 4  ;;  %v995_v8 = vshrl.u32 %v9491_v0, 16  ;;  %v787_v9 = vsel %vm9424_vm8, %v785_v1, %v786_v58  ;;  %v9509_v11 = vld [vmem:[#allocation2 + $0x4] sm:$0xf] }
  0x31   : > { %901 = vst.msk [vmem:[#allocation2 + $0x60] sm:$0xe] %vm882_vm7, %v784_v57  ;;  %904 = vst.msk [vmem:[#allocation2 + $0x6c] sm:$0xe] %vm882_vm7, %v789_v60  ;;  %v792_v10 = vsel %vm9424_vm8, %v790_v4, %v791_v63  ;;  %vm991_vm9 = vsmask.f32 3328  ;;  %8974 = vmatmul.mubr.msk.bf16.gmra.mxu0 %vm422_vm6, %v8609_v16 }
  0x32   : > { %903 = vst.msk [vmem:[#allocation2 + $0x68] sm:$0x1] %vm717_vm2, %v788_v2  ;;  %906 = vst.msk [vmem:[#allocation2 + $0x74] sm:$0x1] %vm717_vm2, %v793_v7  ;;  %v9514_v3 = vld [vmem:[#allocation2 + $0xc] sm:$0xf] }
  0x33   : > { %902 = vst.msk [vmem:[#allocation2 + $0x64] sm:$0xf] %vm701_vm1, %v787_v9  ;;  %905 = vst.msk [vmem:[#allocation2 + $0x70] sm:$0xf] %vm701_vm1, %v792_v10  ;;  %v9516_v6 = vld [vmem:[#allocation2 + $0x10] sm:$0xf] }
  0x34   : > { %v9518_v12 = vld [vmem:[#allocation2 + $0x8] sm:$0x1]  ;;  %vm992_vm10 = vsmask.f32 7440  ;;  %v9526_v17 = vld [vmem:[#allocation2 + $0x18] sm:$0xf] }
  0x35   : > { %v997_v18 = vrot.slane %v995_v8, 4  ;;  %v998_v19 = vshll.u32 %v9491_v0, 16  ;;  %v1004_v20 = vshll.u32 %v9509_v11, 16  ;;  %v1008_v21 = vshrl.u32 %v9509_v11, 16  ;;  %v9531_v22 = vld [vmem:[#allocation2 + $0x14] sm:$0x1]  ;;  %vm9562_vm11 = vmor %vm991_vm9, %vm992_vm10 }
  0x36   : > { %v1014_v23 = vshll.u32 %v9518_v12, 16  ;;  %v1019_v24 = vshrl.u32 %v9514_v3, 16  ;;  %v1022_v25 = vshll.u32 %v9514_v3, 16  ;;  %v1028_v26 = vshll.u32 %v9516_v6, 16  ;;  %v9537_v27 = vld [vmem:[#allocation2 + $0x1c] sm:$0xf] }
  0x37   : > { %v1000_v28 = vrot.slane %v998_v19, 5  ;;  %v9541_v29 = vrot.slane %v1004_v20, 5  ;;  %v1010_v30 = vrot.slane %v1008_v21, 4  ;;  %v1032_v31 = vshrl.u32 %v9516_v6, 16  ;;  %v9558_v40 = vld [vmem:[#allocation2 + $0x24] sm:$0xf] }
  0x38   : > { %v9547_v32 = vrot.slane %v1014_v23, 5  ;;  %v1021_v33 = vrot.slane %v1019_v24, 4  ;;  %v1024_v34 = vrot.slane %v1022_v25, 5  ;;  %v9551_v35 = vrot.slane %v1028_v26, 5  ;;  %v9569_v46 = vld [vmem:[#allocation2 + $0x20] sm:$0x1] }
  0x39   : > { %v1001_v36 = vor.u32 %v1000_v28, %v997_v18  ;;  %v1011_v37 = vor.u32 %v1010_v30, %v9541_v29  ;;  %v1034_v38 = vrot.slane %v1032_v31, 4  ;;  %v1038_v39 = vshll.u32 %v9531_v22, 16  ;;  %v9572_v51 = vld [vmem:[#allocation2 + $0x28] sm:$0xf]  ;;  %v9583_v60 = vld [vmem:[#allocation2 + $0x2c] sm:$0x1] }
  0x3a   : > { %v1025_v42 = vor.u32 %v1024_v34, %v1021_v33  ;;  %v1043_v43 = vshrl.u32 %v9526_v17, 16  ;;  %v1046_v44 = vshll.u32 %v9526_v17, 16  ;;  %v1052_v45 = vshll.u32 %v9537_v27, 16  ;;  %v939_v2 = vld [vmem:[#allocation2 + $0x30] sm:$0xf]  ;;  %s8890_s9 = sshll.u32 %s13645_s15, 8 }
  0x3b   : > { %v1002_v47 = vrot.slane %v1001_v36, 4  ;;  %v1012_v48 = vrot.slane %v1011_v37, 4  ;;  %v1035_v49 = vor.u32 %v1034_v38, %v9551_v35  ;;  %v1040_v50 = vrot.slane %v1038_v39, 5  ;;  %v9597_v9 = vld [vmem:[#allocation2 + $0x34] sm:$0xf]  ;;  %s13187_s12 = scalar_lea.vmem %s13396_s4, %s8890_s9 }
  0x3c   : > { %v1026_v52 = vrot.slane %v1025_v42, 4  ;;  %v1045_v53 = vrot.slane %v1043_v43, 4  ;;  %v1048_v54 = vrot.slane %v1046_v44, 5  ;;  %v1054_v55 = vrot.slane %v1052_v45, 5  ;;  %v9603_v28 = vld [vmem:[#allocation2 + $0x38] sm:$0x1] }
  0x3d   : > { %v1007_v56 = vsel %vm9562_vm11, %v1002_v47, %v9541_v29  ;;  %v1017_v57 = vsel %vm9562_vm11, %v1012_v48, %v9547_v32  ;;  %v1036_v58 = vrot.slane %v1035_v49, 4  ;;  %v1056_v59 = vshrl.u32 %v9537_v27, 16 }
  0x3e   : > { %v1031_v61 = vsel %vm9562_vm11, %v1026_v52, %v9551_v35  ;;  %v1049_v62 = vor.u32 %v1048_v54, %v1045_v53  ;;  %v1062_v63 = vshll.u32 %v9569_v46, 16  ;;  %v1067_v1 = vshrl.u32 %v9558_v40, 16 }
  0x3f   : > { %vm1634_vm12 = vcmask 1042432   ;;  %vm1635_vm13 = vcmask 1046532   ;;  %v1041_v4 = vsel %vm9562_vm11, %v1036_v58, %v1040_v50  ;;  %v1058_v5 = vrot.slane %v1056_v59, 4 }
  0x40   : > { %v1070_v7 = vshll.u32 %v9558_v40, 16  ;;  %v1076_v8 = vshll.u32 %v9572_v51, 16  ;;  %v1050_v10 = vrot.slane %v1049_v62, 4  ;;  %v1064_v13 = vrot.slane %v1062_v63, 5  ;;  %vm9650_vm14 = vmor %vm1634_vm12, %vm1635_vm13 }
  0x41   : > { %v1069_v14 = vrot.slane %v1067_v1, 4  ;;  %v1080_v18 = vshrl.u32 %v9572_v51, 16  ;;  %v1059_v19 = vor.u32 %v1058_v5, %v1054_v55  ;;  %v1086_v25 = vshll.u32 %v9583_v60, 16 }
  0x42   : > { %v1072_v23 = vrot.slane %v1070_v7, 5  ;;  %v1078_v24 = vrot.slane %v1076_v8, 5  ;;  %v1055_v29 = vsel %vm9562_vm11, %v1050_v10, %v1054_v55  ;;  %v1091_v30 = vshrl.u32 %v939_v2, 16 }
  0x43   : > { %v1082_v16 = vrot.slane %v1080_v18, 4  ;;  %v1094_v32 = vshll.u32 %v939_v2, 16  ;;  %v1060_v33 = vrot.slane %v1059_v19, 4  ;;  %v1088_v35 = vrot.slane %v1086_v25, 5 }
  0x44   : > { %v1073_v34 = vor.u32 %v1072_v23, %v1069_v14  ;;  %v13397_v36 = vshll.u32 %v9597_v9, 16  ;;  %v1093_v38 = vrot.slane %v1091_v30, 4  ;;  %v1104_v42 = vshrl.u32 %v9597_v9, 16 }
  0x45   : > { %v1083_v37 = vor.u32 %v1082_v16, %v1078_v24  ;;  %v1096_v39 = vrot.slane %v1094_v32, 5  ;;  %v1065_v43 = vsel %vm9562_vm11, %v1060_v33, %v1064_v13  ;;  %v1110_v48 = vshll.u32 %v9603_v28, 16  ;;  %v9656_v13 = vld [vmem:[#allocation2 + $0xc] sm:$0xe]  ;;  %v9667_v16 = vld [vmem:[#allocation2 + $0x18] sm:$0xe] }
  0x46   : > { %v1074_v44 = vrot.slane %v1073_v34, 4  ;;  %v1102_v47 = vrot.slane %v13397_v36, 5  ;;  %v1106_v52 = vrot.slane %v1104_v42, 4  ;;  %v9619_v53 = vmax.bf16 %v1007_v56, %v9491_v0 }
  0x47   : > { %v1084_v49 = vrot.slane %v1083_v37, 4  ;;  %v1097_v50 = vor.u32 %v1096_v39, %v1093_v38  ;;  %v1112_v55 = vrot.slane %v1110_v48, 5  ;;  %v9624_v58 = vmax.bf16 %v1017_v57, %v9509_v11  ;;  %v9684_v38 = vld [vmem:[#allocation2 + $0x30] sm:$0xe] }
  0x48   : > { %v1079_v54 = vsel %vm9562_vm11, %v1074_v44, %v1078_v24  ;;  %v9627_v62 = vmax.bf16 %v1031_v61, %v9514_v3  ;;  %v1107_v5 = vor.u32 %v1106_v52, %v1102_v47  ;;  %v9632_v7 = vmax.bf16 %v1041_v4, %v9516_v6  ;;  %v9646_v61 = vld [vmem:[#allocation2] sm:$0xe] }
  0x49   : > { %v1089_v63 = vsel %vm9562_vm11, %v1084_v49, %v1088_v35  ;;  %v1098_v1 = vrot.slane %v1097_v50, 4  ;;  %v9635_v0 = vmax.bf16 %v1055_v29, %v9526_v17  ;;  %v9638_v56 = vmax.bf16 %v1065_v43, %v9537_v27 }
  0x4a   : > { %v9641_v57 = vmax.bf16 %v1079_v54, %v9558_v40  ;;  %v9644_v3 = vmax.bf16 %v1089_v63, %v9572_v51  ;;  %v1108_v4 = vrot.slane %v1107_v5, 4  ;;  %v8634_v40 = vrot.slane %v9646_v61, 9 }
  0x4b   : > { %v1103_v17 = vsel %vm9562_vm11, %v1098_v1, %v1102_v47  ;;  %v1639_v14 = vrot.slane %v9509_v11, 5  ;;  %v1642_v23 = vrot.slane %v9518_v12, 5  ;;  %v8635_v24 = vrot.slane %v9656_v13, 9  ;;  %v9677_v12 = vld [vmem:[#allocation2 + $0x24] sm:$0xe] }
  0x4c   : > { %v9660_v19 = vmax.bf16 %v1103_v17, %v939_v2  ;;  %v1646_v25 = vrot.slane %v9516_v6, 5  ;;  %v1113_v29 = vsel %vm9562_vm11, %v1108_v4, %v1112_v55  ;;  %v1649_v33 = vrot.slane %v9531_v22, 5 }
  0x4d   : > { %v9671_v30 = vsel %vm9650_vm14, %v8634_v40, %v1639_v14  ;;  %v1641_v32 = vrot.slane %v1639_v14, 4  ;;  %v9675_v2 = vmax.bf16 %v1113_v29, %v9597_v9  ;;  %v8636_v37 = vrot.slane %v9667_v16, 9  ;;  %v9734_v29 = vld [vmem:[#allocation2 + $0x8] sm:$0x3] }
  0x4e   : > { %v9681_v34 = vsel %vm9650_vm14, %v8635_v24, %v1646_v25  ;;  %v1648_v35 = vrot.slane %v1646_v25, 4  ;;  %v1653_v22 = vrot.slane %v9537_v27, 5  ;;  %v1656_v43 = vrot.slane %v9569_v46, 5 }
  0x4f   : > { %v9688_v39 = vsel %vm9650_vm14, %v1641_v32, %v1642_v23  ;;  %v8637_v44 = vrot.slane %v9677_v12, 9  ;;  %v1660_v48 = vrot.slane %v9572_v51, 5  ;;  %v1663_v49 = vrot.slane %v9583_v60, 5 }
  0x50   : > { %v9695_v47 = vsel %vm9650_vm14, %v1648_v35, %v1649_v33  ;;  %v8638_v50 = vrot.slane %v9684_v38, 9  ;;  %v9702_v52 = vsel %vm9650_vm14, %v8636_v37, %v1653_v22  ;;  %v1655_v54 = vrot.slane %v1653_v22, 4 }
  0x51   : > { %v1667_v55 = vrot.slane %v9597_v9, 5  ;;  %v1670_v46 = vrot.slane %v9603_v28, 5  ;;  %v9708_v63 = vsel %vm9650_vm14, %v8637_v44, %v1660_v48  ;;  %v1662_v1 = vrot.slane %v1660_v48, 4 }
  0x52   : > { %v9716_v17 = vsel %vm9650_vm14, %v1655_v54, %v1656_v43  ;;  %vm1877_vm15 = vsmask.f32 2304  ;;  %vm1878_vm3 = vsmask.f32 6416  ;;  %v1881_v43 = vshrl.u32 %v9646_v61, 16 }
  0x53   : > { %v9720_v4 = vsel %vm9650_vm14, %v8638_v50, %v1667_v55  ;;  %v1669_v28 = vrot.slane %v1667_v55, 4  ;;  %v9726_v14 = vsel %vm9650_vm14, %v1662_v1, %v1663_v49  ;;  %v1884_v44 = vshll.u32 %v9646_v61, 16  ;;  %v9755_v54 = vld [vmem:[#allocation2 + $0x14] sm:$0x3]  ;;  %vm9771_vm4 = vmor %vm1877_vm15, %vm1878_vm3 }
  0x54   : > { %v1889_v48 = vrot.slane %v1008_v21, 5  ;;  %v1890_v49 = vrot.slane %v1004_v20, 6  ;;  %v1895_v50 = vshrl.u32 %v9734_v29, 16  ;;  %v1883_v55 = vrot.slane %v1881_v43, 5 }
  0x55   : > { %v9738_v32 = vsel %vm9650_vm14, %v1669_v28, %v1670_v46  ;;  %v1898_v46 = vshll.u32 %v9734_v29, 16  ;;  %v1904_v1 = vshrl.u32 %v9656_v13, 16  ;;  %v1907_v28 = vshll.u32 %v9656_v13, 16 }
  0x56   : > { %v1886_v22 = vrot.slane %v1884_v44, 6  ;;  %v9760_v37 = vor.u32 %v1890_v49, %v1889_v48  ;;  %v1897_v61 = vrot.slane %v1895_v50, 5  ;;  %v1912_v21 = vrot.slane %v1032_v31, 5 }
  0x57   : > { %v1900_v35 = vrot.slane %v1898_v46, 6  ;;  %v1906_v20 = vrot.slane %v1904_v1, 5  ;;  %v1909_v33 = vrot.slane %v1907_v28, 6  ;;  %v1913_v25 = vrot.slane %v1028_v26, 6  ;;  %v9778_v26 = vld [vmem:[#allocation2 + $0x20] sm:$0x3] }
  0x58   : > { %v1887_v43 = vor.u32 %v1886_v22, %v1883_v55  ;;  %v1893_v24 = vrot.slane %v9760_v37, 4  ;;  %v1918_v23 = vshrl.u32 %v9755_v54, 16  ;;  %v1921_v13 = vshll.u32 %v9755_v54, 16 }
  0x59   : > { %v1901_v31 = vor.u32 %v1900_v35, %v1897_v61  ;;  %v1910_v48 = vor.u32 %v1909_v33, %v1906_v20  ;;  %v9775_v49 = vor.u32 %v1913_v25, %v1912_v21  ;;  %v1927_v50 = vshrl.u32 %v9667_v16, 16  ;;  %v9796_v20 = vld [vmem:[#allocation2 + $0x2c] sm:$0x3] }
  0x5a   : > { %v1888_v22 = vrot.slane %v1887_v43, 4  ;;  %v1920_v55 = vrot.slane %v1918_v23, 5  ;;  %v1923_v46 = vrot.slane %v1921_v13, 6  ;;  %v1930_v1 = vshll.u32 %v9667_v16, 16 }
  0x5b   : > { %v1902_v28 = vsel %vm9771_vm4, %v1893_v24, %v1901_v31  ;;  %v1911_v40 = vrot.slane %v1910_v48, 4  ;;  %v1916_v60 = vrot.slane %v9775_v49, 4  ;;  %v1929_v5 = vrot.slane %v1927_v50, 5 }
  0x5c   : > { %v1892_v25 = vsel %vm9771_vm4, %v1888_v22, %v9760_v37  ;;  %v1924_v33 = vor.u32 %v1923_v46, %v1920_v55  ;;  %v1932_v35 = vrot.slane %v1930_v1, 6  ;;  %v1935_v61 = vrot.slane %v1056_v59, 5 }
  0x5d   : > { %v1915_v16 = vsel %vm9771_vm4, %v1911_v40, %v9775_v49  ;;  %v1936_v23 = vrot.slane %v1052_v45, 6  ;;  %v1941_v24 = vshrl.u32 %v9778_v26, 16  ;;  %v1944_v21 = vshll.u32 %v9778_v26, 16 }
  0x5e   : > { %v1925_v37 = vsel %vm9771_vm4, %v1916_v60, %v1924_v33  ;;  %v1933_v43 = vor.u32 %v1932_v35, %v1929_v5  ;;  %v1950_v13 = vshrl.u32 %v9677_v12, 16  ;;  %v1953_v59 = vshll.u32 %v9677_v12, 16  ;;  %v9808_v33 = vld [vmem:[#allocation2 + $0x38] sm:$0x3] }
  0x5f   : > { %v1937_v31 = vor.u32 %v1936_v23, %v1935_v61  ;;  %v1943_v48 = vrot.slane %v1941_v24, 5  ;;  %v1946_v40 = vrot.slane %v1944_v21, 6  ;;  %v1958_v45 = vrot.slane %v1080_v18, 5 }
  0x60   : > { %v1934_v49 = vrot.slane %v1933_v43, 4  ;;  %v1952_v50 = vrot.slane %v1950_v13, 5  ;;  %v1955_v22 = vrot.slane %v1953_v59, 6  ;;  %v1959_v55 = vrot.slane %v1076_v8, 6 }
  0x61   : > { %v1939_v46 = vrot.slane %v1937_v31, 4  ;;  %v1947_v1 = vor.u32 %v1946_v40, %v1943_v48  ;;  %v1964_v5 = vshrl.u32 %v9796_v20, 16  ;;  %v1967_v60 = vshll.u32 %v9796_v20, 16 }
  0x62   : > { %v1938_v12 = vsel %vm9771_vm4, %v1934_v49, %v1937_v31  ;;  %v1956_v35 = vor.u32 %v1955_v22, %v1952_v50  ;;  %v1960_v61 = vor.u32 %v1959_v55, %v1958_v45  ;;  %v1973_v18 = vshrl.u32 %v9684_v38, 16 }
  0x63   : > { %v1948_v23 = vsel %vm9771_vm4, %v1939_v46, %v1947_v1  ;;  %v1966_v24 = vrot.slane %v1964_v5, 5  ;;  %v1969_v8 = vrot.slane %v1967_v60, 6  ;;  %v1976_v21 = vshll.u32 %v9684_v38, 16 }
  0x64   : > { %v1957_v43 = vrot.slane %v1956_v35, 4  ;;  %v1962_v13 = vrot.slane %v1960_v61, 4  ;;  %v1975_v59 = vrot.slane %v1973_v18, 5  ;;  %v1981_v48 = vrot.slane %v1104_v42, 5 }
  0x65   : > { %v1970_v40 = vor.u32 %v1969_v8, %v1966_v24  ;;  %v1978_v36 = vrot.slane %v1976_v21, 6  ;;  %v13448_v31 = vshll.u32 %v9597_v9, 16  ;;  %v1987_v49 = vshrl.u32 %v9808_v33, 16 }
  0x66   : > { %v1961_v50 = vsel %vm9771_vm4, %v1957_v43, %v1960_v61  ;;  %v1990_v22 = vshll.u32 %v9808_v33, 16  ;;  %v13449_v38 = vmax.bf16 %v9671_v30, %v9619_v53  ;;  %v13450_v42 = vmax.bf16 %v9688_v39, %v9624_v58 }
  0x67   : > { %v1982_v45 = vrot.slane %v13448_v31, 6  ;;  %v1971_v1 = vsel %vm9771_vm4, %v1962_v13, %v1970_v40  ;;  %v1979_v5 = vor.u32 %v1978_v36, %v1975_v59  ;;  %v1989_v35 = vrot.slane %v1987_v49, 5  ;;  %v2424_v31 = vld [vmem:[#allocation2 + $0x30] sm:$0xc] }
  0x68   : > { %v9827_v55 = vmax.bf16 %v1892_v25, %v13449_v38  ;;  %v9832_v46 = vmax.bf16 %v1902_v28, %v13450_v42  ;;  %v1992_v18 = vrot.slane %v1990_v22, 6  ;;  %v13451_v61 = vmax.bf16 %v9681_v34, %v9627_v62  ;;  %v2420_v28 = vld [vmem:[#allocation2] sm:$0xc]  ;;  %v2421_v34 = vld [vmem:[#allocation2 + $0xc] sm:$0xc] }
  0x69   : > { %v1983_v60 = vor.u32 %v1982_v45, %v1981_v48  ;;  %v13452_v53 = vmax.bf16 %v9695_v47, %v9632_v7  ;;  %v13453_v58 = vmax.bf16 %v9702_v52, %v9635_v0  ;;  %v1980_v25 = vrot.slane %v1979_v5, 4  ;;  %v2422_v52 = vld [vmem:[#allocation2 + $0x18] sm:$0xc] }
  0x6a   : > { %v2382_v24 = vmax.bf16 %v1915_v16, %v13451_v61  ;;  %v13454_v36 = vmax.bf16 %v9716_v17, %v9638_v56  ;;  %v13455_v43 = vmax.bf16 %v9708_v63, %v9641_v57  ;;  %v1993_v16 = vor.u32 %v1992_v18, %v1989_v35 }
  0x6b   : > { %v2383_v30 = vmax.bf16 %v1925_v37, %v13452_v53  ;;  %v2384_v39 = vmax.bf16 %v1938_v12, %v13453_v58  ;;  %v1985_v8 = vrot.slane %v1983_v60, 4  ;;  %v13456_v7 = vmax.bf16 %v9726_v14, %v9644_v3  ;;  %v2423_v12 = vld [vmem:[#allocation2 + $0x24] sm:$0xc] }
  0x6c   : > { %v2385_v21 = vmax.bf16 %v1948_v23, %v13454_v36  ;;  %v2386_v62 = vmax.bf16 %v1961_v50, %v13455_v43  ;;  %vm2480_vm5 = vcmask 1041408   ;;  %vm2481_vm9 = vcmask 1045508  }
  0x6d   : > { %v2387_v47 = vmax.bf16 %v1971_v1, %v13456_v7  ;;  %v1984_v0 = vsel %vm9771_vm4, %v1980_v25, %v1983_v60  ;;  %vm9856_vm10 = vmor %vm2480_vm5, %vm2481_vm9  ;;  %v8654_v56 = vrot.slane %v2420_v28, 10  ;;  %v2485_v57 = vrot.slane %v9509_v11, 6 }
  0x6e   : > { %v2488_v63 = vrot.slane %v9734_v29, 6  ;;  %v1994_v17 = vsel %vm9771_vm4, %v1985_v8, %v1993_v16  ;;  %v13459_v3 = vmax.bf16 %v9720_v4, %v9660_v19  ;;  %v8655_v23 = vrot.slane %v2421_v34, 10  ;;  %v9908_v8 = vld [vmem:[#allocation2 + $0x40] sm:$0xf] }
  0x6f   : > { %v2492_v13 = vrot.slane %v9516_v6, 6  ;;  %v13460_v59 = vmax.bf16 %v9738_v32, %v9675_v2  ;;  %v2486_v11 = vsel %vm9856_vm10, %v8654_v56, %v2485_v57  ;;  %v2487_v40 = vrot.slane %v2485_v57, 4 }
  0x70   : > { %v2388_v14 = vmax.bf16 %v1984_v0, %v13459_v3  ;;  %v2495_v29 = vrot.slane %v9755_v54, 6  ;;  %v8656_v4 = vrot.slane %v2422_v52, 10  ;;  %v2499_v49 = vrot.slane %v9537_v27, 6  ;;  %v1559_v52 = vld [vmem:[#allocation2 + $0x3c] sm:$0xe] }
  0x71   : > { %v2389_v48 = vmax.bf16 %v1994_v17, %v13460_v59  ;;  %v2493_v45 = vsel %vm9856_vm10, %v8655_v23, %v2492_v13  ;;  %v2494_v19 = vrot.slane %v2492_v13, 4  ;;  %v2489_v6 = vsel %vm9856_vm10, %v2487_v40, %v2488_v63 }
  0x72   : > { %v2502_v2 = vrot.slane %v9778_v26, 6  ;;  %v8657_v32 = vrot.slane %v2423_v12, 10  ;;  %v2506_v50 = vrot.slane %v9572_v51, 6  ;;  %v2500_v54 = vsel %vm9856_vm10, %v8656_v4, %v2499_v49 }
  0x73   : > { %v2496_v22 = vsel %vm9856_vm10, %v2494_v19, %v2495_v29  ;;  %v2501_v38 = vrot.slane %v2499_v49, 4  ;;  %v2509_v42 = vrot.slane %v9796_v20, 6  ;;  %v8658_v5 = vrot.slane %v2424_v31, 10 }
  0x74   : > { %v2507_v27 = vsel %vm9856_vm10, %v8657_v32, %v2506_v50  ;;  %v2508_v1 = vrot.slane %v2506_v50, 4  ;;  %v2513_v60 = vrot.slane %v9597_v9, 6  ;;  %v2516_v51 = vrot.slane %v9808_v33, 6 }
  0x75   : > { %v2503_v26 = vsel %vm9856_vm10, %v2501_v38, %v2502_v2  ;;  %v2663_v35 = vmax.bf16 %v2486_v11, %v9827_v55  ;;  %v2664_v18 = vmax.bf16 %v2489_v6, %v9832_v46  ;;  %v9898_v58 = vmax.bf16 %v2493_v45, %v2382_v24  ;;  %v941_v55 = vld [vmem:[#allocation2 + $0x3c] sm:$0xf] }
  0x76   : > { %v2510_v61 = vsel %vm9856_vm10, %v2508_v1, %v2509_v42  ;;  %v2514_v20 = vsel %vm9856_vm10, %v8658_v5, %v2513_v60  ;;  %v2515_v53 = vrot.slane %v2513_v60, 4  ;;  %v9900_v28 = vmax.bf16 %v2496_v22, %v2383_v30  ;;  %v976_v30 = vld [vmem:[#allocation2 + $0x44] sm:$0x1] }
  0x77   : > { %v9902_v9 = vmax.bf16 %v2500_v54, %v2384_v39  ;;  %v9904_v25 = vmax.bf16 %v2503_v26, %v2385_v21  ;;  %v9906_v33 = vmax.bf16 %v2507_v27, %v2386_v62  ;;  %v9912_v36 = vmax.bf16 %v2510_v61, %v2387_v47  ;;  %v1862_v1 = vld [vmem:[#allocation2 + $0x44] sm:$0x3] }
  0x78   : > { %v2517_v46 = vsel %vm9856_vm10, %v2515_v53, %v2516_v51  ;;  %v9914_v43 = vmax.bf16 %v2514_v20, %v2388_v14  ;;  %v2703_v24 = vmax.bf16 %v9898_v58, %v2663_v35  ;;  %v2704_v39 = vmax.bf16 %v9900_v28, %v2664_v18  ;;  %v2425_v35 = vld [vmem:[#allocation2 + $0x3c] sm:$0xc] }
  0x79   : > { %v9917_v34 = vmax.bf16 %v2517_v46, %v2389_v48  ;;  %v2705_v21 = vmax.bf16 %v9902_v9, %v9898_v58  ;;  %v2706_v62 = vmax.bf16 %v9904_v25, %v9900_v28  ;;  %v1115_v7 = vshrl.u32 %v941_v55, 16  ;;  %v9972_v28 = vld [vmem:[#allocation2 + $0x48] sm:$0xf] }
  0x7a   : > { %v2735_v16 = vmax.bf16 %v2703_v24, %v9902_v9  ;;  %v1118_v47 = vshll.u32 %v941_v55, 16  ;;  %v1124_v0 = vshll.u32 %v9908_v8, 16  ;;  %v2736_v56 = vmax.bf16 %v2704_v39, %v9904_v25 }
  0x7b   : > { %v1128_v57 = vshrl.u32 %v9908_v8, 16  ;;  %v1134_v63 = vshll.u32 %v976_v30, 16  ;;  %v8639_v17 = vrot.slane %v1559_v52, 9  ;;  %v1117_v14 = vrot.slane %v1115_v7, 4 }
  0x7c   : > { %v2767_v3 = vmax.bf16 %v2735_v16, %v9906_v33  ;;  %v1120_v12 = vrot.slane %v1118_v47, 5  ;;  %v1126_v23 = vrot.slane %v1124_v0, 5  ;;  %v2768_v13 = vmax.bf16 %v2736_v56, %v9912_v36 }
  0x7d   : > { %v1130_v59 = vrot.slane %v1128_v57, 4  ;;  %v1136_v48 = vrot.slane %v1134_v63, 5  ;;  %v1674_v11 = vrot.slane %v9908_v8, 5  ;;  %v1677_v31 = vrot.slane %v976_v30, 5  ;;  %v293_v63 = vld [vmem:[%s9393_s28 + $0x40] sm:$0xf] }
  0x7e   : > { %v2799_v40 = vmax.bf16 %v2767_v3, %v9914_v43  ;;  %v1121_v29 = vor.u32 %v1120_v12, %v1117_v14  ;;  %v1996_v45 = vshrl.u32 %v1559_v52, 16  ;;  %v2800_v19 = vmax.bf16 %v2768_v13, %v9917_v34 }
  0x7f   : > { %v1131_v4 = vor.u32 %v1130_v59, %v1126_v23  ;;  %v1675_v49 = vsel %vm9650_vm14, %v8639_v17, %v1674_v11  ;;  %v1676_v6 = vrot.slane %v1674_v11, 4  ;;  %v1999_v22 = vshll.u32 %v1559_v52, 16  ;;  %v295_v11 = vld [vmem:[%s9393_s28 + $0x48] sm:$0xf] }
  0x80   : > { %v3224_v2 = vrot.slane %v2799_v40, 7  ;;  %v1122_v32 = vrot.slane %v1121_v29, 4  ;;  %v1998_v50 = vrot.slane %v1996_v45, 5  ;;  %v8674_v54 = vcombine.low %v2799_v40, %v2800_v19  ;;  %v9137_v45 = vld [vmem:[%s13393_s1] ss:$0 sps:$4 sm:$0x88]  }
  0x81   : > { %v3226_v38 = vrot.slane %v2800_v19, 7  ;;  %v1132_v42 = vrot.slane %v1131_v4, 4  ;;  %v1678_v27 = vsel %vm9650_vm14, %v1676_v6, %v1677_v31  ;;  %v2001_v26 = vrot.slane %v1999_v22, 6 }
  0x82   : > { %v3225_v5 = vrot.slane %v3224_v2, 4  ;;  %3352 = vst.msk [vmem:[#allocation2 + $0x18] sm:$0xe] %vm882_vm7, %v3224_v2  ;;  %v1127_v60 = vsel %vm9562_vm11, %v1122_v32, %v1126_v23  ;;  %v2004_v51 = vrot.slane %v1128_v57, 5  ;;  %8995 = vmatprep.mubr.msk.bf16.mxu1 %vm422_vm6, %v8674_v54  ;;  %v2005_v53 = vrot.slane %v1124_v0, 6 }
  0x83   : > { %v3228_v18 = vrot.slane %v3226_v38, 4  ;;  %v1137_v61 = vsel %vm9562_vm11, %v1132_v42, %v1136_v48  ;;  %v1524_v20 = vmax.bf16 %v1127_v60, %v941_v55  ;;  %v2002_v30 = vor.u32 %v2001_v26, %v1998_v50  ;;  %v294_v23 = vld [vmem:[%s9393_s28 + $0x44] sm:$0xf]  ;;  %v9983_v60 = vld [vmem:[#allocation2 + $0x4c] sm:$0xf] }
  0x84   : > { %v3227_v46 = vsel %vm9424_vm8, %v3225_v5, %v3226_v38  ;;  %v1525_v24 = vmax.bf16 %v1137_v61, %v9908_v8  ;;  %v2010_v39 = vshrl.u32 %v1862_v1, 16  ;;  %v2006_v7 = vor.u32 %v2005_v53, %v2004_v51  ;;  %v977_v61 = vld [vmem:[#allocation2 + $0x50] sm:$0x1] }
  0x85   : > { %3353 = vst.msk [vmem:[#allocation2 + $0x1c] sm:$0xf] %vm701_vm1, %v3227_v46  ;;  %v1827_v16 = vmax.bf16 %v1675_v49, %v1524_v20  ;;  %v2013_v47 = vshll.u32 %v1862_v1, 16  ;;  %v8659_v52 = vrot.slane %v2425_v35, 10  ;;  %v2003_v56 = vrot.slane %v2002_v30, 4 }
  0x86   : > { %3354 = vst.msk [vmem:[#allocation2 + $0x20] sm:$0x1] %vm717_vm2, %v3228_v18  ;;  %v1828_v55 = vmax.bf16 %v1678_v27, %v1525_v24  ;;  %v2012_v0 = vrot.slane %v2010_v39, 5  ;;  %v2520_v57 = vrot.slane %v9908_v8, 6  ;;  %v2008_v17 = vrot.slane %v2006_v7, 4 }
  0x87   : > { %v2015_v3 = vrot.slane %v2013_v47, 6  ;;  %v2523_v14 = vrot.slane %v1862_v1, 6  ;;  %v2737_v12 = vmax.bf16 %v2705_v21, %v9906_v33  ;;  %v2007_v13 = vsel %vm9771_vm4, %v2003_v56, %v2006_v7  ;;  %v296_v21 = vld [vmem:[%s9393_s28 + $0x4c] sm:$0xf] }
  0x88   : > { %v2521_v59 = vsel %vm9856_vm10, %v8659_v52, %v2520_v57  ;;  %v2522_v48 = vrot.slane %v2520_v57, 4  ;;  %v2738_v8 = vmax.bf16 %v2706_v62, %v9912_v36  ;;  %v2390_v29 = vmax.bf16 %v2007_v13, %v1827_v16  ;;  %v1560_v52 = vld [vmem:[#allocation2 + $0x48] sm:$0xe] }
  0x89   : > { %v2016_v40 = vor.u32 %v2015_v3, %v2012_v0  ;;  %v2769_v31 = vmax.bf16 %v2737_v12, %v9914_v43  ;;  %v8610_v58 = vcombine.low %v293_v63, %v294_v23  ;;  %v794_v49 = vrot.slane %v293_v63, 7 }
  0x8a   : > { %v2524_v19 = vsel %vm9856_vm10, %v2522_v48, %v2523_v14  ;;  %v2770_v4 = vmax.bf16 %v2738_v8, %v9917_v34  ;;  %v796_v6 = vrot.slane %v294_v23, 7  ;;  %v9976_v2 = vmax.bf16 %v2521_v59, %v2390_v29  ;;  %v1863_v48 = vld [vmem:[#allocation2 + $0x50] sm:$0x3] }
  0x8b   : > { %v2017_v62 = vsel %vm9771_vm4, %v2008_v17, %v2016_v40  ;;  %8977 = vmatprep.mubr.msk.bf16.mxu0 %vm422_vm6, %v8610_v58  ;;  %v8611_v32 = vcombine.low %v295_v11, %v296_v21  ;;  %v799_v50 = vrot.slane %v295_v11, 7  ;;  %v795_v54 = vrot.slane %v794_v49, 4  ;;  %907 = vst.msk [vmem:[#allocation2 + $0x78] sm:$0xe] %vm882_vm7, %v794_v49 }
  0x8c   : > { %v2391_v22 = vmax.bf16 %v2017_v62, %v1828_v55  ;;  %v798_v38 = vrot.slane %v796_v6, 4  ;;  %v801_v42 = vrot.slane %v296_v21, 7  ;;  %v2801_v27 = vmax.bf16 %v2769_v31, %v9976_v2 }
  0x8d   : > { %8978 = vmatmul.mubr.msk.bf16.gmra.mxu0 %vm422_vm6, %v8611_v32  ;;  %v800_v1 = vrot.slane %v799_v50, 4  ;;  %910 = vst.msk [vmem:[#allocation2 + $0x84] sm:$0xe] %vm882_vm7, %v799_v50  ;;  %v7861_v5 = vrot.slane %v9137_v45, 3  ;;  %v1139_v26 = vshrl.u32 %v9972_v28, 16  ;;  %v797_v35 = vsel %vm9424_vm8, %v795_v54, %v796_v6 }
  0x8e   : > { %v9986_v51 = vmax.bf16 %v2524_v19, %v2391_v22  ;;  %909 = vst.msk [vmem:[#allocation2 + $0x80] sm:$0x1] %vm717_vm2, %v798_v38  ;;  %v803_v18 = vrot.slane %v801_v42, 4  ;;  %v1142_v20 = vshll.u32 %v9972_v28, 16  ;;  %v3229_v53 = vrot.slane %v2801_v27, 7 }
  0x8f   : > { %908 = vst.msk [vmem:[#allocation2 + $0x7c] sm:$0xf] %vm701_vm1, %v797_v35  ;;  %v802_v46 = vsel %vm9424_vm8, %v800_v1, %v801_v42  ;;  %9098 = vmatprep.subr.msk.bf16.mxu1 %vm471_vm0, %v7861_v5  ;;  %v7911_v24 = vsel %vm471_vm0, %v7861_v5, 0  ;;  %v1141_v30 = vrot.slane %v1139_v26, 4  ;;  %v1148_v7 = vshll.u32 %v9983_v60, 16 }
  0x90   : > { %v2802_v39 = vmax.bf16 %v2770_v4, %v9986_v51  ;;  %911 = vst.msk [vmem:[#allocation2 + $0x88] sm:$0xf] %vm701_vm1, %v802_v46  ;;  %v1144_v16 = vrot.slane %v1142_v20, 5  ;;  %v1152_v47 = vshrl.u32 %v9983_v60, 16  ;;  %v3230_v55 = vrot.slane %v3229_v53, 4 }
  0x91   : > { %912 = vst.msk [vmem:[#allocation2 + $0x8c] sm:$0x1] %vm717_vm2, %v803_v18  ;;  %v1158_v56 = vshll.u32 %v977_v61, 16  ;;  %v8640_v0 = vrot.slane %v1560_v52, 9  ;;  %v1681_v57 = vrot.slane %v9983_v60, 5  ;;  %v1150_v14 = vrot.slane %v1148_v7, 5 }
  0x92   : > { %3355 = vst.msk [vmem:[#allocation2 + $0x24] sm:$0xe] %vm882_vm7, %v3229_v53  ;;  %v8675_v63 = vcombine.low %v2801_v27, %v2802_v39  ;;  %v3231_v17 = vrot.slane %v2802_v39, 7  ;;  %v1145_v3 = vor.u32 %v1144_v16, %v1141_v30  ;;  %v1154_v12 = vrot.slane %v1152_v47, 4  ;;  %v2426_v19 = vld [vmem:[#allocation2 + $0x48] sm:$0xc] }
  0x93   : > { %v1160_v23 = vrot.slane %v1158_v56, 5  ;;  %v1682_v13 = vsel %vm9650_vm14, %v8640_v0, %v1681_v57  ;;  %v1683_v59 = vrot.slane %v1681_v57, 4  ;;  %v1684_v29 = vrot.slane %v977_v61, 5  ;;  %v945_v61 = vld [vmem:[#allocation2 + $0x54] sm:$0xf] }
  0x94   : > { %8996 = vmatmul.mubr.msk.bf16.vlgmr.msra.gmra.mxu1 %vm422_vm6, %v8675_v63  ;;  %v3232_v8 = vsel %vm9424_vm8, %v3230_v55, %v3231_v17  ;;  %v3233_v11 = vrot.slane %v3231_v17, 4  ;;  %v1146_v40 = vrot.slane %v1145_v3, 4  ;;  %v1155_v31 = vor.u32 %v1154_v12, %v1150_v14  ;;  %v10026_v55 = vld [vmem:[#allocation2 + $0x58] sm:$0xf]  ;;  %v978_v63 = vld [vmem:[#allocation2 + $0x5c] sm:$0x1] }
  0x95   : > { %3356 = vst.msk [vmem:[#allocation2 + $0x28] sm:$0xf] %vm701_vm1, %v3232_v8  ;;  %9062 = vmatpush3.bf16.msra.mxu1 %v7911_v24  ;;  %v2019_v58 = vshrl.u32 %v1560_v52, 16  ;;  %v2022_v21 = vshll.u32 %v1560_v52, 16  ;;  %v2027_v45 = vrot.slane %v1152_v47, 5  ;;  %v1685_v49 = vsel %vm9650_vm14, %v1683_v59, %v1684_v29 }
  0x96   : > { %3357 = vst.msk [vmem:[#allocation2 + $0x2c] sm:$0x1] %vm717_vm2, %v3233_v11  ;;  %v1151_v4 = vsel %vm9562_vm11, %v1146_v40, %v1150_v14  ;;  %v2028_v6 = vrot.slane %v1148_v7, 6  ;;  %v2033_v62 = vshrl.u32 %v1863_v48, 16  ;;  %v1156_v32 = vrot.slane %v1155_v31, 4 }
  0x97   : > { %v1526_v50 = vmax.bf16 %v1151_v4, %v9972_v28  ;;  %v2021_v22 = vrot.slane %v2019_v58, 5  ;;  %v2024_v54 = vrot.slane %v2022_v21, 6  ;;  %v2036_v27 = vshll.u32 %v1863_v48, 16  ;;  %v1561_v29 = vld [vmem:[#allocation2 + $0x54] sm:$0xe] }
  0x98   : > { %v2029_v38 = vor.u32 %v2028_v6, %v2027_v45  ;;  %v2035_v42 = vrot.slane %v2033_v62, 5  ;;  %v8660_v1 = vrot.slane %v2426_v19, 10  ;;  %v1161_v5 = vsel %vm9562_vm11, %v1156_v32, %v1160_v23 }
  0x99   : > { %v1829_v26 = vmax.bf16 %v1682_v13, %v1526_v50  ;;  %v2025_v35 = vor.u32 %v2024_v54, %v2021_v22  ;;  %v2527_v18 = vrot.slane %v9983_v60, 6  ;;  %v1527_v20 = vmax.bf16 %v1161_v5, %v9983_v60 }
  0x9a   : > { %v2031_v53 = vrot.slane %v2029_v38, 4  ;;  %v2038_v46 = vrot.slane %v2036_v27, 6  ;;  %v2530_v24 = vrot.slane %v1863_v48, 6  ;;  %v2707_v16 = vmax.bf16 %v9906_v33, %v9902_v9 }
  0x9b   : > { %v2026_v28 = vrot.slane %v2025_v35, 4  ;;  %v2528_v30 = vsel %vm9856_vm10, %v8660_v1, %v2527_v18  ;;  %v2529_v39 = vrot.slane %v2527_v18, 4  ;;  %v1830_v7 = vmax.bf16 %v1685_v49, %v1527_v20  ;;  %v1864_v35 = vld [vmem:[#allocation2 + $0x5c] sm:$0x3] }
  0x9c   : > { %v2039_v47 = vor.u32 %v2038_v46, %v2035_v42  ;;  %v2708_v52 = vmax.bf16 %v9912_v36, %v9904_v25  ;;  %v1163_v56 = vshrl.u32 %v945_v61, 16  ;;  %v2739_v57 = vmax.bf16 %v2707_v16, %v9914_v43 }
  0x9d   : > { %v2030_v60 = vsel %vm9771_vm4, %v2026_v28, %v2029_v38  ;;  %v2531_v0 = vsel %vm9856_vm10, %v2529_v39, %v2530_v24  ;;  %v1166_v17 = vshll.u32 %v945_v61, 16  ;;  %v1172_v59 = vshll.u32 %v10026_v55, 16 }
  0x9e   : > { %v2040_v9 = vsel %vm9771_vm4, %v2031_v53, %v2039_v47  ;;  %v2392_v3 = vmax.bf16 %v2030_v60, %v1829_v26  ;;  %v2740_v14 = vmax.bf16 %v2708_v52, %v9917_v34  ;;  %v1165_v25 = vrot.slane %v1163_v56, 4 }
  0x9f   : > { %v2393_v12 = vmax.bf16 %v2040_v9, %v1830_v7  ;;  %v2771_v23 = vmax.bf16 %v2739_v57, %v9976_v2  ;;  %v1168_v13 = vrot.slane %v1166_v17, 5  ;;  %v1176_v11 = vshrl.u32 %v10026_v55, 16  ;;  %v2427_v7 = vld [vmem:[#allocation2 + $0x54] sm:$0xc] }
  0xa0   : > { %v10038_v48 = vmax.bf16 %v2528_v30, %v2392_v3  ;;  %v2772_v8 = vmax.bf16 %v2740_v14, %v9986_v51  ;;  %v1182_v40 = vshll.u32 %v978_v63, 16  ;;  %v1174_v21 = vrot.slane %v1172_v59, 5 }
  0xa1   : > { %v10042_v31 = vmax.bf16 %v2531_v0, %v2393_v12  ;;  %v1169_v58 = vor.u32 %v1168_v13, %v1165_v25  ;;  %v8641_v45 = vrot.slane %v1561_v29, 9  ;;  %v1178_v4 = vrot.slane %v1176_v11, 4  ;;  %v297_v25 = vld [vmem:[%s9393_s28 + $0x50] sm:$0xf] }
  0xa2   : > { %v2803_v19 = vmax.bf16 %v2771_v23, %v10038_v48  ;;  %v1184_v49 = vrot.slane %v1182_v40, 5  ;;  %v1688_v6 = vrot.slane %v10026_v55, 5  ;;  %v1691_v50 = vrot.slane %v978_v63, 5 }
  0xa3   : > { %v2804_v62 = vmax.bf16 %v2772_v8, %v10042_v31  ;;  %v1170_v32 = vrot.slane %v1169_v58, 4  ;;  %v2042_v22 = vshrl.u32 %v1561_v29, 16  ;;  %v1179_v38 = vor.u32 %v1178_v4, %v1174_v21  ;;  %v298_v8 = vld [vmem:[%s9393_s28 + $0x54] sm:$0xf] }
  0xa4   : > { %v3234_v54 = vrot.slane %v2803_v19, 7  ;;  %v1689_v42 = vsel %vm9650_vm14, %v8641_v45, %v1688_v6  ;;  %v1690_v27 = vrot.slane %v1688_v6, 4  ;;  %v2045_v30 = vshll.u32 %v1561_v29, 16 }
  0xa5   : > { %v8676_v1 = vcombine.low %v2803_v19, %v2804_v62  ;;  %v3236_v5 = vrot.slane %v2804_v62, 7  ;;  %v1175_v26 = vsel %vm9562_vm11, %v1170_v32, %v1174_v21  ;;  %v2044_v18 = vrot.slane %v2042_v22, 5  ;;  %v299_v32 = vld [vmem:[%s9393_s28 + $0x58] sm:$0xf] }
  0xa6   : > { %v3235_v20 = vrot.slane %v3234_v54, 4  ;;  %3358 = vst.msk [vmem:[#allocation2 + $0x30] sm:$0xe] %vm882_vm7, %v3234_v54  ;;  %v1180_v53 = vrot.slane %v1179_v38, 4  ;;  %v1528_v46 = vmax.bf16 %v1175_v26, %v945_v61  ;;  %v1692_v24 = vsel %vm9650_vm14, %v1690_v27, %v1691_v50  ;;  %v300_v50 = vld [vmem:[%s9393_s28 + $0x5c] sm:$0xf] }
  0xa7   : > { %8999 = vmatprep.mubr.msk.bf16.mxu1 %vm422_vm6, %v8676_v1  ;;  %v3238_v28 = vrot.slane %v3236_v5, 4  ;;  %v2050_v39 = vrot.slane %v1176_v11, 5  ;;  %v2051_v16 = vrot.slane %v1172_v59, 6  ;;  %v2056_v60 = vshrl.u32 %v1864_v35, 16  ;;  %v947_v38 = vld [vmem:[#allocation2 + $0x60] sm:$0xf] }
  0xa8   : > { %v3237_v47 = vsel %vm9424_vm8, %v3235_v20, %v3236_v5  ;;  %v1185_v52 = vsel %vm9562_vm11, %v1180_v53, %v1184_v49  ;;  %v1831_v56 = vmax.bf16 %v1689_v42, %v1528_v46  ;;  %v2047_v0 = vrot.slane %v2045_v30, 6  ;;  %v10085_v26 = vld [vmem:[#allocation2 + $0x64] sm:$0xf] }
  0xa9   : > { %3359 = vst.msk [vmem:[#allocation2 + $0x34] sm:$0xf] %vm701_vm1, %v3237_v47  ;;  %v1529_v61 = vmax.bf16 %v1185_v52, %v10026_v55  ;;  %v2052_v57 = vor.u32 %v2051_v16, %v2050_v39  ;;  %v2059_v63 = vshll.u32 %v1864_v35, 16  ;;  %v2058_v17 = vrot.slane %v2056_v60, 5 }
  0xaa   : > { %3360 = vst.msk [vmem:[#allocation2 + $0x38] sm:$0x1] %vm717_vm2, %v3238_v28  ;;  %v8661_v9 = vrot.slane %v2427_v7, 10  ;;  %v2534_v3 = vrot.slane %v10026_v55, 6  ;;  %v2537_v14 = vrot.slane %v1864_v35, 6  ;;  %v2048_v23 = vor.u32 %v2047_v0, %v2044_v18 }
  0xab   : > { %v1832_v12 = vmax.bf16 %v1692_v24, %v1529_v61  ;;  %v2054_v13 = vrot.slane %v2052_v57, 4  ;;  %v2061_v59 = vrot.slane %v2059_v63, 6  ;;  %v2709_v29 = vmax.bf16 %v9914_v43, %v9906_v33  ;;  %v979_v28 = vld [vmem:[#allocation2 + $0x68] sm:$0x1] }
  0xac   : > { %v2535_v11 = vsel %vm9856_vm10, %v8661_v9, %v2534_v3  ;;  %v2536_v40 = vrot.slane %v2534_v3, 4  ;;  %v2710_v58 = vmax.bf16 %v9917_v34, %v9912_v36  ;;  %v2049_v55 = vrot.slane %v2048_v23, 4  ;;  %v1562_v23 = vld [vmem:[#allocation2 + $0x60] sm:$0xe] }
  0xad   : > { %v2062_v21 = vor.u32 %v2061_v59, %v2058_v17  ;;  %v8612_v45 = vcombine.low %v297_v25, %v298_v8  ;;  %v804_v19 = vrot.slane %v297_v25, 7  ;;  %v2741_v49 = vmax.bf16 %v2709_v29, %v9976_v2 }
  0xae   : > { %v2538_v4 = vsel %vm9856_vm10, %v2536_v40, %v2537_v14  ;;  %v2742_v6 = vmax.bf16 %v2710_v58, %v9986_v51  ;;  %v806_v62 = vrot.slane %v298_v8, 7  ;;  %v2053_v33 = vsel %vm9771_vm4, %v2049_v55, %v2052_v57 }
  0xaf   : > { %v2063_v36 = vsel %vm9771_vm4, %v2054_v13, %v2062_v21  ;;  %8981 = vmatprep.mubr.msk.bf16.mxu0 %vm422_vm6, %v8612_v45  ;;  %v805_v22 = vrot.slane %v804_v19, 4  ;;  %913 = vst.msk [vmem:[#allocation2 + $0x90] sm:$0xe] %vm882_vm7, %v804_v19  ;;  %v8613_v54 = vcombine.low %v299_v32, %v300_v50  ;;  %v2394_v42 = vmax.bf16 %v2053_v33, %v1831_v56  ;;  %v2428_v33 = vld [vmem:[#allocation2 + $0x60] sm:$0xc] }
  0xb0   : > { %v2395_v27 = vmax.bf16 %v2063_v36, %v1832_v12  ;;  %v2773_v1 = vmax.bf16 %v2741_v49, %v10038_v48  ;;  %v2774_v5 = vmax.bf16 %v2742_v6, %v10042_v31  ;;  %v808_v18 = vrot.slane %v806_v62, 4 }
  0xb1   : > { %v807_v35 = vsel %vm9424_vm8, %v805_v22, %v806_v62  ;;  %8982 = vmatmul.mubr.msk.bf16.gmra.mxu0 %vm422_vm6, %v8613_v54  ;;  %v809_v20 = vrot.slane %v299_v32, 7  ;;  %v811_v53 = vrot.slane %v300_v50, 7  ;;  %v10090_v46 = vmax.bf16 %v2535_v11, %v2394_v42 }
  0xb2   : > { %v10092_v24 = vmax.bf16 %v2538_v4, %v2395_v27  ;;  %914 = vst.msk [vmem:[#allocation2 + $0x94] sm:$0xf] %vm701_vm1, %v807_v35  ;;  %v1187_v30 = vshrl.u32 %v947_v38, 16  ;;  %v1190_v39 = vshll.u32 %v947_v38, 16  ;;  %v1196_v47 = vshll.u32 %v10085_v26, 16 }
  0xb3   : > { %915 = vst.msk [vmem:[#allocation2 + $0x98] sm:$0x1] %vm717_vm2, %v808_v18  ;;  %v810_v16 = vrot.slane %v809_v20, 4  ;;  %v813_v7 = vrot.slane %v811_v53, 4  ;;  %v1200_v52 = vshrl.u32 %v10085_v26, 16  ;;  %v2805_v56 = vmax.bf16 %v2773_v1, %v10090_v46 }
  0xb4   : > { %916 = vst.msk [vmem:[#allocation2 + $0x9c] sm:$0xe] %vm882_vm7, %v809_v20  ;;  %v2806_v60 = vmax.bf16 %v2774_v5, %v10092_v24  ;;  %v1189_v61 = vrot.slane %v1187_v30, 4  ;;  %v1192_v0 = vrot.slane %v1190_v39, 5  ;;  %v1198_v63 = vrot.slane %v1196_v47, 5 }
  0xb5   : > { %v812_v57 = vsel %vm9424_vm8, %v810_v16, %v811_v53  ;;  %918 = vst.msk [vmem:[#allocation2 + $0xa4] sm:$0x1] %vm717_vm2, %v813_v7  ;;  %v1202_v17 = vrot.slane %v1200_v52, 4  ;;  %v1206_v9 = vshll.u32 %v979_v28, 16  ;;  %v3239_v14 = vrot.slane %v2805_v56, 7 }
  0xb6   : > { %v8677_v3 = vcombine.low %v2805_v56, %v2806_v60  ;;  %v3241_v25 = vrot.slane %v2806_v60, 7  ;;  %917 = vst.msk [vmem:[#allocation2 + $0xa0] sm:$0xf] %vm701_vm1, %v812_v57  ;;  %v1193_v12 = vor.u32 %v1192_v0, %v1189_v61  ;;  %v8642_v8 = vrot.slane %v1562_v23, 9  ;;  %v1865_v4 = vld [vmem:[#allocation2 + $0x68] sm:$0x3] }
  0xb7   : > { %v1203_v13 = vor.u32 %v1202_v17, %v1198_v63  ;;  %v1208_v59 = vrot.slane %v1206_v9, 5  ;;  %v1695_v11 = vrot.slane %v10085_v26, 5  ;;  %v3240_v40 = vrot.slane %v3239_v14, 4  ;;  %3361 = vst.msk [vmem:[#allocation2 + $0x3c] sm:$0xe] %vm882_vm7, %v3239_v14 }
  0xb8   : > { %9000 = vmatmul.mubr.msk.bf16.gmra.mxu1 %vm422_vm6, %v8677_v3  ;;  %v3243_v29 = vrot.slane %v3241_v25, 4  ;;  %v1194_v58 = vrot.slane %v1193_v12, 4  ;;  %v1698_v55 = vrot.slane %v979_v28, 5  ;;  %v2065_v49 = vshrl.u32 %v1562_v23, 16  ;;  %v10124_v0 = vld [vmem:[#allocation2 + $0x70] sm:$0xf] }
  0xb9   : > { %v1204_v21 = vrot.slane %v1203_v13, 4  ;;  %v1696_v45 = vsel %vm9650_vm14, %v8642_v8, %v1695_v11  ;;  %v1697_v19 = vrot.slane %v1695_v11, 4  ;;  %v3242_v6 = vsel %vm9424_vm8, %v3240_v40, %v3241_v25  ;;  %v980_v13 = vld [vmem:[#allocation2 + $0x74] sm:$0x1] }
  0xba   : > { %3363 = vst.msk [vmem:[#allocation2 + $0x44] sm:$0x1] %vm717_vm2, %v3243_v29  ;;  %v1199_v62 = vsel %vm9562_vm11, %v1194_v58, %v1198_v63  ;;  %v2068_v32 = vshll.u32 %v1562_v23, 16  ;;  %v2073_v50 = vrot.slane %v1200_v52, 5  ;;  %v2067_v42 = vrot.slane %v2065_v49, 5 }
  0xbb   : > { %3362 = vst.msk [vmem:[#allocation2 + $0x40] sm:$0xf] %vm701_vm1, %v3242_v6  ;;  %v1209_v36 = vsel %vm9562_vm11, %v1204_v21, %v1208_v59  ;;  %v1530_v22 = vmax.bf16 %v1199_v62, %v947_v38  ;;  %v1699_v54 = vsel %vm9650_vm14, %v1697_v19, %v1698_v55  ;;  %v2074_v5 = vrot.slane %v1196_v47, 6  ;;  %v949_v52 = vld [vmem:[#allocation2 + $0x6c] sm:$0xf] }
  0xbc   : > { %v1531_v27 = vmax.bf16 %v1209_v36, %v10085_v26  ;;  %v2070_v1 = vrot.slane %v2068_v32, 6  ;;  %v2079_v35 = vshrl.u32 %v1865_v4, 16  ;;  %v2082_v20 = vshll.u32 %v1865_v4, 16  ;;  %v1563_v49 = vld [vmem:[#allocation2 + $0x6c] sm:$0xe] }
  0xbd   : > { %v1833_v18 = vmax.bf16 %v1696_v45, %v1530_v22  ;;  %v8662_v53 = vrot.slane %v2428_v33, 10  ;;  %v2541_v28 = vrot.slane %v10085_v26, 6  ;;  %v2075_v16 = vor.u32 %v2074_v5, %v2073_v50 }
  0xbe   : > { %v1834_v30 = vmax.bf16 %v1699_v54, %v1531_v27  ;;  %v2071_v39 = vor.u32 %v2070_v1, %v2067_v42  ;;  %v2081_v7 = vrot.slane %v2079_v35, 5  ;;  %v2084_v38 = vrot.slane %v2082_v20, 6 }
  0xbf   : > { %v2542_v56 = vsel %vm9856_vm10, %v8662_v53, %v2541_v28  ;;  %v2543_v60 = vrot.slane %v2541_v28, 4  ;;  %v2544_v61 = vrot.slane %v1865_v4, 6  ;;  %v2077_v57 = vrot.slane %v2075_v16, 4 }
  0xc0   : > { %v2072_v47 = vrot.slane %v2071_v39, 4  ;;  %v2711_v63 = vmax.bf16 %v9976_v2, %v9914_v43  ;;  %v2712_v26 = vmax.bf16 %v9986_v51, %v9917_v34  ;;  %v2085_v17 = vor.u32 %v2084_v38, %v2081_v7  ;;  %v1866_v7 = vld [vmem:[#allocation2 + $0x74] sm:$0x3] }
  0xc1   : > { %v2545_v9 = vsel %vm9856_vm10, %v2543_v60, %v2544_v61  ;;  %v1211_v3 = vshrl.u32 %v949_v52, 16  ;;  %v1214_v14 = vshll.u32 %v949_v52, 16  ;;  %v1220_v59 = vshll.u32 %v10124_v0, 16 }
  0xc2   : > { %v2076_v25 = vsel %vm9771_vm4, %v2072_v47, %v2075_v16  ;;  %v2743_v12 = vmax.bf16 %v2711_v63, %v10038_v48  ;;  %v2744_v23 = vmax.bf16 %v2712_v26, %v10042_v31  ;;  %v2086_v43 = vsel %vm9771_vm4, %v2077_v57, %v2085_v17  ;;  %v2429_v47 = vld [vmem:[#allocation2 + $0x6c] sm:$0xc] }
  0xc3   : > { %v2396_v34 = vmax.bf16 %v2076_v25, %v1833_v18  ;;  %v1213_v8 = vrot.slane %v1211_v3, 4  ;;  %v1216_v11 = vrot.slane %v1214_v14, 5  ;;  %v2397_v40 = vmax.bf16 %v2086_v43, %v1834_v30 }
  0xc4   : > { %v2775_v29 = vmax.bf16 %v2743_v12, %v10090_v46  ;;  %v2776_v58 = vmax.bf16 %v2744_v23, %v10092_v24  ;;  %v1222_v55 = vrot.slane %v1220_v59, 5  ;;  %v1224_v19 = vshrl.u32 %v10124_v0, 16 }
  0xc5   : > { %v10141_v21 = vmax.bf16 %v2542_v56, %v2396_v34  ;;  %v1217_v45 = vor.u32 %v1216_v11, %v1213_v8  ;;  %v1230_v4 = vshll.u32 %v980_v13, 16  ;;  %v10144_v6 = vmax.bf16 %v2545_v9, %v2397_v40 }
  0xc6   : > { %v8643_v62 = vrot.slane %v1563_v49, 9  ;;  %v1702_v32 = vrot.slane %v10124_v0, 5  ;;  %v1705_v50 = vrot.slane %v980_v13, 5  ;;  %v1226_v22 = vrot.slane %v1224_v19, 4 }
  0xc7   : > { %v2807_v33 = vmax.bf16 %v2775_v29, %v10141_v21  ;;  %v1218_v36 = vrot.slane %v1217_v45, 4  ;;  %v1232_v54 = vrot.slane %v1230_v4, 5  ;;  %v2808_v42 = vmax.bf16 %v2776_v58, %v10144_v6  ;;  %v302_v45 = vld [vmem:[%s9393_s28 + $0x64] sm:$0xf] }
  0xc8   : > { %v1703_v27 = vsel %vm9650_vm14, %v8643_v62, %v1702_v32  ;;  %v1704_v1 = vrot.slane %v1702_v32, 4  ;;  %v2088_v5 = vshrl.u32 %v1563_v49, 16  ;;  %v1227_v20 = vor.u32 %v1226_v22, %v1222_v55 }
  0xc9   : > { %v3244_v35 = vrot.slane %v2807_v33, 7  ;;  %v1223_v18 = vsel %vm9562_vm11, %v1218_v36, %v1222_v55  ;;  %v2091_v53 = vshll.u32 %v1563_v49, 16  ;;  %v8678_v28 = vcombine.low %v2807_v33, %v2808_v42  ;;  %v301_v55 = vld [vmem:[%s9393_s28 + $0x60] sm:$0xf]  ;;  %v303_v36 = vld [vmem:[%s9393_s28 + $0x68] sm:$0xf] }
  0xca   : > { %v3246_v30 = vrot.slane %v2808_v42, 7  ;;  %v1532_v39 = vmax.bf16 %v1223_v18, %v949_v52  ;;  %v1706_v16 = vsel %vm9650_vm14, %v1704_v1, %v1705_v50  ;;  %v1228_v56 = vrot.slane %v1227_v20, 4  ;;  %v10181_v1 = vld [vmem:[#allocation2 + $0x78] sm:$0xf]  ;;  %v10189_v20 = vld [vmem:[#allocation2 + $0x7c] sm:$0xf] }
  0xcb   : > { %v3245_v38 = vrot.slane %v3244_v35, 4  ;;  %3364 = vst.msk [vmem:[#allocation2 + $0x48] sm:$0xe] %vm882_vm7, %v3244_v35  ;;  %v2090_v60 = vrot.slane %v2088_v5, 5  ;;  %v2093_v61 = vrot.slane %v2091_v53, 6  ;;  %9003 = vmatprep.mubr.msk.bf16.mxu1 %vm422_vm6, %v8678_v28  ;;  %v2096_v26 = vrot.slane %v1224_v19, 5 }
  0xcc   : > { %v3248_v57 = vrot.slane %v3246_v30, 4  ;;  %v1835_v63 = vmax.bf16 %v1703_v27, %v1532_v39  ;;  %v2097_v17 = vrot.slane %v1220_v59, 6  ;;  %v1233_v9 = vsel %vm9562_vm11, %v1228_v56, %v1232_v54  ;;  %v304_v27 = vld [vmem:[%s9393_s28 + $0x6c] sm:$0xf] }
  0xcd   : > { %v3247_v52 = vsel %vm9424_vm8, %v3245_v38, %v3246_v30  ;;  %v2094_v3 = vor.u32 %v2093_v61, %v2090_v60  ;;  %v2102_v14 = vshrl.u32 %v1866_v7, 16  ;;  %v1533_v25 = vmax.bf16 %v1233_v9, %v10124_v0 }
  0xce   : > { %3365 = vst.msk [vmem:[#allocation2 + $0x4c] sm:$0xf] %vm701_vm1, %v3247_v52  ;;  %v2098_v12 = vor.u32 %v2097_v17, %v2096_v26  ;;  %v2105_v23 = vshll.u32 %v1866_v7, 16  ;;  %v8663_v13 = vrot.slane %v2429_v47, 10  ;;  %v2548_v34 = vrot.slane %v10124_v0, 6 }
  0xcf   : > { %3366 = vst.msk [vmem:[#allocation2 + $0x50] sm:$0x1] %vm717_vm2, %v3248_v57  ;;  %v2095_v59 = vrot.slane %v2094_v3, 4  ;;  %v2104_v43 = vrot.slane %v2102_v14, 5  ;;  %v2551_v8 = vrot.slane %v1866_v7, 6  ;;  %v1836_v11 = vmax.bf16 %v1706_v16, %v1533_v25 }
  0xd0   : > { %v2100_v40 = vrot.slane %v2098_v12, 4  ;;  %v2107_v29 = vrot.slane %v2105_v23, 6  ;;  %v2713_v58 = vmax.bf16 %v10038_v48, %v9976_v2  ;;  %v2549_v4 = vsel %vm9856_vm10, %v8663_v13, %v2548_v34  ;;  %v981_v47 = vld [vmem:[#allocation2 + $0x80] sm:$0x1]  ;;  %v1564_v23 = vld [vmem:[#allocation2 + $0x78] sm:$0xe] }
  0xd1   : > { %v2099_v19 = vsel %vm9771_vm4, %v2095_v59, %v2098_v12  ;;  %v2550_v49 = vrot.slane %v2548_v34, 4  ;;  %v2714_v0 = vmax.bf16 %v10042_v31, %v9986_v51  ;;  %v8614_v33 = vcombine.low %v301_v55, %v302_v45 }
  0xd2   : > { %v2108_v62 = vor.u32 %v2107_v29, %v2104_v43  ;;  %v2398_v32 = vmax.bf16 %v2099_v19, %v1835_v63  ;;  %v2745_v50 = vmax.bf16 %v2713_v58, %v10090_v46  ;;  %v814_v54 = vrot.slane %v301_v55, 7 }
  0xd3   : > { %v2552_v2 = vsel %vm9856_vm10, %v2550_v49, %v2551_v8  ;;  %v2746_v22 = vmax.bf16 %v2714_v0, %v10092_v24  ;;  %v816_v42 = vrot.slane %v302_v45, 7  ;;  %8985 = vmatprep.mubr.msk.bf16.mxu0 %vm422_vm6, %v8614_v33  ;;  %v8615_v18 = vcombine.low %v303_v36, %v304_v27 }
  0xd4   : > { %v2109_v5 = vsel %vm9771_vm4, %v2100_v40, %v2108_v62  ;;  %v10185_v51 = vmax.bf16 %v2549_v4, %v2398_v32  ;;  %v2777_v35 = vmax.bf16 %v2745_v50, %v10141_v21  ;;  %v815_v30 = vrot.slane %v814_v54, 4  ;;  %919 = vst.msk [vmem:[#allocation2 + $0xa8] sm:$0xe] %vm882_vm7, %v814_v54  ;;  %v1867_v32 = vld [vmem:[#allocation2 + $0x80] sm:$0x3] }
  0xd5   : > { %v2399_v53 = vmax.bf16 %v2109_v5, %v1836_v11  ;;  %v2778_v28 = vmax.bf16 %v2746_v22, %v10144_v6  ;;  %v818_v39 = vrot.slane %v816_v42, 4  ;;  %8986 = vmatmul.mubr.msk.bf16.gmra.mxu0 %vm422_vm6, %v8615_v18  ;;  %v819_v7 = vrot.slane %v303_v36, 7  ;;  %v2430_v22 = vld [vmem:[#allocation2 + $0x78] sm:$0xc] }
  0xd6   : > { %v2809_v16 = vmax.bf16 %v2777_v35, %v10185_v51  ;;  %v821_v38 = vrot.slane %v304_v27, 7  ;;  %v1235_v56 = vshrl.u32 %v10181_v1, 16  ;;  %v817_v61 = vsel %vm9424_vm8, %v815_v30, %v816_v42 }
  0xd7   : > { %v10196_v60 = vmax.bf16 %v2552_v2, %v2399_v53  ;;  %921 = vst.msk [vmem:[#allocation2 + $0xb0] sm:$0x1] %vm717_vm2, %v818_v39  ;;  %v1238_v57 = vshll.u32 %v10181_v1, 16  ;;  %v1244_v63 = vshll.u32 %v10189_v20, 16  ;;  %v820_v17 = vrot.slane %v819_v7, 4 }
  0xd8   : > { %v3249_v26 = vrot.slane %v2809_v16, 7  ;;  %920 = vst.msk [vmem:[#allocation2 + $0xac] sm:$0xf] %vm701_vm1, %v817_v61  ;;  %v823_v52 = vrot.slane %v821_v38, 4  ;;  %v1237_v9 = vrot.slane %v1235_v56, 4  ;;  %v1248_v12 = vshrl.u32 %v10189_v20, 16 }
  0xd9   : > { %922 = vst.msk [vmem:[#allocation2 + $0xb4] sm:$0xe] %vm882_vm7, %v819_v7  ;;  %v2810_v3 = vmax.bf16 %v2778_v28, %v10196_v60  ;;  %v1240_v14 = vrot.slane %v1238_v57, 5  ;;  %v1246_v25 = vrot.slane %v1244_v63, 5  ;;  %v822_v59 = vsel %vm9424_vm8, %v820_v17, %v821_v38  ;;  %v953_v57 = vld [vmem:[#allocation2 + $0x84] sm:$0xf] }
  0xda   : > { %v3250_v13 = vrot.slane %v3249_v26, 4  ;;  %3367 = vst.msk [vmem:[#allocation2 + $0x54] sm:$0xe] %vm882_vm7, %v3249_v26  ;;  %v1254_v43 = vshll.u32 %v981_v47, 16  ;;  %v8644_v34 = vrot.slane %v1564_v23, 9  ;;  %v1250_v29 = vrot.slane %v1248_v12, 4 }
  0xdb   : > { %924 = vst.msk [vmem:[#allocation2 + $0xbc] sm:$0x1] %vm717_vm2, %v823_v52  ;;  %v8679_v8 = vcombine.low %v2809_v16, %v2810_v3  ;;  %v3251_v11 = vrot.slane %v2810_v3, 7  ;;  %v1241_v40 = vor.u32 %v1240_v14, %v1237_v9  ;;  %v1709_v55 = vrot.slane %v10189_v20, 5 }
  0xdc   : > { %923 = vst.msk [vmem:[#allocation2 + $0xb8] sm:$0xf] %vm701_vm1, %v822_v59  ;;  %v1256_v58 = vrot.slane %v1254_v43, 5  ;;  %v1712_v45 = vrot.slane %v981_v47, 5  ;;  %v2111_v19 = vshrl.u32 %v1564_v23, 16  ;;  %v1251_v62 = vor.u32 %v1250_v29, %v1246_v25 }
  0xdd   : > { %9004 = vmatmul.mubr.msk.bf16.gmra.mxu1 %vm422_vm6, %v8679_v8  ;;  %v3252_v4 = vsel %vm9424_vm8, %v3250_v13, %v3251_v11  ;;  %v3253_v49 = vrot.slane %v3251_v11, 4  ;;  %v1242_v0 = vrot.slane %v1241_v40, 4  ;;  %v1710_v50 = vsel %vm9650_vm14, %v8644_v34, %v1709_v55  ;;  %v10239_v34 = vld [vmem:[#allocation2 + $0x88] sm:$0xf]  ;;  %v982_v8 = vld [vmem:[#allocation2 + $0x8c] sm:$0x1] }
  0xde   : > { %3368 = vst.msk [vmem:[#allocation2 + $0x58] sm:$0xf] %vm701_vm1, %v3252_v4  ;;  %v1711_v33 = vrot.slane %v1709_v55, 4  ;;  %v2113_v36 = vrot.slane %v2111_v19, 5  ;;  %v2114_v2 = vshll.u32 %v1564_v23, 16  ;;  %v1252_v42 = vrot.slane %v1251_v62, 4 }
  0xdf   : > { %3369 = vst.msk [vmem:[#allocation2 + $0x5c] sm:$0x1] %vm717_vm2, %v3253_v49  ;;  %v1247_v54 = vsel %vm9562_vm11, %v1242_v0, %v1246_v25  ;;  %v2119_v27 = vrot.slane %v1248_v12, 5  ;;  %v2120_v5 = vrot.slane %v1244_v63, 6  ;;  %v2125_v28 = vshrl.u32 %v1867_v32, 16 }
  0xe0   : > { %v1534_v35 = vmax.bf16 %v1247_v54, %v10181_v1  ;;  %v1713_v18 = vsel %vm9650_vm14, %v1711_v33, %v1712_v45  ;;  %v2116_v53 = vrot.slane %v2114_v2, 6  ;;  %v1257_v30 = vsel %vm9562_vm11, %v1252_v42, %v1256_v58 }
  0xe1   : > { %v2121_v39 = vor.u32 %v2120_v5, %v2119_v27  ;;  %v2128_v16 = vshll.u32 %v1867_v32, 16  ;;  %v8664_v7 = vrot.slane %v2430_v22, 10  ;;  %v1535_v38 = vmax.bf16 %v1257_v30, %v10189_v20 }
  0xe2   : > { %v1837_v56 = vmax.bf16 %v1710_v50, %v1534_v35  ;;  %v2117_v61 = vor.u32 %v2116_v53, %v2113_v36  ;;  %v2127_v47 = vrot.slane %v2125_v28, 5  ;;  %v2555_v1 = vrot.slane %v10189_v20, 6 }
  0xe3   : > { %v2123_v63 = vrot.slane %v2121_v39, 4  ;;  %v2130_v26 = vrot.slane %v2128_v16, 6  ;;  %v2558_v17 = vrot.slane %v1867_v32, 6  ;;  %v1838_v52 = vmax.bf16 %v1713_v18, %v1535_v38  ;;  %v1565_v32 = vld [vmem:[#allocation2 + $0x84] sm:$0xe] }
  0xe4   : > { %v2118_v9 = vrot.slane %v2117_v61, 4  ;;  %v2715_v3 = vmax.bf16 %v10090_v46, %v10038_v48  ;;  %v2716_v14 = vmax.bf16 %v10092_v24, %v10042_v31  ;;  %v2556_v12 = vsel %vm9856_vm10, %v8664_v7, %v2555_v1 }
  0xe5   : > { %v2131_v25 = vor.u32 %v2130_v26, %v2127_v47  ;;  %v2557_v23 = vrot.slane %v2555_v1, 4  ;;  %v1259_v13 = vshrl.u32 %v953_v57, 16  ;;  %v1262_v48 = vshll.u32 %v953_v57, 16 }
  0xe6   : > { %v2122_v59 = vsel %vm9771_vm4, %v2118_v9, %v2121_v39  ;;  %v2747_v20 = vmax.bf16 %v2715_v3, %v10141_v21  ;;  %v2748_v43 = vmax.bf16 %v2716_v14, %v10144_v6  ;;  %v1268_v49 = vshll.u32 %v10239_v34, 16 }
  0xe7   : > { %v2132_v31 = vsel %vm9771_vm4, %v2123_v63, %v2131_v25  ;;  %v2400_v11 = vmax.bf16 %v2122_v59, %v1837_v56  ;;  %v2559_v40 = vsel %vm9856_vm10, %v2557_v23, %v2558_v17  ;;  %v1261_v29 = vrot.slane %v1259_v13, 4  ;;  %v1868_v17 = vld [vmem:[#allocation2 + $0x8c] sm:$0x3]  ;;  %v2431_v25 = vld [vmem:[#allocation2 + $0x84] sm:$0xc] }
  0xe8   : > { %v2401_v58 = vmax.bf16 %v2132_v31, %v1838_v52  ;;  %v2779_v55 = vmax.bf16 %v2747_v20, %v10185_v51  ;;  %v2780_v45 = vmax.bf16 %v2748_v43, %v10196_v60  ;;  %v1264_v19 = vrot.slane %v1262_v48, 5 }
  0xe9   : > { %v10247_v4 = vmax.bf16 %v2556_v12, %v2400_v11  ;;  %v1272_v0 = vshrl.u32 %v10239_v34, 16  ;;  %v1278_v62 = vshll.u32 %v982_v8, 16  ;;  %v8645_v36 = vrot.slane %v1565_v32, 9 }
  0xea   : > { %v10251_v50 = vmax.bf16 %v2559_v40, %v2401_v58  ;;  %v1265_v33 = vor.u32 %v1264_v19, %v1261_v29  ;;  %v1716_v2 = vrot.slane %v10239_v34, 5  ;;  %v1270_v54 = vrot.slane %v1268_v49, 5  ;;  %v305_v19 = vld [vmem:[%s9393_s28 + $0x70] sm:$0xf] }
  0xeb   : > { %13461 = vst [vmem:[#allocation5_spill] sm:$0xff] %v10247_v4  ;;  %v2811_v22 = vmax.bf16 %v2779_v55, %v10247_v4  ;;  %v1274_v42 = vrot.slane %v1272_v0, 4  ;;  %v1280_v27 = vrot.slane %v1278_v62, 5  ;;  %v1719_v39 = vrot.slane %v982_v8, 5 }
  0xec   : > { %13462 = vst [vmem:[#allocation6_spill] sm:$0xff] %v10251_v50  ;;  %v2812_v5 = vmax.bf16 %v2780_v45, %v10251_v50  ;;  %v1266_v35 = vrot.slane %v1265_v33, 4  ;;  %v1717_v18 = vsel %vm9650_vm14, %v8645_v36, %v1716_v2  ;;  %v1718_v53 = vrot.slane %v1716_v2, 4  ;;  %v306_v33 = vld [vmem:[%s9393_s28 + $0x74] sm:$0xf] }
  0xed   : > { %v3254_v28 = vrot.slane %v2811_v22, 7  ;;  %v1275_v30 = vor.u32 %v1274_v42, %v1270_v54  ;;  %v2134_v16 = vshrl.u32 %v1565_v32, 16  ;;  %v2137_v61 = vshll.u32 %v1565_v32, 16 }
  0xee   : > { %v8680_v7 = vcombine.low %v2811_v22, %v2812_v5  ;;  %v3256_v38 = vrot.slane %v2812_v5, 7  ;;  %v1271_v56 = vsel %vm9562_vm11, %v1266_v35, %v1270_v54  ;;  %v1720_v1 = vsel %vm9650_vm14, %v1718_v53, %v1719_v39  ;;  %v307_v35 = vld [vmem:[%s9393_s28 + $0x78] sm:$0xf] }
  0xef   : > { %v3255_v47 = vrot.slane %v3254_v28, 4  ;;  %3370 = vst.msk [vmem:[#allocation2 + $0x60] sm:$0xe] %vm882_vm7, %v3254_v28  ;;  %v1276_v63 = vrot.slane %v1275_v30, 4  ;;  %v1536_v26 = vmax.bf16 %v1271_v56, %v953_v57  ;;  %v2136_v9 = vrot.slane %v2134_v16, 5 }
  0xf0   : > { %9007 = vmatprep.mubr.msk.bf16.mxu1 %vm422_vm6, %v8680_v7  ;;  %v3258_v52 = vrot.slane %v3256_v38, 4  ;;  %v2139_v3 = vrot.slane %v2137_v61, 6  ;;  %v2142_v14 = vrot.slane %v1272_v0, 5  ;;  %v2143_v57 = vrot.slane %v1268_v49, 6  ;;  %v10297_v56 = vld [vmem:[#allocation2 + $0x94] sm:$0xf] }
  0xf1   : > { %v3257_v12 = vsel %vm9424_vm8, %v3255_v47, %v3256_v38  ;;  %v1281_v23 = vsel %vm9562_vm11, %v1276_v63, %v1280_v27  ;;  %v1839_v13 = vmax.bf16 %v1717_v18, %v1536_v26  ;;  %v2148_v43 = vshrl.u32 %v1868_v17, 16  ;;  %v308_v18 = vld [vmem:[%s9393_s28 + $0x7c] sm:$0xf] }
  0xf2   : > { %3371 = vst.msk [vmem:[#allocation2 + $0x64] sm:$0xf] %vm701_vm1, %v3257_v12  ;;  %v1537_v59 = vmax.bf16 %v1281_v23, %v10239_v34  ;;  %v2140_v20 = vor.u32 %v2139_v3, %v2136_v9  ;;  %v2151_v8 = vshll.u32 %v1868_v17, 16  ;;  %v2144_v48 = vor.u32 %v2143_v57, %v2142_v14  ;;  %v983_v9 = vld [vmem:[#allocation2 + $0x98] sm:$0x1] }
  0xf3   : > { %3372 = vst.msk [vmem:[#allocation2 + $0x68] sm:$0x1] %vm717_vm2, %v3258_v52  ;;  %v8665_v31 = vrot.slane %v2431_v25, 10  ;;  %v2562_v11 = vrot.slane %v10239_v34, 6  ;;  %v2565_v40 = vrot.slane %v1868_v17, 6  ;;  %v2150_v55 = vrot.slane %v2148_v43, 5 }
  0xf4   : > { %v1840_v29 = vmax.bf16 %v1720_v1, %v1537_v59  ;;  %v2141_v58 = vrot.slane %v2140_v20, 4  ;;  %v2153_v45 = vrot.slane %v2151_v8, 6  ;;  %v2146_v49 = vrot.slane %v2144_v48, 4 }
  0xf5   : > { %v2563_v0 = vsel %vm9856_vm10, %v8665_v31, %v2562_v11  ;;  %v2564_v62 = vrot.slane %v2562_v11, 4  ;;  %v2717_v32 = vmax.bf16 %v10141_v21, %v10090_v46  ;;  %v2718_v2 = vmax.bf16 %v10144_v6, %v10092_v24  ;;  %v10291_v24 = vld [vmem:[#allocation2 + $0x90] sm:$0xf] }
  0xf6   : > { %v2145_v34 = vsel %vm9771_vm4, %v2141_v58, %v2144_v48  ;;  %v2154_v36 = vor.u32 %v2153_v45, %v2150_v55  ;;  %v8616_v22 = vcombine.low %v305_v19, %v306_v33  ;;  %v824_v5 = vrot.slane %v305_v19, 7  ;;  %v1566_v55 = vld [vmem:[#allocation2 + $0x90] sm:$0xe] }
  0xf7   : > { %v2402_v54 = vmax.bf16 %v2145_v34, %v1839_v13  ;;  %v2566_v42 = vsel %vm9856_vm10, %v2564_v62, %v2565_v40  ;;  %v2749_v27 = vmax.bf16 %v2717_v32, %v10185_v51  ;;  %v2750_v53 = vmax.bf16 %v2718_v2, %v10196_v60 }
  0xf8   : > { %v2155_v46 = vsel %vm9771_vm4, %v2146_v49, %v2154_v36  ;;  %8989 = vmatprep.mubr.msk.bf16.mxu0 %vm422_vm6, %v8616_v22  ;;  %v826_v28 = vrot.slane %v306_v33, 7  ;;  %v8617_v30 = vcombine.low %v307_v35, %v308_v18  ;;  %v825_v38 = vrot.slane %v824_v5, 4  ;;  %925 = vst.msk [vmem:[#allocation2 + $0xc0] sm:$0xe] %vm882_vm7, %v824_v5  ;;  %v1869_v36 = vld [vmem:[#allocation2 + $0x98] sm:$0x3] }
  0xf9   : > { %v2403_v39 = vmax.bf16 %v2155_v46, %v1840_v29  ;;  %v10293_v16 = vmax.bf16 %v2563_v0, %v2402_v54  ;;  %v2781_v7 = vmax.bf16 %v2749_v27, %v10247_v4  ;;  %v2782_v61 = vmax.bf16 %v2750_v53, %v10251_v50  ;;  %v2432_v46 = vld [vmem:[#allocation2 + $0x90] sm:$0xc] }
  0xfa   : > { %v828_v47 = vrot.slane %v826_v28, 4  ;;  %8990 = vmatmul.mubr.msk.bf16.gmra.mxu0 %vm422_vm6, %v8617_v30  ;;  %v829_v63 = vrot.slane %v307_v35, 7  ;;  %v831_v26 = vrot.slane %v308_v18, 7  ;;  %v827_v52 = vsel %vm9424_vm8, %v825_v38, %v826_v28 }
  0xfb   : > { %13463 = vst [vmem:[#allocation7_spill] sm:$0xff] %v10293_v16  ;;  %v10301_v1 = vmax.bf16 %v2566_v42, %v2403_v39  ;;  %v2813_v17 = vmax.bf16 %v2781_v7, %v10293_v16  ;;  %v1283_v3 = vshrl.u32 %v10291_v24, 16  ;;  %926 = vst.msk [vmem:[#allocation2 + $0xc4] sm:$0xf] %vm701_vm1, %v827_v52  ;;  %v1286_v12 = vshll.u32 %v10291_v24, 16 }
  0xfc   : > { %927 = vst.msk [vmem:[#allocation2 + $0xc8] sm:$0x1] %vm717_vm2, %v828_v47  ;;  %v830_v14 = vrot.slane %v829_v63, 4  ;;  %v833_v25 = vrot.slane %v831_v26, 4  ;;  %v1292_v23 = vshll.u32 %v10297_v56, 16  ;;  %v1296_v20 = vshrl.u32 %v10297_v56, 16 }
  0xfd   : > { %13464 = vst [vmem:[#allocation8_spill] sm:$0xff] %v10301_v1  ;;  %928 = vst.msk [vmem:[#allocation2 + $0xcc] sm:$0xe] %vm882_vm7, %v829_v63  ;;  %v2814_v13 = vmax.bf16 %v2782_v61, %v10301_v1  ;;  %v3259_v57 = vrot.slane %v2813_v17, 7  ;;  %v1285_v59 = vrot.slane %v1283_v3, 4  ;;  %v1288_v8 = vrot.slane %v1286_v12, 5 }
  0xfe   : > { %v832_v43 = vsel %vm9424_vm8, %v830_v14, %v831_v26  ;;  %930 = vst.msk [vmem:[#allocation2 + $0xd4] sm:$0x1] %vm717_vm2, %v833_v25  ;;  %v1294_v48 = vrot.slane %v1292_v23, 5  ;;  %v1302_v31 = vshll.u32 %v983_v9, 16  ;;  %v1298_v58 = vrot.slane %v1296_v20, 4 }
  0xff   : > { %v8681_v11 = vcombine.low %v2813_v17, %v2814_v13  ;;  %v3260_v40 = vrot.slane %v3259_v57, 4  ;;  %v3261_v29 = vrot.slane %v2814_v13, 7  ;;  %3373 = vst.msk [vmem:[#allocation2 + $0x6c] sm:$0xe] %vm882_vm7, %v3259_v57  ;;  %v1289_v45 = vor.u32 %v1288_v8, %v1285_v59  ;;  %v957_v12 = vld [vmem:[#allocation2 + $0x9c] sm:$0xf] }
 0x100   : > { %929 = vst.msk [vmem:[#allocation2 + $0xd0] sm:$0xf] %vm701_vm1, %v832_v43  ;;  %v1304_v19 = vrot.slane %v1302_v31, 5  ;;  %v8646_v49 = vrot.slane %v1566_v55, 9  ;;  %v1723_v0 = vrot.slane %v10297_v56, 5  ;;  %v1299_v33 = vor.u32 %v1298_v58, %v1294_v48 }
 0x101   : > { %9008 = vmatmul.mubr.msk.bf16.gmra.mxu1 %vm422_vm6, %v8681_v11  ;;  %v3262_v62 = vsel %vm9424_vm8, %v3260_v40, %v3261_v29  ;;  %v3263_v32 = vrot.slane %v3261_v29, 4  ;;  %v1726_v34 = vrot.slane %v983_v9, 5  ;;  %v1290_v2 = vrot.slane %v1289_v45, 4 }
 0x102   : > { %3374 = vst.msk [vmem:[#allocation2 + $0x70] sm:$0xf] %vm701_vm1, %v3262_v62  ;;  %v1724_v22 = vsel %vm9650_vm14, %v8646_v49, %v1723_v0  ;;  %v1725_v54 = vrot.slane %v1723_v0, 4  ;;  %v2157_v42 = vshrl.u32 %v1566_v55, 16  ;;  %v1300_v27 = vrot.slane %v1299_v33, 4 }
 0x103   : > { %3375 = vst.msk [vmem:[#allocation2 + $0x74] sm:$0x1] %vm717_vm2, %v3263_v32  ;;  %v2160_v5 = vshll.u32 %v1566_v55, 16  ;;  %v2165_v35 = vrot.slane %v1296_v20, 5  ;;  %v2166_v18 = vrot.slane %v1292_v23, 6  ;;  %v1295_v53 = vsel %vm9562_vm11, %v1290_v2, %v1294_v48 }
 0x104   : > { %v1727_v28 = vsel %vm9650_vm14, %v1725_v54, %v1726_v34  ;;  %v2159_v30 = vrot.slane %v2157_v42, 5  ;;  %v2171_v39 = vshrl.u32 %v1869_v36, 16  ;;  %v1305_v7 = vsel %vm9562_vm11, %v1300_v27, %v1304_v19  ;;  %v984_v55 = vld [vmem:[#allocation2 + $0xa4] sm:$0x1] }
 0x105   : > { %v1538_v38 = vmax.bf16 %v1295_v53, %v10291_v24  ;;  %v2162_v61 = vrot.slane %v2160_v5, 6  ;;  %v2167_v47 = vor.u32 %v2166_v18, %v2165_v35  ;;  %v1539_v63 = vmax.bf16 %v1305_v7, %v10297_v56  ;;  %v10338_v24 = vld [vmem:[#allocation2 + $0xa0] sm:$0xf] }
 0x106   : > { %v2173_v26 = vrot.slane %v2171_v39, 5  ;;  %v2174_v17 = vshll.u32 %v1869_v36, 16  ;;  %v8666_v52 = vrot.slane %v2432_v46, 10  ;;  %v2569_v25 = vrot.slane %v10297_v56, 6 }
 0x107   : > { %v1841_v9 = vmax.bf16 %v1724_v22, %v1538_v38  ;;  %v2163_v3 = vor.u32 %v2162_v61, %v2159_v30  ;;  %v2169_v14 = vrot.slane %v2167_v47, 4  ;;  %v1842_v23 = vmax.bf16 %v1727_v28, %v1539_v63 }
 0x108   : > { %v2176_v13 = vrot.slane %v2174_v17, 6  ;;  %v2572_v57 = vrot.slane %v1869_v36, 6  ;;  %v2719_v59 = vmax.bf16 %v10185_v51, %v10141_v21  ;;  %v2570_v43 = vsel %vm9856_vm10, %v8666_v52, %v2569_v25  ;;  %v1567_v36 = vld [vmem:[#allocation2 + $0x9c] sm:$0xe] }
 0x109   : > { %v2164_v20 = vrot.slane %v2163_v3, 4  ;;  %v2571_v8 = vrot.slane %v2569_v25, 4  ;;  %v2720_v48 = vmax.bf16 %v10196_v60, %v10144_v6  ;;  %v1307_v11 = vshrl.u32 %v957_v12, 16 }
 0x10a   : > { %v2177_v31 = vor.u32 %v2176_v13, %v2173_v26  ;;  %v2751_v56 = vmax.bf16 %v2719_v59, %v10247_v4  ;;  %v1310_v40 = vshll.u32 %v957_v12, 16  ;;  %v1316_v45 = vshll.u32 %v10338_v24, 16  ;;  %v1870_v26 = vld [vmem:[#allocation2 + $0xa4] sm:$0x3] }
 0x10b   : > { %v2168_v29 = vsel %vm9771_vm4, %v2164_v20, %v2167_v47  ;;  %v2573_v21 = vsel %vm9856_vm10, %v2571_v8, %v2572_v57  ;;  %v2752_v58 = vmax.bf16 %v2720_v48, %v10251_v50  ;;  %v1309_v0 = vrot.slane %v1307_v11, 4 }
 0x10c   : > { %v2178_v19 = vsel %vm9771_vm4, %v2169_v14, %v2177_v31  ;;  %v2404_v6 = vmax.bf16 %v2168_v29, %v1841_v9  ;;  %v2783_v49 = vmax.bf16 %v2751_v56, %v10293_v16  ;;  %v1312_v33 = vrot.slane %v1310_v40, 5  ;;  %v2433_v31 = vld [vmem:[#allocation2 + $0x9c] sm:$0xc] }
 0x10d   : > { %v2405_v62 = vmax.bf16 %v2178_v19, %v1842_v23  ;;  %v2784_v32 = vmax.bf16 %v2752_v58, %v10301_v1  ;;  %v1318_v34 = vrot.slane %v1316_v45, 5  ;;  %v1320_v22 = vshrl.u32 %v10338_v24, 16 }
 0x10e   : > { %v10355_v2 = vmax.bf16 %v2570_v43, %v2404_v6  ;;  %v1326_v54 = vshll.u32 %v984_v55, 16  ;;  %v8647_v42 = vrot.slane %v1567_v36, 9  ;;  %v1313_v5 = vor.u32 %v1312_v33, %v1309_v0  ;;  %v10379_v0 = vld [vmem:[#allocation2] sm:$0xf] }
 0x10f   : > { %v10358_v27 = vmax.bf16 %v2573_v21, %v2405_v62  ;;  %v1730_v35 = vrot.slane %v10338_v24, 5  ;;  %v1733_v18 = vrot.slane %v984_v55, 5  ;;  %v1322_v53 = vrot.slane %v1320_v22, 4 }
 0x110   : > { %13465 = vst [vmem:[#allocation9_spill] sm:$0xff] %v10355_v2  ;;  %v2815_v46 = vmax.bf16 %v2783_v49, %v10355_v2  ;;  %v1328_v28 = vrot.slane %v1326_v54, 5  ;;  %v2180_v30 = vshrl.u32 %v1567_v36, 16  ;;  %v1314_v7 = vrot.slane %v1313_v5, 4 }
 0x111   : > { %13466 = vst [vmem:[#allocation10_spill] sm:$0xff] %v10358_v27  ;;  %v2816_v39 = vmax.bf16 %v2784_v32, %v10358_v27  ;;  %v1731_v38 = vsel %vm9650_vm14, %v8647_v42, %v1730_v35  ;;  %v1732_v61 = vrot.slane %v1730_v35, 4  ;;  %v1323_v63 = vor.u32 %v1322_v53, %v1318_v34 }
 0x112   : > { %v3264_v47 = vrot.slane %v2815_v46, 7  ;;  %v2182_v17 = vrot.slane %v2180_v30, 5  ;;  %v2183_v52 = vshll.u32 %v1567_v36, 16  ;;  %v1319_v14 = vsel %vm9562_vm11, %v1314_v7, %v1318_v34  ;;  %v10383_v36 = vld [vmem:[#allocation2 + $0x4] sm:$0xf] }
 0x113   : > { %v8682_v9 = vcombine.low %v2815_v46, %v2816_v39  ;;  %v3266_v3 = vrot.slane %v2816_v39, 7  ;;  %v1734_v25 = vsel %vm9650_vm14, %v1732_v61, %v1733_v18  ;;  %v1324_v13 = vrot.slane %v1323_v63, 4  ;;  %v10398_v30 = vld [vmem:[#allocation2 + $0x8] sm:$0x1] }
 0x114   : > { %v3265_v23 = vrot.slane %v3264_v47, 4  ;;  %3376 = vst.msk [vmem:[#allocation2 + $0x78] sm:$0xe] %vm882_vm7, %v3264_v47  ;;  %v1540_v57 = vmax.bf16 %v1319_v14, %v957_v12  ;;  %v2185_v59 = vrot.slane %v2183_v52, 6  ;;  %v2188_v43 = vrot.slane %v1320_v22, 5 }
 0x115   : > { %9011 = vmatprep.mubr.msk.bf16.mxu1 %vm422_vm6, %v8682_v9  ;;  %v3268_v20 = vrot.slane %v3266_v3, 4  ;;  %v2189_v8 = vrot.slane %v1316_v45, 6  ;;  %v2194_v48 = vshrl.u32 %v1870_v26, 16  ;;  %v1329_v11 = vsel %vm9562_vm11, %v1324_v13, %v1328_v28  ;;  %v10396_v28 = vld [vmem:[#allocation2 + $0xc] sm:$0xf] }
 0x116   : > { %v3267_v56 = vsel %vm9424_vm8, %v3265_v23, %v3266_v3  ;;  %v1843_v40 = vmax.bf16 %v1731_v38, %v1540_v57  ;;  %v2186_v29 = vor.u32 %v2185_v59, %v2182_v17  ;;  %v1541_v12 = vmax.bf16 %v1329_v11, %v10338_v24  ;;  %v10407_v47 = vld [vmem:[#allocation2 + $0x10] sm:$0xf]  ;;  %v10420_v57 = vld [vmem:[#allocation2 + $0x14] sm:$0x1] }
 0x117   : > { %3377 = vst.msk [vmem:[#allocation2 + $0x7c] sm:$0xf] %vm701_vm1, %v3267_v56  ;;  %v2190_v21 = vor.u32 %v2189_v8, %v2188_v43  ;;  %v2196_v58 = vrot.slane %v2194_v48, 5  ;;  %v2197_v55 = vshll.u32 %v1870_v26, 16  ;;  %v8667_v19 = vrot.slane %v2433_v31, 10 }
 0x118   : > { %3378 = vst.msk [vmem:[#allocation2 + $0x80] sm:$0x1] %vm717_vm2, %v3268_v20  ;;  %v2187_v45 = vrot.slane %v2186_v29, 4  ;;  %v2576_v6 = vrot.slane %v10338_v24, 6  ;;  %v2579_v49 = vrot.slane %v1870_v26, 6  ;;  %v1844_v62 = vmax.bf16 %v1734_v25, %v1541_v12 }
 0x119   : > { %v2192_v32 = vrot.slane %v2190_v21, 4  ;;  %v2199_v33 = vrot.slane %v2197_v55, 6  ;;  %v2721_v34 = vmax.bf16 %v10247_v4, %v10185_v51  ;;  %v2722_v24 = vmax.bf16 %v10251_v50, %v10196_v60 }
 0x11a   : > { %v2191_v22 = vsel %vm9771_vm4, %v2187_v45, %v2190_v21  ;;  %v2577_v54 = vsel %vm9856_vm10, %v8667_v19, %v2576_v6  ;;  %v2578_v42 = vrot.slane %v2576_v6, 4  ;;  %v3461_v46 = vshrl.u32 %v10379_v0, 16 }
 0x11b   : > { %v2200_v5 = vor.u32 %v2199_v33, %v2196_v58  ;;  %v2406_v35 = vmax.bf16 %v2191_v22, %v1843_v40  ;;  %v2753_v18 = vmax.bf16 %v2721_v34, %v10293_v16  ;;  %v2754_v53 = vmax.bf16 %v2722_v24, %v10301_v1  ;;  %v10429_v40 = vld [vmem:[#allocation2 + $0x18] sm:$0xf]  ;;  %v10447_v34 = vld [vmem:[#allocation2 + $0x20] sm:$0x1] }
 0x11c   : > { %v2580_v51 = vsel %vm9856_vm10, %v2578_v42, %v2579_v49  ;;  %v3464_v39 = vshll.u32 %v10379_v0, 16  ;;  %v3470_v7 = vshll.u32 %v10383_v36, 16  ;;  %v3463_v63 = vrot.slane %v3461_v46, 4 }
 0x11d   : > { %v2201_v60 = vsel %vm9771_vm4, %v2192_v32, %v2200_v5  ;;  %v10404_v38 = vmax.bf16 %v2577_v54, %v2406_v35  ;;  %v2785_v61 = vmax.bf16 %v2753_v18, %v10355_v2  ;;  %v2786_v17 = vmax.bf16 %v2754_v53, %v10358_v27  ;;  %v10459_v18 = vld [vmem:[#allocation2 + $0x24] sm:$0xf]  ;;  %v10463_v53 = vld [vmem:[#allocation2 + $0x28] sm:$0xf] }
 0x11e   : > { %v2407_v26 = vmax.bf16 %v2201_v60, %v1844_v62  ;;  %v3466_v52 = vrot.slane %v3464_v39, 5  ;;  %v10412_v9 = vrot.slane %v3470_v7, 5  ;;  %v3474_v14 = vshrl.u32 %v10383_v36, 16  ;;  %v10441_v62 = vld [vmem:[#allocation2 + $0x1c] sm:$0xf] }
 0x11f   : > { %13467 = vst [vmem:[#allocation11_spill] sm:$0xff] %v10404_v38  ;;  %v2817_v3 = vmax.bf16 %v2785_v61, %v10404_v38  ;;  %v3480_v25 = vshll.u32 %v10398_v30, 16  ;;  %v3485_v23 = vshrl.u32 %v10396_v28, 16  ;;  %v3488_v20 = vshll.u32 %v10396_v28, 16 }
 0x120   : > { %v10418_v13 = vmax.bf16 %v2580_v51, %v2407_v26  ;;  %v3467_v59 = vor.u32 %v3466_v52, %v3463_v63  ;;  %v3494_v43 = vshll.u32 %v10407_v47, 16  ;;  %v3476_v48 = vrot.slane %v3474_v14, 4 }
 0x121   : > { %v3269_v8 = vrot.slane %v2817_v3, 7  ;;  %v10426_v31 = vrot.slane %v3480_v25, 5  ;;  %v3487_v56 = vrot.slane %v3485_v23, 4  ;;  %v3490_v12 = vrot.slane %v3488_v20, 5  ;;  %v10477_v25 = vld [vmem:[#allocation2 + $0x2c] sm:$0x1] }
 0x122   : > { %13468 = vst [vmem:[#allocation12_spill] sm:$0xff] %v10418_v13  ;;  %v2818_v11 = vmax.bf16 %v2786_v17, %v10418_v13  ;;  %v10431_v29 = vrot.slane %v3467_v59, 4  ;;  %v10435_v21 = vrot.slane %v3494_v43, 5  ;;  %v3477_v55 = vor.u32 %v3476_v48, %v10412_v9  ;;  %v3408_v48 = vld [vmem:[#allocation2 + $0x30] sm:$0xf] }
 0x123   : > { %v3270_v58 = vrot.slane %v3269_v8, 4  ;;  %3379 = vst.msk [vmem:[#allocation2 + $0x84] sm:$0xe] %vm882_vm7, %v3269_v8  ;;  %v3498_v45 = vshrl.u32 %v10407_v47, 16  ;;  %v3504_v19 = vshll.u32 %v10420_v57, 16  ;;  %v3491_v33 = vor.u32 %v3490_v12, %v3487_v56 }
 0x124   : > { %v8683_v6 = vcombine.low %v2817_v3, %v2818_v11  ;;  %v3271_v49 = vrot.slane %v2818_v11, 7  ;;  %v3473_v32 = vsel %vm9562_vm11, %v10431_v29, %v10412_v9  ;;  %v10449_v22 = vrot.slane %v3477_v55, 4 }
 0x125   : > { %v3500_v54 = vrot.slane %v3498_v45, 4  ;;  %v10453_v42 = vrot.slane %v3504_v19, 5  ;;  %v3509_v24 = vshrl.u32 %v10429_v40, 16  ;;  %v3492_v46 = vrot.slane %v3491_v33, 4 }
 0x126   : > { %9012 = vmatmul.mubr.msk.bf16.gmra.mxu1 %vm422_vm6, %v8683_v6  ;;  %v3272_v5 = vsel %vm9424_vm8, %v3270_v58, %v3271_v49  ;;  %v3273_v35 = vrot.slane %v3271_v49, 4  ;;  %v3512_v51 = vshll.u32 %v10429_v40, 16  ;;  %v3483_v39 = vsel %vm9562_vm11, %v10449_v22, %v10426_v31 }
 0x127   : > { %3380 = vst.msk [vmem:[#allocation2 + $0x88] sm:$0xf] %vm701_vm1, %v3272_v5  ;;  %v3501_v60 = vor.u32 %v3500_v54, %v10435_v21  ;;  %v3511_v61 = vrot.slane %v3509_v24, 4  ;;  %v13402_v63 = vshll.u32 %v10441_v62, 16  ;;  %v3497_v26 = vsel %vm9562_vm11, %v3492_v46, %v10435_v21  ;;  %v10486_v21 = vld [vmem:[#allocation2 + $0x34] sm:$0xf] }
 0x128   : > { %3381 = vst.msk [vmem:[#allocation2 + $0x8c] sm:$0x1] %vm717_vm2, %v3273_v35  ;;  %v3514_v17 = vrot.slane %v3512_v51, 5  ;;  %v13403_v52 = vshrl.u32 %v10441_v62, 16  ;;  %v3528_v3 = vshll.u32 %v10447_v34, 16  ;;  %v3533_v20 = vshrl.u32 %v10459_v18, 16 }
 0x129   : > { %v3502_v23 = vrot.slane %v3501_v60, 4  ;;  %v3520_v59 = vrot.slane %v13402_v63, 5  ;;  %v3536_v8 = vshll.u32 %v10459_v18, 16  ;;  %v13400_v12 = vshll.u32 %v10463_v53, 16  ;;  %v10495_v24 = vld [vmem:[#allocation2 + $0x38] sm:$0x1] }
 0x12a   : > { %v3515_v31 = vor.u32 %v3514_v17, %v3511_v61  ;;  %v3524_v56 = vrot.slane %v13403_v52, 4  ;;  %v3530_v11 = vrot.slane %v3528_v3, 5  ;;  %v3535_v55 = vrot.slane %v3533_v20, 4 }
 0x12b   : > { %v3507_v58 = vsel %vm9562_vm11, %v3502_v23, %v10453_v42  ;;  %v3538_v19 = vrot.slane %v3536_v8, 5  ;;  %v13401_v6 = vshrl.u32 %v10463_v53, 16  ;;  %v3544_v22 = vrot.slane %v13400_v12, 5 }
 0x12c   : > { %v3516_v49 = vrot.slane %v3515_v31, 4  ;;  %v3525_v33 = vor.u32 %v3524_v56, %v3520_v59  ;;  %v3552_v54 = vshll.u32 %v10477_v25, 16  ;;  %v3557_v46 = vshrl.u32 %v3408_v48, 16 }
 0x12d   : > { %v3539_v5 = vor.u32 %v3538_v19, %v3535_v55  ;;  %v3548_v35 = vrot.slane %v13401_v6, 4  ;;  %v3560_v51 = vshll.u32 %v3408_v48, 16  ;;  %v13398_v17 = vshll.u32 %v10486_v21, 16 }
 0x12e   : > { %v3521_v42 = vsel %vm9562_vm11, %v3516_v49, %v3520_v59  ;;  %v3526_v60 = vrot.slane %v3525_v33, 4  ;;  %v3554_v61 = vrot.slane %v3552_v54, 5  ;;  %v3559_v20 = vrot.slane %v3557_v46, 4 }
 0x12f   : > { %v3540_v3 = vrot.slane %v3539_v5, 4  ;;  %v3549_v23 = vor.u32 %v3548_v35, %v3544_v22  ;;  %v3562_v8 = vrot.slane %v3560_v51, 5  ;;  %v3568_v56 = vrot.slane %v13398_v17, 5 }
 0x130   : > { %v3531_v31 = vsel %vm9562_vm11, %v3526_v60, %v3530_v11  ;;  %v13399_v55 = vshrl.u32 %v10486_v21, 16  ;;  %v3576_v19 = vshll.u32 %v10495_v24, 16  ;;  %v10516_v54 = vmax.bf16 %v3473_v32, %v10379_v0 }
 0x131   : > { %v3545_v59 = vsel %vm9562_vm11, %v3540_v3, %v3544_v22  ;;  %v3550_v49 = vrot.slane %v3549_v23, 4  ;;  %v3563_v33 = vor.u32 %v3562_v8, %v3559_v20  ;;  %v10521_v35 = vmax.bf16 %v3483_v39, %v10383_v36  ;;  %v4020_v39 = vld [vmem:[#allocation2] sm:$0xe]  ;;  %v10551_v20 = vld [vmem:[#allocation2 + $0x18] sm:$0xe] }
 0x132   : > { %v3572_v11 = vrot.slane %v13399_v55, 4  ;;  %v3578_v5 = vrot.slane %v3576_v19, 5  ;;  %v10524_v46 = vmax.bf16 %v3497_v26, %v10396_v28  ;;  %v10529_v60 = vmax.bf16 %v3507_v58, %v10407_v47 }
 0x133   : > { %v3555_v22 = vsel %vm9562_vm11, %v3550_v49, %v3554_v61  ;;  %v3564_v51 = vrot.slane %v3563_v33, 4  ;;  %v10532_v0 = vmax.bf16 %v3521_v42, %v10429_v40  ;;  %v10535_v29 = vmax.bf16 %v3531_v31, %v10441_v62  ;;  %v10545_v61 = vld [vmem:[#allocation2 + $0xc] sm:$0xe] }
 0x134   : > { %v3573_v9 = vor.u32 %v3572_v11, %v3568_v56  ;;  %v10538_v32 = vmax.bf16 %v3545_v59, %v10459_v18  ;;  %v10541_v28 = vmax.bf16 %v3555_v22, %v10463_v53  ;;  %v8707_v58 = vrot.slane %v4020_v39, 9 }
 0x135   : > { %v3569_v26 = vsel %vm9562_vm11, %v3564_v51, %v3568_v56  ;;  %v4102_v40 = vrot.slane %v10383_v36, 5  ;;  %v4105_v42 = vrot.slane %v10398_v30, 5  ;;  %v8708_v18 = vrot.slane %v10545_v61, 9 }
 0x136   : > { %v3574_v3 = vrot.slane %v3573_v9, 4  ;;  %v10549_v23 = vmax.bf16 %v3569_v26, %v3408_v48  ;;  %v4109_v8 = vrot.slane %v10407_v47, 5  ;;  %v4112_v19 = vrot.slane %v10420_v57, 5  ;;  %v10563_v48 = vld [vmem:[#allocation2 + $0x24] sm:$0xe] }
 0x137   : > { %v10557_v31 = vsel %vm9650_vm14, %v8707_v58, %v4102_v40  ;;  %v4104_v56 = vrot.slane %v4102_v40, 4  ;;  %v8709_v59 = vrot.slane %v10551_v20, 9  ;;  %v4116_v11 = vrot.slane %v10441_v62, 5  ;;  %v10579_v9 = vld [vmem:[#allocation2 + $0x30] sm:$0xe] }
 0x138   : > { %v3579_v30 = vsel %vm9562_vm11, %v3574_v3, %v3578_v5  ;;  %v10567_v49 = vsel %vm9650_vm14, %v8708_v18, %v4109_v8  ;;  %v4111_v33 = vrot.slane %v4109_v8, 4  ;;  %v4119_v51 = vrot.slane %v10447_v34, 5 }
 0x139   : > { %v10571_v22 = vmax.bf16 %v3579_v30, %v10486_v21  ;;  %v10575_v57 = vsel %vm9650_vm14, %v4104_v56, %v4105_v42  ;;  %v8710_v5 = vrot.slane %v10563_v48, 9  ;;  %v10587_v58 = vsel %vm9650_vm14, %v8709_v59, %v4116_v11  ;;  %v10638_v30 = vld [vmem:[#allocation2 + $0x14] sm:$0x3] }
 0x13a   : > { %v10583_v26 = vsel %vm9650_vm14, %v4111_v33, %v4112_v19  ;;  %v4118_v40 = vrot.slane %v4116_v11, 4  ;;  %v4123_v3 = vrot.slane %v10463_v53, 5  ;;  %v4126_v42 = vrot.slane %v10477_v25, 5 }
 0x13b   : > { %v8711_v18 = vrot.slane %v10579_v9, 9  ;;  %v4130_v34 = vrot.slane %v10486_v21, 5  ;;  %v4133_v8 = vrot.slane %v10495_v24, 5  ;;  %v4349_v24 = vrot.slane %v3474_v14, 5 }
 0x13c   : > { %v10596_v56 = vsel %vm9650_vm14, %v4118_v40, %v4119_v51  ;;  %v10600_v19 = vsel %vm9650_vm14, %v8710_v5, %v4123_v3  ;;  %v4125_v59 = vrot.slane %v4123_v3, 4  ;;  %v4341_v5 = vshrl.u32 %v4020_v39, 16 }
 0x13d   : > { %v10606_v25 = vsel %vm9650_vm14, %v8711_v18, %v4130_v34  ;;  %v4132_v33 = vrot.slane %v4130_v34, 4  ;;  %v10622_v18 = vld [vmem:[#allocation2 + $0x8] sm:$0x3]  ;;  %v4344_v3 = vshll.u32 %v4020_v39, 16  ;;  %v4364_v11 = vshrl.u32 %v10545_v61, 16 }
 0x13e   : > { %v10614_v51 = vsel %vm9650_vm14, %v4125_v59, %v4126_v42  ;;  %v4358_v42 = vshll.u32 %v10622_v18, 16  ;;  %v4343_v59 = vrot.slane %v4341_v5, 5  ;;  %v4367_v40 = vshll.u32 %v10545_v61, 16 }
 0x13f   : > { %v10626_v34 = vsel %vm9650_vm14, %v4132_v33, %v4133_v8  ;;  %v4350_v8 = vrot.slane %v3470_v7, 6  ;;  %v4355_v33 = vshrl.u32 %v10622_v18, 16  ;;  %v4346_v17 = vrot.slane %v4344_v3, 6 }
 0x140   : > { %v4372_v39 = vrot.slane %v3498_v45, 5  ;;  %v4360_v12 = vrot.slane %v4358_v42, 6  ;;  %v4366_v6 = vrot.slane %v4364_v11, 5  ;;  %v4369_v7 = vrot.slane %v4367_v40, 6  ;;  %v10656_v45 = vld [vmem:[#allocation2 + $0x20] sm:$0x3] }
 0x141   : > { %v10648_v55 = vor.u32 %v4350_v8, %v4349_v24  ;;  %v4357_v14 = vrot.slane %v4355_v33, 5  ;;  %v4347_v63 = vor.u32 %v4346_v17, %v4343_v59  ;;  %v4373_v52 = vrot.slane %v3494_v43, 6 }
 0x142   : > { %v4378_v13 = vshrl.u32 %v10638_v30, 16  ;;  %v4381_v61 = vshll.u32 %v10638_v30, 16  ;;  %v4387_v38 = vshrl.u32 %v10551_v20, 16  ;;  %v4370_v8 = vor.u32 %v4369_v7, %v4366_v6  ;;  %v10669_v7 = vld [vmem:[#allocation2 + $0x2c] sm:$0x3] }
 0x143   : > { %v4353_v5 = vrot.slane %v10648_v55, 4  ;;  %v4361_v3 = vor.u32 %v4360_v12, %v4357_v14  ;;  %v4348_v24 = vrot.slane %v4347_v63, 4  ;;  %v4374_v42 = vor.u32 %v4373_v52, %v4372_v39 }
 0x144   : > { %v4380_v11 = vrot.slane %v4378_v13, 5  ;;  %v4383_v40 = vrot.slane %v4381_v61, 6  ;;  %v4389_v43 = vrot.slane %v4387_v38, 5  ;;  %v4390_v59 = vshll.u32 %v10551_v20, 16 }
 0x145   : > { %v4362_v17 = vsel %vm9771_vm4, %v4353_v5, %v4361_v3  ;;  %v4352_v12 = vsel %vm9771_vm4, %v4348_v24, %v10648_v55  ;;  %v4371_v33 = vrot.slane %v4370_v8, 4  ;;  %v4376_v14 = vrot.slane %v4374_v42, 4 }
 0x146   : > { %v13469_v27 = vshrl.u32 %v10441_v62, 16  ;;  %v4384_v63 = vor.u32 %v4383_v40, %v4380_v11  ;;  %v4392_v6 = vrot.slane %v4390_v59, 6  ;;  %v13470_v13 = vshll.u32 %v10441_v62, 16 }
 0x147   : > { %v4401_v39 = vshrl.u32 %v10656_v45, 16  ;;  %v4375_v38 = vsel %vm9771_vm4, %v4371_v33, %v4374_v42  ;;  %v4404_v20 = vshll.u32 %v10656_v45, 16  ;;  %v4410_v55 = vshrl.u32 %v10563_v48, 16 }
 0x148   : > { %v4395_v2 = vrot.slane %v13469_v27, 5  ;;  %v4396_v52 = vrot.slane %v13470_v13, 6  ;;  %v4413_v5 = vshll.u32 %v10563_v48, 16  ;;  %v4385_v27 = vsel %vm9771_vm4, %v4376_v14, %v4384_v63 }
 0x149   : > { %v4393_v3 = vor.u32 %v4392_v6, %v4389_v43  ;;  %v4403_v24 = vrot.slane %v4401_v39, 5  ;;  %v4406_v8 = vrot.slane %v4404_v20, 6  ;;  %v4412_v11 = vrot.slane %v4410_v55, 5  ;;  %v10685_v43 = vld [vmem:[#allocation2 + $0x38] sm:$0x3] }
 0x14a   : > { %v4397_v61 = vor.u32 %v4396_v52, %v4395_v2  ;;  %v4415_v40 = vrot.slane %v4413_v5, 6  ;;  %v13471_v59 = vshrl.u32 %v10463_v53, 16  ;;  %v13472_v33 = vshll.u32 %v10463_v53, 16 }
 0x14b   : > { %v4394_v1 = vrot.slane %v4393_v3, 4  ;;  %v4424_v16 = vshrl.u32 %v10669_v7, 16  ;;  %v4407_v48 = vor.u32 %v4406_v8, %v4403_v24  ;;  %v4427_v14 = vshll.u32 %v10669_v7, 16 }
 0x14c   : > { %v4418_v13 = vrot.slane %v13471_v59, 5  ;;  %v4399_v42 = vrot.slane %v4397_v61, 4  ;;  %v4419_v50 = vrot.slane %v13472_v33, 6  ;;  %v4416_v4 = vor.u32 %v4415_v40, %v4412_v11 }
 0x14d   : > { %v4433_v2 = vshrl.u32 %v10579_v9, 16  ;;  %v4398_v63 = vsel %vm9771_vm4, %v4394_v1, %v4397_v61  ;;  %v4426_v52 = vrot.slane %v4424_v16, 5  ;;  %v4436_v39 = vshll.u32 %v10579_v9, 16 }
 0x14e   : > { %v4420_v6 = vor.u32 %v4419_v50, %v4418_v13  ;;  %v4408_v20 = vsel %vm9771_vm4, %v4399_v42, %v4407_v48  ;;  %v4417_v55 = vrot.slane %v4416_v4, 4  ;;  %v4429_v5 = vrot.slane %v4427_v14, 6 }
 0x14f   : > { %v4435_v3 = vrot.slane %v4433_v2, 5  ;;  %v4438_v8 = vrot.slane %v4436_v39, 6  ;;  %v13473_v11 = vshrl.u32 %v10486_v21, 16  ;;  %v13474_v59 = vshll.u32 %v10486_v21, 16 }
 0x150   : > { %v4422_v24 = vrot.slane %v4420_v6, 4  ;;  %v4421_v50 = vsel %vm9771_vm4, %v4417_v55, %v4420_v6  ;;  %v4430_v16 = vor.u32 %v4429_v5, %v4426_v52  ;;  %v4447_v1 = vshrl.u32 %v10685_v43, 16  ;;  %v4880_v5 = vld [vmem:[#allocation2] sm:$0xc] }
 0x151   : > { %v4441_v40 = vrot.slane %v13473_v11, 5  ;;  %v4442_v33 = vrot.slane %v13474_v59, 6  ;;  %v4450_v9 = vshll.u32 %v10685_v43, 16  ;;  %v4439_v61 = vor.u32 %v4438_v8, %v4435_v3 }
 0x152   : > { %v13475_v13 = vmax.bf16 %v10557_v31, %v10516_v54  ;;  %v13476_v48 = vmax.bf16 %v10575_v57, %v10521_v35  ;;  %v4431_v2 = vsel %vm9771_vm4, %v4422_v24, %v4430_v16  ;;  %v4449_v6 = vrot.slane %v4447_v1, 5 }
 0x153   : > { %v4443_v4 = vor.u32 %v4442_v33, %v4441_v40  ;;  %v4452_v52 = vrot.slane %v4450_v9, 6  ;;  %v13477_v39 = vmax.bf16 %v10567_v49, %v10524_v46  ;;  %v4440_v3 = vrot.slane %v4439_v61, 4  ;;  %v4884_v33 = vld [vmem:[#allocation2 + $0x30] sm:$0xc] }
 0x154   : > { %v10703_v42 = vmax.bf16 %v4352_v12, %v13475_v13  ;;  %v10708_v14 = vmax.bf16 %v4362_v17, %v13476_v48  ;;  %v13478_v54 = vmax.bf16 %v10583_v26, %v10529_v60  ;;  %v13479_v35 = vmax.bf16 %v10587_v58, %v10532_v0  ;;  %v4881_v17 = vld [vmem:[#allocation2 + $0xc] sm:$0xc]  ;;  %v4882_v26 = vld [vmem:[#allocation2 + $0x18] sm:$0xc] }
 0x155   : > { %v4842_v55 = vmax.bf16 %v4375_v38, %v13477_v39  ;;  %v4445_v8 = vrot.slane %v4443_v4, 4  ;;  %v4453_v12 = vor.u32 %v4452_v52, %v4449_v6  ;;  %v13480_v24 = vmax.bf16 %v10596_v56, %v10535_v29 }
 0x156   : > { %v4843_v31 = vmax.bf16 %v4385_v27, %v13478_v54  ;;  %v4844_v57 = vmax.bf16 %v4398_v63, %v13479_v35  ;;  %v13481_v46 = vmax.bf16 %v10600_v19, %v10538_v32  ;;  %v13482_v38 = vmax.bf16 %v10614_v51, %v10541_v28  ;;  %v4883_v19 = vld [vmem:[#allocation2 + $0x24] sm:$0xc] }
 0x157   : > { %v4845_v11 = vmax.bf16 %v4408_v20, %v13480_v24  ;;  %v4444_v60 = vsel %vm9771_vm4, %v4440_v3, %v4443_v4  ;;  %v8727_v0 = vrot.slane %v4880_v5, 10  ;;  %v4942_v58 = vrot.slane %v10383_v36, 6 }
 0x158   : > { %v4846_v49 = vmax.bf16 %v4421_v50, %v13481_v46  ;;  %v4847_v40 = vmax.bf16 %v4431_v2, %v13482_v38  ;;  %v4945_v27 = vrot.slane %v10622_v18, 6  ;;  %v4454_v29 = vsel %vm9771_vm4, %v4445_v8, %v4453_v12 }
 0x159   : > { %v13483_v32 = vmax.bf16 %v10606_v25, %v10549_v23  ;;  %v8728_v63 = vrot.slane %v4881_v17, 10  ;;  %v4949_v28 = vrot.slane %v10407_v47, 6  ;;  %v13484_v51 = vmax.bf16 %v10626_v34, %v10571_v22  ;;  %v10776_v17 = vld [vmem:[#allocation2 + $0x40] sm:$0xf] }
 0x15a   : > { %v4943_v36 = vsel %vm9856_vm10, %v8727_v0, %v4942_v58  ;;  %v4944_v59 = vrot.slane %v4942_v58, 4  ;;  %v4952_v18 = vrot.slane %v10638_v30, 6  ;;  %v8729_v25 = vrot.slane %v4882_v26, 10 }
 0x15b   : > { %v4848_v56 = vmax.bf16 %v4444_v60, %v13483_v32  ;;  %v4849_v20 = vmax.bf16 %v4454_v29, %v13484_v51  ;;  %v4950_v50 = vsel %vm9856_vm10, %v8728_v63, %v4949_v28  ;;  %v4951_v23 = vrot.slane %v4949_v28, 4  ;;  %v4025_v63 = vld [vmem:[#allocation2 + $0x3c] sm:$0xe] }
 0x15c   : > { %v4956_v16 = vrot.slane %v10441_v62, 6  ;;  %v4946_v47 = vsel %vm9856_vm10, %v4944_v59, %v4945_v27  ;;  %v4959_v22 = vrot.slane %v10656_v45, 6  ;;  %v8730_v34 = vrot.slane %v4883_v19, 10 }
 0x15d   : > { %v4963_v1 = vrot.slane %v10463_v53, 6  ;;  %v4953_v9 = vsel %vm9856_vm10, %v4951_v23, %v4952_v18  ;;  %v4966_v4 = vrot.slane %v10669_v7, 6  ;;  %v8731_v48 = vrot.slane %v4884_v33, 10 }
 0x15e   : > { %v4957_v30 = vsel %vm9856_vm10, %v8729_v25, %v4956_v16  ;;  %v4958_v61 = vrot.slane %v4956_v16, 4  ;;  %v4970_v2 = vrot.slane %v10486_v21, 6  ;;  %v4973_v53 = vrot.slane %v10685_v43, 6  ;;  %v3410_v43 = vld [vmem:[#allocation2 + $0x3c] sm:$0xf] }
 0x15f   : > { %v4964_v62 = vsel %vm9856_vm10, %v8730_v34, %v4963_v1  ;;  %v4965_v13 = vrot.slane %v4963_v1, 4  ;;  %v5120_v6 = vmax.bf16 %v4943_v36, %v10703_v42  ;;  %v5121_v52 = vmax.bf16 %v4946_v47, %v10708_v14 }
 0x160   : > { %v4960_v45 = vsel %vm9856_vm10, %v4958_v61, %v4959_v22  ;;  %v4971_v7 = vsel %vm9856_vm10, %v8731_v48, %v4970_v2  ;;  %v4972_v5 = vrot.slane %v4970_v2, 4  ;;  %v5122_v3 = vmax.bf16 %v4950_v50, %v4842_v55 }
 0x161   : > { %v4967_v39 = vsel %vm9856_vm10, %v4965_v13, %v4966_v4  ;;  %v5123_v8 = vmax.bf16 %v4953_v9, %v4843_v31  ;;  %v10770_v54 = vmax.bf16 %v4957_v30, %v4844_v57  ;;  %v10772_v21 = vmax.bf16 %v4960_v45, %v4845_v11  ;;  %v4325_v45 = vld [vmem:[#allocation2 + $0x44] sm:$0x3] }
 0x162   : > { %v10774_v35 = vmax.bf16 %v4964_v62, %v4846_v49  ;;  %v4974_v42 = vsel %vm9856_vm10, %v4972_v5, %v4973_v53  ;;  %v10780_v14 = vmax.bf16 %v4967_v39, %v4847_v40  ;;  %v10782_v12 = vmax.bf16 %v4971_v7, %v4848_v56  ;;  %v3445_v49 = vld [vmem:[#allocation2 + $0x44] sm:$0x1] }
 0x163   : > { %v5160_v24 = vmax.bf16 %v5122_v3, %v5120_v6  ;;  %v10784_v46 = vmax.bf16 %v4974_v42, %v4849_v20  ;;  %v5161_v55 = vmax.bf16 %v5123_v8, %v5121_v52  ;;  %v5162_v31 = vmax.bf16 %v10770_v54, %v5122_v3  ;;  %v4885_v6 = vld [vmem:[#allocation2 + $0x3c] sm:$0xc] }
 0x164   : > { %v5163_v57 = vmax.bf16 %v10772_v21, %v5123_v8  ;;  %v3581_v38 = vshrl.u32 %v3410_v43, 16  ;;  %v3584_v60 = vshll.u32 %v3410_v43, 16  ;;  %v3590_v26 = vshll.u32 %v10776_v17, 16 }
 0x165   : > { %v5192_v11 = vmax.bf16 %v5160_v24, %v10770_v54  ;;  %v5193_v40 = vmax.bf16 %v5161_v55, %v10772_v21  ;;  %v10792_v0 = vmax.bf16 %v5162_v31, %v10774_v35  ;;  %v3594_v27 = vshrl.u32 %v10776_v17, 16 }
 0x166   : > { %v10795_v58 = vmax.bf16 %v5163_v57, %v10780_v14  ;;  %v3583_v32 = vrot.slane %v3581_v38, 4  ;;  %v3586_v56 = vrot.slane %v3584_v60, 5  ;;  %v3592_v19 = vrot.slane %v3590_v26, 5 }
 0x167   : > { %v5224_v29 = vmax.bf16 %v5192_v11, %v10774_v35  ;;  %v5225_v28 = vmax.bf16 %v5193_v40, %v10780_v14  ;;  %v3596_v51 = vrot.slane %v3594_v27, 4  ;;  %v3600_v20 = vshll.u32 %v3445_v49, 16  ;;  %v959_v40 = vld [vmem:[#allocation2 + $0xa8] sm:$0xf] }
 0x168   : > { %v8712_v36 = vrot.slane %v4025_v63, 9  ;;  %v3587_v18 = vor.u32 %v3586_v56, %v3583_v32  ;;  %v4137_v33 = vrot.slane %v10776_v17, 5  ;;  %v4140_v50 = vrot.slane %v3445_v49, 5  ;;  %v10821_v56 = vld [vmem:[#allocation2 + $0xac] sm:$0xf] }
 0x169   : > { %v5256_v59 = vmax.bf16 %v5224_v29, %v10782_v12  ;;  %v5257_v23 = vmax.bf16 %v5225_v28, %v10784_v46  ;;  %v3597_v25 = vor.u32 %v3596_v51, %v3592_v19  ;;  %v3602_v16 = vrot.slane %v3600_v20, 5 }
 0x16a   : > { %v4456_v47 = vshrl.u32 %v4025_v63, 16  ;;  %v3588_v34 = vrot.slane %v3587_v18, 4  ;;  %v4138_v1 = vsel %vm9650_vm14, %v8712_v36, %v4137_v33  ;;  %v4139_v9 = vrot.slane %v4137_v33, 4 }
 0x16b   : > { %v5681_v22 = vrot.slane %v5256_v59, 7  ;;  %v8747_v30 = vcombine.low %v5256_v59, %v5257_v23  ;;  %v5683_v61 = vrot.slane %v5257_v23, 7  ;;  %v3598_v4 = vrot.slane %v3597_v25, 4 }
 0x16c   : > { %v4458_v62 = vrot.slane %v4456_v47, 5  ;;  %v3593_v48 = vsel %vm9562_vm11, %v3588_v34, %v3592_v19  ;;  %v4141_v2 = vsel %vm9650_vm14, %v4139_v9, %v4140_v50  ;;  %v4459_v53 = vshll.u32 %v4025_v63, 16 }
 0x16d   : > { %v5682_v13 = vrot.slane %v5681_v22, 4  ;;  %5809 = vst.msk [vmem:[#allocation2 + $0x18] sm:$0xe] %vm882_vm7, %v5681_v22  ;;  %9029 = vmatprep.mubr.msk.bf16.mxu0 %vm422_vm6, %v8747_v30  ;;  %v5685_v52 = vrot.slane %v5683_v61, 4  ;;  %v3603_v39 = vsel %vm9562_vm11, %v3598_v4, %v3602_v16  ;;  %v3990_v7 = vmax.bf16 %v3593_v48, %v3410_v43  ;;  %v1568_v30 = vld [vmem:[#allocation2 + $0xa8] sm:$0xe] }
 0x16e   : > { %v4464_v5 = vrot.slane %v3594_v27, 5  ;;  %v3991_v8 = vmax.bf16 %v3603_v39, %v10776_v17  ;;  %v4461_v42 = vrot.slane %v4459_v53, 6  ;;  %v4465_v24 = vrot.slane %v3590_v26, 6 }
 0x16f   : > { %v5684_v3 = vsel %vm9424_vm8, %v5682_v13, %v5683_v61  ;;  %5811 = vst.msk [vmem:[#allocation2 + $0x20] sm:$0x1] %vm717_vm2, %v5685_v52  ;;  %v4290_v55 = vmax.bf16 %v4138_v1, %v3990_v7  ;;  %v4470_v31 = vshrl.u32 %v4325_v45, 16  ;;  %v4473_v57 = vshll.u32 %v4325_v45, 16 }
 0x170   : > { %5810 = vst.msk [vmem:[#allocation2 + $0x1c] sm:$0xf] %vm701_vm1, %v5684_v3  ;;  %v8732_v11 = vrot.slane %v4885_v6, 10  ;;  %v4291_v49 = vmax.bf16 %v4141_v2, %v3991_v8  ;;  %v4462_v38 = vor.u32 %v4461_v42, %v4458_v62  ;;  %v4466_v60 = vor.u32 %v4465_v24, %v4464_v5 }
 0x171   : > { %v4977_v43 = vrot.slane %v10776_v17, 6  ;;  %v4472_v27 = vrot.slane %v4470_v31, 5  ;;  %v4475_v29 = vrot.slane %v4473_v57, 6  ;;  %v4980_v32 = vrot.slane %v4325_v45, 6  ;;  %v985_v17 = vld [vmem:[#allocation2 + $0xb0] sm:$0x1] }
 0x172   : > { %v5226_v26 = vmax.bf16 %v10792_v0, %v10782_v12  ;;  %v4463_v19 = vrot.slane %v4462_v38, 4  ;;  %v4468_v63 = vrot.slane %v4466_v60, 4  ;;  %v5227_v36 = vmax.bf16 %v10795_v58, %v10784_v46  ;;  %v1871_v57 = vld [vmem:[#allocation2 + $0xb0] sm:$0x3] }
 0x173   : > { %v4978_v28 = vsel %vm9856_vm10, %v8732_v11, %v4977_v43  ;;  %v4979_v51 = vrot.slane %v4977_v43, 4  ;;  %v4476_v20 = vor.u32 %v4475_v29, %v4472_v27  ;;  %v1331_v59 = vshrl.u32 %v959_v40, 16 }
 0x174   : > { %v1334_v18 = vshll.u32 %v959_v40, 16  ;;  %v4467_v33 = vsel %vm9771_vm4, %v4463_v19, %v4466_v60  ;;  %v1340_v50 = vshll.u32 %v10821_v56, 16  ;;  %v1344_v23 = vshrl.u32 %v10821_v56, 16  ;;  %v2434_v19 = vld [vmem:[#allocation2 + $0xa8] sm:$0xc] }
 0x175   : > { %v4981_v0 = vsel %vm9856_vm10, %v4979_v51, %v4980_v32  ;;  %v4477_v25 = vsel %vm9771_vm4, %v4468_v63, %v4476_v20  ;;  %v4850_v16 = vmax.bf16 %v4467_v33, %v4290_v55  ;;  %v1333_v47 = vrot.slane %v1331_v59, 4 }
 0x176   : > { %v1336_v22 = vrot.slane %v1334_v18, 5  ;;  %v4851_v58 = vmax.bf16 %v4477_v25, %v4291_v49  ;;  %v1342_v34 = vrot.slane %v1340_v50, 5  ;;  %v1346_v1 = vrot.slane %v1344_v23, 4  ;;  %v961_v25 = vld [vmem:[#allocation2 + $0xb4] sm:$0xf] }
 0x177   : > { %v1350_v9 = vshll.u32 %v985_v17, 16  ;;  %v10835_v61 = vmax.bf16 %v4978_v28, %v4850_v16  ;;  %v8648_v62 = vrot.slane %v1568_v30, 9  ;;  %v1737_v13 = vrot.slane %v10821_v56, 5 }
 0x178   : > { %v1337_v4 = vor.u32 %v1336_v22, %v1333_v47  ;;  %v10838_v48 = vmax.bf16 %v4981_v0, %v4851_v58  ;;  %v1347_v2 = vor.u32 %v1346_v1, %v1342_v34  ;;  %v1740_v53 = vrot.slane %v985_v17, 5  ;;  %v13485_v22 = vld [vmem:[#allocation5_spill] sm:$0xff]  ;;  %v13486_v58 = vld [vmem:[#allocation7_spill] sm:$0xff] }
 0x179   : > { %v1352_v45 = vrot.slane %v1350_v9, 5  ;;  %v5258_v6 = vmax.bf16 %v5226_v26, %v10835_v61  ;;  %v1738_v39 = vsel %vm9650_vm14, %v8648_v62, %v1737_v13  ;;  %v1739_v7 = vrot.slane %v1737_v13, 4  ;;  %v13488_v62 = vld [vmem:[#allocation8_spill] sm:$0xff] }
 0x17a   : > { %v1338_v52 = vrot.slane %v1337_v4, 4  ;;  %v5259_v5 = vmax.bf16 %v5227_v36, %v10838_v48  ;;  %v1348_v3 = vrot.slane %v1347_v2, 4  ;;  %v2203_v8 = vshrl.u32 %v1568_v30, 16  ;;  %v13487_v4 = vld [vmem:[#allocation6_spill] sm:$0xff]  ;;  %v10864_v2 = vld [vmem:[#allocation2 + $0xb8] sm:$0xf] }
 0x17b   : > { %v2206_v42 = vshll.u32 %v1568_v30, 16  ;;  %v5686_v24 = vrot.slane %v5258_v6, 7  ;;  %v1741_v31 = vsel %vm9650_vm14, %v1739_v7, %v1740_v53  ;;  %v2211_v11 = vrot.slane %v1344_v23, 5  ;;  %v13489_v53 = vld [vmem:[#allocation9_spill] sm:$0xff] }
 0x17c   : > { %v1343_v55 = vsel %vm9562_vm11, %v1338_v52, %v1342_v34  ;;  %v8748_v49 = vcombine.low %v5258_v6, %v5259_v5  ;;  %v5688_v38 = vrot.slane %v5259_v5, 7  ;;  %v1353_v60 = vsel %vm9562_vm11, %v1348_v3, %v1352_v45  ;;  %v13490_v5 = vld [vmem:[#allocation10_spill] sm:$0xff] }
 0x17d   : > { %v1542_v43 = vmax.bf16 %v1343_v55, %v959_v40  ;;  %v5687_v27 = vrot.slane %v5686_v24, 4  ;;  %5812 = vst.msk [vmem:[#allocation2 + $0x24] sm:$0xe] %vm882_vm7, %v5686_v24  ;;  %v1543_v29 = vmax.bf16 %v1353_v60, %v10821_v56  ;;  %v2205_v32 = vrot.slane %v2203_v8, 5  ;;  %v986_v8 = vld [vmem:[#allocation2 + $0xbc] sm:$0x1] }
 0x17e   : > { %v2208_v26 = vrot.slane %v2206_v42, 6  ;;  %9030 = vmatmul.mubr.msk.bf16.vlgmr.msra.gmra.mxu0 %vm422_vm6, %v8748_v49  ;;  %v5690_v63 = vrot.slane %v5688_v38, 4  ;;  %v2212_v51 = vrot.slane %v1340_v50, 6  ;;  %v2217_v20 = vshrl.u32 %v1871_v57, 16  ;;  %v13491_v55 = vld [vmem:[#allocation11_spill] sm:$0xff]  ;;  %v13492_v60 = vld [vmem:[#allocation12_spill] sm:$0xff] }
 0x17f   : > { %v1845_v28 = vmax.bf16 %v1738_v39, %v1542_v43  ;;  %v5689_v36 = vsel %vm9424_vm8, %v5687_v27, %v5688_v38  ;;  %v1846_v17 = vmax.bf16 %v1741_v31, %v1543_v29  ;;  %v2220_v40 = vshll.u32 %v1871_v57, 16  ;;  %v1569_v29 = vld [vmem:[#allocation2 + $0xb4] sm:$0xe] }
 0x180   : > { %v2209_v59 = vor.u32 %v2208_v26, %v2205_v32  ;;  %5813 = vst.msk [vmem:[#allocation2 + $0x28] sm:$0xf] %vm701_vm1, %v5689_v36  ;;  %v2213_v18 = vor.u32 %v2212_v51, %v2211_v11  ;;  %v2219_v33 = vrot.slane %v2217_v20, 5  ;;  %v8668_v0 = vrot.slane %v2434_v19, 10 }
 0x181   : > { %5814 = vst.msk [vmem:[#allocation2 + $0x2c] sm:$0x1] %vm717_vm2, %v5690_v63  ;;  %v2583_v23 = vrot.slane %v10821_v56, 6  ;;  %v2222_v47 = vrot.slane %v2220_v40, 6  ;;  %v2586_v50 = vrot.slane %v1871_v57, 6  ;;  %v2723_v34 = vmax.bf16 %v13486_v58, %v13485_v22 }
 0x182   : > { %v2210_v16 = vrot.slane %v2209_v59, 4  ;;  %v2215_v1 = vrot.slane %v2213_v18, 4  ;;  %v2724_v13 = vmax.bf16 %v13488_v62, %v13487_v4  ;;  %v1355_v52 = vshrl.u32 %v961_v25, 16 }
 0x183   : > { %v2584_v9 = vsel %vm9856_vm10, %v8668_v0, %v2583_v23  ;;  %v2585_v30 = vrot.slane %v2583_v23, 4  ;;  %v2223_v45 = vor.u32 %v2222_v47, %v2219_v33  ;;  %v2755_v6 = vmax.bf16 %v2723_v34, %v13489_v53 }
 0x184   : > { %v2214_v56 = vsel %vm9771_vm4, %v2210_v16, %v2213_v18  ;;  %v2756_v3 = vmax.bf16 %v2724_v13, %v13490_v5  ;;  %v1358_v42 = vshll.u32 %v961_v25, 16  ;;  %v1357_v57 = vrot.slane %v1355_v52, 4  ;;  %v1872_v13 = vld [vmem:[#allocation2 + $0xbc] sm:$0x3] }
 0x185   : > { %v2408_v39 = vmax.bf16 %v2214_v56, %v1845_v28  ;;  %v2587_v7 = vsel %vm9856_vm10, %v2585_v30, %v2586_v50  ;;  %v2224_v24 = vsel %vm9771_vm4, %v2215_v1, %v2223_v45  ;;  %v2787_v31 = vmax.bf16 %v2755_v6, %v13491_v55 }
 0x186   : > { %v1364_v11 = vshll.u32 %v10864_v2, 16  ;;  %v2409_v49 = vmax.bf16 %v2224_v24, %v1846_v17  ;;  %v2788_v43 = vmax.bf16 %v2756_v3, %v13492_v60  ;;  %v1360_v27 = vrot.slane %v1358_v42, 5 }
 0x187   : > { %v10876_v38 = vmax.bf16 %v2584_v9, %v2408_v39  ;;  %v1368_v26 = vshrl.u32 %v10864_v2, 16  ;;  %v1374_v19 = vshll.u32 %v986_v8, 16  ;;  %v8649_v63 = vrot.slane %v1569_v29, 9  ;;  %v2435_v39 = vld [vmem:[#allocation2 + $0xb4] sm:$0xc] }
 0x188   : > { %v1366_v32 = vrot.slane %v1364_v11, 5  ;;  %v10880_v28 = vmax.bf16 %v2587_v7, %v2409_v49  ;;  %v1361_v20 = vor.u32 %v1360_v27, %v1357_v57  ;;  %v1744_v36 = vrot.slane %v10864_v2, 5 }
 0x189   : > { %v2819_v51 = vmax.bf16 %v2787_v31, %v10876_v38  ;;  %v1370_v59 = vrot.slane %v1368_v26, 4  ;;  %v1376_v17 = vrot.slane %v1374_v19, 5  ;;  %v1747_v40 = vrot.slane %v986_v8, 5 }
 0x18a   : > { %v2226_v18 = vshrl.u32 %v1569_v29, 16  ;;  %v2820_v33 = vmax.bf16 %v2788_v43, %v10880_v28  ;;  %v1362_v23 = vrot.slane %v1361_v20, 4  ;;  %v1745_v16 = vsel %vm9650_vm14, %v8649_v63, %v1744_v36  ;;  %v3412_v63 = vld [vmem:[#allocation2 + $0x48] sm:$0xf] }
 0x18b   : > { %v3274_v0 = vrot.slane %v2819_v51, 7  ;;  %v1371_v47 = vor.u32 %v1370_v59, %v1366_v32  ;;  %v1746_v50 = vrot.slane %v1744_v36, 4  ;;  %v2229_v34 = vshll.u32 %v1569_v29, 16 }
 0x18c   : > { %v2228_v22 = vrot.slane %v2226_v18, 5  ;;  %v8684_v1 = vcombine.low %v2819_v51, %v2820_v33  ;;  %v3276_v30 = vrot.slane %v2820_v33, 7  ;;  %v1367_v4 = vsel %vm9562_vm11, %v1362_v23, %v1366_v32 }
 0x18d   : > { %v3275_v9 = vrot.slane %v3274_v0, 4  ;;  %3382 = vst.msk [vmem:[#allocation2 + $0x90] sm:$0xe] %vm882_vm7, %v3274_v0  ;;  %v1372_v56 = vrot.slane %v1371_v47, 4  ;;  %v1544_v45 = vmax.bf16 %v1367_v4, %v961_v25  ;;  %v1748_v6 = vsel %vm9650_vm14, %v1746_v50, %v1747_v40 }
 0x18e   : > { %v2231_v52 = vrot.slane %v2229_v34, 6  ;;  %9015 = vmatprep.mubr.msk.bf16.mxu1 %vm422_vm6, %v8684_v1  ;;  %v3278_v3 = vrot.slane %v3276_v30, 4  ;;  %v2234_v8 = vrot.slane %v1368_v26, 5  ;;  %v2235_v42 = vrot.slane %v1364_v11, 6 }
 0x18f   : > { %v3277_v7 = vsel %vm9424_vm8, %v3275_v9, %v3276_v30  ;;  %v1377_v24 = vsel %vm9562_vm11, %v1372_v56, %v1376_v17  ;;  %v1847_v31 = vmax.bf16 %v1745_v16, %v1544_v45  ;;  %v2240_v57 = vshrl.u32 %v1872_v13, 16  ;;  %v10903_v17 = vld [vmem:[#allocation2 + $0x4c] sm:$0xf] }
 0x190   : > { %3383 = vst.msk [vmem:[#allocation2 + $0x94] sm:$0xf] %vm701_vm1, %v3277_v7  ;;  %v2232_v25 = vor.u32 %v2231_v52, %v2228_v22  ;;  %v1545_v49 = vmax.bf16 %v1377_v24, %v10864_v2  ;;  %v2236_v43 = vor.u32 %v2235_v42, %v2234_v8  ;;  %v2243_v27 = vshll.u32 %v1872_v13, 16  ;;  %v3446_v22 = vld [vmem:[#allocation2 + $0x50] sm:$0x1] }
 0x191   : > { %3384 = vst.msk [vmem:[#allocation2 + $0x98] sm:$0x1] %vm717_vm2, %v3278_v3  ;;  %v8669_v29 = vrot.slane %v2435_v39, 10  ;;  %v2242_v19 = vrot.slane %v2240_v57, 5  ;;  %v2590_v26 = vrot.slane %v10864_v2, 6  ;;  %v2593_v11 = vrot.slane %v1872_v13, 6 }
 0x192   : > { %v2233_v32 = vrot.slane %v2232_v25, 4  ;;  %v1848_v51 = vmax.bf16 %v1748_v6, %v1545_v49  ;;  %v2238_v20 = vrot.slane %v2236_v43, 4  ;;  %v2245_v36 = vrot.slane %v2243_v27, 6  ;;  %v4026_v52 = vld [vmem:[#allocation2 + $0x48] sm:$0xe] }
 0x193   : > { %v2725_v59 = vmax.bf16 %v13489_v53, %v13486_v58  ;;  %v2591_v18 = vsel %vm9856_vm10, %v8669_v29, %v2590_v26  ;;  %v2592_v33 = vrot.slane %v2590_v26, 4  ;;  %v2726_v2 = vmax.bf16 %v13490_v5, %v13488_v62 }
 0x194   : > { %v2237_v40 = vsel %vm9771_vm4, %v2233_v32, %v2236_v43  ;;  %v2246_v0 = vor.u32 %v2245_v36, %v2242_v19  ;;  %v3605_v47 = vshrl.u32 %v3412_v63, 16  ;;  %v3608_v34 = vshll.u32 %v3412_v63, 16 }
 0x195   : > { %v2410_v23 = vmax.bf16 %v2237_v40, %v1847_v31  ;;  %v2757_v16 = vmax.bf16 %v2725_v59, %v13491_v55  ;;  %v2594_v58 = vsel %vm9856_vm10, %v2592_v33, %v2593_v11  ;;  %v2758_v50 = vmax.bf16 %v2726_v2, %v13492_v60 }
 0x196   : > { %v3614_v1 = vshll.u32 %v10903_v17, 16  ;;  %v2247_v9 = vsel %vm9771_vm4, %v2238_v20, %v2246_v0  ;;  %v3607_v4 = vrot.slane %v3605_v47, 4  ;;  %v3610_v45 = vrot.slane %v3608_v34, 5  ;;  %v4326_v20 = vld [vmem:[#allocation2 + $0x50] sm:$0x3] }
 0x197   : > { %v10918_v30 = vmax.bf16 %v2591_v18, %v2410_v23  ;;  %v2789_v62 = vmax.bf16 %v2757_v16, %v10876_v38  ;;  %v2411_v13 = vmax.bf16 %v2247_v9, %v1848_v51  ;;  %v2790_v56 = vmax.bf16 %v2758_v50, %v10880_v28 }
 0x198   : > { %v3616_v6 = vrot.slane %v3614_v1, 5  ;;  %v3618_v7 = vshrl.u32 %v10903_v17, 16  ;;  %v3624_v3 = vshll.u32 %v3446_v22, 16  ;;  %v8713_v8 = vrot.slane %v4026_v52, 9 }
 0x199   : > { %v2821_v39 = vmax.bf16 %v2789_v62, %v10918_v30  ;;  %v10924_v42 = vmax.bf16 %v2594_v58, %v2411_v13  ;;  %v3611_v24 = vor.u32 %v3610_v45, %v3607_v4  ;;  %v4144_v31 = vrot.slane %v10903_v17, 5  ;;  %v4886_v58 = vld [vmem:[#allocation2 + $0x48] sm:$0xc] }
 0x19a   : > { %v4147_v25 = vrot.slane %v3446_v22, 5  ;;  %v3620_v49 = vrot.slane %v3618_v7, 4  ;;  %v3626_v43 = vrot.slane %v3624_v3, 5  ;;  %v4479_v27 = vshrl.u32 %v4026_v52, 16 }
 0x19b   : > { %v3279_v57 = vrot.slane %v2821_v39, 7  ;;  %v2822_v29 = vmax.bf16 %v2790_v56, %v10924_v42  ;;  %v3612_v32 = vrot.slane %v3611_v24, 4  ;;  %v4145_v19 = vsel %vm9650_vm14, %v8713_v8, %v4144_v31  ;;  %v3414_v8 = vld [vmem:[#allocation2 + $0x54] sm:$0xf] }
 0x19c   : > { %v4146_v26 = vrot.slane %v4144_v31, 4  ;;  %v3621_v51 = vor.u32 %v3620_v49, %v3616_v6  ;;  %v4481_v36 = vrot.slane %v4479_v27, 5  ;;  %v4482_v59 = vshll.u32 %v4026_v52, 16  ;;  %v10948_v49 = vld [vmem:[#allocation2 + $0x58] sm:$0xf] }
 0x19d   : > { %v3280_v11 = vrot.slane %v3279_v57, 4  ;;  %3385 = vst.msk [vmem:[#allocation2 + $0x9c] sm:$0xe] %vm882_vm7, %v3279_v57  ;;  %v8685_v40 = vcombine.low %v2821_v39, %v2822_v29  ;;  %v3281_v18 = vrot.slane %v2822_v29, 7  ;;  %v3617_v33 = vsel %vm9562_vm11, %v3612_v32, %v3616_v6 }
 0x19e   : > { %v4148_v2 = vsel %vm9650_vm14, %v4146_v26, %v4147_v25  ;;  %v3622_v0 = vrot.slane %v3621_v51, 4  ;;  %v3992_v23 = vmax.bf16 %v3617_v33, %v3412_v63  ;;  %v4484_v16 = vrot.slane %v4482_v59, 6  ;;  %v3447_v51 = vld [vmem:[#allocation2 + $0x5c] sm:$0x1] }
 0x19f   : > { %v4487_v47 = vrot.slane %v3618_v7, 5  ;;  %9016 = vmatmul.mubr.msk.bf16.gmra.mxu1 %vm422_vm6, %v8685_v40  ;;  %v3282_v50 = vsel %vm9424_vm8, %v3280_v11, %v3281_v18  ;;  %v3283_v22 = vrot.slane %v3281_v18, 4  ;;  %v4488_v34 = vrot.slane %v3614_v1, 6 }
 0x1a0   : > { %v4493_v9 = vshrl.u32 %v4326_v20, 16  ;;  %3386 = vst.msk [vmem:[#allocation2 + $0xa0] sm:$0xf] %vm701_vm1, %v3282_v50  ;;  %v3627_v62 = vsel %vm9562_vm11, %v3622_v0, %v3626_v43  ;;  %v4292_v4 = vmax.bf16 %v4145_v19, %v3992_v23  ;;  %v4485_v13 = vor.u32 %v4484_v16, %v4481_v36 }
 0x1a1   : > { %v4496_v56 = vshll.u32 %v4326_v20, 16  ;;  %3387 = vst.msk [vmem:[#allocation2 + $0xa4] sm:$0x1] %vm717_vm2, %v3283_v22  ;;  %v3993_v63 = vmax.bf16 %v3627_v62, %v10903_v17  ;;  %v4489_v45 = vor.u32 %v4488_v34, %v4487_v47  ;;  %v8733_v52 = vrot.slane %v4886_v58, 10  ;;  %v4027_v47 = vld [vmem:[#allocation2 + $0x54] sm:$0xe] }
 0x1a2   : > { %v4495_v6 = vrot.slane %v4493_v9, 5  ;;  %v4486_v39 = vrot.slane %v4485_v13, 4  ;;  %v4984_v1 = vrot.slane %v10903_v17, 6  ;;  %v4987_v3 = vrot.slane %v4326_v20, 6 }
 0x1a3   : > { %v4498_v7 = vrot.slane %v4496_v56, 6  ;;  %v4293_v24 = vmax.bf16 %v4148_v2, %v3993_v63  ;;  %v4491_v31 = vrot.slane %v4489_v45, 4  ;;  %v5164_v25 = vmax.bf16 %v10774_v35, %v10770_v54 }
 0x1a4   : > { %v5165_v57 = vmax.bf16 %v10780_v14, %v10772_v21  ;;  %v4490_v43 = vsel %vm9771_vm4, %v4486_v39, %v4489_v45  ;;  %v4985_v29 = vsel %vm9856_vm10, %v8733_v52, %v4984_v1  ;;  %v4986_v17 = vrot.slane %v4984_v1, 4 }
 0x1a5   : > { %v4499_v27 = vor.u32 %v4498_v7, %v4495_v6  ;;  %v4852_v32 = vmax.bf16 %v4490_v43, %v4292_v4  ;;  %v5196_v19 = vmax.bf16 %v5164_v25, %v10782_v12  ;;  %v3629_v11 = vshrl.u32 %v3414_v8, 16  ;;  %v4327_v25 = vld [vmem:[#allocation2 + $0x5c] sm:$0x3] }
 0x1a6   : > { %v5197_v26 = vmax.bf16 %v5165_v57, %v10784_v46  ;;  %v4988_v21 = vsel %vm9856_vm10, %v4986_v17, %v4987_v3  ;;  %v3632_v20 = vshll.u32 %v3414_v8, 16  ;;  %v3638_v36 = vshll.u32 %v10948_v49, 16 }
 0x1a7   : > { %v4500_v54 = vsel %vm9771_vm4, %v4491_v31, %v4499_v27  ;;  %v10961_v40 = vmax.bf16 %v4985_v29, %v4852_v32  ;;  %v5228_v18 = vmax.bf16 %v5196_v19, %v10835_v61  ;;  %v3631_v2 = vrot.slane %v3629_v11, 4  ;;  %v4887_v32 = vld [vmem:[#allocation2 + $0x54] sm:$0xc] }
 0x1a8   : > { %v4853_v59 = vmax.bf16 %v4500_v54, %v4293_v24  ;;  %v5229_v33 = vmax.bf16 %v5197_v26, %v10838_v48  ;;  %v3634_v0 = vrot.slane %v3632_v20, 5  ;;  %v3640_v23 = vrot.slane %v3638_v36, 5 }
 0x1a9   : > { %v3642_v16 = vshrl.u32 %v10948_v49, 16  ;;  %v5260_v50 = vmax.bf16 %v5228_v18, %v10961_v40  ;;  %v3648_v22 = vshll.u32 %v3447_v51, 16  ;;  %v8714_v34 = vrot.slane %v4027_v47, 9 }
 0x1aa   : > { %v10966_v58 = vmax.bf16 %v4988_v21, %v4853_v59  ;;  %v3635_v9 = vor.u32 %v3634_v0, %v3631_v2  ;;  %v4151_v4 = vrot.slane %v10948_v49, 5  ;;  %v4154_v13 = vrot.slane %v3447_v51, 5 }
 0x1ab   : > { %v3644_v62 = vrot.slane %v3642_v16, 4  ;;  %v5691_v63 = vrot.slane %v5260_v50, 7  ;;  %v3650_v45 = vrot.slane %v3648_v22, 5  ;;  %v4502_v6 = vshrl.u32 %v4027_v47, 16 }
 0x1ac   : > { %v5261_v56 = vmax.bf16 %v5229_v33, %v10966_v58  ;;  %v3636_v52 = vrot.slane %v3635_v9, 4  ;;  %v4152_v7 = vsel %vm9650_vm14, %v8714_v34, %v4151_v4  ;;  %v4153_v1 = vrot.slane %v4151_v4, 4 }
 0x1ad   : > { %v3645_v39 = vor.u32 %v3644_v62, %v3640_v23  ;;  %v5692_v24 = vrot.slane %v5691_v63, 4  ;;  %5815 = vst.msk [vmem:[#allocation2 + $0x30] sm:$0xe] %vm882_vm7, %v5691_v63  ;;  %v4504_v57 = vrot.slane %v4502_v6, 5  ;;  %v4505_v17 = vshll.u32 %v4027_v47, 16 }
 0x1ae   : > { %v8749_v3 = vcombine.low %v5260_v50, %v5261_v56  ;;  %v5693_v31 = vrot.slane %v5261_v56, 7  ;;  %v3641_v43 = vsel %vm9562_vm11, %v3636_v52, %v3640_v23  ;;  %v4155_v29 = vsel %vm9650_vm14, %v4153_v1, %v4154_v13  ;;  %v10989_v62 = vld [vmem:[#allocation2 + $0xc4] sm:$0xf] }
 0x1af   : > { %v3646_v27 = vrot.slane %v3645_v39, 4  ;;  %v3994_v11 = vmax.bf16 %v3641_v43, %v3414_v8  ;;  %v4510_v54 = vrot.slane %v3642_v16, 5  ;;  %v4507_v51 = vrot.slane %v4505_v17, 6  ;;  %v963_v16 = vld [vmem:[#allocation2 + $0xc0] sm:$0xf] }
 0x1b0   : > { %9033 = vmatprep.mubr.msk.bf16.mxu0 %vm422_vm6, %v8749_v3  ;;  %v5694_v19 = vsel %vm9424_vm8, %v5692_v24, %v5693_v31  ;;  %v5695_v26 = vrot.slane %v5693_v31, 4  ;;  %v4511_v20 = vrot.slane %v3638_v36, 6  ;;  %v4516_v59 = vshrl.u32 %v4327_v25, 16 }
 0x1b1   : > { %5816 = vst.msk [vmem:[#allocation2 + $0x34] sm:$0xf] %vm701_vm1, %v5694_v19  ;;  %v3651_v21 = vsel %vm9562_vm11, %v3646_v27, %v3650_v45  ;;  %v4294_v33 = vmax.bf16 %v4152_v7, %v3994_v11  ;;  %v4519_v2 = vshll.u32 %v4327_v25, 16  ;;  %v8734_v0 = vrot.slane %v4887_v32, 10  ;;  %v987_v7 = vld [vmem:[#allocation2 + $0xc8] sm:$0x1] }
 0x1b2   : > { %5817 = vst.msk [vmem:[#allocation2 + $0x38] sm:$0x1] %vm717_vm2, %v5695_v26  ;;  %v3995_v18 = vmax.bf16 %v3651_v21, %v10948_v49  ;;  %v4508_v23 = vor.u32 %v4507_v51, %v4504_v57  ;;  %v4512_v47 = vor.u32 %v4511_v20, %v4510_v54  ;;  %v4518_v50 = vrot.slane %v4516_v59, 5  ;;  %v1570_v11 = vld [vmem:[#allocation2 + $0xc0] sm:$0xe] }
 0x1b3   : > { %v4991_v8 = vrot.slane %v10948_v49, 6  ;;  %v4521_v34 = vrot.slane %v4519_v2, 6  ;;  %v4994_v9 = vrot.slane %v4327_v25, 6  ;;  %v5166_v36 = vmax.bf16 %v10782_v12, %v10774_v35 }
 0x1b4   : > { %v4295_v22 = vmax.bf16 %v4155_v29, %v3995_v18  ;;  %v4509_v4 = vrot.slane %v4508_v23, 4  ;;  %v4514_v13 = vrot.slane %v4512_v47, 4  ;;  %v5167_v6 = vmax.bf16 %v10784_v46, %v10780_v14 }
 0x1b5   : > { %v4992_v56 = vsel %vm9856_vm10, %v8734_v0, %v4991_v8  ;;  %v4993_v63 = vrot.slane %v4991_v8, 4  ;;  %v4522_v45 = vor.u32 %v4521_v34, %v4518_v50  ;;  %v5198_v49 = vmax.bf16 %v5166_v36, %v10835_v61 }
 0x1b6   : > { %v1379_v52 = vshrl.u32 %v963_v16, 16  ;;  %v4513_v39 = vsel %vm9771_vm4, %v4509_v4, %v4512_v47  ;;  %v1382_v1 = vshll.u32 %v963_v16, 16  ;;  %v1388_v3 = vshll.u32 %v10989_v62, 16 }
 0x1b7   : > { %v4995_v35 = vsel %vm9856_vm10, %v4993_v63, %v4994_v9  ;;  %v4523_v24 = vsel %vm9771_vm4, %v4514_v13, %v4522_v45  ;;  %v4854_v31 = vmax.bf16 %v4513_v39, %v4294_v33  ;;  %v5199_v25 = vmax.bf16 %v5167_v6, %v10838_v48  ;;  %v1873_v63 = vld [vmem:[#allocation2 + $0xc8] sm:$0x3] }
 0x1b8   : > { %v5230_v14 = vmax.bf16 %v5198_v49, %v10961_v40  ;;  %v4855_v57 = vmax.bf16 %v4523_v24, %v4295_v22  ;;  %v1381_v43 = vrot.slane %v1379_v52, 4  ;;  %v1384_v27 = vrot.slane %v1382_v1, 5  ;;  %v2436_v24 = vld [vmem:[#allocation2 + $0xc0] sm:$0xc] }
 0x1b9   : > { %v1390_v29 = vrot.slane %v1388_v3, 5  ;;  %v11005_v17 = vmax.bf16 %v4992_v56, %v4854_v31  ;;  %v5231_v32 = vmax.bf16 %v5199_v25, %v10966_v58  ;;  %v1392_v19 = vshrl.u32 %v10989_v62, 16 }
 0x1ba   : > { %v1398_v26 = vshll.u32 %v987_v7, 16  ;;  %v11009_v54 = vmax.bf16 %v4995_v35, %v4855_v57  ;;  %v1385_v21 = vor.u32 %v1384_v27, %v1381_v43  ;;  %v8650_v51 = vrot.slane %v1570_v11, 9 }
 0x1bb   : > { %v1751_v20 = vrot.slane %v10989_v62, 5  ;;  %v5262_v59 = vmax.bf16 %v5230_v14, %v11005_v17  ;;  %v1394_v18 = vrot.slane %v1392_v19, 4  ;;  %v1754_v2 = vrot.slane %v987_v7, 5 }
 0x1bc   : > { %v1400_v33 = vrot.slane %v1398_v26, 5  ;;  %v5263_v0 = vmax.bf16 %v5231_v32, %v11009_v54  ;;  %v1386_v23 = vrot.slane %v1385_v21, 4  ;;  %v2249_v34 = vshrl.u32 %v1570_v11, 16 }
 0x1bd   : > { %v1752_v47 = vsel %vm9650_vm14, %v8650_v51, %v1751_v20  ;;  %v1753_v50 = vrot.slane %v1751_v20, 4  ;;  %v5696_v8 = vrot.slane %v5262_v59, 7  ;;  %v1395_v22 = vor.u32 %v1394_v18, %v1390_v29 }
 0x1be   : > { %v2252_v9 = vshll.u32 %v1570_v11, 16  ;;  %v8750_v36 = vcombine.low %v5262_v59, %v5263_v0  ;;  %v5698_v4 = vrot.slane %v5263_v0, 7  ;;  %v1391_v13 = vsel %vm9562_vm11, %v1386_v23, %v1390_v29  ;;  %v965_v11 = vld [vmem:[#allocation2 + $0xcc] sm:$0xf]  ;;  %v11036_v23 = vld [vmem:[#allocation2 + $0xd0] sm:$0xf] }
 0x1bf   : > { %v1755_v56 = vsel %vm9650_vm14, %v1753_v50, %v1754_v2  ;;  %v5697_v45 = vrot.slane %v5696_v8, 4  ;;  %5818 = vst.msk [vmem:[#allocation2 + $0x3c] sm:$0xe] %vm882_vm7, %v5696_v8  ;;  %v1396_v6 = vrot.slane %v1395_v22, 4  ;;  %v1546_v49 = vmax.bf16 %v1391_v13, %v963_v16 }
 0x1c0   : > { %v2251_v52 = vrot.slane %v2249_v34, 5  ;;  %9034 = vmatmul.mubr.msk.bf16.gmra.mxu0 %vm422_vm6, %v8750_v36  ;;  %v5700_v39 = vrot.slane %v5698_v4, 4  ;;  %v2254_v35 = vrot.slane %v2252_v9, 6  ;;  %v2257_v7 = vrot.slane %v1392_v19, 5 }
 0x1c1   : > { %v2258_v1 = vrot.slane %v1388_v3, 6  ;;  %v5699_v31 = vsel %vm9424_vm8, %v5697_v45, %v5698_v4  ;;  %v1401_v25 = vsel %vm9562_vm11, %v1396_v6, %v1400_v33  ;;  %v1849_v14 = vmax.bf16 %v1752_v47, %v1546_v49 }
 0x1c2   : > { %v2263_v57 = vshrl.u32 %v1873_v63, 16  ;;  %5819 = vst.msk [vmem:[#allocation2 + $0x40] sm:$0xf] %vm701_vm1, %v5699_v31  ;;  %v1547_v16 = vmax.bf16 %v1401_v25, %v10989_v62  ;;  %v2255_v43 = vor.u32 %v2254_v35, %v2251_v52  ;;  %v2266_v29 = vshll.u32 %v1873_v63, 16 }
 0x1c3   : > { %5820 = vst.msk [vmem:[#allocation2 + $0x44] sm:$0x1] %vm717_vm2, %v5700_v39  ;;  %v2259_v27 = vor.u32 %v2258_v1, %v2257_v7  ;;  %v8670_v3 = vrot.slane %v2436_v24, 10  ;;  %v2597_v19 = vrot.slane %v10989_v62, 6  ;;  %v2600_v26 = vrot.slane %v1873_v63, 6 }
 0x1c4   : > { %v2265_v32 = vrot.slane %v2263_v57, 5  ;;  %v1850_v21 = vmax.bf16 %v1755_v56, %v1547_v16  ;;  %v2256_v51 = vrot.slane %v2255_v43, 4  ;;  %v2268_v59 = vrot.slane %v2266_v29, 6  ;;  %v1571_v1 = vld [vmem:[#allocation2 + $0xcc] sm:$0xe] }
 0x1c5   : > { %v2261_v20 = vrot.slane %v2259_v27, 4  ;;  %v2598_v18 = vsel %vm9856_vm10, %v8670_v3, %v2597_v19  ;;  %v2599_v33 = vrot.slane %v2597_v19, 4  ;;  %v2727_v2 = vmax.bf16 %v13491_v55, %v13489_v53  ;;  %v988_v53 = vld [vmem:[#allocation2 + $0xd4] sm:$0x1] }
 0x1c6   : > { %v2728_v0 = vmax.bf16 %v13492_v60, %v13490_v5  ;;  %v2260_v62 = vsel %vm9771_vm4, %v2256_v51, %v2259_v27  ;;  %v2269_v47 = vor.u32 %v2268_v59, %v2265_v32  ;;  %v1403_v50 = vshrl.u32 %v965_v11, 16 }
 0x1c7   : > { %v1406_v8 = vshll.u32 %v965_v11, 16  ;;  %v2412_v22 = vmax.bf16 %v2260_v62, %v1849_v14  ;;  %v2601_v34 = vsel %vm9856_vm10, %v2599_v33, %v2600_v26  ;;  %v2759_v9 = vmax.bf16 %v2727_v2, %v10876_v38 }
 0x1c8   : > { %v2760_v36 = vmax.bf16 %v2728_v0, %v10880_v28  ;;  %v2270_v5 = vsel %vm9771_vm4, %v2261_v20, %v2269_v47  ;;  %v1405_v4 = vrot.slane %v1403_v50, 4  ;;  %v1412_v56 = vshll.u32 %v11036_v23, 16  ;;  %v1874_v0 = vld [vmem:[#allocation2 + $0xd4] sm:$0x3] }
 0x1c9   : > { %v1408_v13 = vrot.slane %v1406_v8, 5  ;;  %v2413_v63 = vmax.bf16 %v2270_v5, %v1850_v21  ;;  %v11047_v45 = vmax.bf16 %v2598_v18, %v2412_v22  ;;  %v2791_v6 = vmax.bf16 %v2759_v9, %v10918_v30  ;;  %v2437_v22 = vld [vmem:[#allocation2 + $0xcc] sm:$0xc] }
 0x1ca   : > { %v2792_v49 = vmax.bf16 %v2760_v36, %v10924_v42  ;;  %v1414_v39 = vrot.slane %v1412_v56, 5  ;;  %v1416_v35 = vshrl.u32 %v11036_v23, 16  ;;  %v1422_v7 = vshll.u32 %v988_v53, 16 }
 0x1cb   : > { %v1409_v52 = vor.u32 %v1408_v13, %v1405_v4  ;;  %v11052_v24 = vmax.bf16 %v2601_v34, %v2413_v63  ;;  %v2823_v31 = vmax.bf16 %v2791_v6, %v11047_v45  ;;  %v8651_v25 = vrot.slane %v1571_v1, 9 }
 0x1cc   : > { %v1758_v14 = vrot.slane %v11036_v23, 5  ;;  %v1418_v16 = vrot.slane %v1416_v35, 4  ;;  %v1424_v43 = vrot.slane %v1422_v7, 5  ;;  %v1761_v27 = vrot.slane %v988_v53, 5 }
 0x1cd   : > { %v1410_v57 = vrot.slane %v1409_v52, 4  ;;  %v2824_v29 = vmax.bf16 %v2792_v49, %v11052_v24  ;;  %v3284_v32 = vrot.slane %v2823_v31, 7  ;;  %v2272_v51 = vshrl.u32 %v1571_v1, 16 }
 0x1ce   : > { %v1759_v3 = vsel %vm9650_vm14, %v8651_v25, %v1758_v14  ;;  %v1760_v19 = vrot.slane %v1758_v14, 4  ;;  %v1419_v21 = vor.u32 %v1418_v16, %v1414_v39  ;;  %v2275_v20 = vshll.u32 %v1571_v1, 16  ;;  %v11075_v16 = vld [vmem:[#allocation2 + $0x64] sm:$0xf] }
 0x1cf   : > { %v1415_v26 = vsel %vm9562_vm11, %v1410_v57, %v1414_v39  ;;  %v8686_v59 = vcombine.low %v2823_v31, %v2824_v29  ;;  %v3285_v18 = vrot.slane %v3284_v32, 4  ;;  %v3286_v33 = vrot.slane %v2824_v29, 7  ;;  %3388 = vst.msk [vmem:[#allocation2 + $0xa8] sm:$0xe] %vm882_vm7, %v3284_v32  ;;  %v3416_v31 = vld [vmem:[#allocation2 + $0x60] sm:$0xf] }
 0x1d0   : > { %v1548_v2 = vmax.bf16 %v1415_v26, %v965_v11  ;;  %v1420_v62 = vrot.slane %v1419_v21, 4  ;;  %v1762_v47 = vsel %vm9650_vm14, %v1760_v19, %v1761_v27  ;;  %v2274_v50 = vrot.slane %v2272_v51, 5 }
 0x1d1   : > { %v2277_v8 = vrot.slane %v2275_v20, 6  ;;  %9019 = vmatprep.mubr.msk.bf16.mxu1 %vm422_vm6, %v8686_v59  ;;  %v3287_v34 = vsel %vm9424_vm8, %v3285_v18, %v3286_v33  ;;  %v3288_v9 = vrot.slane %v3286_v33, 4  ;;  %v2280_v53 = vrot.slane %v1416_v35, 5  ;;  %v3448_v20 = vld [vmem:[#allocation2 + $0x68] sm:$0x1] }
 0x1d2   : > { %v1851_v36 = vmax.bf16 %v1759_v3, %v1548_v2  ;;  %3389 = vst.msk [vmem:[#allocation2 + $0xac] sm:$0xf] %vm701_vm1, %v3287_v34  ;;  %v1425_v11 = vsel %vm9562_vm11, %v1420_v62, %v1424_v43  ;;  %v2281_v4 = vrot.slane %v1412_v56, 6  ;;  %v2286_v13 = vshrl.u32 %v1874_v0, 16 }
 0x1d3   : > { %v2278_v5 = vor.u32 %v2277_v8, %v2274_v50  ;;  %3390 = vst.msk [vmem:[#allocation2 + $0xb0] sm:$0x1] %vm717_vm2, %v3288_v9  ;;  %v1549_v63 = vmax.bf16 %v1425_v11, %v11036_v23  ;;  %v2289_v6 = vshll.u32 %v1874_v0, 16  ;;  %v8671_v49 = vrot.slane %v2437_v22, 10  ;;  %v4028_v8 = vld [vmem:[#allocation2 + $0x60] sm:$0xe] }
 0x1d4   : > { %v2604_v52 = vrot.slane %v11036_v23, 6  ;;  %v2282_v7 = vor.u32 %v2281_v4, %v2280_v53  ;;  %v2288_v1 = vrot.slane %v2286_v13, 5  ;;  %v2607_v35 = vrot.slane %v1874_v0, 6 }
 0x1d5   : > { %v2279_v39 = vrot.slane %v2278_v5, 4  ;;  %v1852_v25 = vmax.bf16 %v1762_v47, %v1549_v63  ;;  %v2291_v14 = vrot.slane %v2289_v6, 6  ;;  %v2729_v23 = vmax.bf16 %v10876_v38, %v13491_v55 }
 0x1d6   : > { %v2605_v57 = vsel %vm9856_vm10, %v8671_v49, %v2604_v52  ;;  %v2606_v56 = vrot.slane %v2604_v52, 4  ;;  %v2284_v27 = vrot.slane %v2282_v7, 4  ;;  %v2730_v29 = vmax.bf16 %v10880_v28, %v13492_v60 }
 0x1d7   : > { %v2283_v43 = vsel %vm9771_vm4, %v2279_v39, %v2282_v7  ;;  %v2292_v32 = vor.u32 %v2291_v14, %v2288_v1  ;;  %v3653_v26 = vshrl.u32 %v3416_v31, 16  ;;  %v2761_v21 = vmax.bf16 %v2729_v23, %v10918_v30 }
 0x1d8   : > { %v2414_v3 = vmax.bf16 %v2283_v43, %v1851_v36  ;;  %v2608_v19 = vsel %vm9856_vm10, %v2606_v56, %v2607_v35  ;;  %v2762_v51 = vmax.bf16 %v2730_v29, %v10924_v42  ;;  %v3656_v59 = vshll.u32 %v3416_v31, 16  ;;  %v4328_v29 = vld [vmem:[#allocation2 + $0x68] sm:$0x3] }
 0x1d9   : > { %v3662_v18 = vshll.u32 %v11075_v16, 16  ;;  %v2293_v55 = vsel %vm9771_vm4, %v2284_v27, %v2292_v32  ;;  %v3655_v60 = vrot.slane %v3653_v26, 4  ;;  %v3666_v2 = vshrl.u32 %v11075_v16, 16 }
 0x1da   : > { %v11090_v33 = vmax.bf16 %v2605_v57, %v2414_v3  ;;  %v2415_v0 = vmax.bf16 %v2293_v55, %v1852_v25  ;;  %v2793_v62 = vmax.bf16 %v2761_v21, %v11047_v45  ;;  %v2794_v47 = vmax.bf16 %v2762_v51, %v11052_v24  ;;  %v4888_v21 = vld [vmem:[#allocation2 + $0x60] sm:$0xc] }
 0x1db   : > { %v3658_v50 = vrot.slane %v3656_v59, 5  ;;  %v3664_v22 = vrot.slane %v3662_v18, 5  ;;  %v3668_v34 = vrot.slane %v3666_v2, 4  ;;  %v3672_v9 = vshll.u32 %v3448_v20, 16 }
 0x1dc   : > { %v8715_v36 = vrot.slane %v4028_v8, 9  ;;  %v11095_v53 = vmax.bf16 %v2608_v19, %v2415_v0  ;;  %v2825_v11 = vmax.bf16 %v2793_v62, %v11090_v33  ;;  %v4158_v4 = vrot.slane %v11075_v16, 5 }
 0x1dd   : > { %v3659_v5 = vor.u32 %v3658_v50, %v3655_v60  ;;  %v3669_v13 = vor.u32 %v3668_v34, %v3664_v22  ;;  %v3674_v63 = vrot.slane %v3672_v9, 5  ;;  %v4161_v6 = vrot.slane %v3448_v20, 5  ;;  %v3418_v34 = vld [vmem:[#allocation2 + $0x6c] sm:$0xf] }
 0x1de   : > { %v4525_v49 = vshrl.u32 %v4028_v8, 16  ;;  %v2826_v52 = vmax.bf16 %v2794_v47, %v11095_v53  ;;  %v3289_v39 = vrot.slane %v2825_v11, 7  ;;  %v4159_v1 = vsel %vm9650_vm14, %v8715_v36, %v4158_v4 }
 0x1df   : > { %v3660_v7 = vrot.slane %v3659_v5, 4  ;;  %v3670_v35 = vrot.slane %v3669_v13, 4  ;;  %v4160_v25 = vrot.slane %v4158_v4, 4  ;;  %v4528_v57 = vshll.u32 %v4028_v8, 16 }
 0x1e0   : > { %v4527_v14 = vrot.slane %v4525_v49, 5  ;;  %v8687_v56 = vcombine.low %v2825_v11, %v2826_v52  ;;  %v3290_v43 = vrot.slane %v3289_v39, 4  ;;  %v3291_v27 = vrot.slane %v2826_v52, 7  ;;  %3391 = vst.msk [vmem:[#allocation2 + $0xb4] sm:$0xe] %vm882_vm7, %v3289_v39 }
 0x1e1   : > { %v3665_v23 = vsel %vm9562_vm11, %v3660_v7, %v3664_v22  ;;  %v3675_v32 = vsel %vm9562_vm11, %v3670_v35, %v3674_v63  ;;  %v4162_v19 = vsel %vm9650_vm14, %v4160_v25, %v4161_v6  ;;  %v4530_v26 = vrot.slane %v4528_v57, 6  ;;  %v11120_v63 = vld [vmem:[#allocation2 + $0x70] sm:$0xf] }
 0x1e2   : > { %v3996_v3 = vmax.bf16 %v3665_v23, %v3416_v31  ;;  %9020 = vmatmul.mubr.msk.bf16.gmra.mxu1 %vm422_vm6, %v8687_v56  ;;  %v3292_v51 = vsel %vm9424_vm8, %v3290_v43, %v3291_v27  ;;  %v3293_v20 = vrot.slane %v3291_v27, 4  ;;  %v3997_v59 = vmax.bf16 %v3675_v32, %v11075_v16 }
 0x1e3   : > { %v4533_v55 = vrot.slane %v3666_v2, 5  ;;  %3392 = vst.msk [vmem:[#allocation2 + $0xb8] sm:$0xf] %vm701_vm1, %v3292_v51  ;;  %v4531_v0 = vor.u32 %v4530_v26, %v4527_v14  ;;  %v4534_v62 = vrot.slane %v3662_v18, 6  ;;  %v4539_v31 = vshrl.u32 %v4328_v29, 16 }
 0x1e4   : > { %v4296_v60 = vmax.bf16 %v4159_v1, %v3996_v3  ;;  %3393 = vst.msk [vmem:[#allocation2 + $0xbc] sm:$0x1] %vm717_vm2, %v3293_v20  ;;  %v4297_v47 = vmax.bf16 %v4162_v19, %v3997_v59  ;;  %v4542_v50 = vshll.u32 %v4328_v29, 16  ;;  %v8735_v8 = vrot.slane %v4888_v21, 10  ;;  %v4029_v26 = vld [vmem:[#allocation2 + $0x6c] sm:$0xe] }
 0x1e5   : > { %v4998_v22 = vrot.slane %v11075_v16, 6  ;;  %v4532_v9 = vrot.slane %v4531_v0, 4  ;;  %v4535_v36 = vor.u32 %v4534_v62, %v4533_v55  ;;  %v4541_v11 = vrot.slane %v4539_v31, 5 }
 0x1e6   : > { %v5001_v5 = vrot.slane %v4328_v29, 6  ;;  %v4544_v4 = vrot.slane %v4542_v50, 6  ;;  %v5168_v18 = vmax.bf16 %v10835_v61, %v10782_v12  ;;  %v5169_v16 = vmax.bf16 %v10838_v48, %v10784_v46  ;;  %v3449_v12 = vld [vmem:[#allocation2 + $0x74] sm:$0x1] }
 0x1e7   : > { %v4999_v2 = vsel %vm9856_vm10, %v8735_v8, %v4998_v22  ;;  %v5000_v13 = vrot.slane %v4998_v22, 4  ;;  %v4536_v6 = vsel %vm9771_vm4, %v4532_v9, %v4535_v36  ;;  %v4537_v49 = vrot.slane %v4535_v36, 4 }
 0x1e8   : > { %v3677_v52 = vshrl.u32 %v3418_v34, 16  ;;  %v4545_v39 = vor.u32 %v4544_v4, %v4541_v11  ;;  %v4856_v7 = vmax.bf16 %v4536_v6, %v4296_v60  ;;  %v5200_v35 = vmax.bf16 %v5168_v18, %v10961_v40 }
 0x1e9   : > { %v5002_v1 = vsel %vm9856_vm10, %v5000_v13, %v5001_v5  ;;  %v5201_v25 = vmax.bf16 %v5169_v16, %v10966_v58  ;;  %v3680_v57 = vshll.u32 %v3418_v34, 16  ;;  %v3686_v56 = vshll.u32 %v11120_v63, 16 }
 0x1ea   : > { %v3679_v14 = vrot.slane %v3677_v52, 4  ;;  %v4546_v43 = vsel %vm9771_vm4, %v4537_v49, %v4545_v39  ;;  %v11133_v27 = vmax.bf16 %v4999_v2, %v4856_v7  ;;  %v5232_v46 = vmax.bf16 %v5200_v35, %v11005_v17  ;;  %v4329_v52 = vld [vmem:[#allocation2 + $0x74] sm:$0x3] }
 0x1eb   : > { %v3690_v23 = vshrl.u32 %v11120_v63, 16  ;;  %v4857_v29 = vmax.bf16 %v4546_v43, %v4297_v47  ;;  %v5233_v32 = vmax.bf16 %v5201_v25, %v11009_v54  ;;  %v3682_v3 = vrot.slane %v3680_v57, 5  ;;  %v4889_v25 = vld [vmem:[#allocation2 + $0x6c] sm:$0xc] }
 0x1ec   : > { %v3688_v19 = vrot.slane %v3686_v56, 5  ;;  %v5264_v21 = vmax.bf16 %v5232_v46, %v11133_v27  ;;  %v3696_v20 = vshll.u32 %v3449_v12, 16  ;;  %v8716_v59 = vrot.slane %v4029_v26, 9 }
 0x1ed   : > { %v3692_v51 = vrot.slane %v3690_v23, 4  ;;  %v11139_v55 = vmax.bf16 %v5002_v1, %v4857_v29  ;;  %v3683_v60 = vor.u32 %v3682_v3, %v3679_v14  ;;  %v4165_v0 = vrot.slane %v11120_v63, 5 }
 0x1ee   : > { %v4168_v62 = vrot.slane %v3449_v12, 5  ;;  %v5701_v31 = vrot.slane %v5264_v21, 7  ;;  %v3698_v8 = vrot.slane %v3696_v20, 5  ;;  %v4548_v47 = vshrl.u32 %v4029_v26, 16 }
 0x1ef   : > { %v3693_v50 = vor.u32 %v3692_v51, %v3688_v19  ;;  %v5265_v22 = vmax.bf16 %v5233_v32, %v11139_v55  ;;  %v3684_v9 = vrot.slane %v3683_v60, 4  ;;  %v4166_v36 = vsel %vm9650_vm14, %v8716_v59, %v4165_v0 }
 0x1f0   : > { %v4167_v11 = vrot.slane %v4165_v0, 4  ;;  %v5702_v5 = vrot.slane %v5701_v31, 4  ;;  %5821 = vst.msk [vmem:[#allocation2 + $0x48] sm:$0xe] %vm882_vm7, %v5701_v31  ;;  %v4550_v2 = vrot.slane %v4548_v47, 5  ;;  %v4551_v13 = vshll.u32 %v4029_v26, 16 }
 0x1f1   : > { %v3694_v4 = vrot.slane %v3693_v50, 4  ;;  %v8751_v18 = vcombine.low %v5264_v21, %v5265_v22  ;;  %v5703_v6 = vrot.slane %v5265_v22, 7  ;;  %v3689_v49 = vsel %vm9562_vm11, %v3684_v9, %v3688_v19  ;;  %v967_v21 = vld [vmem:[#allocation2 + $0xd8] sm:$0xf]  ;;  %v11163_v50 = vld [vmem:[#allocation2 + $0xdc] sm:$0xf] }
 0x1f2   : > { %v4169_v16 = vsel %vm9650_vm14, %v4167_v11, %v4168_v62  ;;  %v3998_v7 = vmax.bf16 %v3689_v49, %v3418_v34  ;;  %v4553_v1 = vrot.slane %v4551_v13, 6  ;;  %v4556_v35 = vrot.slane %v3690_v23, 5 }
 0x1f3   : > { %v3699_v39 = vsel %vm9562_vm11, %v3694_v4, %v3698_v8  ;;  %9037 = vmatprep.mubr.msk.bf16.mxu0 %vm422_vm6, %v8751_v18  ;;  %v5704_v12 = vsel %vm9424_vm8, %v5702_v5, %v5703_v6  ;;  %v5705_v14 = vrot.slane %v5703_v6, 4  ;;  %v4557_v43 = vrot.slane %v3686_v56, 6  ;;  %v989_v5 = vld [vmem:[#allocation2 + $0xe0] sm:$0x1] }
 0x1f4   : > { %v3999_v57 = vmax.bf16 %v3699_v39, %v11120_v63  ;;  %5822 = vst.msk [vmem:[#allocation2 + $0x4c] sm:$0xf] %vm701_vm1, %v5704_v12  ;;  %v4298_v46 = vmax.bf16 %v4166_v36, %v3998_v7  ;;  %v4554_v29 = vor.u32 %v4553_v1, %v4550_v2  ;;  %v4562_v32 = vshrl.u32 %v4329_v52, 16 }
 0x1f5   : > { %v4565_v3 = vshll.u32 %v4329_v52, 16  ;;  %5823 = vst.msk [vmem:[#allocation2 + $0x50] sm:$0x1] %vm717_vm2, %v5705_v14  ;;  %v4558_v23 = vor.u32 %v4557_v43, %v4556_v35  ;;  %v8736_v19 = vrot.slane %v4889_v25, 10  ;;  %v5005_v26 = vrot.slane %v11120_v63, 6 }
 0x1f6   : > { %v4299_v34 = vmax.bf16 %v4169_v16, %v3999_v57  ;;  %v4555_v51 = vrot.slane %v4554_v29, 4  ;;  %v4564_v20 = vrot.slane %v4562_v32, 5  ;;  %v5008_v60 = vrot.slane %v4329_v52, 6  ;;  %v1572_v35 = vld [vmem:[#allocation2 + $0xd8] sm:$0xe] }
 0x1f7   : > { %v4567_v59 = vrot.slane %v4565_v3, 6  ;;  %v4560_v0 = vrot.slane %v4558_v23, 4  ;;  %v5006_v56 = vsel %vm9856_vm10, %v8736_v19, %v5005_v26  ;;  %v5007_v62 = vrot.slane %v5005_v26, 4 }
 0x1f8   : > { %v5170_v31 = vmax.bf16 %v10961_v40, %v10835_v61  ;;  %v4559_v8 = vsel %vm9771_vm4, %v4555_v51, %v4558_v23  ;;  %v5171_v63 = vmax.bf16 %v10966_v58, %v10838_v48  ;;  %v1427_v22 = vshrl.u32 %v967_v21, 16 }
 0x1f9   : > { %v4568_v47 = vor.u32 %v4567_v59, %v4564_v20  ;;  %v4858_v9 = vmax.bf16 %v4559_v8, %v4298_v46  ;;  %v5009_v36 = vsel %vm9856_vm10, %v5007_v62, %v5008_v60  ;;  %v1430_v4 = vshll.u32 %v967_v21, 16 }
 0x1fa   : > { %v5202_v11 = vmax.bf16 %v5170_v31, %v11005_v17  ;;  %v5203_v2 = vmax.bf16 %v5171_v63, %v11009_v54  ;;  %v1429_v13 = vrot.slane %v1427_v22, 4  ;;  %v1436_v18 = vshll.u32 %v11163_v50, 16  ;;  %v1875_v31 = vld [vmem:[#allocation2 + $0xe0] sm:$0x3] }
 0x1fb   : > { %v4569_v61 = vsel %vm9771_vm4, %v4560_v0, %v4568_v47  ;;  %v11176_v49 = vmax.bf16 %v5006_v56, %v4858_v9  ;;  %v1432_v16 = vrot.slane %v1430_v4, 5  ;;  %v1440_v7 = vshrl.u32 %v11163_v50, 16  ;;  %v2438_v9 = vld [vmem:[#allocation2 + $0xd8] sm:$0xc] }
 0x1fc   : > { %v4859_v6 = vmax.bf16 %v4569_v61, %v4299_v34  ;;  %v5234_v48 = vmax.bf16 %v5202_v11, %v11133_v27  ;;  %v5235_v52 = vmax.bf16 %v5203_v2, %v11139_v55  ;;  %v1438_v39 = vrot.slane %v1436_v18, 5 }
 0x1fd   : > { %v1446_v1 = vshll.u32 %v989_v5, 16  ;;  %v1433_v14 = vor.u32 %v1432_v16, %v1429_v13  ;;  %v8652_v57 = vrot.slane %v1572_v35, 9  ;;  %v1442_v43 = vrot.slane %v1440_v7, 4 }
 0x1fe   : > { %v11181_v25 = vmax.bf16 %v5009_v36, %v4859_v6  ;;  %v5266_v12 = vmax.bf16 %v5234_v48, %v11176_v49  ;;  %v1765_v29 = vrot.slane %v11163_v50, 5  ;;  %v1768_v32 = vrot.slane %v989_v5, 5 }
 0x1ff   : > { %v1448_v46 = vrot.slane %v1446_v1, 5  ;;  %v1434_v23 = vrot.slane %v1433_v14, 4  ;;  %v2295_v19 = vshrl.u32 %v1572_v35, 16  ;;  %v1443_v26 = vor.u32 %v1442_v43, %v1438_v39 }
 0x200   : > { %v5267_v3 = vmax.bf16 %v5235_v52, %v11181_v25  ;;  %v5706_v34 = vrot.slane %v5266_v12, 7  ;;  %v1766_v51 = vsel %vm9650_vm14, %v8652_v57, %v1765_v29  ;;  %v1767_v20 = vrot.slane %v1765_v29, 4 }
 0x201   : > { %v2298_v59 = vshll.u32 %v1572_v35, 16  ;;  %v1439_v62 = vsel %vm9562_vm11, %v1434_v23, %v1438_v39  ;;  %v1444_v8 = vrot.slane %v1443_v26, 4  ;;  %v2297_v22 = vrot.slane %v2295_v19, 5 }
 0x202   : > { %v8752_v60 = vcombine.low %v5266_v12, %v5267_v3  ;;  %v5707_v0 = vrot.slane %v5706_v34, 4  ;;  %v5708_v56 = vrot.slane %v5267_v3, 7  ;;  %5824 = vst.msk [vmem:[#allocation2 + $0x54] sm:$0xe] %vm882_vm7, %v5706_v34  ;;  %v1550_v47 = vmax.bf16 %v1439_v62, %v967_v21  ;;  %v969_v12 = vld [vmem:[#allocation2 + $0xe4] sm:$0xf] }
 0x203   : > { %v1769_v63 = vsel %vm9650_vm14, %v1767_v20, %v1768_v32  ;;  %v2300_v5 = vrot.slane %v2298_v59, 6  ;;  %v2303_v4 = vrot.slane %v1440_v7, 5  ;;  %v1449_v61 = vsel %vm9562_vm11, %v1444_v8, %v1448_v46  ;;  %v11208_v34 = vld [vmem:[#allocation2 + $0xe8] sm:$0xf]  ;;  %v990_v59 = vld [vmem:[#allocation2 + $0xec] sm:$0x1] }
 0x204   : > { %9038 = vmatmul.mubr.msk.bf16.gmra.mxu0 %vm422_vm6, %v8752_v60  ;;  %v5709_v36 = vsel %vm9424_vm8, %v5707_v0, %v5708_v56  ;;  %v5710_v11 = vrot.slane %v5708_v56, 4  ;;  %v1853_v2 = vmax.bf16 %v1766_v51, %v1550_v47  ;;  %v2304_v21 = vrot.slane %v1436_v18, 6 }
 0x205   : > { %5825 = vst.msk [vmem:[#allocation2 + $0x58] sm:$0xf] %vm701_vm1, %v5709_v36  ;;  %v2309_v13 = vshrl.u32 %v1875_v31, 16  ;;  %v1551_v6 = vmax.bf16 %v1449_v61, %v11163_v50  ;;  %v2301_v48 = vor.u32 %v2300_v5, %v2297_v22  ;;  %v2312_v16 = vshll.u32 %v1875_v31, 16  ;;  %v1573_v22 = vld [vmem:[#allocation2 + $0xe4] sm:$0xe] }
 0x206   : > { %5826 = vst.msk [vmem:[#allocation2 + $0x5c] sm:$0x1] %vm717_vm2, %v5710_v11  ;;  %v8672_v52 = vrot.slane %v2438_v9, 10  ;;  %v2305_v39 = vor.u32 %v2304_v21, %v2303_v4  ;;  %v2611_v35 = vrot.slane %v11163_v50, 6  ;;  %v2614_v7 = vrot.slane %v1875_v31, 6 }
 0x207   : > { %v2311_v1 = vrot.slane %v2309_v13, 5  ;;  %v1854_v14 = vmax.bf16 %v1769_v63, %v1551_v6  ;;  %v2302_v57 = vrot.slane %v2301_v48, 4  ;;  %v2314_v43 = vrot.slane %v2312_v16, 6 }
 0x208   : > { %v2731_v18 = vmax.bf16 %v10918_v30, %v10876_v38  ;;  %v2307_v46 = vrot.slane %v2305_v39, 4  ;;  %v2612_v29 = vsel %vm9856_vm10, %v8672_v52, %v2611_v35  ;;  %v2613_v32 = vrot.slane %v2611_v35, 4 }
 0x209   : > { %v2732_v3 = vmax.bf16 %v10924_v42, %v10880_v28  ;;  %v2306_v50 = vsel %vm9771_vm4, %v2302_v57, %v2305_v39  ;;  %v2315_v23 = vor.u32 %v2314_v43, %v2311_v1  ;;  %v1451_v26 = vshrl.u32 %v969_v12, 16 }
 0x20a   : > { %v2763_v19 = vmax.bf16 %v2731_v18, %v11047_v45  ;;  %v2416_v51 = vmax.bf16 %v2306_v50, %v1853_v2  ;;  %v2615_v38 = vsel %vm9856_vm10, %v2613_v32, %v2614_v7  ;;  %v1454_v60 = vshll.u32 %v969_v12, 16 }
 0x20b   : > { %v2764_v20 = vmax.bf16 %v2732_v3, %v11052_v24  ;;  %v2316_v28 = vsel %vm9771_vm4, %v2307_v46, %v2315_v23  ;;  %v1453_v56 = vrot.slane %v1451_v26, 4  ;;  %v1460_v62 = vshll.u32 %v11208_v34, 16  ;;  %v1876_v3 = vld [vmem:[#allocation2 + $0xec] sm:$0x3] }
 0x20c   : > { %v2795_v0 = vmax.bf16 %v2763_v19, %v11090_v33  ;;  %v2417_v31 = vmax.bf16 %v2316_v28, %v1854_v14  ;;  %v11220_v8 = vmax.bf16 %v2612_v29, %v2416_v51  ;;  %v1456_v63 = vrot.slane %v1454_v60, 5  ;;  %v2439_v51 = vld [vmem:[#allocation2 + $0xe4] sm:$0xc] }
 0x20d   : > { %v2796_v47 = vmax.bf16 %v2764_v20, %v11095_v53  ;;  %v1462_v9 = vrot.slane %v1460_v62, 5  ;;  %v1464_v36 = vshrl.u32 %v11208_v34, 16  ;;  %v1470_v11 = vshll.u32 %v990_v59, 16 }
 0x20e   : > { %v8653_v5 = vrot.slane %v1573_v22, 9  ;;  %v11224_v4 = vmax.bf16 %v2615_v38, %v2417_v31  ;;  %v2827_v61 = vmax.bf16 %v2795_v0, %v11220_v8  ;;  %v1457_v2 = vor.u32 %v1456_v63, %v1453_v56 }
 0x20f   : > { %v1772_v21 = vrot.slane %v11208_v34, 5  ;;  %v1466_v13 = vrot.slane %v1464_v36, 4  ;;  %v1472_v6 = vrot.slane %v1470_v11, 5  ;;  %v1775_v48 = vrot.slane %v990_v59, 5 }
 0x210   : > { %v2318_v16 = vshrl.u32 %v1573_v22, 16  ;;  %v2828_v52 = vmax.bf16 %v2796_v47, %v11224_v4  ;;  %v3294_v39 = vrot.slane %v2827_v61, 7  ;;  %v1458_v1 = vrot.slane %v1457_v2, 4 }
 0x211   : > { %v1773_v35 = vsel %vm9650_vm14, %v8653_v5, %v1772_v21  ;;  %v1467_v7 = vor.u32 %v1466_v13, %v1462_v9  ;;  %v1774_v14 = vrot.slane %v1772_v21, 4  ;;  %v2321_v43 = vshll.u32 %v1573_v22, 16  ;;  %v3420_v5 = vld [vmem:[#allocation2 + $0x78] sm:$0xf] }
 0x212   : > { %v2320_v57 = vrot.slane %v2318_v16, 5  ;;  %v8688_v18 = vcombine.low %v2827_v61, %v2828_v52  ;;  %v3295_v46 = vrot.slane %v3294_v39, 4  ;;  %v3296_v29 = vrot.slane %v2828_v52, 7  ;;  %3394 = vst.msk [vmem:[#allocation2 + $0xc0] sm:$0xe] %vm882_vm7, %v3294_v39 }
 0x213   : > { %v1463_v32 = vsel %vm9562_vm11, %v1458_v1, %v1462_v9  ;;  %v1468_v50 = vrot.slane %v1467_v7, 4  ;;  %v1776_v19 = vsel %vm9650_vm14, %v1774_v14, %v1775_v48  ;;  %v2323_v26 = vrot.slane %v2321_v43, 6  ;;  %v3450_v14 = vld [vmem:[#allocation2 + $0x80] sm:$0x1] }
 0x214   : > { %v1552_v23 = vmax.bf16 %v1463_v32, %v969_v12  ;;  %9023 = vmatprep.mubr.msk.bf16.mxu1 %vm422_vm6, %v8688_v18  ;;  %v3297_v38 = vsel %vm9424_vm8, %v3295_v46, %v3296_v29  ;;  %v3298_v20 = vrot.slane %v3296_v29, 4  ;;  %v2326_v59 = vrot.slane %v1464_v36, 5 }
 0x215   : > { %v2327_v60 = vrot.slane %v1460_v62, 6  ;;  %3395 = vst.msk [vmem:[#allocation2 + $0xc4] sm:$0xf] %vm701_vm1, %v3297_v38  ;;  %v1473_v28 = vsel %vm9562_vm11, %v1468_v50, %v1472_v6  ;;  %v2324_v12 = vor.u32 %v2323_v26, %v2320_v57  ;;  %v2332_v56 = vshrl.u32 %v1876_v3, 16  ;;  %v11247_v6 = vld [vmem:[#allocation2 + $0x7c] sm:$0xf] }
 0x216   : > { %v1855_v0 = vmax.bf16 %v1773_v35, %v1552_v23  ;;  %3396 = vst.msk [vmem:[#allocation2 + $0xc8] sm:$0x1] %vm717_vm2, %v3298_v20  ;;  %v1553_v31 = vmax.bf16 %v1473_v28, %v11208_v34  ;;  %v2335_v63 = vshll.u32 %v1876_v3, 16  ;;  %v8673_v22 = vrot.slane %v2439_v51, 10  ;;  %v4030_v50 = vld [vmem:[#allocation2 + $0x78] sm:$0xe] }
 0x217   : > { %v2328_v47 = vor.u32 %v2327_v60, %v2326_v59  ;;  %v2325_v9 = vrot.slane %v2324_v12, 4  ;;  %v2334_v11 = vrot.slane %v2332_v56, 5  ;;  %v2618_v36 = vrot.slane %v11208_v34, 6 }
 0x218   : > { %v2621_v62 = vrot.slane %v1876_v3, 6  ;;  %v1856_v61 = vmax.bf16 %v1776_v19, %v1553_v31  ;;  %v2337_v21 = vrot.slane %v2335_v63, 6  ;;  %v2733_v13 = vmax.bf16 %v11047_v45, %v10918_v30 }
 0x219   : > { %v2330_v2 = vrot.slane %v2328_v47, 4  ;;  %v2329_v48 = vsel %vm9771_vm4, %v2325_v9, %v2328_v47  ;;  %v2619_v16 = vsel %vm9856_vm10, %v8673_v22, %v2618_v36  ;;  %v2620_v52 = vrot.slane %v2618_v36, 4  ;;  %v4330_v22 = vld [vmem:[#allocation2 + $0x80] sm:$0x3] }
 0x21a   : > { %v2734_v34 = vmax.bf16 %v11052_v24, %v10924_v42  ;;  %v2338_v39 = vor.u32 %v2337_v21, %v2334_v11  ;;  %v2418_v1 = vmax.bf16 %v2329_v48, %v1855_v0  ;;  %v2765_v35 = vmax.bf16 %v2733_v13, %v11090_v33 }
 0x21b   : > { %v3701_v7 = vshrl.u32 %v3420_v5, 16  ;;  %v2622_v30 = vsel %vm9856_vm10, %v2620_v52, %v2621_v62  ;;  %v3704_v57 = vshll.u32 %v3420_v5, 16  ;;  %v3710_v43 = vshll.u32 %v11247_v6, 16  ;;  %v4890_v52 = vld [vmem:[#allocation2 + $0x78] sm:$0xc] }
 0x21c   : > { %v2766_v45 = vmax.bf16 %v2734_v34, %v11095_v53  ;;  %v2339_v18 = vsel %vm9771_vm4, %v2330_v2, %v2338_v39  ;;  %v2701_v46 = vmax.bf16 %v2619_v16, %v2418_v1  ;;  %v2797_v42 = vmax.bf16 %v2765_v35, %v11220_v8 }
 0x21d   : > { %v3703_v24 = vrot.slane %v3701_v7, 4  ;;  %v2419_v29 = vmax.bf16 %v2339_v18, %v1856_v61  ;;  %v3706_v32 = vrot.slane %v3704_v57, 5  ;;  %v3712_v3 = vrot.slane %v3710_v43, 5 }
 0x21e   : > { %v2798_v33 = vmax.bf16 %v2766_v45, %v11224_v4  ;;  %v2829_v23 = vmax.bf16 %v2797_v42, %v2701_v46  ;;  %v3714_v53 = vshrl.u32 %v11247_v6, 16  ;;  %v3720_v19 = vshll.u32 %v3450_v14, 16 }
 0x21f   : > { %v8717_v26 = vrot.slane %v4030_v50, 9  ;;  %v2702_v51 = vmax.bf16 %v2622_v30, %v2419_v29  ;;  %v3707_v38 = vor.u32 %v3706_v32, %v3703_v24  ;;  %v4172_v20 = vrot.slane %v11247_v6, 5 }
 0x220   : > { %v4175_v59 = vrot.slane %v3450_v14, 5  ;;  %v3299_v60 = vrot.slane %v2829_v23, 7  ;;  %v3716_v28 = vrot.slane %v3714_v53, 4  ;;  %v3722_v8 = vrot.slane %v3720_v19, 5 }
 0x221   : > { %v4571_v0 = vshrl.u32 %v4030_v50, 16  ;;  %v2830_v12 = vmax.bf16 %v2798_v33, %v2702_v51  ;;  %v3708_v56 = vrot.slane %v3707_v38, 4  ;;  %v4173_v4 = vsel %vm9650_vm14, %v8717_v26, %v4172_v20  ;;  %v3422_v33 = vld [vmem:[#allocation2 + $0x84] sm:$0xf] }
 0x222   : > { %v4174_v31 = vrot.slane %v4172_v20, 4  ;;  %v3300_v47 = vrot.slane %v3299_v60, 4  ;;  %3397 = vst.msk [vmem:[#allocation2 + $0xcc] sm:$0xe] %vm882_vm7, %v3299_v60  ;;  %v3717_v63 = vor.u32 %v3716_v28, %v3712_v3  ;;  %v4574_v11 = vshll.u32 %v4030_v50, 16 }
 0x223   : > { %v4573_v9 = vrot.slane %v4571_v0, 5  ;;  %v8689_v36 = vcombine.low %v2829_v23, %v2830_v12  ;;  %v3301_v62 = vrot.slane %v2830_v12, 7  ;;  %v3713_v61 = vsel %vm9562_vm11, %v3708_v56, %v3712_v3  ;;  %v3451_v28 = vld [vmem:[#allocation2 + $0x8c] sm:$0x1] }
 0x224   : > { %v4176_v2 = vsel %vm9650_vm14, %v4174_v31, %v4175_v59  ;;  %v3718_v21 = vrot.slane %v3717_v63, 4  ;;  %v4000_v13 = vmax.bf16 %v3713_v61, %v3420_v5  ;;  %v4576_v48 = vrot.slane %v4574_v11, 6  ;;  %v4031_v11 = vld [vmem:[#allocation2 + $0x84] sm:$0xe] }
 0x225   : > { %v4579_v16 = vrot.slane %v3714_v53, 5  ;;  %9024 = vmatmul.mubr.msk.bf16.gmra.mxu1 %vm422_vm6, %v8689_v36  ;;  %v3302_v34 = vsel %vm9424_vm8, %v3300_v47, %v3301_v62  ;;  %v3303_v39 = vrot.slane %v3301_v62, 4  ;;  %v4580_v1 = vrot.slane %v3710_v43, 6  ;;  %v11286_v53 = vld [vmem:[#allocation2 + $0x88] sm:$0xf] }
 0x226   : > { %v4585_v35 = vshrl.u32 %v4330_v22, 16  ;;  %3398 = vst.msk [vmem:[#allocation2 + $0xd0] sm:$0xf] %vm701_vm1, %v3302_v34  ;;  %v3723_v7 = vsel %vm9562_vm11, %v3718_v21, %v3722_v8  ;;  %v4300_v30 = vmax.bf16 %v4173_v4, %v4000_v13  ;;  %v4577_v45 = vor.u32 %v4576_v48, %v4573_v9 }
 0x227   : > { %v4588_v14 = vshll.u32 %v4330_v22, 16  ;;  %3399 = vst.msk [vmem:[#allocation2 + $0xd4] sm:$0x1] %vm717_vm2, %v3303_v39  ;;  %v4001_v5 = vmax.bf16 %v3723_v7, %v11247_v6  ;;  %v4581_v57 = vor.u32 %v4580_v1, %v4579_v16  ;;  %v8737_v46 = vrot.slane %v4890_v52, 10 }
 0x228   : > { %v4587_v18 = vrot.slane %v4585_v35, 5  ;;  %v4578_v42 = vrot.slane %v4577_v45, 4  ;;  %v5012_v43 = vrot.slane %v11247_v6, 6  ;;  %v5015_v29 = vrot.slane %v4330_v22, 6 }
 0x229   : > { %v4590_v24 = vrot.slane %v4588_v14, 6  ;;  %v4301_v32 = vmax.bf16 %v4176_v2, %v4001_v5  ;;  %v4583_v3 = vrot.slane %v4581_v57, 4  ;;  %v5172_v50 = vmax.bf16 %v11005_v17, %v10961_v40 }
 0x22a   : > { %v5173_v23 = vmax.bf16 %v11009_v54, %v10966_v58  ;;  %v4582_v19 = vsel %vm9771_vm4, %v4578_v42, %v4581_v57  ;;  %v5013_v51 = vsel %vm9856_vm10, %v8737_v46, %v5012_v43  ;;  %v5014_v6 = vrot.slane %v5012_v43, 4 }
 0x22b   : > { %v4591_v26 = vor.u32 %v4590_v24, %v4587_v18  ;;  %v4860_v38 = vmax.bf16 %v4582_v19, %v4300_v30  ;;  %v5204_v20 = vmax.bf16 %v5172_v50, %v11133_v27  ;;  %v3725_v60 = vshrl.u32 %v3422_v33, 16  ;;  %v4331_v18 = vld [vmem:[#allocation2 + $0x8c] sm:$0x3] }
 0x22c   : > { %v5205_v59 = vmax.bf16 %v5173_v23, %v11139_v55  ;;  %v5016_v58 = vsel %vm9856_vm10, %v5014_v6, %v5015_v29  ;;  %v3728_v8 = vshll.u32 %v3422_v33, 16  ;;  %v3734_v0 = vshll.u32 %v11286_v53, 16 }
 0x22d   : > { %v4592_v40 = vsel %vm9771_vm4, %v4583_v3, %v4591_v26  ;;  %v11299_v56 = vmax.bf16 %v5013_v51, %v4860_v38  ;;  %v5236_v4 = vmax.bf16 %v5204_v20, %v11176_v49  ;;  %v3727_v47 = vrot.slane %v3725_v60, 4 }
 0x22e   : > { %v4861_v12 = vmax.bf16 %v4592_v40, %v4301_v32  ;;  %v5237_v31 = vmax.bf16 %v5205_v59, %v11181_v25  ;;  %v3730_v63 = vrot.slane %v3728_v8, 5  ;;  %v3736_v22 = vrot.slane %v3734_v0, 5  ;;  %v4891_v32 = vld [vmem:[#allocation2 + $0x84] sm:$0xc] }
 0x22f   : > { %v3738_v9 = vshrl.u32 %v11286_v53, 16  ;;  %v5268_v62 = vmax.bf16 %v5236_v4, %v11299_v56  ;;  %v3744_v61 = vshll.u32 %v3451_v28, 16  ;;  %v8718_v2 = vrot.slane %v4031_v11, 9 }
 0x230   : > { %v11304_v36 = vmax.bf16 %v5016_v58, %v4861_v12  ;;  %v3731_v21 = vor.u32 %v3730_v63, %v3727_v47  ;;  %v4179_v48 = vrot.slane %v11286_v53, 5  ;;  %v4182_v16 = vrot.slane %v3451_v28, 5  ;;  %v3424_v12 = vld [vmem:[#allocation2 + $0x90] sm:$0xf]  ;;  %v11327_v63 = vld [vmem:[#allocation2 + $0x94] sm:$0xf] }
 0x231   : > { %v3740_v13 = vrot.slane %v3738_v9, 4  ;;  %v5711_v34 = vrot.slane %v5268_v62, 7  ;;  %v3746_v39 = vrot.slane %v3744_v61, 5  ;;  %v4594_v1 = vshrl.u32 %v4031_v11, 16 }
 0x232   : > { %13493 = vst [vmem:[#allocation5_spill] sm:$0xff] %v11304_v36  ;;  %v5269_v52 = vmax.bf16 %v5237_v31, %v11304_v36  ;;  %v3732_v35 = vrot.slane %v3731_v21, 4  ;;  %v4180_v30 = vsel %vm9650_vm14, %v8718_v2, %v4179_v48  ;;  %v4181_v45 = vrot.slane %v4179_v48, 4  ;;  %v3452_v48 = vld [vmem:[#allocation2 + $0x98] sm:$0x1] }
 0x233   : > { %v3741_v7 = vor.u32 %v3740_v13, %v3736_v22  ;;  %v5712_v5 = vrot.slane %v5711_v34, 4  ;;  %5827 = vst.msk [vmem:[#allocation2 + $0x60] sm:$0xe] %vm882_vm7, %v5711_v34  ;;  %v4596_v46 = vrot.slane %v4594_v1, 5  ;;  %v4597_v29 = vshll.u32 %v4031_v11, 16 }
 0x234   : > { %v8753_v14 = vcombine.low %v5268_v62, %v5269_v52  ;;  %v5713_v57 = vrot.slane %v5269_v52, 7  ;;  %v3737_v42 = vsel %vm9562_vm11, %v3732_v35, %v3736_v22  ;;  %v4183_v43 = vsel %vm9650_vm14, %v4181_v45, %v4182_v16 }
 0x235   : > { %v3742_v24 = vrot.slane %v3741_v7, 4  ;;  %v4002_v23 = vmax.bf16 %v3737_v42, %v3422_v33  ;;  %v4602_v19 = vrot.slane %v3738_v9, 5  ;;  %v4599_v51 = vrot.slane %v4597_v29, 6 }
 0x236   : > { %9041 = vmatprep.mubr.msk.bf16.mxu0 %vm422_vm6, %v8753_v14  ;;  %v5714_v3 = vsel %vm9424_vm8, %v5712_v5, %v5713_v57  ;;  %v5715_v50 = vrot.slane %v5713_v57, 4  ;;  %v4603_v6 = vrot.slane %v3734_v0, 6  ;;  %v4608_v38 = vshrl.u32 %v4331_v18, 16 }
 0x237   : > { %5828 = vst.msk [vmem:[#allocation2 + $0x64] sm:$0xf] %vm701_vm1, %v5714_v3  ;;  %v3747_v26 = vsel %vm9562_vm11, %v3742_v24, %v3746_v39  ;;  %v4302_v59 = vmax.bf16 %v4180_v30, %v4002_v23  ;;  %v4611_v60 = vshll.u32 %v4331_v18, 16  ;;  %v8738_v40 = vrot.slane %v4891_v32, 10 }
 0x238   : > { %5829 = vst.msk [vmem:[#allocation2 + $0x68] sm:$0x1] %vm717_vm2, %v5715_v50  ;;  %v4003_v20 = vmax.bf16 %v3747_v26, %v11286_v53  ;;  %v4600_v58 = vor.u32 %v4599_v51, %v4596_v46  ;;  %v4604_v28 = vor.u32 %v4603_v6, %v4602_v19  ;;  %v4610_v8 = vrot.slane %v4608_v38, 5  ;;  %v4032_v46 = vld [vmem:[#allocation2 + $0x90] sm:$0xe] }
 0x239   : > { %v5019_v33 = vrot.slane %v11286_v53, 6  ;;  %v4613_v31 = vrot.slane %v4611_v60, 6  ;;  %v5022_v47 = vrot.slane %v4331_v18, 6  ;;  %v5174_v0 = vmax.bf16 %v11133_v27, %v11005_v17 }
 0x23a   : > { %v4303_v4 = vmax.bf16 %v4183_v43, %v4003_v20  ;;  %v4601_v22 = vrot.slane %v4600_v58, 4  ;;  %v4606_v9 = vrot.slane %v4604_v28, 4  ;;  %v5175_v2 = vmax.bf16 %v11139_v55, %v11009_v54 }
 0x23b   : > { %v5020_v11 = vsel %vm9856_vm10, %v8738_v40, %v5019_v33  ;;  %v5021_v62 = vrot.slane %v5019_v33, 4  ;;  %v4614_v61 = vor.u32 %v4613_v31, %v4610_v8  ;;  %v5206_v53 = vmax.bf16 %v5174_v0, %v11176_v49  ;;  %v4332_v33 = vld [vmem:[#allocation2 + $0x98] sm:$0x3] }
 0x23c   : > { %v3749_v21 = vshrl.u32 %v3424_v12, 16  ;;  %v4605_v13 = vsel %vm9771_vm4, %v4601_v22, %v4604_v28  ;;  %v3752_v16 = vshll.u32 %v3424_v12, 16  ;;  %v3758_v52 = vshll.u32 %v11327_v63, 16 }
 0x23d   : > { %v5023_v17 = vsel %vm9856_vm10, %v5021_v62, %v5022_v47  ;;  %v4615_v34 = vsel %vm9771_vm4, %v4606_v9, %v4614_v61  ;;  %v4862_v39 = vmax.bf16 %v4605_v13, %v4302_v59  ;;  %v5207_v1 = vmax.bf16 %v5175_v2, %v11181_v25  ;;  %v4892_v61 = vld [vmem:[#allocation2 + $0x90] sm:$0xc] }
 0x23e   : > { %v5238_v54 = vmax.bf16 %v5206_v53, %v11299_v56  ;;  %v4863_v35 = vmax.bf16 %v4615_v34, %v4303_v4  ;;  %v3751_v7 = vrot.slane %v3749_v21, 4  ;;  %v3754_v30 = vrot.slane %v3752_v16, 5 }
 0x23f   : > { %v3760_v45 = vrot.slane %v3758_v52, 5  ;;  %v11343_v14 = vmax.bf16 %v5020_v11, %v4862_v39  ;;  %v5239_v5 = vmax.bf16 %v5207_v1, %v11304_v36  ;;  %v3762_v57 = vshrl.u32 %v11327_v63, 16 }
 0x240   : > { %v3768_v18 = vshll.u32 %v3452_v48, 16  ;;  %v11347_v42 = vmax.bf16 %v5023_v17, %v4863_v35  ;;  %v3755_v24 = vor.u32 %v3754_v30, %v3751_v7  ;;  %v8719_v43 = vrot.slane %v4032_v46, 9 }
 0x241   : > { %13494 = vst [vmem:[#allocation7_spill] sm:$0xff] %v11343_v14  ;;  %v4186_v29 = vrot.slane %v11327_v63, 5  ;;  %v5270_v32 = vmax.bf16 %v5238_v54, %v11343_v14  ;;  %v3764_v3 = vrot.slane %v3762_v57, 4  ;;  %v4189_v23 = vrot.slane %v3452_v48, 5  ;;  %v3426_v54 = vld [vmem:[#allocation2 + $0x9c] sm:$0xf] }
 0x242   : > { %13495 = vst [vmem:[#allocation6_spill] sm:$0xff] %v11347_v42  ;;  %v3770_v50 = vrot.slane %v3768_v18, 5  ;;  %v5271_v19 = vmax.bf16 %v5239_v5, %v11347_v42  ;;  %v3756_v26 = vrot.slane %v3755_v24, 4  ;;  %v4617_v59 = vshrl.u32 %v4032_v46, 16  ;;  %v11374_v24 = vld [vmem:[#allocation2 + $0xa0] sm:$0xf] }
 0x243   : > { %v4187_v51 = vsel %vm9650_vm14, %v8719_v43, %v4186_v29  ;;  %v4188_v6 = vrot.slane %v4186_v29, 4  ;;  %v5716_v38 = vrot.slane %v5270_v32, 7  ;;  %v3765_v20 = vor.u32 %v3764_v3, %v3760_v45 }
 0x244   : > { %v4620_v60 = vshll.u32 %v4032_v46, 16  ;;  %v8754_v40 = vcombine.low %v5270_v32, %v5271_v19  ;;  %v5718_v58 = vrot.slane %v5271_v19, 7  ;;  %v3761_v28 = vsel %vm9562_vm11, %v3756_v26, %v3760_v45 }
 0x245   : > { %v4190_v8 = vsel %vm9650_vm14, %v4188_v6, %v4189_v23  ;;  %v5717_v4 = vrot.slane %v5716_v38, 4  ;;  %5830 = vst.msk [vmem:[#allocation2 + $0x6c] sm:$0xe] %vm882_vm7, %v5716_v38  ;;  %v3766_v31 = vrot.slane %v3765_v20, 4  ;;  %v4004_v47 = vmax.bf16 %v3761_v28, %v3424_v12 }
 0x246   : > { %v4619_v0 = vrot.slane %v4617_v59, 5  ;;  %9042 = vmatmul.mubr.msk.bf16.gmra.mxu0 %vm422_vm6, %v8754_v40  ;;  %v5720_v22 = vrot.slane %v5718_v58, 4  ;;  %v4622_v9 = vrot.slane %v4620_v60, 6  ;;  %v4625_v11 = vrot.slane %v3762_v57, 5 }
 0x247   : > { %v4626_v62 = vrot.slane %v3758_v52, 6  ;;  %v5719_v2 = vsel %vm9424_vm8, %v5717_v4, %v5718_v58  ;;  %v3771_v53 = vsel %vm9562_vm11, %v3766_v31, %v3770_v50  ;;  %v4304_v21 = vmax.bf16 %v4187_v51, %v4004_v47 }
 0x248   : > { %v4631_v13 = vshrl.u32 %v4332_v33, 16  ;;  %5831 = vst.msk [vmem:[#allocation2 + $0x70] sm:$0xf] %vm701_vm1, %v5719_v2  ;;  %v4005_v12 = vmax.bf16 %v3771_v53, %v11327_v63  ;;  %v4623_v17 = vor.u32 %v4622_v9, %v4619_v0  ;;  %v4634_v16 = vshll.u32 %v4332_v33, 16 }
 0x249   : > { %5832 = vst.msk [vmem:[#allocation2 + $0x74] sm:$0x1] %vm717_vm2, %v5720_v22  ;;  %v4627_v48 = vor.u32 %v4626_v62, %v4625_v11  ;;  %v8739_v52 = vrot.slane %v4892_v61, 10  ;;  %v5026_v39 = vrot.slane %v11327_v63, 6  ;;  %v5029_v1 = vrot.slane %v4332_v33, 6 }
 0x24a   : > { %v4633_v34 = vrot.slane %v4631_v13, 5  ;;  %v4305_v35 = vmax.bf16 %v4190_v8, %v4005_v12  ;;  %v4624_v7 = vrot.slane %v4623_v17, 4  ;;  %v4636_v45 = vrot.slane %v4634_v16, 6  ;;  %v4033_v33 = vld [vmem:[#allocation2 + $0x9c] sm:$0xe] }
 0x24b   : > { %v4629_v30 = vrot.slane %v4627_v48, 4  ;;  %v5027_v5 = vsel %vm9856_vm10, %v8739_v52, %v5026_v39  ;;  %v5028_v57 = vrot.slane %v5026_v39, 4  ;;  %v5176_v18 = vmax.bf16 %v11176_v49, %v11133_v27  ;;  %v3453_v27 = vld [vmem:[#allocation2 + $0xa4] sm:$0x1] }
 0x24c   : > { %v5177_v46 = vmax.bf16 %v11181_v25, %v11139_v55  ;;  %v4628_v63 = vsel %vm9771_vm4, %v4624_v7, %v4627_v48  ;;  %v4637_v43 = vor.u32 %v4636_v45, %v4633_v34  ;;  %v3773_v29 = vshrl.u32 %v3426_v54, 16 }
 0x24d   : > { %v3776_v32 = vshll.u32 %v3426_v54, 16  ;;  %v4864_v3 = vmax.bf16 %v4628_v63, %v4304_v21  ;;  %v5030_v50 = vsel %vm9856_vm10, %v5028_v57, %v5029_v1  ;;  %v5208_v23 = vmax.bf16 %v5176_v18, %v11299_v56  ;;  %v4333_v1 = vld [vmem:[#allocation2 + $0xa4] sm:$0x3] }
 0x24e   : > { %v5209_v19 = vmax.bf16 %v5177_v46, %v11304_v36  ;;  %v4638_v55 = vsel %vm9771_vm4, %v4629_v30, %v4637_v43  ;;  %v3775_v26 = vrot.slane %v3773_v29, 4  ;;  %v3782_v6 = vshll.u32 %v11374_v24, 16 }
 0x24f   : > { %v3778_v51 = vrot.slane %v3776_v32, 5  ;;  %v4865_v38 = vmax.bf16 %v4638_v55, %v4305_v35  ;;  %v11385_v20 = vmax.bf16 %v5027_v5, %v4864_v3  ;;  %v5240_v59 = vmax.bf16 %v5208_v23, %v11343_v14  ;;  %v4893_v5 = vld [vmem:[#allocation2 + $0x9c] sm:$0xc] }
 0x250   : > { %v5241_v60 = vmax.bf16 %v5209_v19, %v11347_v42  ;;  %v3784_v58 = vrot.slane %v3782_v6, 5  ;;  %v3786_v28 = vshrl.u32 %v11374_v24, 16  ;;  %v3792_v8 = vshll.u32 %v3453_v27, 16 }
 0x251   : > { %13496 = vst [vmem:[#allocation8_spill] sm:$0xff] %v11385_v20  ;;  %v3779_v40 = vor.u32 %v3778_v51, %v3775_v26  ;;  %v11390_v4 = vmax.bf16 %v5030_v50, %v4865_v38  ;;  %v5272_v31 = vmax.bf16 %v5240_v59, %v11385_v20  ;;  %v8720_v47 = vrot.slane %v4033_v33, 9  ;;  %v11411_v38 = vld [vmem:[#allocation2] sm:$0xf] }
 0x252   : > { %v4193_v0 = vrot.slane %v11374_v24, 5  ;;  %v3788_v9 = vrot.slane %v3786_v28, 4  ;;  %v3794_v11 = vrot.slane %v3792_v8, 5  ;;  %v4196_v62 = vrot.slane %v3453_v27, 5 }
 0x253   : > { %13497 = vst [vmem:[#allocation9_spill] sm:$0xff] %v11390_v4  ;;  %v3780_v22 = vrot.slane %v3779_v40, 4  ;;  %v5273_v61 = vmax.bf16 %v5241_v60, %v11390_v4  ;;  %v5721_v2 = vrot.slane %v5272_v31, 7  ;;  %v4640_v17 = vshrl.u32 %v4033_v33, 16 }
 0x254   : > { %v4194_v53 = vsel %vm9650_vm14, %v8720_v47, %v4193_v0  ;;  %v4195_v21 = vrot.slane %v4193_v0, 4  ;;  %v3789_v12 = vor.u32 %v3788_v9, %v3784_v58  ;;  %v4643_v48 = vshll.u32 %v4033_v33, 16 }
 0x255   : > { %v3785_v13 = vsel %vm9562_vm11, %v3780_v22, %v3784_v58  ;;  %v8755_v16 = vcombine.low %v5272_v31, %v5273_v61  ;;  %v5722_v34 = vrot.slane %v5721_v2, 4  ;;  %v5723_v52 = vrot.slane %v5273_v61, 7  ;;  %5833 = vst.msk [vmem:[#allocation2 + $0x78] sm:$0xe] %vm882_vm7, %v5721_v2  ;;  %v11415_v58 = vld [vmem:[#allocation2 + $0x4] sm:$0xf] }
 0x256   : > { %v4006_v39 = vmax.bf16 %v3785_v13, %v3426_v54  ;;  %v3790_v35 = vrot.slane %v3789_v12, 4  ;;  %v4197_v7 = vsel %vm9650_vm14, %v4195_v21, %v4196_v62  ;;  %v4642_v30 = vrot.slane %v4640_v17, 5  ;;  %v11428_v62 = vld [vmem:[#allocation2 + $0xc] sm:$0xf]  ;;  %v11430_v61 = vld [vmem:[#allocation2 + $0x8] sm:$0x1] }
 0x257   : > { %v4645_v45 = vrot.slane %v4643_v48, 6  ;;  %9045 = vmatprep.mubr.msk.bf16.mxu0 %vm422_vm6, %v8755_v16  ;;  %v5724_v57 = vsel %vm9424_vm8, %v5722_v34, %v5723_v52  ;;  %v5725_v18 = vrot.slane %v5723_v52, 4  ;;  %v4648_v63 = vrot.slane %v3786_v28, 5  ;;  %v11441_v16 = vld [vmem:[#allocation2 + $0x10] sm:$0xf] }
 0x258   : > { %v4306_v46 = vmax.bf16 %v4194_v53, %v4006_v39  ;;  %5834 = vst.msk [vmem:[#allocation2 + $0x7c] sm:$0xf] %vm701_vm1, %v5724_v57  ;;  %v3795_v54 = vsel %vm9562_vm11, %v3790_v35, %v3794_v11  ;;  %v4649_v29 = vrot.slane %v3782_v6, 6  ;;  %v4654_v32 = vshrl.u32 %v4333_v1, 16 }
 0x259   : > { %v4646_v43 = vor.u32 %v4645_v45, %v4642_v30  ;;  %5835 = vst.msk [vmem:[#allocation2 + $0x80] sm:$0x1] %vm717_vm2, %v5725_v18  ;;  %v4007_v3 = vmax.bf16 %v3795_v54, %v11374_v24  ;;  %v4657_v50 = vshll.u32 %v4333_v1, 16  ;;  %v8740_v23 = vrot.slane %v4893_v5, 10  ;;  %v11454_v45 = vld [vmem:[#allocation2 + $0x14] sm:$0x1] }
 0x25a   : > { %v5033_v19 = vrot.slane %v11374_v24, 6  ;;  %v4650_v55 = vor.u32 %v4649_v29, %v4648_v63  ;;  %v4656_v26 = vrot.slane %v4654_v32, 5  ;;  %v5036_v51 = vrot.slane %v4333_v1, 6 }
 0x25b   : > { %v4647_v27 = vrot.slane %v4646_v43, 4  ;;  %v4307_v59 = vmax.bf16 %v4197_v7, %v4007_v3  ;;  %v4659_v60 = vrot.slane %v4657_v50, 6  ;;  %v5178_v24 = vmax.bf16 %v11299_v56, %v11176_v49  ;;  %v11464_v50 = vld [vmem:[#allocation2 + $0x18] sm:$0xf] }
 0x25c   : > { %v5034_v6 = vsel %vm9856_vm10, %v8740_v23, %v5033_v19  ;;  %v5035_v40 = vrot.slane %v5033_v19, 4  ;;  %v4652_v8 = vrot.slane %v4650_v55, 4  ;;  %v5179_v33 = vmax.bf16 %v11304_v36, %v11181_v25 }
 0x25d   : > { %v4651_v28 = vsel %vm9771_vm4, %v4647_v27, %v4650_v55  ;;  %v4660_v31 = vor.u32 %v4659_v60, %v4656_v26  ;;  %v5918_v22 = vshrl.u32 %v11411_v38, 16  ;;  %v5210_v9 = vmax.bf16 %v5178_v24, %v11343_v14  ;;  %v11475_v60 = vld [vmem:[#allocation2 + $0x1c] sm:$0xf] }
 0x25e   : > { %v4866_v47 = vmax.bf16 %v4651_v28, %v4306_v46  ;;  %v5037_v0 = vsel %vm9856_vm10, %v5035_v40, %v5036_v51  ;;  %v5211_v11 = vmax.bf16 %v5179_v33, %v11347_v42  ;;  %v5921_v49 = vshll.u32 %v11411_v38, 16  ;;  %v11481_v40 = vld [vmem:[#allocation2 + $0x24] sm:$0xf]  ;;  %v11483_v28 = vld [vmem:[#allocation2 + $0x20] sm:$0x1] }
 0x25f   : > { %v5927_v2 = vshll.u32 %v11415_v58, 16  ;;  %v4661_v25 = vsel %vm9771_vm4, %v4652_v8, %v4660_v31  ;;  %v5920_v21 = vrot.slane %v5918_v22, 4  ;;  %v5931_v13 = vshrl.u32 %v11415_v58, 16 }
 0x260   : > { %v11436_v53 = vmax.bf16 %v5034_v6, %v4866_v47  ;;  %v4867_v12 = vmax.bf16 %v4661_v25, %v4307_v59  ;;  %v5242_v17 = vmax.bf16 %v5210_v9, %v11385_v20  ;;  %v5243_v48 = vmax.bf16 %v5211_v11, %v11390_v4  ;;  %v11499_v11 = vld [vmem:[#allocation2 + $0x28] sm:$0xf] }
 0x261   : > { %v5923_v34 = vrot.slane %v5921_v49, 5  ;;  %v11445_v52 = vrot.slane %v5927_v2, 5  ;;  %v5933_v39 = vrot.slane %v5931_v13, 4  ;;  %v5937_v1 = vshll.u32 %v11430_v61, 16 }
 0x262   : > { %13498 = vst [vmem:[#allocation10_spill] sm:$0xff] %v11436_v53  ;;  %v5942_v35 = vshrl.u32 %v11428_v62, 16  ;;  %v11451_v7 = vmax.bf16 %v5037_v0, %v4867_v12  ;;  %v5274_v30 = vmax.bf16 %v5242_v17, %v11436_v53  ;;  %v5945_v57 = vshll.u32 %v11428_v62, 16  ;;  %v11505_v17 = vld [vmem:[#allocation2 + $0x30] sm:$0xf] }
 0x263   : > { %v5924_v5 = vor.u32 %v5923_v34, %v5920_v21  ;;  %v5934_v18 = vor.u32 %v5933_v39, %v11445_v52  ;;  %v11458_v46 = vrot.slane %v5937_v1, 5  ;;  %v5951_v54 = vshll.u32 %v11441_v16, 16  ;;  %v11509_v1 = vld [vmem:[#allocation2 + $0x2c] sm:$0x1] }
 0x264   : > { %13499 = vst [vmem:[#allocation11_spill] sm:$0xff] %v11451_v7  ;;  %v5944_v63 = vrot.slane %v5942_v35, 4  ;;  %v5275_v43 = vmax.bf16 %v5243_v48, %v11451_v7  ;;  %v5726_v29 = vrot.slane %v5274_v30, 7  ;;  %v5947_v3 = vrot.slane %v5945_v57, 5 }
 0x265   : > { %v11462_v32 = vrot.slane %v5924_v5, 4  ;;  %v11466_v23 = vrot.slane %v5934_v18, 4  ;;  %v11470_v19 = vrot.slane %v5951_v54, 5  ;;  %v5955_v27 = vshrl.u32 %v11441_v16, 16 }
 0x266   : > { %v5961_v55 = vshll.u32 %v11454_v45, 16  ;;  %v8756_v26 = vcombine.low %v5274_v30, %v5275_v43  ;;  %v5727_v51 = vrot.slane %v5726_v29, 4  ;;  %v5728_v59 = vrot.slane %v5275_v43, 7  ;;  %5836 = vst.msk [vmem:[#allocation2 + $0x84] sm:$0xe] %vm882_vm7, %v5726_v29 }
 0x267   : > { %v5930_v6 = vsel %vm9562_vm11, %v11462_v32, %v11445_v52  ;;  %v5940_v8 = vsel %vm9562_vm11, %v11466_v23, %v11458_v46  ;;  %v5948_v24 = vor.u32 %v5947_v3, %v5944_v63  ;;  %v5957_v33 = vrot.slane %v5955_v27, 4 }
 0x268   : > { %v11491_v31 = vrot.slane %v5961_v55, 5  ;;  %9046 = vmatmul.mubr.msk.bf16.gmra.mxu0 %vm422_vm6, %v8756_v26  ;;  %v5729_v47 = vsel %vm9424_vm8, %v5727_v51, %v5728_v59  ;;  %v5730_v0 = vrot.slane %v5728_v59, 4  ;;  %v5966_v22 = vshrl.u32 %v11464_v50, 16 }
 0x269   : > { %v5969_v9 = vshll.u32 %v11464_v50, 16  ;;  %5837 = vst.msk [vmem:[#allocation2 + $0x88] sm:$0xf] %vm701_vm1, %v5729_v47  ;;  %v5949_v49 = vrot.slane %v5948_v24, 4  ;;  %v5958_v25 = vor.u32 %v5957_v33, %v11470_v19  ;;  %v13422_v21 = vshll.u32 %v11475_v60, 16 }
 0x26a   : > { %v13423_v12 = vshrl.u32 %v11475_v60, 16  ;;  %5838 = vst.msk [vmem:[#allocation2 + $0x8c] sm:$0x1] %vm717_vm2, %v5730_v0  ;;  %v5968_v48 = vrot.slane %v5966_v22, 4  ;;  %v5985_v52 = vshll.u32 %v11483_v28, 16  ;;  %v5990_v39 = vshrl.u32 %v11481_v40, 16 }
 0x26b   : > { %v5971_v34 = vrot.slane %v5969_v9, 5  ;;  %v5954_v35 = vsel %vm9562_vm11, %v5949_v49, %v11470_v19  ;;  %v5959_v30 = vrot.slane %v5958_v25, 4  ;;  %v5977_v5 = vrot.slane %v13422_v21, 5  ;;  %v11524_v19 = vld [vmem:[#allocation2 + $0x34] sm:$0xf] }
 0x26c   : > { %v5981_v57 = vrot.slane %v13423_v12, 4  ;;  %v5987_v46 = vrot.slane %v5985_v52, 5  ;;  %v5992_v63 = vrot.slane %v5990_v39, 4  ;;  %v5993_v43 = vshll.u32 %v11481_v40, 16  ;;  %v11528_v24 = vld [vmem:[#allocation2 + $0x38] sm:$0x1] }
 0x26d   : > { %v5972_v18 = vor.u32 %v5971_v34, %v5968_v48  ;;  %v5964_v29 = vsel %vm9562_vm11, %v5959_v30, %v11491_v31  ;;  %v13420_v3 = vshll.u32 %v11499_v11, 16  ;;  %v13421_v23 = vshrl.u32 %v11499_v11, 16 }
 0x26e   : > { %v5982_v32 = vor.u32 %v5981_v57, %v5977_v5  ;;  %v5995_v26 = vrot.slane %v5993_v43, 5  ;;  %v6009_v51 = vshll.u32 %v11509_v1, 16  ;;  %v6014_v59 = vshrl.u32 %v11505_v17, 16 }
 0x26f   : > { %v5973_v55 = vrot.slane %v5972_v18, 4  ;;  %v6001_v47 = vrot.slane %v13420_v3, 5  ;;  %v6005_v31 = vrot.slane %v13421_v23, 4  ;;  %v6017_v0 = vshll.u32 %v11505_v17, 16 }
 0x270   : > { %v5983_v33 = vrot.slane %v5982_v32, 4  ;;  %v5996_v9 = vor.u32 %v5995_v26, %v5992_v63  ;;  %v6011_v49 = vrot.slane %v6009_v51, 5  ;;  %v6016_v25 = vrot.slane %v6014_v59, 4 }
 0x271   : > { %v5978_v22 = vsel %vm9562_vm11, %v5973_v55, %v5977_v5  ;;  %v6006_v34 = vor.u32 %v6005_v31, %v6001_v47  ;;  %v6019_v52 = vrot.slane %v6017_v0, 5  ;;  %v13418_v39 = vshll.u32 %v11524_v19, 16 }
 0x272   : > { %v5988_v48 = vsel %vm9562_vm11, %v5983_v33, %v5987_v46  ;;  %v5997_v30 = vrot.slane %v5996_v9, 4  ;;  %v13419_v57 = vshrl.u32 %v11524_v19, 16  ;;  %v6033_v18 = vshll.u32 %v11528_v24, 16 }
 0x273   : > { %v11543_v43 = vmax.bf16 %v5930_v6, %v11411_v38  ;;  %v6007_v32 = vrot.slane %v6006_v34, 4  ;;  %v6020_v5 = vor.u32 %v6019_v52, %v6016_v25  ;;  %v6025_v63 = vrot.slane %v13418_v39, 5 }
 0x274   : > { %v11548_v55 = vmax.bf16 %v5940_v8, %v11415_v58  ;;  %v6002_v46 = vsel %vm9562_vm11, %v5997_v30, %v6001_v47  ;;  %v6029_v26 = vrot.slane %v13419_v57, 4  ;;  %v6035_v51 = vrot.slane %v6033_v18, 5 }
 0x275   : > { %v11555_v59 = vmax.bf16 %v5954_v35, %v11428_v62  ;;  %v6012_v38 = vsel %vm9562_vm11, %v6007_v32, %v6011_v49  ;;  %v6021_v6 = vrot.slane %v6020_v5, 4  ;;  %v11560_v33 = vmax.bf16 %v5964_v29, %v11441_v16  ;;  %v6477_v35 = vld [vmem:[#allocation2] sm:$0xe]  ;;  %v11576_v49 = vld [vmem:[#allocation2 + $0xc] sm:$0xe] }
 0x276   : > { %v11563_v8 = vmax.bf16 %v5978_v22, %v11464_v50  ;;  %v6030_v31 = vor.u32 %v6029_v26, %v6025_v63  ;;  %v11566_v47 = vmax.bf16 %v5988_v48, %v11475_v60  ;;  %v11569_v0 = vmax.bf16 %v6002_v46, %v11481_v40  ;;  %v11583_v40 = vld [vmem:[#allocation2 + $0x18] sm:$0xe] }
 0x277   : > { %v11572_v62 = vmax.bf16 %v6012_v38, %v11499_v11  ;;  %v6026_v9 = vsel %vm9562_vm11, %v6021_v6, %v6025_v63  ;;  %v8780_v29 = vrot.slane %v6477_v35, 9  ;;  %v6559_v50 = vrot.slane %v11415_v58, 5 }
 0x278   : > { %v6562_v22 = vrot.slane %v11430_v61, 5  ;;  %v6031_v25 = vrot.slane %v6030_v31, 4  ;;  %v11581_v48 = vmax.bf16 %v6026_v9, %v11505_v17  ;;  %v8781_v34 = vrot.slane %v11576_v49, 9  ;;  %v11595_v17 = vld [vmem:[#allocation2 + $0x24] sm:$0xe] }
 0x279   : > { %v6566_v52 = vrot.slane %v11441_v16, 5  ;;  %v11589_v30 = vsel %vm9650_vm14, %v8780_v29, %v6559_v50  ;;  %v6561_v18 = vrot.slane %v6559_v50, 4  ;;  %v6569_v32 = vrot.slane %v11454_v45, 5  ;;  %v11611_v31 = vld [vmem:[#allocation2 + $0x30] sm:$0xe] }
 0x27a   : > { %v8782_v5 = vrot.slane %v11583_v40, 9  ;;  %v6036_v61 = vsel %vm9562_vm11, %v6031_v25, %v6035_v51  ;;  %v6573_v26 = vrot.slane %v11475_v60, 5  ;;  %v6576_v6 = vrot.slane %v11483_v28, 5 }
 0x27b   : > { %v11599_v63 = vsel %vm9650_vm14, %v8781_v34, %v6566_v52  ;;  %v6568_v46 = vrot.slane %v6566_v52, 4  ;;  %v11603_v38 = vmax.bf16 %v6036_v61, %v11524_v19  ;;  %v11607_v45 = vsel %vm9650_vm14, %v6561_v18, %v6562_v22  ;;  %v11670_v61 = vld [vmem:[#allocation2 + $0x14] sm:$0x3] }
 0x27c   : > { %v8783_v51 = vrot.slane %v11595_v17, 9  ;;  %v11619_v29 = vsel %vm9650_vm14, %v8782_v5, %v6573_v26  ;;  %v6575_v50 = vrot.slane %v6573_v26, 4  ;;  %v6580_v25 = vrot.slane %v11499_v11, 5 }
 0x27d   : > { %v11615_v9 = vsel %vm9650_vm14, %v6568_v46, %v6569_v32  ;;  %v6583_v22 = vrot.slane %v11509_v1, 5  ;;  %v8784_v34 = vrot.slane %v11611_v31, 9  ;;  %v6587_v28 = vrot.slane %v11524_v19, 5 }
 0x27e   : > { %v6590_v52 = vrot.slane %v11528_v24, 5  ;;  %v11628_v18 = vsel %vm9650_vm14, %v6575_v50, %v6576_v6  ;;  %v11632_v32 = vsel %vm9650_vm14, %v8783_v51, %v6580_v25  ;;  %v6582_v5 = vrot.slane %v6580_v25, 4 }
 0x27f   : > { %v11638_v1 = vsel %vm9650_vm14, %v8784_v34, %v6587_v28  ;;  %v6589_v46 = vrot.slane %v6587_v28, 4  ;;  %v11654_v34 = vld [vmem:[#allocation2 + $0x8] sm:$0x3]  ;;  %v6798_v51 = vshrl.u32 %v6477_v35, 16  ;;  %v6801_v25 = vshll.u32 %v6477_v35, 16 }
 0x280   : > { %v11646_v6 = vsel %vm9650_vm14, %v6582_v5, %v6583_v22  ;;  %v6806_v24 = vrot.slane %v5931_v13, 5  ;;  %v6815_v22 = vshll.u32 %v11654_v34, 16  ;;  %v6821_v26 = vshrl.u32 %v11576_v49, 16 }
 0x281   : > { %v11658_v28 = vsel %vm9650_vm14, %v6589_v46, %v6590_v52  ;;  %v6807_v52 = vrot.slane %v5927_v2, 6  ;;  %v6812_v46 = vshrl.u32 %v11654_v34, 16  ;;  %v6800_v5 = vrot.slane %v6798_v51, 5 }
 0x282   : > { %v6803_v39 = vrot.slane %v6801_v25, 6  ;;  %v6824_v50 = vshll.u32 %v11576_v49, 16  ;;  %v6829_v35 = vrot.slane %v5955_v27, 5  ;;  %v6817_v3 = vrot.slane %v6815_v22, 6  ;;  %v11688_v27 = vld [vmem:[#allocation2 + $0x20] sm:$0x3] }
 0x283   : > { %v11680_v57 = vor.u32 %v6807_v52, %v6806_v24  ;;  %v6814_v13 = vrot.slane %v6812_v46, 5  ;;  %v6823_v23 = vrot.slane %v6821_v26, 5  ;;  %v6830_v12 = vrot.slane %v5951_v54, 6 }
 0x284   : > { %v6804_v21 = vor.u32 %v6803_v39, %v6800_v5  ;;  %v6826_v2 = vrot.slane %v6824_v50, 6  ;;  %v6835_v15 = vshrl.u32 %v11670_v61, 16  ;;  %v6838_v49 = vshll.u32 %v11670_v61, 16 }
 0x285   : > { %v6810_v51 = vrot.slane %v11680_v57, 4  ;;  %v6818_v25 = vor.u32 %v6817_v3, %v6814_v13  ;;  %v6844_v7 = vshrl.u32 %v11583_v40, 16  ;;  %v6831_v22 = vor.u32 %v6830_v12, %v6829_v35 }
 0x286   : > { %v6805_v24 = vrot.slane %v6804_v21, 4  ;;  %v6827_v52 = vor.u32 %v6826_v2, %v6823_v23  ;;  %v6837_v26 = vrot.slane %v6835_v15, 5  ;;  %v6840_v50 = vrot.slane %v6838_v49, 6  ;;  %v11701_v2 = vld [vmem:[#allocation2 + $0x2c] sm:$0x3] }
 0x287   : > { %v6819_v39 = vsel %vm9771_vm4, %v6810_v51, %v6818_v25  ;;  %v6846_v54 = vrot.slane %v6844_v7, 5  ;;  %v6847_v5 = vshll.u32 %v11583_v40, 16  ;;  %v6833_v13 = vrot.slane %v6831_v22, 4 }
 0x288   : > { %v6809_v3 = vsel %vm9771_vm4, %v6805_v24, %v11680_v57  ;;  %v6828_v46 = vrot.slane %v6827_v52, 4  ;;  %v13500_v53 = vshrl.u32 %v11475_v60, 16  ;;  %v6841_v21 = vor.u32 %v6840_v50, %v6837_v26 }
 0x289   : > { %v6849_v23 = vrot.slane %v6847_v5, 6  ;;  %v13501_v15 = vshll.u32 %v11475_v60, 16  ;;  %v6858_v35 = vshrl.u32 %v11688_v27, 16  ;;  %v6861_v40 = vshll.u32 %v11688_v27, 16 }
 0x28a   : > { %v6852_v4 = vrot.slane %v13500_v53, 5  ;;  %v6832_v7 = vsel %vm9771_vm4, %v6828_v46, %v6831_v22  ;;  %v6867_v57 = vshrl.u32 %v11595_v17, 16  ;;  %v6870_v51 = vshll.u32 %v11595_v17, 16 }
 0x28b   : > { %v6853_v12 = vrot.slane %v13501_v15, 6  ;;  %v6842_v53 = vsel %vm9771_vm4, %v6833_v13, %v6841_v21  ;;  %v6850_v25 = vor.u32 %v6849_v23, %v6846_v54  ;;  %v6860_v24 = vrot.slane %v6858_v35, 5  ;;  %v11717_v54 = vld [vmem:[#allocation2 + $0x38] sm:$0x3] }
 0x28c   : > { %v6863_v52 = vrot.slane %v6861_v40, 6  ;;  %v6869_v26 = vrot.slane %v6867_v57, 5  ;;  %v6872_v50 = vrot.slane %v6870_v51, 6  ;;  %v13502_v5 = vshrl.u32 %v11499_v11, 16 }
 0x28d   : > { %v6854_v49 = vor.u32 %v6853_v12, %v6852_v4  ;;  %v6851_v20 = vrot.slane %v6850_v25, 4  ;;  %v13503_v46 = vshll.u32 %v11499_v11, 16  ;;  %v6881_v36 = vshrl.u32 %v11701_v2, 16 }
 0x28e   : > { %v6875_v15 = vrot.slane %v13502_v5, 5  ;;  %v6864_v17 = vor.u32 %v6863_v52, %v6860_v24  ;;  %v6873_v14 = vor.u32 %v6872_v50, %v6869_v26  ;;  %v6884_v13 = vshll.u32 %v11701_v2, 16 }
 0x28f   : > { %v6856_v22 = vrot.slane %v6854_v49, 4  ;;  %v6876_v42 = vrot.slane %v13503_v46, 6  ;;  %v6890_v4 = vshrl.u32 %v11611_v31, 16  ;;  %v6855_v21 = vsel %vm9771_vm4, %v6851_v20, %v6854_v49 }
 0x290   : > { %v6883_v12 = vrot.slane %v6881_v36, 5  ;;  %v6893_v35 = vshll.u32 %v11611_v31, 16  ;;  %v6874_v57 = vrot.slane %v6873_v14, 4  ;;  %v6886_v51 = vrot.slane %v6884_v13, 6 }
 0x291   : > { %v6877_v23 = vor.u32 %v6876_v42, %v6875_v15  ;;  %v6865_v40 = vsel %vm9771_vm4, %v6856_v22, %v6864_v17  ;;  %v6892_v25 = vrot.slane %v6890_v4, 5  ;;  %v13504_v26 = vshrl.u32 %v11524_v19, 16 }
 0x292   : > { %v6895_v52 = vrot.slane %v6893_v35, 6  ;;  %v13505_v5 = vshll.u32 %v11524_v19, 16  ;;  %v6887_v36 = vor.u32 %v6886_v51, %v6883_v12  ;;  %v6904_v20 = vshrl.u32 %v11717_v54, 16  ;;  %v7337_v51 = vld [vmem:[#allocation2] sm:$0xc] }
 0x293   : > { %v6879_v24 = vrot.slane %v6877_v23, 4  ;;  %v6898_v50 = vrot.slane %v13504_v26, 5  ;;  %v6878_v42 = vsel %vm9771_vm4, %v6874_v57, %v6877_v23  ;;  %v6907_v31 = vshll.u32 %v11717_v54, 16 }
 0x294   : > { %v6899_v46 = vrot.slane %v13505_v5, 6  ;;  %v6896_v49 = vor.u32 %v6895_v52, %v6892_v25  ;;  %v13506_v15 = vmax.bf16 %v11589_v30, %v11543_v43  ;;  %v13507_v17 = vmax.bf16 %v11607_v45, %v11548_v55 }
 0x295   : > { %v6888_v4 = vsel %vm9771_vm4, %v6879_v24, %v6887_v36  ;;  %v6906_v23 = vrot.slane %v6904_v20, 5  ;;  %v6909_v12 = vrot.slane %v6907_v31, 6  ;;  %v13508_v35 = vmax.bf16 %v11599_v63, %v11555_v59 }
 0x296   : > { %v6900_v14 = vor.u32 %v6899_v46, %v6898_v50  ;;  %v11735_v22 = vmax.bf16 %v6809_v3, %v13506_v15  ;;  %v11740_v13 = vmax.bf16 %v6819_v39, %v13507_v17  ;;  %v6897_v25 = vrot.slane %v6896_v49, 4  ;;  %v7338_v39 = vld [vmem:[#allocation2 + $0xc] sm:$0xc]  ;;  %v7341_v46 = vld [vmem:[#allocation2 + $0x30] sm:$0xc] }
 0x297   : > { %v7299_v57 = vmax.bf16 %v6832_v7, %v13508_v35  ;;  %v13509_v43 = vmax.bf16 %v11615_v9, %v11560_v33  ;;  %v13510_v55 = vmax.bf16 %v11619_v29, %v11563_v8  ;;  %v6910_v3 = vor.u32 %v6909_v12, %v6906_v23  ;;  %v7339_v9 = vld [vmem:[#allocation2 + $0x18] sm:$0xc] }
 0x298   : > { %v6902_v52 = vrot.slane %v6900_v14, 4  ;;  %v13511_v24 = vmax.bf16 %v11628_v18, %v11566_v47  ;;  %v13512_v59 = vmax.bf16 %v11632_v32, %v11569_v0  ;;  %v13513_v7 = vmax.bf16 %v11646_v6, %v11572_v62  ;;  %v7340_v32 = vld [vmem:[#allocation2 + $0x24] sm:$0xc] }
 0x299   : > { %v7300_v30 = vmax.bf16 %v6842_v53, %v13509_v43  ;;  %v7301_v45 = vmax.bf16 %v6855_v21, %v13510_v55  ;;  %v6901_v33 = vsel %vm9771_vm4, %v6897_v25, %v6900_v14  ;;  %v8800_v8 = vrot.slane %v7337_v51, 10 }
 0x29a   : > { %v7302_v26 = vmax.bf16 %v6865_v40, %v13511_v24  ;;  %v7303_v63 = vmax.bf16 %v6878_v42, %v13512_v59  ;;  %v7304_v50 = vmax.bf16 %v6888_v4, %v13513_v7  ;;  %v7399_v29 = vrot.slane %v11415_v58, 6 }
 0x29b   : > { %v7402_v53 = vrot.slane %v11654_v34, 6  ;;  %v6911_v47 = vsel %vm9771_vm4, %v6902_v52, %v6910_v3  ;;  %v13514_v0 = vmax.bf16 %v11638_v1, %v11581_v48  ;;  %v8801_v21 = vrot.slane %v7338_v39, 10  ;;  %v11808_v39 = vld [vmem:[#allocation2 + $0x40] sm:$0xf] }
 0x29c   : > { %v7406_v62 = vrot.slane %v11441_v16, 6  ;;  %v13515_v6 = vmax.bf16 %v11658_v28, %v11603_v38  ;;  %v7400_v58 = vsel %vm9856_vm10, %v8800_v8, %v7399_v29  ;;  %v7401_v5 = vrot.slane %v7399_v29, 4 }
 0x29d   : > { %v7305_v18 = vmax.bf16 %v6901_v33, %v13514_v0  ;;  %v7409_v34 = vrot.slane %v11670_v61, 6  ;;  %v8802_v1 = vrot.slane %v7339_v9, 10  ;;  %v7413_v36 = vrot.slane %v11475_v60, 6 }
 0x29e   : > { %v7306_v40 = vmax.bf16 %v6911_v47, %v13515_v6  ;;  %v7407_v42 = vsel %vm9856_vm10, %v8801_v21, %v7406_v62  ;;  %v7408_v48 = vrot.slane %v7406_v62, 4  ;;  %v7403_v16 = vsel %vm9856_vm10, %v7401_v5, %v7402_v53  ;;  %v6482_v21 = vld [vmem:[#allocation2 + $0x3c] sm:$0xe] }
 0x29f   : > { %v7416_v38 = vrot.slane %v11688_v27, 6  ;;  %v8803_v28 = vrot.slane %v7340_v32, 10  ;;  %v7420_v20 = vrot.slane %v11499_v11, 6  ;;  %v7414_v61 = vsel %vm9856_vm10, %v8802_v1, %v7413_v36 }
 0x2a0   : > { %v7410_v31 = vsel %vm9856_vm10, %v7408_v48, %v7409_v34  ;;  %v7415_v49 = vrot.slane %v7413_v36, 4  ;;  %v7423_v14 = vrot.slane %v11701_v2, 6  ;;  %v8804_v17 = vrot.slane %v7341_v46, 10 }
 0x2a1   : > { %v7421_v60 = vsel %vm9856_vm10, %v8803_v28, %v7420_v20  ;;  %v7422_v15 = vrot.slane %v7420_v20, 4  ;;  %v7427_v4 = vrot.slane %v11524_v19, 6  ;;  %v7430_v11 = vrot.slane %v11717_v54, 6  ;;  %v5867_v54 = vld [vmem:[#allocation2 + $0x3c] sm:$0xf] }
 0x2a2   : > { %v7417_v27 = vsel %vm9856_vm10, %v7415_v49, %v7416_v38  ;;  %v7577_v23 = vmax.bf16 %v7400_v58, %v11735_v22  ;;  %v7578_v12 = vmax.bf16 %v7403_v16, %v11740_v13  ;;  %v7579_v25 = vmax.bf16 %v7407_v42, %v7299_v57 }
 0x2a3   : > { %v7424_v35 = vsel %vm9856_vm10, %v7422_v15, %v7423_v14  ;;  %v7428_v2 = vsel %vm9856_vm10, %v8804_v17, %v7427_v4  ;;  %v7429_v51 = vrot.slane %v7427_v4, 4  ;;  %v7580_v52 = vmax.bf16 %v7410_v31, %v7300_v30  ;;  %v6782_v31 = vld [vmem:[#allocation2 + $0x44] sm:$0x3]  ;;  %v7342_v17 = vld [vmem:[#allocation2 + $0x3c] sm:$0xc] }
 0x2a4   : > { %v11802_v43 = vmax.bf16 %v7414_v61, %v7301_v45  ;;  %v11804_v19 = vmax.bf16 %v7417_v27, %v7302_v26  ;;  %v11806_v55 = vmax.bf16 %v7421_v60, %v7303_v63  ;;  %v11812_v13 = vmax.bf16 %v7424_v35, %v7304_v50  ;;  %v5902_v63 = vld [vmem:[#allocation2 + $0x44] sm:$0x1] }
 0x2a5   : > { %v7431_v22 = vsel %vm9856_vm10, %v7429_v51, %v7430_v11  ;;  %v11814_v3 = vmax.bf16 %v7428_v2, %v7305_v18  ;;  %v7617_v24 = vmax.bf16 %v7579_v25, %v7577_v23  ;;  %v7618_v57 = vmax.bf16 %v7580_v52, %v7578_v12 }
 0x2a6   : > { %v11816_v59 = vmax.bf16 %v7431_v22, %v7306_v40  ;;  %v7619_v30 = vmax.bf16 %v11802_v43, %v7579_v25  ;;  %v7620_v45 = vmax.bf16 %v11804_v19, %v7580_v52  ;;  %v6038_v7 = vshrl.u32 %v5867_v54, 16 }
 0x2a7   : > { %v7649_v26 = vmax.bf16 %v7617_v24, %v11802_v43  ;;  %v6041_v33 = vshll.u32 %v5867_v54, 16  ;;  %v6047_v9 = vshll.u32 %v11808_v39, 16  ;;  %v7650_v50 = vmax.bf16 %v7618_v57, %v11804_v19 }
 0x2a8   : > { %v11824_v8 = vmax.bf16 %v7619_v30, %v11806_v55  ;;  %v11827_v29 = vmax.bf16 %v7620_v45, %v11812_v13  ;;  %v6051_v53 = vshrl.u32 %v11808_v39, 16  ;;  %v6040_v0 = vrot.slane %v6038_v7, 4 }
 0x2a9   : > { %v7681_v47 = vmax.bf16 %v7649_v26, %v11806_v55  ;;  %v6043_v18 = vrot.slane %v6041_v33, 5  ;;  %v6049_v32 = vrot.slane %v6047_v9, 5  ;;  %v7682_v62 = vmax.bf16 %v7650_v50, %v11812_v13 }
 0x2aa   : > { %v6053_v6 = vrot.slane %v6051_v53, 4  ;;  %v6057_v40 = vshll.u32 %v5902_v63, 16  ;;  %v8785_v58 = vrot.slane %v6482_v21, 9  ;;  %v6594_v46 = vrot.slane %v11808_v39, 5 }
 0x2ab   : > { %v7713_v5 = vmax.bf16 %v7681_v47, %v11814_v3  ;;  %v6044_v34 = vor.u32 %v6043_v18, %v6040_v0  ;;  %v6597_v42 = vrot.slane %v5902_v63, 5  ;;  %v7714_v48 = vmax.bf16 %v7682_v62, %v11816_v59  ;;  %v3428_v63 = vld [vmem:[#allocation2 + $0xa8] sm:$0xf] }
 0x2ac   : > { %v6054_v1 = vor.u32 %v6053_v6, %v6049_v32  ;;  %v6059_v36 = vrot.slane %v6057_v40, 5  ;;  %v6913_v16 = vshrl.u32 %v6482_v21, 16  ;;  %v6595_v28 = vsel %vm9650_vm14, %v8785_v58, %v6594_v46 }
 0x2ad   : > { %v6045_v38 = vrot.slane %v6044_v34, 4  ;;  %v6596_v20 = vrot.slane %v6594_v46, 4  ;;  %v6916_v61 = vshll.u32 %v6482_v21, 16  ;;  %v8820_v49 = vcombine.low %v7713_v5, %v7714_v48  ;;  %v3454_v21 = vld [vmem:[#allocation2 + $0xb0] sm:$0x1] }
 0x2ae   : > { %v6055_v14 = vrot.slane %v6054_v1, 4  ;;  %v6915_v60 = vrot.slane %v6913_v16, 5  ;;  %v6921_v15 = vrot.slane %v6051_v53, 5  ;;  %v6922_v23 = vrot.slane %v6047_v9, 6  ;;  %v11846_v53 = vld [vmem:[#allocation2 + $0xac] sm:$0xf] }
 0x2af   : > { %v6050_v4 = vsel %vm9562_vm11, %v6045_v38, %v6049_v32  ;;  %v6598_v27 = vsel %vm9650_vm14, %v6596_v20, %v6597_v42  ;;  %v6918_v11 = vrot.slane %v6916_v61, 6  ;;  %9063 = vmatprep.mubr.msk.bf16.mxu1 %vm422_vm6, %v8820_v49  ;;  %v6927_v2 = vshrl.u32 %v6782_v31, 16  ;;  %v4034_v1 = vld [vmem:[#allocation2 + $0xa8] sm:$0xe] }
 0x2b0   : > { %v6060_v12 = vsel %vm9562_vm11, %v6055_v14, %v6059_v36  ;;  %v6447_v35 = vmax.bf16 %v6050_v4, %v5867_v54  ;;  %v6930_v51 = vshll.u32 %v6782_v31, 16  ;;  %v6923_v22 = vor.u32 %v6922_v23, %v6921_v15  ;;  %v4334_v23 = vld [vmem:[#allocation2 + $0xb0] sm:$0x3] }
 0x2b1   : > { %v6448_v25 = vmax.bf16 %v6060_v12, %v11808_v39  ;;  %v6919_v52 = vor.u32 %v6918_v11, %v6915_v60  ;;  %v8805_v24 = vrot.slane %v7342_v17, 10  ;;  %v6929_v30 = vrot.slane %v6927_v2, 5 }
 0x2b2   : > { %v6747_v57 = vmax.bf16 %v6595_v28, %v6447_v35  ;;  %v6932_v45 = vrot.slane %v6930_v51, 6  ;;  %v7434_v26 = vrot.slane %v11808_v39, 6  ;;  %v6925_v9 = vrot.slane %v6923_v22, 4 }
 0x2b3   : > { %v6748_v7 = vmax.bf16 %v6598_v27, %v6448_v25  ;;  %v6920_v33 = vrot.slane %v6919_v52, 4  ;;  %v7437_v50 = vrot.slane %v6782_v31, 6  ;;  %v7683_v18 = vmax.bf16 %v11824_v8, %v11814_v3  ;;  %v4894_v25 = vld [vmem:[#allocation2 + $0xa8] sm:$0xc] }
 0x2b4   : > { %v6933_v54 = vor.u32 %v6932_v45, %v6929_v30  ;;  %v7435_v47 = vsel %vm9856_vm10, %v8805_v24, %v7434_v26  ;;  %v7436_v0 = vrot.slane %v7434_v26, 4  ;;  %v7684_v39 = vmax.bf16 %v11827_v29, %v11816_v59 }
 0x2b5   : > { %v6924_v32 = vsel %vm9771_vm4, %v6920_v33, %v6923_v22  ;;  %v3797_v62 = vshrl.u32 %v3428_v63, 16  ;;  %v3800_v6 = vshll.u32 %v3428_v63, 16  ;;  %v3806_v34 = vshll.u32 %v11846_v53, 16 }
 0x2b6   : > { %v6934_v40 = vsel %vm9771_vm4, %v6925_v9, %v6933_v54  ;;  %v7307_v58 = vmax.bf16 %v6924_v32, %v6747_v57  ;;  %v7438_v5 = vsel %vm9856_vm10, %v7436_v0, %v7437_v50  ;;  %v3810_v48 = vshrl.u32 %v11846_v53, 16 }
 0x2b7   : > { %v7308_v46 = vmax.bf16 %v6934_v40, %v6748_v7  ;;  %v3799_v8 = vrot.slane %v3797_v62, 4  ;;  %v3802_v42 = vrot.slane %v3800_v6, 5  ;;  %v3808_v29 = vrot.slane %v3806_v34, 5 }
 0x2b8   : > { %v11862_v36 = vmax.bf16 %v7435_v47, %v7307_v58  ;;  %v3816_v16 = vshll.u32 %v3454_v21, 16  ;;  %v8721_v38 = vrot.slane %v4034_v1, 9  ;;  %v3812_v31 = vrot.slane %v3810_v48, 4 }
 0x2b9   : > { %v11864_v28 = vmax.bf16 %v7438_v5, %v7308_v46  ;;  %v3803_v20 = vor.u32 %v3802_v42, %v3799_v8  ;;  %v4200_v61 = vrot.slane %v11846_v53, 5  ;;  %v4203_v60 = vrot.slane %v3454_v21, 5  ;;  %v13516_v5 = vld [vmem:[#allocation7_spill] sm:$0xff]  ;;  %v13517_v46 = vld [vmem:[#allocation5_spill] sm:$0xff]  ;;  %v13518_v8 = vld [vmem:[#allocation6_spill] sm:$0xff] }
 0x2ba   : > { %v7715_v49 = vmax.bf16 %v7683_v18, %v11862_v36  ;;  %v3818_v14 = vrot.slane %v3816_v16, 5  ;;  %v4663_v15 = vshrl.u32 %v4034_v1, 16  ;;  %v3813_v27 = vor.u32 %v3812_v31, %v3808_v29  ;;  %v13520_v31 = vld [vmem:[#allocation9_spill] sm:$0xff] }
 0x2bb   : > { %v7716_v17 = vmax.bf16 %v7684_v39, %v11864_v28  ;;  %v3804_v4 = vrot.slane %v3803_v20, 4  ;;  %v4201_v11 = vsel %vm9650_vm14, %v8721_v38, %v4200_v61  ;;  %v4202_v12 = vrot.slane %v4200_v61, 4  ;;  %v3430_v39 = vld [vmem:[#allocation2 + $0xb4] sm:$0xf] }
 0x2bc   : > { %v4665_v35 = vrot.slane %v4663_v15, 5  ;;  %v4666_v2 = vshll.u32 %v4034_v1, 16  ;;  %v4671_v51 = vrot.slane %v3810_v48, 5  ;;  %v3814_v24 = vrot.slane %v3813_v27, 4  ;;  %v13519_v20 = vld [vmem:[#allocation8_spill] sm:$0xff] }
 0x2bd   : > { %v8821_v52 = vcombine.low %v7715_v49, %v7716_v17  ;;  %v3809_v22 = vsel %vm9562_vm11, %v3804_v4, %v3808_v29  ;;  %v4672_v57 = vrot.slane %v3806_v34, 6  ;;  %v4204_v45 = vsel %vm9650_vm14, %v4202_v12, %v4203_v60  ;;  %v11890_v49 = vld [vmem:[#allocation2 + $0xb8] sm:$0xf]  ;;  %v13522_v12 = vld [vmem:[#allocation11_spill] sm:$0xff] }
 0x2be   : > { %v4008_v30 = vmax.bf16 %v3809_v22, %v3428_v63  ;;  %v4668_v26 = vrot.slane %v4666_v2, 6  ;;  %v4677_v7 = vshrl.u32 %v4334_v23, 16  ;;  %v3819_v33 = vsel %vm9562_vm11, %v3814_v24, %v3818_v14  ;;  %v3455_v14 = vld [vmem:[#allocation2 + $0xbc] sm:$0x1]  ;;  %v4035_v24 = vld [vmem:[#allocation2 + $0xb4] sm:$0xe] }
 0x2bf   : > { %9064 = vmatmul.mubr.msk.bf16.vlgmr.msra.gmra.mxu1 %vm422_vm6, %v8821_v52  ;;  %v4673_v9 = vor.u32 %v4672_v57, %v4671_v51  ;;  %v4680_v50 = vshll.u32 %v4334_v23, 16  ;;  %v8741_v54 = vrot.slane %v4894_v25, 10  ;;  %v4009_v47 = vmax.bf16 %v3819_v33, %v11846_v53 }
 0x2c0   : > { %v4308_v0 = vmax.bf16 %v4201_v11, %v4008_v30  ;;  %v4669_v18 = vor.u32 %v4668_v26, %v4665_v35  ;;  %v4679_v32 = vrot.slane %v4677_v7, 5  ;;  %v5040_v62 = vrot.slane %v11846_v53, 6  ;;  %v13521_v11 = vld [vmem:[#allocation10_spill] sm:$0xff] }
 0x2c1   : > { %v4675_v63 = vrot.slane %v4673_v9, 4  ;;  %v4682_v21 = vrot.slane %v4680_v50, 6  ;;  %v5043_v6 = vrot.slane %v4334_v23, 6  ;;  %v4309_v40 = vmax.bf16 %v4204_v45, %v4009_v47 }
 0x2c2   : > { %v4670_v58 = vrot.slane %v4669_v18, 4  ;;  %v5180_v34 = vmax.bf16 %v13516_v5, %v11299_v56  ;;  %v5181_v42 = vmax.bf16 %v13518_v8, %v13517_v46  ;;  %v5041_v1 = vsel %vm9856_vm10, %v8741_v54, %v5040_v62 }
 0x2c3   : > { %v4683_v48 = vor.u32 %v4682_v21, %v4679_v32  ;;  %v5042_v29 = vrot.slane %v5040_v62, 4  ;;  %v3821_v16 = vshrl.u32 %v3430_v39, 16  ;;  %v3824_v56 = vshll.u32 %v3430_v39, 16 }
 0x2c4   : > { %v4674_v38 = vsel %vm9771_vm4, %v4670_v58, %v4673_v9  ;;  %v5212_v53 = vmax.bf16 %v5180_v34, %v13519_v20  ;;  %v5213_v61 = vmax.bf16 %v5181_v42, %v13520_v31  ;;  %v3830_v25 = vshll.u32 %v11890_v49, 16 }
 0x2c5   : > { %v4684_v60 = vsel %vm9771_vm4, %v4675_v63, %v4683_v48  ;;  %v4868_v15 = vmax.bf16 %v4674_v38, %v4308_v0  ;;  %v5044_v17 = vsel %vm9856_vm10, %v5042_v29, %v5043_v6  ;;  %v3823_v4 = vrot.slane %v3821_v16, 4  ;;  %v4335_v29 = vld [vmem:[#allocation2 + $0xbc] sm:$0x3] }
 0x2c6   : > { %v4869_v27 = vmax.bf16 %v4684_v60, %v4309_v40  ;;  %v5244_v23 = vmax.bf16 %v5212_v53, %v13521_v11  ;;  %v5245_v35 = vmax.bf16 %v5213_v61, %v13522_v12  ;;  %v3826_v2 = vrot.slane %v3824_v56, 5 }
 0x2c7   : > { %v11898_v51 = vmax.bf16 %v5041_v1, %v4868_v15  ;;  %v3834_v52 = vshrl.u32 %v11890_v49, 16  ;;  %v3840_v22 = vshll.u32 %v3455_v14, 16  ;;  %v8722_v45 = vrot.slane %v4035_v24, 9 }
 0x2c8   : > { %v11902_v57 = vmax.bf16 %v5044_v17, %v4869_v27  ;;  %v3827_v30 = vor.u32 %v3826_v2, %v3823_v4  ;;  %v4207_v26 = vrot.slane %v11890_v49, 5  ;;  %v3832_v33 = vrot.slane %v3830_v25, 5 }
 0x2c9   : > { %v5276_v7 = vmax.bf16 %v5244_v23, %v11898_v51  ;;  %v3836_v9 = vrot.slane %v3834_v52, 4  ;;  %v3842_v50 = vrot.slane %v3840_v22, 5  ;;  %v4210_v21 = vrot.slane %v3455_v14, 5  ;;  %v4895_v14 = vld [vmem:[#allocation2 + $0xb4] sm:$0xc] }
 0x2ca   : > { %v5277_v54 = vmax.bf16 %v5245_v35, %v11902_v57  ;;  %v3828_v47 = vrot.slane %v3827_v30, 4  ;;  %v4208_v0 = vsel %vm9650_vm14, %v8722_v45, %v4207_v26  ;;  %v4209_v18 = vrot.slane %v4207_v26, 4  ;;  %v5869_v30 = vld [vmem:[#allocation2 + $0x48] sm:$0xf] }
 0x2cb   : > { %v5731_v32 = vrot.slane %v5276_v7, 7  ;;  %v3837_v63 = vor.u32 %v3836_v9, %v3832_v33  ;;  %v4686_v62 = vshrl.u32 %v4035_v24, 16  ;;  %v4689_v34 = vshll.u32 %v4035_v24, 16 }
 0x2cc   : > { %v8757_v6 = vcombine.low %v5276_v7, %v5277_v54  ;;  %v5733_v40 = vrot.slane %v5277_v54, 7  ;;  %v3833_v58 = vsel %vm9562_vm11, %v3828_v47, %v3832_v33  ;;  %v4211_v1 = vsel %vm9650_vm14, %v4209_v18, %v4210_v21  ;;  %v11927_v47 = vld [vmem:[#allocation2 + $0x4c] sm:$0xf] }
 0x2cd   : > { %v5732_v46 = vrot.slane %v5731_v32, 4  ;;  %5839 = vst.msk [vmem:[#allocation2 + $0x90] sm:$0xe] %vm882_vm7, %v5731_v32  ;;  %v3838_v42 = vrot.slane %v3837_v63, 4  ;;  %v4010_v48 = vmax.bf16 %v3833_v58, %v3430_v39  ;;  %v4688_v38 = vrot.slane %v4686_v62, 5 }
 0x2ce   : > { %9049 = vmatprep.mubr.msk.bf16.mxu0 %vm422_vm6, %v8757_v6  ;;  %v5735_v16 = vrot.slane %v5733_v40, 4  ;;  %v4691_v53 = vrot.slane %v4689_v34, 6  ;;  %v4694_v61 = vrot.slane %v3834_v52, 5  ;;  %v4695_v4 = vrot.slane %v3830_v25, 6  ;;  %v5903_v6 = vld [vmem:[#allocation2 + $0x50] sm:$0x1] }
 0x2cf   : > { %v5734_v60 = vsel %vm9424_vm8, %v5732_v46, %v5733_v40  ;;  %v3843_v15 = vsel %vm9562_vm11, %v3838_v42, %v3842_v50  ;;  %v4310_v17 = vmax.bf16 %v4208_v0, %v4010_v48  ;;  %v4700_v23 = vshrl.u32 %v4335_v29, 16 }
 0x2d0   : > { %5840 = vst.msk [vmem:[#allocation2 + $0x94] sm:$0xf] %vm701_vm1, %v5734_v60  ;;  %v4011_v39 = vmax.bf16 %v3843_v15, %v11890_v49  ;;  %v4692_v27 = vor.u32 %v4691_v53, %v4688_v38  ;;  %v4703_v35 = vshll.u32 %v4335_v29, 16  ;;  %v4696_v2 = vor.u32 %v4695_v4, %v4694_v61  ;;  %v6483_v61 = vld [vmem:[#allocation2 + $0x48] sm:$0xe] }
 0x2d1   : > { %5841 = vst.msk [vmem:[#allocation2 + $0x98] sm:$0x1] %vm717_vm2, %v5735_v16  ;;  %v8742_v52 = vrot.slane %v4895_v14, 10  ;;  %v5047_v22 = vrot.slane %v11890_v49, 6  ;;  %v5050_v24 = vrot.slane %v4335_v29, 6  ;;  %v4702_v7 = vrot.slane %v4700_v23, 5 }
 0x2d2   : > { %v4311_v45 = vmax.bf16 %v4211_v1, %v4011_v39  ;;  %v4693_v26 = vrot.slane %v4692_v27, 4  ;;  %v4705_v33 = vrot.slane %v4703_v35, 6  ;;  %v4698_v25 = vrot.slane %v4696_v2, 4 }
 0x2d3   : > { %v5048_v9 = vsel %vm9856_vm10, %v8742_v52, %v5047_v22  ;;  %v5049_v50 = vrot.slane %v5047_v22, 4  ;;  %v5182_v54 = vmax.bf16 %v13519_v20, %v13516_v5  ;;  %v5183_v18 = vmax.bf16 %v13520_v31, %v13518_v8 }
 0x2d4   : > { %v4697_v0 = vsel %vm9771_vm4, %v4693_v26, %v4696_v2  ;;  %v4706_v49 = vor.u32 %v4705_v33, %v4702_v7  ;;  %v6062_v32 = vshrl.u32 %v5869_v30, 16  ;;  %v6065_v40 = vshll.u32 %v5869_v30, 16 }
 0x2d5   : > { %v4870_v63 = vmax.bf16 %v4697_v0, %v4310_v17  ;;  %v5051_v21 = vsel %vm9856_vm10, %v5049_v50, %v5050_v24  ;;  %v5214_v62 = vmax.bf16 %v5182_v54, %v13521_v11  ;;  %v5215_v58 = vmax.bf16 %v5183_v18, %v13522_v12  ;;  %v6783_v54 = vld [vmem:[#allocation2 + $0x50] sm:$0x3] }
 0x2d6   : > { %v4707_v5 = vsel %vm9771_vm4, %v4698_v25, %v4706_v49  ;;  %v6064_v34 = vrot.slane %v6062_v32, 4  ;;  %v6071_v46 = vshll.u32 %v11927_v47, 16  ;;  %v6067_v1 = vrot.slane %v6065_v40, 5 }
 0x2d7   : > { %v4871_v42 = vmax.bf16 %v4707_v5, %v4311_v45  ;;  %v11940_v48 = vmax.bf16 %v5048_v9, %v4870_v63  ;;  %v5246_v8 = vmax.bf16 %v5214_v62, %v11898_v51  ;;  %v5247_v29 = vmax.bf16 %v5215_v58, %v11902_v57  ;;  %v7343_v63 = vld [vmem:[#allocation2 + $0x48] sm:$0xc] }
 0x2d8   : > { %v6073_v16 = vrot.slane %v6071_v46, 5  ;;  %v6075_v38 = vshrl.u32 %v11927_v47, 16  ;;  %v6081_v53 = vshll.u32 %v5903_v6, 16  ;;  %v6068_v15 = vor.u32 %v6067_v1, %v6064_v34 }
 0x2d9   : > { %v11945_v14 = vmax.bf16 %v5051_v21, %v4871_v42  ;;  %v5278_v60 = vmax.bf16 %v5246_v8, %v11940_v48  ;;  %v8786_v17 = vrot.slane %v6483_v61, 9  ;;  %v6601_v27 = vrot.slane %v11927_v47, 5 }
 0x2da   : > { %v6077_v4 = vrot.slane %v6075_v38, 4  ;;  %v6083_v39 = vrot.slane %v6081_v53, 5  ;;  %v6604_v23 = vrot.slane %v5903_v6, 5  ;;  %v6069_v52 = vrot.slane %v6068_v15, 4 }
 0x2db   : > { %v5279_v35 = vmax.bf16 %v5247_v29, %v11945_v14  ;;  %v5736_v2 = vrot.slane %v5278_v60, 7  ;;  %v6936_v22 = vshrl.u32 %v6483_v61, 16  ;;  %v6602_v45 = vsel %vm9650_vm14, %v8786_v17, %v6601_v27 }
 0x2dc   : > { %v6078_v24 = vor.u32 %v6077_v4, %v6073_v16  ;;  %v6603_v26 = vrot.slane %v6601_v27, 4  ;;  %v6939_v7 = vshll.u32 %v6483_v61, 16  ;;  %v6074_v50 = vsel %vm9562_vm11, %v6069_v52, %v6073_v16 }
 0x2dd   : > { %v8758_v33 = vcombine.low %v5278_v60, %v5279_v35  ;;  %v5737_v25 = vrot.slane %v5736_v2, 4  ;;  %v5738_v9 = vrot.slane %v5279_v35, 7  ;;  %5842 = vst.msk [vmem:[#allocation2 + $0x9c] sm:$0xe] %vm882_vm7, %v5736_v2  ;;  %v6449_v49 = vmax.bf16 %v6074_v50, %v5869_v30  ;;  %v5871_v60 = vld [vmem:[#allocation2 + $0x54] sm:$0xf] }
 0x2de   : > { %v6079_v0 = vrot.slane %v6078_v24, 4  ;;  %v6605_v18 = vsel %vm9650_vm14, %v6603_v26, %v6604_v23  ;;  %v6938_v32 = vrot.slane %v6936_v22, 5  ;;  %v6941_v6 = vrot.slane %v6939_v7, 6  ;;  %v11972_v2 = vld [vmem:[#allocation2 + $0x58] sm:$0xf] }
 0x2df   : > { %9050 = vmatmul.mubr.msk.bf16.gmra.mxu0 %vm422_vm6, %v8758_v33  ;;  %v5739_v21 = vsel %vm9424_vm8, %v5737_v25, %v5738_v9  ;;  %v5740_v62 = vrot.slane %v5738_v9, 4  ;;  %v6944_v40 = vrot.slane %v6075_v38, 5  ;;  %v6749_v58 = vmax.bf16 %v6602_v45, %v6449_v49  ;;  %v5904_v7 = vld [vmem:[#allocation2 + $0x5c] sm:$0x1] }
 0x2e0   : > { %5843 = vst.msk [vmem:[#allocation2 + $0xa0] sm:$0xf] %vm701_vm1, %v5739_v21  ;;  %v6084_v5 = vsel %vm9562_vm11, %v6079_v0, %v6083_v39  ;;  %v6945_v30 = vrot.slane %v6071_v46, 6  ;;  %v6950_v34 = vshrl.u32 %v6783_v54, 16  ;;  %v6942_v8 = vor.u32 %v6941_v6, %v6938_v32  ;;  %v6484_v32 = vld [vmem:[#allocation2 + $0x54] sm:$0xe] }
 0x2e1   : > { %5844 = vst.msk [vmem:[#allocation2 + $0xa4] sm:$0x1] %vm717_vm2, %v5740_v62  ;;  %v6450_v42 = vmax.bf16 %v6084_v5, %v11927_v47  ;;  %v6953_v1 = vshll.u32 %v6783_v54, 16  ;;  %v8806_v29 = vrot.slane %v7343_v63, 10  ;;  %v7441_v61 = vrot.slane %v11927_v47, 6 }
 0x2e2   : > { %v6946_v16 = vor.u32 %v6945_v30, %v6944_v40  ;;  %v6952_v53 = vrot.slane %v6950_v34, 5  ;;  %v7444_v38 = vrot.slane %v6783_v54, 6  ;;  %v6943_v17 = vrot.slane %v6942_v8, 4 }
 0x2e3   : > { %v6750_v15 = vmax.bf16 %v6605_v18, %v6450_v42  ;;  %v6955_v4 = vrot.slane %v6953_v1, 6  ;;  %v7621_v46 = vmax.bf16 %v11806_v55, %v11802_v43  ;;  %v7442_v27 = vsel %vm9856_vm10, %v8806_v29, %v7441_v61 }
 0x2e4   : > { %v6948_v39 = vrot.slane %v6946_v16, 4  ;;  %v7443_v23 = vrot.slane %v7441_v61, 4  ;;  %v7622_v35 = vmax.bf16 %v11812_v13, %v11804_v19  ;;  %v6947_v47 = vsel %vm9771_vm4, %v6943_v17, %v6946_v16 }
 0x2e5   : > { %v6956_v52 = vor.u32 %v6955_v4, %v6952_v53  ;;  %v7653_v22 = vmax.bf16 %v7621_v46, %v11814_v3  ;;  %v6086_v24 = vshrl.u32 %v5871_v60, 16  ;;  %v7309_v45 = vmax.bf16 %v6947_v47, %v6749_v58 }
 0x2e6   : > { %v7445_v43 = vsel %vm9856_vm10, %v7443_v23, %v7444_v38  ;;  %v7654_v26 = vmax.bf16 %v7622_v35, %v11816_v59  ;;  %v6089_v33 = vshll.u32 %v5871_v60, 16  ;;  %v6095_v50 = vshll.u32 %v11972_v2, 16  ;;  %v6784_v38 = vld [vmem:[#allocation2 + $0x5c] sm:$0x3] }
 0x2e7   : > { %v6957_v19 = vsel %vm9771_vm4, %v6948_v39, %v6956_v52  ;;  %v7685_v25 = vmax.bf16 %v7653_v22, %v11862_v36  ;;  %v6088_v9 = vrot.slane %v6086_v24, 4  ;;  %v11984_v0 = vmax.bf16 %v7442_v27, %v7309_v45  ;;  %v7344_v39 = vld [vmem:[#allocation2 + $0x54] sm:$0xc] }
 0x2e8   : > { %v7310_v54 = vmax.bf16 %v6957_v19, %v6750_v15  ;;  %v7686_v49 = vmax.bf16 %v7654_v26, %v11864_v28  ;;  %v6091_v18 = vrot.slane %v6089_v33, 5  ;;  %v6097_v63 = vrot.slane %v6095_v50, 5 }
 0x2e9   : > { %v6099_v21 = vshrl.u32 %v11972_v2, 16  ;;  %v6105_v62 = vshll.u32 %v5904_v7, 16  ;;  %v8787_v6 = vrot.slane %v6484_v32, 9  ;;  %v7717_v5 = vmax.bf16 %v7685_v25, %v11984_v0 }
 0x2ea   : > { %v11988_v40 = vmax.bf16 %v7445_v43, %v7310_v54  ;;  %v6092_v58 = vor.u32 %v6091_v18, %v6088_v9  ;;  %v6608_v30 = vrot.slane %v11972_v2, 5  ;;  %v6611_v8 = vrot.slane %v5904_v7, 5 }
 0x2eb   : > { %v6101_v34 = vrot.slane %v6099_v21, 4  ;;  %v6107_v42 = vrot.slane %v6105_v62, 5  ;;  %v6959_v1 = vshrl.u32 %v6484_v32, 16  ;;  %v6962_v4 = vshll.u32 %v6484_v32, 16 }
 0x2ec   : > { %v7718_v29 = vmax.bf16 %v7686_v49, %v11988_v40  ;;  %v6093_v16 = vrot.slane %v6092_v58, 4  ;;  %v6609_v53 = vsel %vm9650_vm14, %v8787_v6, %v6608_v30  ;;  %v6610_v61 = vrot.slane %v6608_v30, 4  ;;  %v3432_v49 = vld [vmem:[#allocation2 + $0xc0] sm:$0xf] }
 0x2ed   : > { %v6102_v15 = vor.u32 %v6101_v34, %v6097_v63  ;;  %v6961_v17 = vrot.slane %v6959_v1, 5  ;;  %v6967_v46 = vrot.slane %v6099_v21, 5  ;;  %v6968_v47 = vrot.slane %v6095_v50, 6  ;;  %v12010_v34 = vld [vmem:[#allocation2 + $0xc4] sm:$0xf] }
 0x2ee   : > { %v8822_v27 = vcombine.low %v7717_v5, %v7718_v29  ;;  %v6098_v23 = vsel %vm9562_vm11, %v6093_v16, %v6097_v63  ;;  %v6612_v35 = vsel %vm9650_vm14, %v6610_v61, %v6611_v8  ;;  %v6964_v24 = vrot.slane %v6962_v4, 6  ;;  %v3456_v29 = vld [vmem:[#allocation2 + $0xc8] sm:$0x1] }
 0x2ef   : > { %v6103_v52 = vrot.slane %v6102_v15, 4  ;;  %v6451_v22 = vmax.bf16 %v6098_v23, %v5871_v60  ;;  %v6973_v45 = vshrl.u32 %v6784_v38, 16  ;;  %v6969_v43 = vor.u32 %v6968_v47, %v6967_v46 }
 0x2f0   : > { %9067 = vmatprep.mubr.msk.bf16.mxu1 %vm422_vm6, %v8822_v27  ;;  %v6976_v26 = vshll.u32 %v6784_v38, 16  ;;  %v8807_v7 = vrot.slane %v7344_v39, 10  ;;  %v7448_v33 = vrot.slane %v11972_v2, 6  ;;  %v6965_v9 = vor.u32 %v6964_v24, %v6961_v17 }
 0x2f1   : > { %v6108_v19 = vsel %vm9562_vm11, %v6103_v52, %v6107_v42  ;;  %v6751_v25 = vmax.bf16 %v6609_v53, %v6451_v22  ;;  %v6975_v54 = vrot.slane %v6973_v45, 5  ;;  %v6971_v18 = vrot.slane %v6969_v43, 4 }
 0x2f2   : > { %v6452_v50 = vmax.bf16 %v6108_v19, %v11972_v2  ;;  %v6978_v60 = vrot.slane %v6976_v26, 6  ;;  %v7449_v32 = vsel %vm9856_vm10, %v8807_v7, %v7448_v33  ;;  %v6966_v63 = vrot.slane %v6965_v9, 4 }
 0x2f3   : > { %v7450_v21 = vrot.slane %v7448_v33, 4  ;;  %v7451_v62 = vrot.slane %v6784_v38, 6  ;;  %v7623_v6 = vmax.bf16 %v11814_v3, %v11806_v55  ;;  %v7624_v30 = vmax.bf16 %v11816_v59, %v11812_v13 }
 0x2f4   : > { %v6752_v5 = vmax.bf16 %v6612_v35, %v6452_v50  ;;  %v6979_v58 = vor.u32 %v6978_v60, %v6975_v54  ;;  %v3845_v42 = vshrl.u32 %v3432_v49, 16  ;;  %v6970_v2 = vsel %vm9771_vm4, %v6966_v63, %v6969_v43  ;;  %v4036_v35 = vld [vmem:[#allocation2 + $0xc0] sm:$0xe]  ;;  %v4336_v60 = vld [vmem:[#allocation2 + $0xc8] sm:$0x3] }
 0x2f5   : > { %v7452_v8 = vsel %vm9856_vm10, %v7450_v21, %v7451_v62  ;;  %v7655_v1 = vmax.bf16 %v7623_v6, %v11862_v36  ;;  %v3848_v16 = vshll.u32 %v3432_v49, 16  ;;  %v7311_v53 = vmax.bf16 %v6970_v2, %v6751_v25  ;;  %v4896_v63 = vld [vmem:[#allocation2 + $0xc0] sm:$0xc] }
 0x2f6   : > { %v6980_v55 = vsel %vm9771_vm4, %v6971_v18, %v6979_v58  ;;  %v7656_v61 = vmax.bf16 %v7624_v30, %v11864_v28  ;;  %v3847_v13 = vrot.slane %v3845_v42, 4  ;;  %v3854_v4 = vshll.u32 %v12010_v34, 16 }
 0x2f7   : > { %v7312_v38 = vmax.bf16 %v6980_v55, %v6752_v5  ;;  %v7687_v15 = vmax.bf16 %v7655_v1, %v11984_v0  ;;  %v3850_v17 = vrot.slane %v3848_v16, 5  ;;  %v12022_v46 = vmax.bf16 %v7449_v32, %v7311_v53 }
 0x2f8   : > { %v7688_v39 = vmax.bf16 %v7656_v61, %v11988_v40  ;;  %v3858_v27 = vshrl.u32 %v12010_v34, 16  ;;  %v3864_v23 = vshll.u32 %v3456_v29, 16  ;;  %v3856_v22 = vrot.slane %v3854_v4, 5 }
 0x2f9   : > { %v12026_v47 = vmax.bf16 %v7452_v8, %v7312_v38  ;;  %v3851_v52 = vor.u32 %v3850_v17, %v3847_v13  ;;  %v8723_v24 = vrot.slane %v4036_v35, 9  ;;  %v7719_v45 = vmax.bf16 %v7687_v15, %v12022_v46 }
 0x2fa   : > { %v3860_v43 = vrot.slane %v3858_v27, 4  ;;  %v3866_v26 = vrot.slane %v3864_v23, 5  ;;  %v4214_v7 = vrot.slane %v12010_v34, 5  ;;  %v4217_v25 = vrot.slane %v3456_v29, 5 }
 0x2fb   : > { %v7720_v33 = vmax.bf16 %v7688_v39, %v12026_v47  ;;  %v3852_v19 = vrot.slane %v3851_v52, 4  ;;  %v4709_v9 = vshrl.u32 %v4036_v35, 16  ;;  %v4712_v32 = vshll.u32 %v4036_v35, 16  ;;  %v3434_v39 = vld [vmem:[#allocation2 + $0xcc] sm:$0xf] }
 0x2fc   : > { %v3861_v54 = vor.u32 %v3860_v43, %v3856_v22  ;;  %v4215_v50 = vsel %vm9650_vm14, %v8723_v24, %v4214_v7  ;;  %v4216_v18 = vrot.slane %v4214_v7, 4  ;;  %v4717_v5 = vrot.slane %v3858_v27, 5  ;;  %v12046_v43 = vld [vmem:[#allocation2 + $0xd0] sm:$0xf] }
 0x2fd   : > { %v8823_v21 = vcombine.low %v7719_v45, %v7720_v33  ;;  %v3857_v62 = vsel %vm9562_vm11, %v3852_v19, %v3856_v22  ;;  %v4711_v6 = vrot.slane %v4709_v9, 5  ;;  %v4714_v2 = vrot.slane %v4712_v32, 6 }
 0x2fe   : > { %v3862_v58 = vrot.slane %v3861_v54, 4  ;;  %v4012_v30 = vmax.bf16 %v3857_v62, %v3432_v49  ;;  %v4218_v42 = vsel %vm9650_vm14, %v4216_v18, %v4217_v25  ;;  %v4718_v8 = vrot.slane %v3854_v4, 6  ;;  %v3457_v54 = vld [vmem:[#allocation2 + $0xd4] sm:$0x1] }
 0x2ff   : > { %9068 = vmatmul.mubr.msk.bf16.gmra.mxu1 %vm422_vm6, %v8823_v21  ;;  %v4723_v1 = vshrl.u32 %v4336_v60, 16  ;;  %v4726_v29 = vshll.u32 %v4336_v60, 16  ;;  %v8743_v16 = vrot.slane %v4896_v63, 10  ;;  %v4715_v61 = vor.u32 %v4714_v2, %v4711_v6 }
 0x300   : > { %v3867_v55 = vsel %vm9562_vm11, %v3862_v58, %v3866_v26  ;;  %v4312_v53 = vmax.bf16 %v4215_v50, %v4012_v30  ;;  %v5054_v13 = vrot.slane %v12010_v34, 6  ;;  %v4719_v49 = vor.u32 %v4718_v8, %v4717_v5 }
 0x301   : > { %v4013_v38 = vmax.bf16 %v3867_v55, %v12010_v34  ;;  %v4725_v15 = vrot.slane %v4723_v1, 5  ;;  %v4728_v17 = vrot.slane %v4726_v29, 6  ;;  %v4716_v27 = vrot.slane %v4715_v61, 4 }
 0x302   : > { %v5055_v4 = vsel %vm9856_vm10, %v8743_v16, %v5054_v13  ;;  %v5056_v23 = vrot.slane %v5054_v13, 4  ;;  %v5057_v35 = vrot.slane %v4336_v60, 6  ;;  %v4721_v22 = vrot.slane %v4719_v49, 4 }
 0x303   : > { %v4313_v52 = vmax.bf16 %v4218_v42, %v4013_v38  ;;  %v4729_v24 = vor.u32 %v4728_v17, %v4725_v15  ;;  %v5184_v45 = vmax.bf16 %v13521_v11, %v13519_v20  ;;  %v4720_v34 = vsel %vm9771_vm4, %v4716_v27, %v4719_v49  ;;  %v4037_v42 = vld [vmem:[#allocation2 + $0xcc] sm:$0xe] }
 0x304   : > { %v5058_v26 = vsel %vm9856_vm10, %v5056_v23, %v5057_v35  ;;  %v5185_v7 = vmax.bf16 %v13522_v12, %v13520_v31  ;;  %v3869_v33 = vshrl.u32 %v3434_v39, 16  ;;  %v4872_v25 = vmax.bf16 %v4720_v34, %v4312_v53 }
 0x305   : > { %v4730_v19 = vsel %vm9771_vm4, %v4721_v22, %v4729_v24  ;;  %v5216_v9 = vmax.bf16 %v5184_v45, %v11898_v51  ;;  %v3872_v20 = vshll.u32 %v3434_v39, 16  ;;  %v3878_v32 = vshll.u32 %v12046_v43, 16  ;;  %v4337_v24 = vld [vmem:[#allocation2 + $0xd4] sm:$0x3] }
 0x306   : > { %v4873_v50 = vmax.bf16 %v4730_v19, %v4313_v52  ;;  %v5217_v18 = vmax.bf16 %v5185_v7, %v11902_v57  ;;  %v3871_v60 = vrot.slane %v3869_v33, 4  ;;  %v12059_v63 = vmax.bf16 %v5055_v4, %v4872_v25  ;;  %v4897_v19 = vld [vmem:[#allocation2 + $0xcc] sm:$0xc] }
 0x307   : > { %v5248_v21 = vmax.bf16 %v5216_v9, %v11940_v48  ;;  %v3874_v31 = vrot.slane %v3872_v20, 5  ;;  %v3882_v62 = vshrl.u32 %v12046_v43, 16  ;;  %v3880_v58 = vrot.slane %v3878_v32, 5 }
 0x308   : > { %v12063_v6 = vmax.bf16 %v5058_v26, %v4873_v50  ;;  %v5249_v5 = vmax.bf16 %v5217_v18, %v11945_v14  ;;  %v3888_v30 = vshll.u32 %v3457_v54, 16  ;;  %v8724_v29 = vrot.slane %v4037_v42, 9 }
 0x309   : > { %v5280_v2 = vmax.bf16 %v5248_v21, %v12059_v63  ;;  %v3875_v8 = vor.u32 %v3874_v31, %v3871_v60  ;;  %v3884_v1 = vrot.slane %v3882_v62, 4  ;;  %v4221_v53 = vrot.slane %v12046_v43, 5 }
 0x30a   : > { %v5281_v16 = vmax.bf16 %v5249_v5, %v12063_v6  ;;  %v3890_v55 = vrot.slane %v3888_v30, 5  ;;  %v4224_v61 = vrot.slane %v3457_v54, 5  ;;  %v4732_v15 = vshrl.u32 %v4037_v42, 16  ;;  %v5873_v30 = vld [vmem:[#allocation2 + $0x60] sm:$0xf] }
 0x30b   : > { %v5741_v13 = vrot.slane %v5280_v2, 7  ;;  %v3876_v38 = vrot.slane %v3875_v8, 4  ;;  %v3885_v49 = vor.u32 %v3884_v1, %v3880_v58  ;;  %v4222_v4 = vsel %vm9650_vm14, %v8724_v29, %v4221_v53 }
 0x30c   : > { %v8759_v17 = vcombine.low %v5280_v2, %v5281_v16  ;;  %v5743_v27 = vrot.slane %v5281_v16, 7  ;;  %v4223_v23 = vrot.slane %v4221_v53, 4  ;;  %v4734_v45 = vrot.slane %v4732_v15, 5 }
 0x30d   : > { %v5742_v35 = vrot.slane %v5741_v13, 4  ;;  %5845 = vst.msk [vmem:[#allocation2 + $0xa8] sm:$0xe] %vm882_vm7, %v5741_v13  ;;  %v3881_v52 = vsel %vm9562_vm11, %v3876_v38, %v3880_v58  ;;  %v3886_v22 = vrot.slane %v3885_v49, 4  ;;  %v4735_v33 = vshll.u32 %v4037_v42, 16 }
 0x30e   : > { %9053 = vmatprep.mubr.msk.bf16.mxu0 %vm422_vm6, %v8759_v17  ;;  %v5745_v34 = vrot.slane %v5743_v27, 4  ;;  %v4014_v26 = vmax.bf16 %v3881_v52, %v3434_v39  ;;  %v4225_v7 = vsel %vm9650_vm14, %v4223_v23, %v4224_v61  ;;  %v4740_v54 = vrot.slane %v3882_v62, 5 }
 0x30f   : > { %v5744_v25 = vsel %vm9424_vm8, %v5742_v35, %v5743_v27  ;;  %v3891_v9 = vsel %vm9562_vm11, %v3886_v22, %v3890_v55  ;;  %v4741_v20 = vrot.slane %v3878_v32, 6  ;;  %v4737_v18 = vrot.slane %v4735_v33, 6  ;;  %v12085_v32 = vld [vmem:[#allocation2 + $0x64] sm:$0xf]  ;;  %v5905_v35 = vld [vmem:[#allocation2 + $0x68] sm:$0x1] }
 0x310   : > { %5846 = vst.msk [vmem:[#allocation2 + $0xac] sm:$0xf] %vm701_vm1, %v5744_v25  ;;  %v4015_v50 = vmax.bf16 %v3891_v9, %v12046_v43  ;;  %v4314_v39 = vmax.bf16 %v4222_v4, %v4014_v26  ;;  %v4746_v60 = vshrl.u32 %v4337_v24, 16  ;;  %v4749_v31 = vshll.u32 %v4337_v24, 16  ;;  %v6485_v33 = vld [vmem:[#allocation2 + $0x60] sm:$0xe] }
 0x311   : > { %5847 = vst.msk [vmem:[#allocation2 + $0xb0] sm:$0x1] %vm717_vm2, %v5745_v34  ;;  %v4742_v21 = vor.u32 %v4741_v20, %v4740_v54  ;;  %v8744_v5 = vrot.slane %v4897_v19, 10  ;;  %v5061_v58 = vrot.slane %v12046_v43, 6  ;;  %v4738_v2 = vor.u32 %v4737_v18, %v4734_v45 }
 0x312   : > { %v4315_v42 = vmax.bf16 %v4225_v7, %v4015_v50  ;;  %v4748_v8 = vrot.slane %v4746_v60, 5  ;;  %v5064_v62 = vrot.slane %v4337_v24, 6  ;;  %v4751_v29 = vrot.slane %v4749_v31, 6 }
 0x313   : > { %v4744_v1 = vrot.slane %v4742_v21, 4  ;;  %v5062_v16 = vsel %vm9856_vm10, %v8744_v5, %v5061_v58  ;;  %v5063_v55 = vrot.slane %v5061_v58, 4  ;;  %v4739_v53 = vrot.slane %v4738_v2, 4 }
 0x314   : > { %v5186_v61 = vmax.bf16 %v11898_v51, %v13521_v11  ;;  %v5187_v43 = vmax.bf16 %v11902_v57, %v13522_v12  ;;  %v6110_v13 = vshrl.u32 %v5873_v30, 16  ;;  %v4752_v38 = vor.u32 %v4751_v29, %v4748_v8 }
 0x315   : > { %v5065_v49 = vsel %vm9856_vm10, %v5063_v55, %v5064_v62  ;;  %v6113_v15 = vshll.u32 %v5873_v30, 16  ;;  %v6119_v17 = vshll.u32 %v12085_v32, 16  ;;  %v4743_v27 = vsel %vm9771_vm4, %v4739_v53, %v4742_v21 }
 0x316   : > { %v5218_v4 = vmax.bf16 %v5186_v61, %v11940_v48  ;;  %v5219_v23 = vmax.bf16 %v5187_v43, %v11945_v14  ;;  %v6112_v11 = vrot.slane %v6110_v13, 4  ;;  %v4753_v12 = vsel %vm9771_vm4, %v4744_v1, %v4752_v38  ;;  %v6785_v13 = vld [vmem:[#allocation2 + $0x68] sm:$0x3] }
 0x317   : > { %v4874_v52 = vmax.bf16 %v4743_v27, %v4314_v39  ;;  %v6115_v22 = vrot.slane %v6113_v15, 5  ;;  %v6121_v24 = vrot.slane %v6119_v17, 5  ;;  %v4875_v45 = vmax.bf16 %v4753_v12, %v4315_v42 }
 0x318   : > { %v5250_v34 = vmax.bf16 %v5218_v4, %v12059_v63  ;;  %v5251_v26 = vmax.bf16 %v5219_v23, %v12063_v6  ;;  %v6123_v7 = vshrl.u32 %v12085_v32, 16  ;;  %v6129_v9 = vshll.u32 %v5905_v35, 16  ;;  %v7345_v4 = vld [vmem:[#allocation2 + $0x60] sm:$0xc] }
 0x319   : > { %v12105_v19 = vmax.bf16 %v5062_v16, %v4874_v52  ;;  %v6116_v25 = vor.u32 %v6115_v22, %v6112_v11  ;;  %v8788_v54 = vrot.slane %v6485_v33, 9  ;;  %v12107_v20 = vmax.bf16 %v5065_v49, %v4875_v45 }
 0x31a   : > { %v6125_v50 = vrot.slane %v6123_v7, 4  ;;  %v6615_v39 = vrot.slane %v12085_v32, 5  ;;  %v6618_v18 = vrot.slane %v5905_v35, 5  ;;  %v6131_v31 = vrot.slane %v6129_v9, 5 }
 0x31b   : > { %v5282_v60 = vmax.bf16 %v5250_v34, %v12105_v19  ;;  %v6117_v21 = vrot.slane %v6116_v25, 4  ;;  %v6982_v5 = vshrl.u32 %v6485_v33, 16  ;;  %v5283_v58 = vmax.bf16 %v5251_v26, %v12107_v20 }
 0x31c   : > { %v6126_v42 = vor.u32 %v6125_v50, %v6121_v24  ;;  %v6616_v2 = vsel %vm9650_vm14, %v8788_v54, %v6615_v39  ;;  %v6617_v8 = vrot.slane %v6615_v39, 4  ;;  %v6985_v16 = vshll.u32 %v6485_v33, 16  ;;  %v5875_v33 = vld [vmem:[#allocation2 + $0x6c] sm:$0xf] }
 0x31d   : > { %v5746_v62 = vrot.slane %v5282_v60, 7  ;;  %v6122_v1 = vsel %vm9562_vm11, %v6117_v21, %v6121_v24  ;;  %v6984_v29 = vrot.slane %v6982_v5, 5  ;;  %v8760_v55 = vcombine.low %v5282_v60, %v5283_v58  ;;  %v12130_v21 = vld [vmem:[#allocation2 + $0x70] sm:$0xf] }
 0x31e   : > { %v5748_v53 = vrot.slane %v5283_v58, 7  ;;  %v6127_v61 = vrot.slane %v6126_v42, 4  ;;  %v6453_v43 = vmax.bf16 %v6122_v1, %v5873_v30  ;;  %v6619_v49 = vsel %vm9650_vm14, %v6617_v8, %v6618_v18 }
 0x31f   : > { %v5747_v38 = vrot.slane %v5746_v62, 4  ;;  %5848 = vst.msk [vmem:[#allocation2 + $0xb4] sm:$0xe] %vm882_vm7, %v5746_v62  ;;  %v6987_v15 = vrot.slane %v6985_v16, 6  ;;  %v6990_v27 = vrot.slane %v6123_v7, 5  ;;  %9054 = vmatmul.mubr.msk.bf16.gmra.mxu0 %vm422_vm6, %v8760_v55  ;;  %v6991_v12 = vrot.slane %v6119_v17, 6 }
 0x320   : > { %v5750_v23 = vrot.slane %v5748_v53, 4  ;;  %v6132_v35 = vsel %vm9562_vm11, %v6127_v61, %v6131_v31  ;;  %v6753_v11 = vmax.bf16 %v6616_v2, %v6453_v43  ;;  %v6996_v24 = vshrl.u32 %v6785_v13, 16  ;;  %v5906_v16 = vld [vmem:[#allocation2 + $0x74] sm:$0x1] }
 0x321   : > { %v5749_v30 = vsel %vm9424_vm8, %v5747_v38, %v5748_v53  ;;  %v6454_v52 = vmax.bf16 %v6132_v35, %v12085_v32  ;;  %v6988_v22 = vor.u32 %v6987_v15, %v6984_v29  ;;  %v6992_v45 = vor.u32 %v6991_v12, %v6990_v27  ;;  %v6486_v27 = vld [vmem:[#allocation2 + $0x6c] sm:$0xe] }
 0x322   : > { %5849 = vst.msk [vmem:[#allocation2 + $0xb8] sm:$0xf] %vm701_vm1, %v5749_v30  ;;  %v6999_v34 = vshll.u32 %v6785_v13, 16  ;;  %v8808_v26 = vrot.slane %v7345_v4, 10  ;;  %v7455_v7 = vrot.slane %v12085_v32, 6  ;;  %v6998_v17 = vrot.slane %v6996_v24, 5 }
 0x323   : > { %5850 = vst.msk [vmem:[#allocation2 + $0xbc] sm:$0x1] %vm717_vm2, %v5750_v23  ;;  %v6754_v25 = vmax.bf16 %v6619_v49, %v6454_v52  ;;  %v6989_v9 = vrot.slane %v6988_v22, 4  ;;  %v7458_v54 = vrot.slane %v6785_v13, 6  ;;  %v6994_v50 = vrot.slane %v6992_v45, 4 }
 0x324   : > { %v7001_v39 = vrot.slane %v6999_v34, 6  ;;  %v7456_v18 = vsel %vm9856_vm10, %v8808_v26, %v7455_v7  ;;  %v7457_v60 = vrot.slane %v7455_v7, 4  ;;  %v7625_v5 = vmax.bf16 %v11862_v36, %v11814_v3 }
 0x325   : > { %v6993_v31 = vsel %vm9771_vm4, %v6989_v9, %v6992_v45  ;;  %v7626_v32 = vmax.bf16 %v11864_v28, %v11816_v59  ;;  %v6134_v58 = vshrl.u32 %v5875_v33, 16  ;;  %v6137_v62 = vshll.u32 %v5875_v33, 16 }
 0x326   : > { %v7002_v42 = vor.u32 %v7001_v39, %v6998_v17  ;;  %v7313_v2 = vmax.bf16 %v6993_v31, %v6753_v11  ;;  %v7459_v8 = vsel %vm9856_vm10, %v7457_v60, %v7458_v54  ;;  %v7657_v1 = vmax.bf16 %v7625_v5, %v11984_v0  ;;  %v6786_v17 = vld [vmem:[#allocation2 + $0x74] sm:$0x3]  ;;  %v7346_v31 = vld [vmem:[#allocation2 + $0x6c] sm:$0xc] }
 0x327   : > { %v7658_v29 = vmax.bf16 %v7626_v32, %v11988_v40  ;;  %v6136_v55 = vrot.slane %v6134_v58, 4  ;;  %v6143_v53 = vshll.u32 %v12130_v21, 16  ;;  %v6139_v59 = vrot.slane %v6137_v62, 5 }
 0x328   : > { %v7003_v3 = vsel %vm9771_vm4, %v6994_v50, %v7002_v42  ;;  %v12145_v61 = vmax.bf16 %v7456_v18, %v7313_v2  ;;  %v6147_v43 = vshrl.u32 %v12130_v21, 16  ;;  %v7689_v38 = vmax.bf16 %v7657_v1, %v12022_v46 }
 0x329   : > { %v7314_v13 = vmax.bf16 %v7003_v3, %v6754_v25  ;;  %v7690_v49 = vmax.bf16 %v7658_v29, %v12026_v47  ;;  %v6145_v15 = vrot.slane %v6143_v53, 5  ;;  %v6140_v4 = vor.u32 %v6139_v59, %v6136_v55 }
 0x32a   : > { %v6149_v23 = vrot.slane %v6147_v43, 4  ;;  %v6153_v35 = vshll.u32 %v5906_v16, 16  ;;  %v8789_v11 = vrot.slane %v6486_v27, 9  ;;  %v7721_v30 = vmax.bf16 %v7689_v38, %v12145_v61  ;;  %v3436_v38 = vld [vmem:[#allocation2 + $0xd8] sm:$0xf] }
 0x32b   : > { %v12150_v12 = vmax.bf16 %v7459_v8, %v7314_v13  ;;  %v6622_v52 = vrot.slane %v12130_v21, 5  ;;  %v6625_v22 = vrot.slane %v5906_v16, 5  ;;  %v6141_v24 = vrot.slane %v6140_v4, 4 }
 0x32c   : > { %v6150_v45 = vor.u32 %v6149_v23, %v6145_v15  ;;  %v6155_v34 = vrot.slane %v6153_v35, 5  ;;  %v7005_v26 = vshrl.u32 %v6486_v27, 16  ;;  %v7008_v54 = vshll.u32 %v6486_v27, 16 }
 0x32d   : > { %v7722_v7 = vmax.bf16 %v7690_v49, %v12150_v12  ;;  %v6623_v25 = vsel %vm9650_vm14, %v8789_v11, %v6622_v52  ;;  %v6624_v9 = vrot.slane %v6622_v52, 4  ;;  %v6146_v50 = vsel %vm9562_vm11, %v6141_v24, %v6145_v15 }
 0x32e   : > { %v6151_v39 = vrot.slane %v6150_v45, 4  ;;  %v7007_v18 = vrot.slane %v7005_v26, 5  ;;  %v7013_v60 = vrot.slane %v6147_v43, 5  ;;  %v6455_v32 = vmax.bf16 %v6146_v50, %v5875_v33  ;;  %v3458_v26 = vld [vmem:[#allocation2 + $0xe0] sm:$0x1] }
 0x32f   : > { %v8824_v5 = vcombine.low %v7721_v30, %v7722_v7  ;;  %v6626_v58 = vsel %vm9650_vm14, %v6624_v9, %v6625_v22  ;;  %v7010_v42 = vrot.slane %v7008_v54, 6  ;;  %v7014_v8 = vrot.slane %v6143_v53, 6  ;;  %v12175_v22 = vld [vmem:[#allocation2 + $0xdc] sm:$0xf] }
 0x330   : > { %v6156_v2 = vsel %vm9562_vm11, %v6151_v39, %v6155_v34  ;;  %v7019_v62 = vshrl.u32 %v6786_v17, 16  ;;  %v7022_v1 = vshll.u32 %v6786_v17, 16  ;;  %v6755_v16 = vmax.bf16 %v6623_v25, %v6455_v32 }
 0x331   : > { %9071 = vmatprep.mubr.msk.bf16.mxu1 %vm422_vm6, %v8824_v5  ;;  %v6456_v29 = vmax.bf16 %v6156_v2, %v12130_v21  ;;  %v7011_v55 = vor.u32 %v7010_v42, %v7007_v18  ;;  %v8809_v3 = vrot.slane %v7346_v31, 10  ;;  %v7015_v59 = vor.u32 %v7014_v8, %v7013_v60  ;;  %v4038_v60 = vld [vmem:[#allocation2 + $0xd8] sm:$0xe] }
 0x332   : > { %v7021_v43 = vrot.slane %v7019_v62, 5  ;;  %v7024_v33 = vrot.slane %v7022_v1, 6  ;;  %v7462_v13 = vrot.slane %v12130_v21, 6  ;;  %v7465_v27 = vrot.slane %v6786_v17, 6 }
 0x333   : > { %v6756_v49 = vmax.bf16 %v6626_v58, %v6456_v29  ;;  %v7012_v15 = vrot.slane %v7011_v55, 4  ;;  %v7627_v53 = vmax.bf16 %v11984_v0, %v11862_v36  ;;  %v7017_v4 = vrot.slane %v7015_v59, 4 }
 0x334   : > { %v7025_v23 = vor.u32 %v7024_v33, %v7021_v43  ;;  %v7463_v35 = vsel %vm9856_vm10, %v8809_v3, %v7462_v13  ;;  %v7464_v11 = vrot.slane %v7462_v13, 4  ;;  %v7628_v52 = vmax.bf16 %v11988_v40, %v11864_v28  ;;  %v4338_v43 = vld [vmem:[#allocation2 + $0xe0] sm:$0x3] }
 0x335   : > { %v7016_v30 = vsel %vm9771_vm4, %v7012_v15, %v7015_v59  ;;  %v7659_v21 = vmax.bf16 %v7627_v53, %v12022_v46  ;;  %v3893_v24 = vshrl.u32 %v3436_v38, 16  ;;  %v3896_v7 = vshll.u32 %v3436_v38, 16 }
 0x336   : > { %v7026_v36 = vsel %vm9771_vm4, %v7017_v4, %v7025_v23  ;;  %v7315_v45 = vmax.bf16 %v7016_v30, %v6755_v16  ;;  %v7466_v34 = vsel %vm9856_vm10, %v7464_v11, %v7465_v27  ;;  %v7660_v9 = vmax.bf16 %v7628_v52, %v12026_v47  ;;  %v4898_v4 = vld [vmem:[#allocation2 + $0xd8] sm:$0xc] }
 0x337   : > { %v7316_v25 = vmax.bf16 %v7026_v36, %v6756_v49  ;;  %v7691_v17 = vmax.bf16 %v7659_v21, %v12145_v61  ;;  %v3895_v28 = vrot.slane %v3893_v24, 4  ;;  %v3898_v50 = vrot.slane %v3896_v7, 5 }
 0x338   : > { %v12183_v54 = vmax.bf16 %v7463_v35, %v7315_v45  ;;  %v3902_v39 = vshll.u32 %v12175_v22, 16  ;;  %v3906_v18 = vshrl.u32 %v12175_v22, 16  ;;  %v7692_v5 = vmax.bf16 %v7660_v9, %v12150_v12 }
 0x339   : > { %v12187_v31 = vmax.bf16 %v7466_v34, %v7316_v25  ;;  %v3912_v32 = vshll.u32 %v3458_v26, 16  ;;  %v8725_v58 = vrot.slane %v4038_v60, 9  ;;  %v3899_v2 = vor.u32 %v3898_v50, %v3895_v28 }
 0x33a   : > { %v7723_v42 = vmax.bf16 %v7691_v17, %v12183_v54  ;;  %v3904_v8 = vrot.slane %v3902_v39, 5  ;;  %v3908_v62 = vrot.slane %v3906_v18, 4  ;;  %v4228_v16 = vrot.slane %v12175_v22, 5 }
 0x33b   : > { %v7724_v1 = vmax.bf16 %v7692_v5, %v12187_v31  ;;  %v3914_v29 = vrot.slane %v3912_v32, 5  ;;  %v4231_v55 = vrot.slane %v3458_v26, 5  ;;  %v3900_v3 = vrot.slane %v3899_v2, 4  ;;  %v3438_v5 = vld [vmem:[#allocation2 + $0xe4] sm:$0xf] }
 0x33c   : > { %v3909_v59 = vor.u32 %v3908_v62, %v3904_v8  ;;  %v4755_v33 = vshrl.u32 %v4038_v60, 16  ;;  %v4758_v13 = vshll.u32 %v4038_v60, 16  ;;  %v4229_v15 = vsel %vm9650_vm14, %v8725_v58, %v4228_v16  ;;  %v12208_v2 = vld [vmem:[#allocation2 + $0xe8] sm:$0xf] }
 0x33d   : > { %v8825_v49 = vcombine.low %v7723_v42, %v7724_v1  ;;  %v4230_v27 = vrot.slane %v4228_v16, 4  ;;  %v4763_v53 = vrot.slane %v3906_v18, 5  ;;  %v3905_v23 = vsel %vm9562_vm11, %v3900_v3, %v3904_v8 }
 0x33e   : > { %v3910_v35 = vrot.slane %v3909_v59, 4  ;;  %v4757_v11 = vrot.slane %v4755_v33, 5  ;;  %v4760_v30 = vrot.slane %v4758_v13, 6  ;;  %v4016_v52 = vmax.bf16 %v3905_v23, %v3436_v38  ;;  %v3459_v59 = vld [vmem:[#allocation2 + $0xec] sm:$0x1] }
 0x33f   : > { %9072 = vmatmul.mubr.msk.bf16.gmra.mxu1 %vm422_vm6, %v8825_v49  ;;  %v4232_v21 = vsel %vm9650_vm14, %v4230_v27, %v4231_v55  ;;  %v4764_v24 = vrot.slane %v3902_v39, 6  ;;  %v4769_v36 = vshrl.u32 %v4338_v43, 16  ;;  %v4772_v26 = vshll.u32 %v4338_v43, 16 }
 0x340   : > { %v3915_v45 = vsel %vm9562_vm11, %v3910_v35, %v3914_v29  ;;  %v4761_v34 = vor.u32 %v4760_v30, %v4757_v11  ;;  %v8745_v7 = vrot.slane %v4898_v4, 10  ;;  %v4316_v9 = vmax.bf16 %v4229_v15, %v4016_v52  ;;  %v4039_v11 = vld [vmem:[#allocation2 + $0xe4] sm:$0xe] }
 0x341   : > { %v4017_v25 = vmax.bf16 %v3915_v45, %v12175_v22  ;;  %v4765_v17 = vor.u32 %v4764_v24, %v4763_v53  ;;  %v4771_v28 = vrot.slane %v4769_v36, 5  ;;  %v4774_v18 = vrot.slane %v4772_v26, 6 }
 0x342   : > { %v4762_v50 = vrot.slane %v4761_v34, 4  ;;  %v5068_v38 = vrot.slane %v12175_v22, 6  ;;  %v5071_v60 = vrot.slane %v4338_v43, 6  ;;  %v5188_v58 = vmax.bf16 %v11940_v48, %v11898_v51 }
 0x343   : > { %v4317_v32 = vmax.bf16 %v4232_v21, %v4017_v25  ;;  %v4767_v39 = vrot.slane %v4765_v17, 4  ;;  %v5189_v42 = vmax.bf16 %v11945_v14, %v11902_v57  ;;  %v4775_v62 = vor.u32 %v4774_v18, %v4771_v28 }
 0x344   : > { %v4766_v8 = vsel %vm9771_vm4, %v4762_v50, %v4765_v17  ;;  %v5069_v1 = vsel %vm9856_vm10, %v8745_v7, %v5068_v38  ;;  %v5070_v22 = vrot.slane %v5068_v38, 4  ;;  %v5220_v16 = vmax.bf16 %v5188_v58, %v12059_v63  ;;  %v4339_v58 = vld [vmem:[#allocation2 + $0xec] sm:$0x3] }
 0x345   : > { %v4876_v29 = vmax.bf16 %v4766_v8, %v4316_v9  ;;  %v5221_v55 = vmax.bf16 %v5189_v42, %v12063_v6  ;;  %v3917_v3 = vshrl.u32 %v3438_v5, 16  ;;  %v4776_v51 = vsel %vm9771_vm4, %v4767_v39, %v4775_v62 }
 0x346   : > { %v5072_v57 = vsel %vm9856_vm10, %v5070_v22, %v5071_v60  ;;  %v3920_v43 = vshll.u32 %v3438_v5, 16  ;;  %v3926_v33 = vshll.u32 %v12208_v2, 16  ;;  %v4877_v13 = vmax.bf16 %v4776_v51, %v4317_v32 }
 0x347   : > { %v12221_v49 = vmax.bf16 %v5069_v1, %v4876_v29  ;;  %v5252_v15 = vmax.bf16 %v5220_v16, %v12105_v19  ;;  %v5253_v27 = vmax.bf16 %v5221_v55, %v12107_v20  ;;  %v3919_v53 = vrot.slane %v3917_v3, 4  ;;  %v4899_v29 = vld [vmem:[#allocation2 + $0xe4] sm:$0xc] }
 0x348   : > { %v3922_v4 = vrot.slane %v3920_v43, 5  ;;  %v3928_v23 = vrot.slane %v3926_v33, 5  ;;  %v3930_v35 = vshrl.u32 %v12208_v2, 16  ;;  %v12226_v30 = vmax.bf16 %v5072_v57, %v4877_v13 }
 0x349   : > { %v5284_v52 = vmax.bf16 %v5252_v15, %v12221_v49  ;;  %v3936_v21 = vshll.u32 %v3459_v59, 16  ;;  %v8726_v24 = vrot.slane %v4039_v11, 9  ;;  %v4235_v34 = vrot.slane %v12208_v2, 5 }
 0x34a   : > { %v3923_v36 = vor.u32 %v3922_v4, %v3919_v53  ;;  %v3932_v45 = vrot.slane %v3930_v35, 4  ;;  %v4238_v26 = vrot.slane %v3459_v59, 5  ;;  %v5285_v7 = vmax.bf16 %v5253_v27, %v12226_v30 }
 0x34b   : > { %v5751_v25 = vrot.slane %v5284_v52, 7  ;;  %v3938_v9 = vrot.slane %v3936_v21, 5  ;;  %v4778_v17 = vshrl.u32 %v4039_v11, 16  ;;  %v4236_v18 = vsel %vm9650_vm14, %v8726_v24, %v4235_v34 }
 0x34c   : > { %v3924_v28 = vrot.slane %v3923_v36, 4  ;;  %v3933_v50 = vor.u32 %v3932_v45, %v3928_v23  ;;  %v4237_v38 = vrot.slane %v4235_v34, 4  ;;  %v8761_v60 = vcombine.low %v5284_v52, %v5285_v7  ;;  %v12249_v45 = vld [vmem:[#allocation2 + $0x7c] sm:$0xf] }
 0x34d   : > { %v5752_v32 = vrot.slane %v5751_v25, 4  ;;  %v5753_v39 = vrot.slane %v5285_v7, 7  ;;  %5851 = vst.msk [vmem:[#allocation2 + $0xc0] sm:$0xe] %vm882_vm7, %v5751_v25  ;;  %v4780_v42 = vrot.slane %v4778_v17, 5  ;;  %v4781_v22 = vshll.u32 %v4039_v11, 16 }
 0x34e   : > { %v3929_v8 = vsel %vm9562_vm11, %v3924_v28, %v3928_v23  ;;  %v3934_v62 = vrot.slane %v3933_v50, 4  ;;  %v4239_v1 = vsel %vm9650_vm14, %v4237_v38, %v4238_v26  ;;  %9057 = vmatprep.mubr.msk.bf16.mxu0 %vm422_vm6, %v8761_v60  ;;  %v4786_v51 = vrot.slane %v3930_v35, 5  ;;  %v5877_v35 = vld [vmem:[#allocation2 + $0x78] sm:$0xf] }
 0x34f   : > { %v5754_v16 = vsel %vm9424_vm8, %v5752_v32, %v5753_v39  ;;  %v5755_v55 = vrot.slane %v5753_v39, 4  ;;  %v4018_v3 = vmax.bf16 %v3929_v8, %v3438_v5  ;;  %v4783_v59 = vrot.slane %v4781_v22, 6 }
 0x350   : > { %5852 = vst.msk [vmem:[#allocation2 + $0xc4] sm:$0xf] %vm701_vm1, %v5754_v16  ;;  %v3939_v57 = vsel %vm9562_vm11, %v3934_v62, %v3938_v9  ;;  %v4787_v43 = vrot.slane %v3926_v33, 6  ;;  %v4792_v13 = vshrl.u32 %v4339_v58, 16  ;;  %v4795_v53 = vshll.u32 %v4339_v58, 16 }
 0x351   : > { %5853 = vst.msk [vmem:[#allocation2 + $0xc8] sm:$0x1] %vm717_vm2, %v5755_v55  ;;  %v4019_v15 = vmax.bf16 %v3939_v57, %v12208_v2  ;;  %v4318_v27 = vmax.bf16 %v4236_v18, %v4018_v3  ;;  %v8746_v4 = vrot.slane %v4899_v29, 10  ;;  %v4784_v23 = vor.u32 %v4783_v59, %v4780_v42  ;;  %v6487_v29 = vld [vmem:[#allocation2 + $0x78] sm:$0xe] }
 0x352   : > { %v4788_v11 = vor.u32 %v4787_v43, %v4786_v51  ;;  %v4794_v52 = vrot.slane %v4792_v13, 5  ;;  %v5075_v5 = vrot.slane %v12208_v2, 6  ;;  %v4797_v24 = vrot.slane %v4795_v53, 6 }
 0x353   : > { %v4319_v21 = vmax.bf16 %v4239_v1, %v4019_v15  ;;  %v5078_v36 = vrot.slane %v4339_v58, 6  ;;  %v5190_v33 = vmax.bf16 %v12059_v63, %v11940_v48  ;;  %v4785_v34 = vrot.slane %v4784_v23, 4  ;;  %v5907_v63 = vld [vmem:[#allocation2 + $0x80] sm:$0x1] }
 0x354   : > { %v4790_v26 = vrot.slane %v4788_v11, 4  ;;  %v5076_v7 = vsel %vm9856_vm10, %v8746_v4, %v5075_v5  ;;  %v5077_v25 = vrot.slane %v5075_v5, 4  ;;  %v4798_v9 = vor.u32 %v4797_v24, %v4794_v52  ;;  %v6787_v24 = vld [vmem:[#allocation2 + $0x80] sm:$0x3] }
 0x355   : > { %v5191_v17 = vmax.bf16 %v12063_v6, %v11945_v14  ;;  %v5222_v2 = vmax.bf16 %v5190_v33, %v12105_v19  ;;  %v6158_v28 = vshrl.u32 %v5877_v35, 16  ;;  %v4789_v50 = vsel %vm9771_vm4, %v4785_v34, %v4788_v11 }
 0x356   : > { %v5079_v48 = vsel %vm9856_vm10, %v5077_v25, %v5078_v36  ;;  %v6161_v18 = vshll.u32 %v5877_v35, 16  ;;  %v6167_v38 = vshll.u32 %v12249_v45, 16  ;;  %v4799_v60 = vsel %vm9771_vm4, %v4790_v26, %v4798_v9 }
 0x357   : > { %v4878_v32 = vmax.bf16 %v4789_v50, %v4318_v27  ;;  %v5223_v39 = vmax.bf16 %v5191_v17, %v12107_v20  ;;  %v5254_v14 = vmax.bf16 %v5222_v2, %v12221_v49  ;;  %v4879_v6 = vmax.bf16 %v4799_v60, %v4319_v21  ;;  %v7347_v2 = vld [vmem:[#allocation2 + $0x78] sm:$0xc] }
 0x358   : > { %v6160_v19 = vrot.slane %v6158_v28, 4  ;;  %v6163_v58 = vrot.slane %v6161_v18, 5  ;;  %v6169_v42 = vrot.slane %v6167_v38, 5  ;;  %v6171_v1 = vshrl.u32 %v12249_v45, 16 }
 0x359   : > { %v5158_v8 = vmax.bf16 %v5076_v7, %v4878_v32  ;;  %v5255_v62 = vmax.bf16 %v5223_v39, %v12226_v30  ;;  %v6177_v22 = vshll.u32 %v5907_v63, 16  ;;  %v5159_v16 = vmax.bf16 %v5079_v48, %v4879_v6  ;;  %v5879_v6 = vld [vmem:[#allocation2 + $0x84] sm:$0xf] }
 0x35a   : > { %v6164_v55 = vor.u32 %v6163_v58, %v6160_v19  ;;  %v8790_v3 = vrot.slane %v6487_v29, 9  ;;  %v6629_v51 = vrot.slane %v12249_v45, 5  ;;  %v6173_v20 = vrot.slane %v6171_v1, 4 }
 0x35b   : > { %v5286_v57 = vmax.bf16 %v5254_v14, %v5158_v8  ;;  %v6179_v59 = vrot.slane %v6177_v22, 5  ;;  %v6632_v49 = vrot.slane %v5907_v63, 5  ;;  %v5287_v43 = vmax.bf16 %v5255_v62, %v5159_v16  ;;  %v12290_v16 = vld [vmem:[#allocation2 + $0x88] sm:$0xf] }
 0x35c   : > { %v6165_v13 = vrot.slane %v6164_v55, 4  ;;  %v6630_v15 = vsel %vm9650_vm14, %v8790_v3, %v6629_v51  ;;  %v6631_v27 = vrot.slane %v6629_v51, 4  ;;  %v6174_v53 = vor.u32 %v6173_v20, %v6169_v42 }
 0x35d   : > { %v5756_v30 = vrot.slane %v5286_v57, 7  ;;  %v7028_v4 = vshrl.u32 %v6487_v29, 16  ;;  %v7031_v23 = vshll.u32 %v6487_v29, 16  ;;  %v8762_v11 = vcombine.low %v5286_v57, %v5287_v43 }
 0x35e   : > { %v5758_v52 = vrot.slane %v5287_v43, 7  ;;  %v6170_v5 = vsel %vm9562_vm11, %v6165_v13, %v6169_v42  ;;  %v6633_v21 = vsel %vm9650_vm14, %v6631_v27, %v6632_v49  ;;  %v6175_v33 = vrot.slane %v6174_v53, 4 }
 0x35f   : > { %v5757_v36 = vrot.slane %v5756_v30, 4  ;;  %5854 = vst.msk [vmem:[#allocation2 + $0xcc] sm:$0xe] %vm882_vm7, %v5756_v30  ;;  %v6457_v34 = vmax.bf16 %v6170_v5, %v5877_v35  ;;  %v7030_v26 = vrot.slane %v7028_v4, 5  ;;  %9058 = vmatmul.mubr.msk.bf16.gmra.mxu0 %vm422_vm6, %v8762_v11  ;;  %v7033_v25 = vrot.slane %v7031_v23, 6 }
 0x360   : > { %v5760_v7 = vrot.slane %v5758_v52, 4  ;;  %v7036_v9 = vrot.slane %v6171_v1, 5  ;;  %v7037_v17 = vrot.slane %v6167_v38, 6  ;;  %v6180_v50 = vsel %vm9562_vm11, %v6175_v33, %v6179_v59 }
 0x361   : > { %v5759_v28 = vsel %vm9424_vm8, %v5757_v36, %v5758_v52  ;;  %v6757_v48 = vmax.bf16 %v6630_v15, %v6457_v34  ;;  %v7042_v63 = vshrl.u32 %v6787_v24, 16  ;;  %v6458_v35 = vmax.bf16 %v6180_v50, %v12249_v45  ;;  %v6788_v50 = vld [vmem:[#allocation2 + $0x8c] sm:$0x3] }
 0x362   : > { %5855 = vst.msk [vmem:[#allocation2 + $0xd0] sm:$0xf] %vm701_vm1, %v5759_v28  ;;  %v7034_v18 = vor.u32 %v7033_v25, %v7030_v26  ;;  %v7038_v60 = vor.u32 %v7037_v17, %v7036_v9  ;;  %v7045_v32 = vshll.u32 %v6787_v24, 16  ;;  %v8810_v38 = vrot.slane %v7347_v2, 10 }
 0x363   : > { %5856 = vst.msk [vmem:[#allocation2 + $0xd4] sm:$0x1] %vm717_vm2, %v5760_v7  ;;  %v7044_v39 = vrot.slane %v7042_v63, 5  ;;  %v7469_v14 = vrot.slane %v12249_v45, 6  ;;  %v7472_v56 = vrot.slane %v6787_v24, 6  ;;  %v6758_v19 = vmax.bf16 %v6633_v21, %v6458_v35 }
 0x364   : > { %v7035_v58 = vrot.slane %v7034_v18, 4  ;;  %v7040_v42 = vrot.slane %v7038_v60, 4  ;;  %v7047_v8 = vrot.slane %v7045_v32, 6  ;;  %v7629_v22 = vmax.bf16 %v12022_v46, %v11984_v0  ;;  %v5908_v0 = vld [vmem:[#allocation2 + $0x8c] sm:$0x1] }
 0x365   : > { %v7470_v62 = vsel %vm9856_vm10, %v8810_v38, %v7469_v14  ;;  %v7471_v1 = vrot.slane %v7469_v14, 4  ;;  %v7630_v29 = vmax.bf16 %v12026_v47, %v11988_v40  ;;  %v6182_v3 = vshrl.u32 %v5879_v6, 16  ;;  %v6488_v21 = vld [vmem:[#allocation2 + $0x84] sm:$0xe] }
 0x366   : > { %v7039_v45 = vsel %vm9771_vm4, %v7035_v58, %v7038_v60  ;;  %v7048_v55 = vor.u32 %v7047_v8, %v7044_v39  ;;  %v6185_v51 = vshll.u32 %v5879_v6, 16  ;;  %v7661_v59 = vmax.bf16 %v7629_v22, %v12145_v61  ;;  %v7348_v32 = vld [vmem:[#allocation2 + $0x84] sm:$0xc] }
 0x367   : > { %v7317_v57 = vmax.bf16 %v7039_v45, %v6757_v48  ;;  %v7473_v20 = vsel %vm9856_vm10, %v7471_v1, %v7472_v56  ;;  %v7662_v49 = vmax.bf16 %v7630_v29, %v12150_v12  ;;  %v6184_v43 = vrot.slane %v6182_v3, 4 }
 0x368   : > { %v7049_v40 = vsel %vm9771_vm4, %v7040_v42, %v7048_v55  ;;  %v6187_v13 = vrot.slane %v6185_v51, 5  ;;  %v6191_v15 = vshll.u32 %v12290_v16, 16  ;;  %v7693_v53 = vmax.bf16 %v7661_v59, %v12183_v54  ;;  %v5881_v51 = vld [vmem:[#allocation2 + $0x90] sm:$0xf] }
 0x369   : > { %v7318_v27 = vmax.bf16 %v7049_v40, %v6758_v19  ;;  %v12301_v30 = vmax.bf16 %v7470_v62, %v7317_v57  ;;  %v7694_v4 = vmax.bf16 %v7662_v49, %v12187_v31  ;;  %v6195_v52 = vshrl.u32 %v12290_v16, 16 }
 0x36a   : > { %v6188_v23 = vor.u32 %v6187_v13, %v6184_v43  ;;  %v6193_v11 = vrot.slane %v6191_v15, 5  ;;  %v6201_v5 = vshll.u32 %v5908_v0, 16  ;;  %v8791_v33 = vrot.slane %v6488_v21, 9 }
 0x36b   : > { %v12306_v24 = vmax.bf16 %v7473_v20, %v7318_v27  ;;  %v7725_v36 = vmax.bf16 %v7693_v53, %v12301_v30  ;;  %v6636_v34 = vrot.slane %v12290_v16, 5  ;;  %v6197_v7 = vrot.slane %v6195_v52, 4 }
 0x36c   : > { %v6189_v26 = vrot.slane %v6188_v23, 4  ;;  %v6203_v25 = vrot.slane %v6201_v5, 5  ;;  %v6639_v9 = vrot.slane %v5908_v0, 5  ;;  %v7051_v48 = vshrl.u32 %v6488_v21, 16  ;;  %v5909_v5 = vld [vmem:[#allocation2 + $0x98] sm:$0x1] }
 0x36d   : > { %v7726_v17 = vmax.bf16 %v7694_v4, %v12306_v24  ;;  %v6637_v2 = vsel %vm9650_vm14, %v8791_v33, %v6636_v34  ;;  %v6638_v28 = vrot.slane %v6636_v34, 4  ;;  %v6198_v35 = vor.u32 %v6197_v7, %v6193_v11  ;;  %v12328_v4 = vld [vmem:[#allocation2 + $0x94] sm:$0xf] }
 0x36e   : > { %v6194_v63 = vsel %vm9562_vm11, %v6189_v26, %v6193_v11  ;;  %v7054_v18 = vshll.u32 %v6488_v21, 16  ;;  %v7059_v60 = vrot.slane %v6195_v52, 5  ;;  %v7053_v56 = vrot.slane %v7051_v48, 5 }
 0x36f   : > { %v8826_v39 = vcombine.low %v7725_v36, %v7726_v17  ;;  %v6459_v38 = vmax.bf16 %v6194_v63, %v5879_v6  ;;  %v6640_v14 = vsel %vm9650_vm14, %v6638_v28, %v6639_v9  ;;  %v6199_v19 = vrot.slane %v6198_v35, 4 }
 0x370   : > { %v7056_v58 = vrot.slane %v7054_v18, 6  ;;  %v7060_v42 = vrot.slane %v6191_v15, 6  ;;  %v7065_v8 = vshrl.u32 %v6788_v50, 16  ;;  %v7068_v1 = vshll.u32 %v6788_v50, 16 }
 0x371   : > { %9075 = vmatprep.mubr.msk.bf16.mxu1 %vm422_vm6, %v8826_v39  ;;  %v6759_v62 = vmax.bf16 %v6637_v2, %v6459_v38  ;;  %v8811_v22 = vrot.slane %v7348_v32, 10  ;;  %v7476_v29 = vrot.slane %v12290_v16, 6  ;;  %v6204_v45 = vsel %vm9562_vm11, %v6199_v19, %v6203_v25 }
 0x372   : > { %v7057_v55 = vor.u32 %v7056_v58, %v7053_v56  ;;  %v7061_v6 = vor.u32 %v7060_v42, %v7059_v60  ;;  %v7067_v3 = vrot.slane %v7065_v8, 5  ;;  %v6460_v57 = vmax.bf16 %v6204_v45, %v12290_v16  ;;  %v12349_v42 = vpop.f32.mrf.mxu0  ;;  %v7349_v45 = vld [vmem:[#allocation2 + $0x90] sm:$0xc] }
 0x373   : > { %v7070_v20 = vrot.slane %v7068_v1, 6  ;;  %v7477_v59 = vsel %vm9856_vm10, %v8811_v22, %v7476_v29  ;;  %v7478_v49 = vrot.slane %v7476_v29, 4  ;;  %v7479_v43 = vrot.slane %v6788_v50, 6  ;;  %v6489_v50 = vld [vmem:[#allocation2 + $0x90] sm:$0xe] }
 0x374   : > { %v7058_v0 = vrot.slane %v7057_v55, 4  ;;  %v7063_v40 = vrot.slane %v7061_v6, 4  ;;  %v7631_v13 = vmax.bf16 %v12145_v61, %v12022_v46  ;;  %v6760_v15 = vmax.bf16 %v6640_v14, %v6460_v57  ;;  %v6789_v22 = vld [vmem:[#allocation2 + $0x98] sm:$0x3] }
 0x375   : > { %v7071_v27 = vor.u32 %v7070_v20, %v7067_v3  ;;  %v7632_v53 = vmax.bf16 %v12150_v12, %v12026_v47  ;;  %v6206_v23 = vshrl.u32 %v5881_v51, 16  ;;  %v7480_v11 = vsel %vm9856_vm10, %v7478_v49, %v7479_v43  ;;  %v12355_v20 = vpop.f32.mrf.mxu0 }
 0x376   : > { %v7062_v16 = vsel %vm9771_vm4, %v7058_v0, %v7061_v6  ;;  %v7663_v52 = vmax.bf16 %v7631_v13, %v12183_v54  ;;  %v6209_v21 = vshll.u32 %v5881_v51, 16  ;;  %v6215_v25 = vshll.u32 %v12328_v4, 16 }
 0x377   : > { %v7072_v46 = vsel %vm9771_vm4, %v7063_v40, %v7071_v27  ;;  %v7319_v36 = vmax.bf16 %v7062_v16, %v6759_v62  ;;  %v7664_v33 = vmax.bf16 %v7632_v53, %v12187_v31  ;;  %v6208_v47 = vrot.slane %v6206_v23, 4  ;;  %v12360_v53 = vpop.f32.mrf.mxu0 }
 0x378   : > { %v7320_v34 = vmax.bf16 %v7072_v46, %v6760_v15  ;;  %v7695_v26 = vmax.bf16 %v7663_v52, %v12301_v30  ;;  %v6211_v7 = vrot.slane %v6209_v21, 5  ;;  %v6219_v2 = vshrl.u32 %v12328_v4, 16 }
 0x379   : > { %v12340_v9 = vmax.bf16 %v7477_v59, %v7319_v36  ;;  %v7696_v17 = vmax.bf16 %v7664_v33, %v12306_v24  ;;  %v6225_v28 = vshll.u32 %v5909_v5, 16  ;;  %v6217_v35 = vrot.slane %v6215_v25, 5  ;;  %v12366_v36 = vld [vmem:[#allocation2 + $0x9c] sm:$0xf]  ;;  %v12368_v33 = vpop.f32.mrf.mxu0 }
 0x37a   : > { %v12344_v48 = vmax.bf16 %v7480_v11, %v7320_v34  ;;  %v6212_v63 = vor.u32 %v6211_v7, %v6208_v47  ;;  %v8792_v18 = vrot.slane %v6489_v50, 9  ;;  %v6221_v32 = vrot.slane %v6219_v2, 4 }
 0x37b   : > { %v7727_v60 = vmax.bf16 %v7695_v26, %v12340_v9  ;;  %v6227_v39 = vrot.slane %v6225_v28, 5  ;;  %v6643_v38 = vrot.slane %v12328_v4, 5  ;;  %v6646_v19 = vrot.slane %v5909_v5, 5 }
 0x37c   : > { %v7728_v14 = vmax.bf16 %v7696_v17, %v12344_v48  ;;  %v6213_v56 = vrot.slane %v6212_v63, 4  ;;  %v7074_v58 = vshrl.u32 %v6489_v50, 16  ;;  %v6222_v8 = vor.u32 %v6221_v32, %v6217_v35  ;;  %v12378_v63 = vpop.f32.mrf.mxu1 }
 0x37d   : > { %v6644_v62 = vsel %vm9650_vm14, %v8792_v18, %v6643_v38  ;;  %v6645_v1 = vrot.slane %v6643_v38, 4  ;;  %v7077_v29 = vshll.u32 %v6489_v50, 16  ;;  %v7082_v57 = vrot.slane %v6219_v2, 5  ;;  %v12376_v50 = vpop.f32.mrf.mxu0  ;;  %13524 = vst [vmem:[#allocation12_spill] sm:$0xff] %v12378_v63 }
 0x37e   : > { %v8827_v55 = vcombine.low %v7727_v60, %v7728_v14  ;;  %v6218_v6 = vsel %vm9562_vm11, %v6213_v56, %v6217_v35  ;;  %v7076_v3 = vrot.slane %v7074_v58, 5  ;;  %v6223_v59 = vrot.slane %v6222_v8, 4  ;;  %v5910_v14 = vld [vmem:[#allocation2 + $0xa4] sm:$0x1] }
 0x37f   : > { %v6461_v49 = vmax.bf16 %v6218_v6, %v5881_v51  ;;  %v6647_v0 = vsel %vm9650_vm14, %v6645_v1, %v6646_v19  ;;  %v7079_v40 = vrot.slane %v7077_v29, 6  ;;  %v7083_v43 = vrot.slane %v6215_v25, 6  ;;  %v12391_v19 = vpop.f32.mrf.mxu0 }
 0x380   : > { %9076 = vmatmul.mubr.msk.bf16.gmra.mxu1 %vm422_vm6, %v8827_v55  ;;  %v7088_v13 = vshrl.u32 %v6789_v22, 16  ;;  %v7091_v15 = vshll.u32 %v6789_v22, 16  ;;  %v8812_v27 = vrot.slane %v7349_v45, 10  ;;  %v6228_v23 = vsel %vm9562_vm11, %v6223_v59, %v6227_v39 }
 0x381   : > { %v6761_v16 = vmax.bf16 %v6644_v62, %v6461_v49  ;;  %v7080_v11 = vor.u32 %v7079_v40, %v7076_v3  ;;  %v7483_v52 = vrot.slane %v12328_v4, 6  ;;  %v6462_v51 = vmax.bf16 %v6228_v23, %v12328_v4  ;;  %v12374_v4 = vld [vmem:[#allocation2 + $0xa0] sm:$0xf]  ;;  %v12401_v6 = vpop.f32.mrf.mxu0 }
 0x382   : > { %v7084_v5 = vor.u32 %v7083_v43, %v7082_v57  ;;  %v7090_v21 = vrot.slane %v7088_v13, 5  ;;  %v7093_v46 = vrot.slane %v7091_v15, 6  ;;  %v7486_v7 = vrot.slane %v6789_v22, 6 }
 0x383   : > { %v7081_v47 = vrot.slane %v7080_v11, 4  ;;  %v7484_v34 = vsel %vm9856_vm10, %v8812_v27, %v7483_v52  ;;  %v7485_v26 = vrot.slane %v7483_v52, 4  ;;  %v6762_v25 = vmax.bf16 %v6647_v0, %v6462_v51  ;;  %v6490_v0 = vld [vmem:[#allocation2 + $0x9c] sm:$0xe]  ;;  %v12409_v23 = vpop.f32.mrf.mxu0 }
 0x384   : > { %v7086_v17 = vrot.slane %v7084_v5, 4  ;;  %v7094_v2 = vor.u32 %v7093_v46, %v7090_v21  ;;  %v7633_v28 = vmax.bf16 %v12183_v54, %v12145_v61  ;;  %v7634_v60 = vmax.bf16 %v12187_v31, %v12150_v12  ;;  %v12395_v12 = vpop.f32.mrf.mxu1 }
 0x385   : > { %v7085_v35 = vsel %vm9771_vm4, %v7081_v47, %v7084_v5  ;;  %v7487_v18 = vsel %vm9856_vm10, %v7485_v26, %v7486_v7  ;;  %v6230_v32 = vshrl.u32 %v12366_v36, 16  ;;  %v6233_v56 = vshll.u32 %v12366_v36, 16  ;;  %13525 = vst [vmem:[#allocation7_spill] sm:$0xff] %v12395_v12  ;;  %v6790_v47 = vld [vmem:[#allocation2 + $0xa4] sm:$0x3]  ;;  %v12415_v7 = vpop.f32.mrf.mxu0 }
 0x386   : > { %v7095_v61 = vsel %vm9771_vm4, %v7086_v17, %v7094_v2  ;;  %v7321_v39 = vmax.bf16 %v7085_v35, %v6761_v16  ;;  %v7665_v38 = vmax.bf16 %v7633_v28, %v12301_v30  ;;  %v7666_v8 = vmax.bf16 %v7634_v60, %v12306_v24  ;;  %v12406_v40 = vpop.f32.mrf.mxu1  ;;  %v7350_v35 = vld [vmem:[#allocation2 + $0x9c] sm:$0xc] }
 0x387   : > { %v7322_v58 = vmax.bf16 %v7095_v61, %v6762_v25  ;;  %v6232_v62 = vrot.slane %v6230_v32, 4  ;;  %v6239_v1 = vshll.u32 %v12374_v4, 16  ;;  %v6235_v45 = vrot.slane %v6233_v56, 5  ;;  %13526 = vst [vmem:[#allocation5_spill] sm:$0xff] %v12406_v40 }
 0x388   : > { %v12397_v22 = vmax.bf16 %v7484_v34, %v7321_v39  ;;  %v7697_v29 = vmax.bf16 %v7665_v38, %v12340_v9  ;;  %v6243_v55 = vshrl.u32 %v12374_v4, 16  ;;  %v7698_v57 = vmax.bf16 %v7666_v8, %v12344_v48  ;;  %v12413_v5 = vpop.f32.mrf.mxu1  ;;  %v12423_v38 = vpop.f32.mrf.mxu0 }
 0x389   : > { %v12403_v3 = vmax.bf16 %v7487_v18, %v7322_v58  ;;  %v6241_v59 = vrot.slane %v6239_v1, 5  ;;  %v6249_v49 = vshll.u32 %v5910_v14, 16  ;;  %v6236_v13 = vor.u32 %v6235_v45, %v6232_v62  ;;  %13527 = vst [vmem:[#allocation6_spill] sm:$0xff] %v12413_v5 }
 0x38a   : > { %v7729_v43 = vmax.bf16 %v7697_v29, %v12397_v22  ;;  %v6245_v15 = vrot.slane %v6243_v55, 4  ;;  %v8793_v27 = vrot.slane %v6490_v0, 9  ;;  %v6650_v52 = vrot.slane %v12374_v4, 5  ;;  %v12419_v18 = vpop.f32.mrf.mxu1 }
 0x38b   : > { %v7730_v16 = vmax.bf16 %v7698_v57, %v12403_v3  ;;  %v6251_v11 = vrot.slane %v6249_v49, 5  ;;  %v6653_v51 = vrot.slane %v5910_v14, 5  ;;  %v6237_v21 = vrot.slane %v6236_v13, 4  ;;  %13528 = vst [vmem:[#allocation8_spill] sm:$0xff] %v12419_v18 }
 0x38c   : > { %v6246_v46 = vor.u32 %v6245_v15, %v6241_v59  ;;  %v7097_v34 = vshrl.u32 %v6490_v0, 16  ;;  %v7100_v26 = vshll.u32 %v6490_v0, 16  ;;  %v6651_v17 = vsel %vm9650_vm14, %v8793_v27, %v6650_v52  ;;  %v12429_v62 = vpop.f32.mrf.mxu1 }
 0x38d   : > { %v8828_v25 = vcombine.low %v7729_v43, %v7730_v16  ;;  %v6652_v2 = vrot.slane %v6650_v52, 4  ;;  %v7105_v28 = vrot.slane %v6243_v55, 5  ;;  %v6242_v60 = vsel %vm9562_vm11, %v6237_v21, %v6241_v59  ;;  %13529 = vst [vmem:[#allocation9_spill] sm:$0xff] %v12429_v62  ;;  %v12433_v59 = vpop.f32.mrf.mxu0  ;;  %v12439_v52 = vld [vmem:[#allocation2 + $0xa8] sm:$0xf] }
 0x38e   : > { %v6247_v32 = vrot.slane %v6246_v46, 4  ;;  %v7099_v61 = vrot.slane %v7097_v34, 5  ;;  %v7102_v39 = vrot.slane %v7100_v26, 6  ;;  %v6463_v14 = vmax.bf16 %v6242_v60, %v12366_v36  ;;  %v12436_v13 = vpop.f32.mrf.mxu1  ;;  %v12447_v26 = vld [vmem:[#allocation2 + $0xac] sm:$0xf] }
 0x38f   : > { %9079 = vmatprep.mubr.msk.bf16.mxu1 %vm422_vm6, %v8828_v25  ;;  %v6654_v56 = vsel %vm9650_vm14, %v6652_v2, %v6653_v51  ;;  %v7106_v58 = vrot.slane %v6239_v1, 6  ;;  %v7111_v8 = vshrl.u32 %v6790_v47, 16  ;;  %v7114_v55 = vshll.u32 %v6790_v47, 16  ;;  %13530 = vst [vmem:[#allocation10_spill] sm:$0xff] %v12436_v13  ;;  %v7351_v13 = vld [vmem:[#allocation2 + $0xa8] sm:$0xc] }
 0x390   : > { %v6252_v29 = vsel %vm9562_vm11, %v6247_v32, %v6251_v11  ;;  %v7103_v45 = vor.u32 %v7102_v39, %v7099_v61  ;;  %v8813_v57 = vrot.slane %v7350_v35, 10  ;;  %v6763_v0 = vmax.bf16 %v6651_v17, %v6463_v14  ;;  %v12441_v11 = vpop.f32.mrf.mxu0  ;;  %v12449_v25 = vpop.f32.mrf.mxu1  ;;  %v5911_v14 = vld [vmem:[#allocation2 + $0xb0] sm:$0x1] }
 0x391   : > { %v6464_v49 = vmax.bf16 %v6252_v29, %v12374_v4  ;;  %v7107_v43 = vor.u32 %v7106_v58, %v7105_v28  ;;  %v7113_v36 = vrot.slane %v7111_v8, 5  ;;  %v7116_v1 = vrot.slane %v7114_v55, 6  ;;  %13531 = vst [vmem:[#allocation11_spill] sm:$0xff] %v12449_v25 }
 0x392   : > { %v7104_v15 = vrot.slane %v7103_v45, 4  ;;  %v7490_v27 = vrot.slane %v12374_v4, 6  ;;  %v7493_v16 = vrot.slane %v6790_v47, 6  ;;  %v7635_v46 = vmax.bf16 %v12301_v30, %v12183_v54  ;;  %v12455_v28 = vpop.f32.mrf.mxu0  ;;  %v12460_v32 = vpop.f32.mrf.mxu1 }
 0x393   : > { %v6764_v51 = vmax.bf16 %v6654_v56, %v6464_v49  ;;  %v7109_v21 = vrot.slane %v7107_v43, 4  ;;  %v7636_v34 = vmax.bf16 %v12306_v24, %v12187_v31  ;;  %v7117_v47 = vor.u32 %v7116_v1, %v7113_v36  ;;  %13532 = vst [vmem:[#allocation4_spill] sm:$0xff] %v12460_v32  ;;  %v6491_v1 = vld [vmem:[#allocation2 + $0xa8] sm:$0xe] }
 0x394   : > { %v7108_v4 = vsel %vm9771_vm4, %v7104_v15, %v7107_v43  ;;  %v7491_v17 = vsel %vm9856_vm10, %v8813_v57, %v7490_v27  ;;  %v7492_v2 = vrot.slane %v7490_v27, 4  ;;  %v7667_v54 = vmax.bf16 %v7635_v46, %v12340_v9  ;;  %v12468_v8 = vpop.f32.mrf.mxu0  ;;  %v12474_v49 = vpop.f32.mrf.mxu1 }
 0x395   : > { %v7323_v35 = vmax.bf16 %v7108_v4, %v6763_v0  ;;  %v7668_v60 = vmax.bf16 %v7636_v34, %v12344_v48  ;;  %v6254_v31 = vshrl.u32 %v12439_v52, 16  ;;  %v7118_v61 = vsel %vm9771_vm4, %v7109_v21, %v7117_v47  ;;  %13533 = vst [vmem:[#allocation13_spill] sm:$0xff] %v12474_v49  ;;  %v6791_v49 = vld [vmem:[#allocation2 + $0xb0] sm:$0x3] }
 0x396   : > { %v7494_v39 = vsel %vm9856_vm10, %v7492_v2, %v7493_v16  ;;  %v6257_v56 = vshll.u32 %v12439_v52, 16  ;;  %v6263_v58 = vshll.u32 %v12447_v26, 16  ;;  %v7324_v29 = vmax.bf16 %v7118_v61, %v6764_v51  ;;  %v12477_v27 = vpop.f32.mrf.mxu0  ;;  %v12482_v34 = vpop.f32.mrf.mxu1 }
 0x397   : > { %v12470_v45 = vmax.bf16 %v7491_v17, %v7323_v35  ;;  %v7699_v55 = vmax.bf16 %v7667_v54, %v12397_v22  ;;  %v7700_v57 = vmax.bf16 %v7668_v60, %v12403_v3  ;;  %v6256_v0 = vrot.slane %v6254_v31, 4  ;;  %13534 = vst [vmem:[#allocation14_spill] sm:$0xff] %v12482_v34 }
 0x398   : > { %v6259_v43 = vrot.slane %v6257_v56, 5  ;;  %v6265_v36 = vrot.slane %v6263_v58, 5  ;;  %v6267_v15 = vshrl.u32 %v12447_v26, 16  ;;  %v12479_v16 = vmax.bf16 %v7494_v39, %v7324_v29  ;;  %v12485_v35 = vpop.f32.mrf.mxu0 }
 0x399   : > { %v7731_v51 = vmax.bf16 %v7699_v55, %v12470_v45  ;;  %v6273_v21 = vshll.u32 %v5911_v14, 16  ;;  %v8794_v46 = vrot.slane %v6491_v1, 9  ;;  %v6657_v17 = vrot.slane %v12447_v26, 5 }
 0x39a   : > { %v6260_v4 = vor.u32 %v6259_v43, %v6256_v0  ;;  %v6269_v47 = vrot.slane %v6267_v15, 4  ;;  %v6660_v2 = vrot.slane %v5911_v14, 5  ;;  %v7732_v54 = vmax.bf16 %v7700_v57, %v12479_v16  ;;  %v12490_v34 = vpop.f32.mrf.mxu0  ;;  %v12492_v0 = vpop.f32.mrf.mxu1 }
 0x39b   : > { %v6275_v60 = vrot.slane %v6273_v21, 5  ;;  %v7120_v31 = vshrl.u32 %v6491_v1, 16  ;;  %v7123_v61 = vshll.u32 %v6491_v1, 16  ;;  %v6658_v29 = vsel %vm9650_vm14, %v8794_v46, %v6657_v17  ;;  %13535 = vst [vmem:[#allocation15_spill] sm:$0xff] %v12492_v0 }
 0x39c   : > { %v6261_v39 = vrot.slane %v6260_v4, 4  ;;  %v6270_v56 = vor.u32 %v6269_v47, %v6265_v36  ;;  %v6659_v55 = vrot.slane %v6657_v17, 4  ;;  %v8829_v43 = vcombine.low %v7731_v51, %v7732_v54  ;;  %v12498_v46 = vpop.f32.mrf.mxu0 }
 0x39d   : > { %v7122_v14 = vrot.slane %v7120_v31, 5  ;;  %v7125_v32 = vrot.slane %v7123_v61, 6  ;;  %v7128_v25 = vrot.slane %v6267_v15, 5  ;;  %v7129_v4 = vrot.slane %v6263_v58, 6 }
 0x39e   : > { %v6266_v57 = vsel %vm9562_vm11, %v6261_v39, %v6265_v36  ;;  %v6271_v1 = vrot.slane %v6270_v56, 4  ;;  %v6661_v21 = vsel %vm9650_vm14, %v6659_v55, %v6660_v2  ;;  %9080 = vmatmul.mubr.msk.bf16.gmra.mxu1 %vm422_vm6, %v8829_v43  ;;  %v7134_v51 = vshrl.u32 %v6791_v49, 16  ;;  %v12505_v39 = vpop.f32.mrf.mxu0  ;;  %v12507_v2 = vpop.f32.mrf.mxu1 }
 0x39f   : > { %v6465_v47 = vmax.bf16 %v6266_v57, %v12439_v52  ;;  %v7126_v17 = vor.u32 %v7125_v32, %v7122_v14  ;;  %v7137_v54 = vshll.u32 %v6791_v49, 16  ;;  %v7130_v31 = vor.u32 %v7129_v4, %v7128_v25  ;;  %13536 = vst [vmem:[#allocation16_spill] sm:$0xff] %v12507_v2  ;;  %v12510_v52 = vld [vmem:[#allocation2 + $0xb4] sm:$0xf] }
 0x3a0   : > { %v6276_v15 = vsel %vm9562_vm11, %v6271_v1, %v6275_v60  ;;  %v8814_v61 = vrot.slane %v7351_v13, 10  ;;  %v7497_v36 = vrot.slane %v12447_v26, 6  ;;  %v7136_v43 = vrot.slane %v7134_v51, 5  ;;  %v12514_v13 = vld [vmem:[#allocation2 + $0xb8] sm:$0xf]  ;;  %v12516_v57 = vpop.f32.mrf.mxu0 }
 0x3a1   : > { %v6466_v58 = vmax.bf16 %v6276_v15, %v12447_v26  ;;  %v6765_v56 = vmax.bf16 %v6658_v29, %v6465_v47  ;;  %v7127_v55 = vrot.slane %v7126_v17, 4  ;;  %v7132_v32 = vrot.slane %v7130_v31, 4 }
 0x3a2   : > { %v7139_v14 = vrot.slane %v7137_v54, 6  ;;  %v7498_v60 = vsel %vm9856_vm10, %v8814_v61, %v7497_v36  ;;  %v7499_v25 = vrot.slane %v7497_v36, 4  ;;  %v7500_v26 = vrot.slane %v6791_v49, 6  ;;  %v12525_v15 = vpop.f32.mrf.mxu0  ;;  %v12527_v61 = vpop.f32.mrf.mxu1  ;;  %v5912_v49 = vld [vmem:[#allocation2 + $0xbc] sm:$0x1] }
 0x3a3   : > { %v6766_v1 = vmax.bf16 %v6661_v21, %v6466_v58  ;;  %v7131_v4 = vsel %vm9771_vm4, %v7127_v55, %v7130_v31  ;;  %v7637_v29 = vmax.bf16 %v12340_v9, %v12301_v30  ;;  %v7638_v51 = vmax.bf16 %v12344_v48, %v12306_v24  ;;  %13537 = vst [vmem:[#allocation17_spill] sm:$0xff] %v12525_v15 }
 0x3a4   : > { %v7140_v47 = vor.u32 %v7139_v14, %v7136_v43  ;;  %v7325_v17 = vmax.bf16 %v7131_v4, %v6765_v56  ;;  %v6278_v54 = vshrl.u32 %v12510_v52, 16  ;;  %13538 = vst [vmem:[#allocation18_spill] sm:$0xff] %v12527_v61  ;;  %v7501_v21 = vsel %vm9856_vm10, %v7499_v25, %v7500_v26  ;;  %v12539_v43 = vpop.f32.mrf.mxu0 }
 0x3a5   : > { %v7669_v31 = vmax.bf16 %v7637_v29, %v12397_v22  ;;  %v6281_v36 = vshll.u32 %v12510_v52, 16  ;;  %v6287_v30 = vshll.u32 %v12514_v13, 16  ;;  %v7670_v56 = vmax.bf16 %v7638_v51, %v12403_v3  ;;  %13539 = vst [vmem:[#allocation19_spill] sm:$0xff] %v12539_v43  ;;  %v6492_v29 = vld [vmem:[#allocation2 + $0xb4] sm:$0xe] }
 0x3a6   : > { %v7141_v58 = vsel %vm9771_vm4, %v7132_v32, %v7140_v47  ;;  %v12536_v24 = vmax.bf16 %v7498_v60, %v7325_v17  ;;  %v6280_v55 = vrot.slane %v6278_v54, 4  ;;  %v6291_v2 = vshrl.u32 %v12514_v13, 16  ;;  %v12544_v32 = vpop.f32.mrf.mxu0  ;;  %v12546_v60 = vpop.f32.mrf.mxu1 }
 0x3a7   : > { %v7326_v14 = vmax.bf16 %v7141_v58, %v6766_v1  ;;  %v7701_v25 = vmax.bf16 %v7669_v31, %v12470_v45  ;;  %v6283_v4 = vrot.slane %v6281_v36, 5  ;;  %v6289_v26 = vrot.slane %v6287_v30, 5  ;;  %13540 = vst [vmem:[#allocation20_spill] sm:$0xff] %v12544_v32  ;;  %13541 = vst [vmem:[#allocation21_spill] sm:$0xff] %v12546_v60  ;;  %v7355_v32 = vld [vmem:[#allocation2 + $0xd8] sm:$0xc] }
 0x3a8   : > { %v7702_v61 = vmax.bf16 %v7670_v56, %v12479_v16  ;;  %v6297_v0 = vshll.u32 %v5912_v49, 16  ;;  %v8795_v62 = vrot.slane %v6492_v29, 9  ;;  %v6664_v51 = vrot.slane %v12514_v13, 5  ;;  %v12552_v56 = vpop.f32.mrf.mxu0 }
 0x3a9   : > { %v12548_v47 = vmax.bf16 %v7501_v21, %v7326_v14  ;;  %v7733_v17 = vmax.bf16 %v7701_v25, %v12536_v24  ;;  %v6284_v1 = vor.u32 %v6283_v4, %v6280_v55  ;;  %v6293_v54 = vrot.slane %v6291_v2, 4  ;;  %13542 = vst [vmem:[#allocation22_spill] sm:$0xff] %v12552_v56  ;;  %v6792_v21 = vld [vmem:[#allocation2 + $0xbc] sm:$0x3]  ;;  %v7352_v4 = vld [vmem:[#allocation2 + $0xb4] sm:$0xc] }
 0x3aa   : > { %v6299_v31 = vrot.slane %v6297_v0, 5  ;;  %v6667_v36 = vrot.slane %v5912_v49, 5  ;;  %v7143_v58 = vshrl.u32 %v6492_v29, 16  ;;  %v6665_v40 = vsel %vm9650_vm14, %v8795_v62, %v6664_v51  ;;  %v12557_v63 = vpop.f32.mrf.mxu0  ;;  %v12559_v0 = vpop.f32.mrf.mxu1 }
 0x3ab   : > { %v7734_v18 = vmax.bf16 %v7702_v61, %v12548_v47  ;;  %v6285_v5 = vrot.slane %v6284_v1, 4  ;;  %v6666_v60 = vrot.slane %v6664_v51, 4  ;;  %v6294_v14 = vor.u32 %v6293_v54, %v6289_v26  ;;  %13543 = vst [vmem:[#allocation23_spill] sm:$0xff] %v12557_v63  ;;  %13544 = vst [vmem:[#allocation24_spill] sm:$0xff] %v12559_v0 }
 0x3ac   : > { %v7145_v12 = vrot.slane %v7143_v58, 5  ;;  %v7146_v25 = vshll.u32 %v6492_v29, 16  ;;  %v7151_v55 = vrot.slane %v6291_v2, 5  ;;  %v7152_v1 = vrot.slane %v6287_v30, 6  ;;  %v12566_v29 = vpop.f32.mrf.mxu0 }
 0x3ad   : > { %v8830_v49 = vcombine.low %v7733_v17, %v7734_v18  ;;  %v6290_v56 = vsel %vm9562_vm11, %v6285_v5, %v6289_v26  ;;  %v6668_v61 = vsel %vm9650_vm14, %v6666_v60, %v6667_v36  ;;  %v6295_v62 = vrot.slane %v6294_v14, 4  ;;  %13545 = vst [vmem:[#allocation25_spill] sm:$0xff] %v12566_v29  ;;  %v12572_v17 = vld [vmem:[#allocation2 + $0xc0] sm:$0xf]  ;;  %v12576_v36 = vpop.f32.mrf.mxu1 }
 0x3ae   : > { %v6467_v51 = vmax.bf16 %v6290_v56, %v12510_v52  ;;  %v7148_v54 = vrot.slane %v7146_v25, 6  ;;  %v7157_v58 = vshrl.u32 %v6792_v21, 16  ;;  %v7153_v2 = vor.u32 %v7152_v1, %v7151_v55  ;;  %v12574_v52 = vpop.f32.mrf.mxu0  ;;  %13547 = vst [vmem:[#allocation27_spill] sm:$0xff] %v12576_v36 }
 0x3af   : > { %9083 = vmatprep.mubr.msk.bf16.mxu1 %vm422_vm6, %v8830_v49  ;;  %v7160_v63 = vshll.u32 %v6792_v21, 16  ;;  %v8815_v0 = vrot.slane %v7352_v4, 10  ;;  %v7504_v18 = vrot.slane %v12514_v13, 6  ;;  %v6300_v5 = vsel %vm9562_vm11, %v6295_v62, %v6299_v31  ;;  %13546 = vst [vmem:[#allocation26_spill] sm:$0xff] %v12574_v52 }
 0x3b0   : > { %v6767_v26 = vmax.bf16 %v6665_v40, %v6467_v51  ;;  %v7149_v60 = vor.u32 %v7148_v54, %v7145_v12  ;;  %v7159_v30 = vrot.slane %v7157_v58, 5  ;;  %v6468_v56 = vmax.bf16 %v6300_v5, %v12514_v13  ;;  %v12583_v40 = vpop.f32.mrf.mxu0  ;;  %v12587_v54 = vld [vmem:[#allocation2 + $0xc4] sm:$0xf] }
 0x3b1   : > { %v7155_v14 = vrot.slane %v7153_v2, 4  ;;  %v7162_v25 = vrot.slane %v7160_v63, 6  ;;  %v7505_v55 = vsel %vm9856_vm10, %v8815_v0, %v7504_v18  ;;  %v7506_v49 = vrot.slane %v7504_v18, 4  ;;  %13548 = vst [vmem:[#allocation28_spill] sm:$0xff] %v12583_v40  ;;  %v12598_v18 = vpop.f32.mrf.mxu1  ;;  %v7353_v40 = vld [vmem:[#allocation2 + $0xc0] sm:$0xc] }
 0x3b2   : > { %v7150_v4 = vrot.slane %v7149_v60, 4  ;;  %v7507_v1 = vrot.slane %v6792_v21, 6  ;;  %v7639_v12 = vmax.bf16 %v12397_v22, %v12340_v9  ;;  %v6768_v31 = vmax.bf16 %v6668_v61, %v6468_v56  ;;  %v5913_v9 = vld [vmem:[#allocation2 + $0xc8] sm:$0x1]  ;;  %v12596_v61 = vpop.f32.mrf.mxu0  ;;  %13550 = vst [vmem:[#allocation30_spill] sm:$0xff] %v12598_v18 }
 0x3b3   : > { %v7163_v62 = vor.u32 %v7162_v25, %v7159_v30  ;;  %v7640_v51 = vmax.bf16 %v12403_v3, %v12344_v48  ;;  %v6302_v63 = vshrl.u32 %v12572_v17, 16  ;;  %v6305_v58 = vshll.u32 %v12572_v17, 16  ;;  %13549 = vst [vmem:[#allocation29_spill] sm:$0xff] %v12596_v61 }
 0x3b4   : > { %v7154_v13 = vsel %vm9771_vm4, %v7150_v4, %v7153_v2  ;;  %v7508_v21 = vsel %vm9856_vm10, %v7506_v49, %v7507_v1  ;;  %v7671_v0 = vmax.bf16 %v7639_v12, %v12470_v45  ;;  %v6311_v4 = vshll.u32 %v12587_v54, 16  ;;  %v12605_v49 = vpop.f32.mrf.mxu0 }
 0x3b5   : > { %v7164_v48 = vsel %vm9771_vm4, %v7155_v14, %v7163_v62  ;;  %v7327_v5 = vmax.bf16 %v7154_v13, %v6767_v26  ;;  %v7672_v60 = vmax.bf16 %v7640_v51, %v12479_v16  ;;  %v6304_v30 = vrot.slane %v6302_v63, 4  ;;  %13551 = vst [vmem:[#allocation31_spill] sm:$0xff] %v12605_v49  ;;  %v6493_v14 = vld [vmem:[#allocation2 + $0xc0] sm:$0xe]  ;;  %v12615_v13 = vpop.f32.mrf.mxu1 }
 0x3b6   : > { %v7328_v2 = vmax.bf16 %v7164_v48, %v6768_v31  ;;  %v7703_v56 = vmax.bf16 %v7671_v0, %v12536_v24  ;;  %v6307_v25 = vrot.slane %v6305_v58, 5  ;;  %v6315_v18 = vshrl.u32 %v12587_v54, 16  ;;  %v12613_v63 = vpop.f32.mrf.mxu0  ;;  %13553 = vst [vmem:[#allocation33_spill] sm:$0xff] %v12615_v13 }
 0x3b7   : > { %v12607_v1 = vmax.bf16 %v7505_v55, %v7327_v5  ;;  %v7704_v12 = vmax.bf16 %v7672_v60, %v12548_v47  ;;  %v6321_v36 = vshll.u32 %v5913_v9, 16  ;;  %v6313_v51 = vrot.slane %v6311_v4, 5  ;;  %13552 = vst [vmem:[#allocation32_spill] sm:$0xff] %v12613_v63  ;;  %v6793_v63 = vld [vmem:[#allocation2 + $0xc8] sm:$0x3] }
 0x3b8   : > { %v12611_v26 = vmax.bf16 %v7508_v21, %v7328_v2  ;;  %v6308_v62 = vor.u32 %v6307_v25, %v6304_v30  ;;  %v8796_v31 = vrot.slane %v6493_v14, 9  ;;  %v6317_v58 = vrot.slane %v6315_v18, 4  ;;  %v12620_v21 = vpop.f32.mrf.mxu0 }
 0x3b9   : > { %v7735_v0 = vmax.bf16 %v7703_v56, %v12607_v1  ;;  %v6323_v55 = vrot.slane %v6321_v36, 5  ;;  %v6671_v48 = vrot.slane %v12587_v54, 5  ;;  %v6674_v49 = vrot.slane %v5913_v9, 5  ;;  %13554 = vst [vmem:[#allocation34_spill] sm:$0xff] %v12620_v21  ;;  %v12628_v9 = vpop.f32.mrf.mxu1 }
 0x3ba   : > { %v7736_v5 = vmax.bf16 %v7704_v12, %v12611_v26  ;;  %v6309_v60 = vrot.slane %v6308_v62, 4  ;;  %v7166_v61 = vshrl.u32 %v6493_v14, 16  ;;  %v6318_v30 = vor.u32 %v6317_v58, %v6313_v51  ;;  %v12626_v12 = vpop.f32.mrf.mxu0  ;;  %13556 = vst [vmem:[#allocation36_spill] sm:$0xff] %v12628_v9 }
 0x3bb   : > { %v6672_v2 = vsel %vm9650_vm14, %v8796_v31, %v6671_v48  ;;  %v6673_v25 = vrot.slane %v6671_v48, 4  ;;  %v7169_v13 = vshll.u32 %v6493_v14, 16  ;;  %v7174_v29 = vrot.slane %v6315_v18, 5  ;;  %13555 = vst [vmem:[#allocation35_spill] sm:$0xff] %v12626_v12 }
 0x3bc   : > { %v8831_v56 = vcombine.low %v7735_v0, %v7736_v5  ;;  %v6314_v36 = vsel %vm9562_vm11, %v6309_v60, %v6313_v51  ;;  %v7168_v52 = vrot.slane %v7166_v61, 5  ;;  %v6319_v62 = vrot.slane %v6318_v30, 4  ;;  %v12634_v51 = vpop.f32.mrf.mxu0 }
 0x3bd   : > { %v6469_v58 = vmax.bf16 %v6314_v36, %v12572_v17  ;;  %v6675_v31 = vsel %vm9650_vm14, %v6673_v25, %v6674_v49  ;;  %v7171_v48 = vrot.slane %v7169_v13, 6  ;;  %v7175_v14 = vrot.slane %v6311_v4, 6  ;;  %13557 = vst [vmem:[#allocation37_spill] sm:$0xff] %v12634_v51  ;;  %v12640_v25 = vld [vmem:[#allocation2 + $0xcc] sm:$0xf] }
 0x3be   : > { %9084 = vmatmul.mubr.msk.bf16.gmra.mxu1 %vm422_vm6, %v8831_v56  ;;  %v7180_v0 = vshrl.u32 %v6793_v63, 16  ;;  %v7183_v5 = vshll.u32 %v6793_v63, 16  ;;  %v8816_v21 = vrot.slane %v7353_v40, 10  ;;  %v6324_v61 = vsel %vm9562_vm11, %v6319_v62, %v6323_v55  ;;  %v12642_v4 = vpop.f32.mrf.mxu0  ;;  %v12644_v56 = vpop.f32.mrf.mxu1 }
 0x3bf   : > { %v6769_v18 = vmax.bf16 %v6672_v2, %v6469_v58  ;;  %v7172_v60 = vor.u32 %v7171_v48, %v7168_v52  ;;  %v7511_v30 = vrot.slane %v12587_v54, 6  ;;  %v6470_v17 = vmax.bf16 %v6324_v61, %v12587_v54  ;;  %13558 = vst [vmem:[#allocation38_spill] sm:$0xff] %v12642_v4  ;;  %13559 = vst [vmem:[#allocation39_spill] sm:$0xff] %v12644_v56  ;;  %v12650_v54 = vld [vmem:[#allocation2 + $0xd0] sm:$0xf] }
 0x3c0   : > { %v7176_v36 = vor.u32 %v7175_v14, %v7174_v29  ;;  %v7182_v49 = vrot.slane %v7180_v0, 5  ;;  %v7185_v13 = vrot.slane %v7183_v5, 6  ;;  %v7514_v2 = vrot.slane %v6793_v63, 6  ;;  %v12652_v48 = vpop.f32.mrf.mxu0  ;;  %v5914_v61 = vld [vmem:[#allocation2 + $0xd4] sm:$0x1] }
 0x3c1   : > { %v7173_v40 = vrot.slane %v7172_v60, 4  ;;  %v7512_v51 = vsel %vm9856_vm10, %v8816_v21, %v7511_v30  ;;  %v7513_v55 = vrot.slane %v7511_v30, 4  ;;  %v6770_v52 = vmax.bf16 %v6675_v31, %v6470_v17  ;;  %13560 = vst [vmem:[#allocation40_spill] sm:$0xff] %v12652_v48  ;;  %v12665_v30 = vpop.f32.mrf.mxu1  ;;  %v6794_v4 = vld [vmem:[#allocation2 + $0xd4] sm:$0x3] }
 0x3c2   : > { %v7178_v62 = vrot.slane %v7176_v36, 4  ;;  %v7186_v58 = vor.u32 %v7185_v13, %v7182_v49  ;;  %v7641_v29 = vmax.bf16 %v12470_v45, %v12397_v22  ;;  %v7642_v21 = vmax.bf16 %v12479_v16, %v12403_v3  ;;  %13561 = vst [vmem:[#allocation41_spill] sm:$0xff] %v12665_v30  ;;  %v12667_v17 = vpop.f32.mrf.mxu0 }
 0x3c3   : > { %v7177_v14 = vsel %vm9771_vm4, %v7173_v40, %v7176_v36  ;;  %v7515_v0 = vsel %vm9856_vm10, %v7513_v55, %v7514_v2  ;;  %v6326_v63 = vshrl.u32 %v12640_v25, 16  ;;  %v6329_v60 = vshll.u32 %v12640_v25, 16  ;;  %13562 = vst [vmem:[#allocation42_spill] sm:$0xff] %v12667_v17 }
 0x3c4   : > { %v7187_v31 = vsel %vm9771_vm4, %v7178_v62, %v7186_v58  ;;  %v7329_v5 = vmax.bf16 %v7177_v14, %v6769_v18  ;;  %v7673_v22 = vmax.bf16 %v7641_v29, %v12536_v24  ;;  %v7674_v49 = vmax.bf16 %v7642_v21, %v12548_v47  ;;  %v12675_v62 = vpop.f32.mrf.mxu0 }
 0x3c5   : > { %v7330_v36 = vmax.bf16 %v7187_v31, %v6770_v52  ;;  %v6328_v13 = vrot.slane %v6326_v63, 4  ;;  %v6335_v3 = vshll.u32 %v12650_v54, 16  ;;  %v6331_v18 = vrot.slane %v6329_v60, 5  ;;  %13563 = vst [vmem:[#allocation43_spill] sm:$0xff] %v12675_v62  ;;  %v6494_v31 = vld [vmem:[#allocation2 + $0xcc] sm:$0xe] }
 0x3c6   : > { %v12671_v40 = vmax.bf16 %v7512_v51, %v7329_v5  ;;  %v7705_v55 = vmax.bf16 %v7673_v22, %v12607_v1  ;;  %v6339_v2 = vshrl.u32 %v12650_v54, 16  ;;  %v7706_v29 = vmax.bf16 %v7674_v49, %v12611_v26  ;;  %v12681_v5 = vpop.f32.mrf.mxu1  ;;  %v12683_v22 = vpop.f32.mrf.mxu0 }
 0x3c7   : > { %v12677_v58 = vmax.bf16 %v7515_v0, %v7330_v36  ;;  %v6337_v14 = vrot.slane %v6335_v3, 5  ;;  %v6345_v52 = vshll.u32 %v5914_v61, 16  ;;  %v6332_v63 = vor.u32 %v6331_v18, %v6328_v13  ;;  %13564 = vst [vmem:[#allocation44_spill] sm:$0xff] %v12681_v5  ;;  %13565 = vst [vmem:[#allocation45_spill] sm:$0xff] %v12683_v22  ;;  %v7354_v22 = vld [vmem:[#allocation2 + $0xcc] sm:$0xc] }
 0x3c8   : > { %v7737_v21 = vmax.bf16 %v7705_v55, %v12671_v40  ;;  %v6341_v17 = vrot.slane %v6339_v2, 4  ;;  %v8797_v51 = vrot.slane %v6494_v31, 9  ;;  %v6678_v0 = vrot.slane %v12650_v54, 5  ;;  %v12687_v56 = vpop.f32.mrf.mxu0 }
 0x3c9   : > { %v7738_v60 = vmax.bf16 %v7706_v29, %v12677_v58  ;;  %v6347_v48 = vrot.slane %v6345_v52, 5  ;;  %v6681_v36 = vrot.slane %v5914_v61, 5  ;;  %v6333_v62 = vrot.slane %v6332_v63, 4  ;;  %13566 = vst [vmem:[#allocation46_spill] sm:$0xff] %v12687_v56  ;;  %v12693_v63 = vpop.f32.mrf.mxu1 }
 0x3ca   : > { %v6342_v49 = vor.u32 %v6341_v17, %v6337_v14  ;;  %v7189_v12 = vshrl.u32 %v6494_v31, 16  ;;  %v7192_v30 = vshll.u32 %v6494_v31, 16  ;;  %v6679_v55 = vsel %vm9650_vm14, %v8797_v51, %v6678_v0  ;;  %13567 = vst [vmem:[#allocation47_spill] sm:$0xff] %v12693_v63 }
 0x3cb   : > { %v8832_v13 = vcombine.low %v7737_v21, %v7738_v60  ;;  %v6680_v18 = vrot.slane %v6678_v0, 4  ;;  %v7197_v5 = vrot.slane %v6339_v2, 5  ;;  %v6338_v29 = vsel %vm9562_vm11, %v6333_v62, %v6337_v14  ;;  %v12699_v60 = vpop.f32.mrf.mxu0 }
 0x3cc   : > { %v6343_v52 = vrot.slane %v6342_v49, 4  ;;  %v7191_v9 = vrot.slane %v7189_v12, 5  ;;  %v7194_v61 = vrot.slane %v7192_v30, 6  ;;  %v6471_v17 = vmax.bf16 %v6338_v29, %v12640_v25  ;;  %13568 = vst [vmem:[#allocation48_spill] sm:$0xff] %v12699_v60 }
 0x3cd   : > { %9087 = vmatprep.mubr.msk.bf16.mxu1 %vm422_vm6, %v8832_v13  ;;  %v6682_v31 = vsel %vm9650_vm14, %v6680_v18, %v6681_v36  ;;  %v7198_v21 = vrot.slane %v6335_v3, 6  ;;  %v7203_v51 = vshrl.u32 %v6794_v4, 16  ;;  %v7206_v14 = vshll.u32 %v6794_v4, 16  ;;  %v5893_v3 = vld [vmem:[#allocation2 + $0xd8] sm:$0xf]  ;;  %v12705_v18 = vpop.f32.mrf.mxu1 }
 0x3ce   : > { %v6348_v2 = vsel %vm9562_vm11, %v6343_v52, %v6347_v48  ;;  %v7195_v62 = vor.u32 %v7194_v61, %v7191_v9  ;;  %v8817_v12 = vrot.slane %v7354_v22, 10  ;;  %v6771_v0 = vmax.bf16 %v6679_v55, %v6471_v17  ;;  %13569 = vst [vmem:[#allocation49_spill] sm:$0xff] %v12705_v18  ;;  %v12711_v22 = vld [vmem:[#allocation2 + $0xdc] sm:$0xf] }
 0x3cf   : > { %v6472_v30 = vmax.bf16 %v6348_v2, %v12650_v54  ;;  %v7199_v49 = vor.u32 %v7198_v21, %v7197_v5  ;;  %v7205_v13 = vrot.slane %v7203_v51, 5  ;;  %v7208_v25 = vrot.slane %v7206_v14, 6  ;;  %v12713_v5 = vpop.f32.mrf.mxu0  ;;  %v5915_v51 = vld [vmem:[#allocation2 + $0xe0] sm:$0x1] }
 0x3d0   : > { %v7196_v56 = vrot.slane %v7195_v62, 4  ;;  %v7518_v29 = vrot.slane %v12650_v54, 6  ;;  %v7521_v36 = vrot.slane %v6794_v4, 6  ;;  %v7643_v9 = vmax.bf16 %v12536_v24, %v12470_v45  ;;  %13570 = vst [vmem:[#allocation50_spill] sm:$0xff] %v12713_v5  ;;  %v12726_v62 = vpop.f32.mrf.mxu1 }
 0x3d1   : > { %v6772_v60 = vmax.bf16 %v6682_v31, %v6472_v30  ;;  %v7201_v63 = vrot.slane %v7199_v49, 4  ;;  %v7644_v48 = vmax.bf16 %v12548_v47, %v12479_v16  ;;  %v7209_v54 = vor.u32 %v7208_v25, %v7205_v13  ;;  %13571 = vst [vmem:[#allocation51_spill] sm:$0xff] %v12726_v62 }
 0x3d2   : > { %v7200_v55 = vsel %vm9771_vm4, %v7196_v56, %v7199_v49  ;;  %v7519_v4 = vsel %vm9856_vm10, %v8817_v12, %v7518_v29  ;;  %v7520_v52 = vrot.slane %v7518_v29, 4  ;;  %v7675_v17 = vmax.bf16 %v7643_v9, %v12607_v1  ;;  %v12732_v49 = vpop.f32.mrf.mxu0 }
 0x3d3   : > { %v7331_v61 = vmax.bf16 %v7200_v55, %v6771_v0  ;;  %v7676_v45 = vmax.bf16 %v7644_v48, %v12611_v26  ;;  %v6350_v31 = vshrl.u32 %v5893_v3, 16  ;;  %v7210_v16 = vsel %vm9771_vm4, %v7201_v63, %v7209_v54  ;;  %13572 = vst [vmem:[#allocation52_spill] sm:$0xff] %v12732_v49 }
 0x3d4   : > { %v7522_v21 = vsel %vm9856_vm10, %v7520_v52, %v7521_v36  ;;  %v6353_v2 = vshll.u32 %v5893_v3, 16  ;;  %v6359_v56 = vshll.u32 %v12711_v22, 16  ;;  %v7332_v14 = vmax.bf16 %v7210_v16, %v6772_v60  ;;  %v6495_v36 = vld [vmem:[#allocation2 + $0xd8] sm:$0xe]  ;;  %v12742_v49 = vpop.f32.mrf.mxu0 }
 0x3d5   : > { %v12728_v12 = vmax.bf16 %v7519_v4, %v7331_v61  ;;  %v7707_v30 = vmax.bf16 %v7675_v17, %v12671_v40  ;;  %v7708_v0 = vmax.bf16 %v7676_v45, %v12677_v58  ;;  %v6352_v13 = vrot.slane %v6350_v31, 4  ;;  %v12739_v17 = vpop.f32.mrf.mxu1  ;;  %13574 = vst [vmem:[#allocation54_spill] sm:$0xff] %v12742_v49 }
 0x3d6   : > { %v6355_v63 = vrot.slane %v6353_v2, 5  ;;  %v6361_v25 = vrot.slane %v6359_v56, 5  ;;  %v6363_v29 = vshrl.u32 %v12711_v22, 16  ;;  %v12735_v9 = vmax.bf16 %v7522_v21, %v7332_v14  ;;  %13573 = vst [vmem:[#allocation53_spill] sm:$0xff] %v12739_v17  ;;  %v7356_v17 = vld [vmem:[#allocation2 + $0xe4] sm:$0xc] }
 0x3d7   : > { %v7739_v48 = vmax.bf16 %v7707_v30, %v12728_v12  ;;  %v6369_v55 = vshll.u32 %v5915_v51, 16  ;;  %v8798_v60 = vrot.slane %v6495_v36, 9  ;;  %v6685_v52 = vrot.slane %v12711_v22, 5 }
 0x3d8   : > { %v6356_v54 = vor.u32 %v6355_v63, %v6352_v13  ;;  %v6365_v4 = vrot.slane %v6363_v29, 4  ;;  %v6688_v61 = vrot.slane %v5915_v51, 5  ;;  %v7740_v45 = vmax.bf16 %v7708_v0, %v12735_v9  ;;  %v6795_v13 = vld [vmem:[#allocation2 + $0xe0] sm:$0x3] }
 0x3d9   : > { %v6371_v31 = vrot.slane %v6369_v55, 5  ;;  %v7212_v16 = vshrl.u32 %v6495_v36, 16  ;;  %v7215_v2 = vshll.u32 %v6495_v36, 16  ;;  %v6686_v30 = vsel %vm9650_vm14, %v8798_v60, %v6685_v52 }
 0x3da   : > { %v6357_v21 = vrot.slane %v6356_v54, 4  ;;  %v6366_v14 = vor.u32 %v6365_v4, %v6361_v25  ;;  %v6687_v5 = vrot.slane %v6685_v52, 4  ;;  %v8833_v63 = vcombine.low %v7739_v48, %v7740_v45  ;;  %v12750_v54 = vpop.f32.mrf.mxu1  ;;  %v12753_v45 = vpop.f32.mrf.mxu0 }
 0x3db   : > { %v7214_v62 = vrot.slane %v7212_v16, 5  ;;  %v7217_v18 = vrot.slane %v7215_v2, 6  ;;  %v7220_v51 = vrot.slane %v6363_v29, 5  ;;  %v7221_v49 = vrot.slane %v6359_v56, 6  ;;  %13575 = vst [vmem:[#allocation55_spill] sm:$0xff] %v12750_v54  ;;  %13576 = vst [vmem:[#allocation56_spill] sm:$0xff] %v12753_v45 }
 0x3dc   : > { %v6362_v0 = vsel %vm9562_vm11, %v6357_v21, %v6361_v25  ;;  %v6367_v55 = vrot.slane %v6366_v14, 4  ;;  %v6689_v36 = vsel %vm9650_vm14, %v6687_v5, %v6688_v61  ;;  %9088 = vmatmul.mubr.msk.bf16.gmra.mxu1 %vm422_vm6, %v8833_v63  ;;  %v7226_v52 = vshrl.u32 %v6795_v13, 16  ;;  %v5895_v14 = vld [vmem:[#allocation2 + $0xe4] sm:$0xf]  ;;  %v12763_v45 = vpop.f32.mrf.mxu1 }
 0x3dd   : > { %v6473_v60 = vmax.bf16 %v6362_v0, %v5893_v3  ;;  %v7218_v4 = vor.u32 %v7217_v18, %v7214_v62  ;;  %v7229_v48 = vshll.u32 %v6795_v13, 16  ;;  %v7222_v16 = vor.u32 %v7221_v49, %v7220_v51  ;;  %v12761_v0 = vld [vmem:[#allocation2 + $0xe8] sm:$0xf]  ;;  %13577 = vst [vmem:[#allocation57_spill] sm:$0xff] %v12763_v45 }
 0x3de   : > { %v6372_v29 = vsel %vm9562_vm11, %v6367_v55, %v6371_v31  ;;  %v8818_v25 = vrot.slane %v7355_v32, 10  ;;  %v7525_v2 = vrot.slane %v12711_v22, 6  ;;  %v7228_v21 = vrot.slane %v7226_v52, 5 }
 0x3df   : > { %v6474_v5 = vmax.bf16 %v6372_v29, %v12711_v22  ;;  %v6773_v56 = vmax.bf16 %v6686_v30, %v6473_v60  ;;  %v7219_v61 = vrot.slane %v7218_v4, 4  ;;  %v7224_v63 = vrot.slane %v7222_v16, 4  ;;  %v12769_v30 = vpop.f32.mrf.mxu0 }
 0x3e0   : > { %v7231_v3 = vrot.slane %v7229_v48, 6  ;;  %v7526_v18 = vsel %vm9856_vm10, %v8818_v25, %v7525_v2  ;;  %v7527_v62 = vrot.slane %v7525_v2, 4  ;;  %v7528_v31 = vrot.slane %v6795_v13, 6  ;;  %13578 = vst [vmem:[#allocation58_spill] sm:$0xff] %v12769_v30  ;;  %v5916_v48 = vld [vmem:[#allocation2 + $0xec] sm:$0x1] }
 0x3e1   : > { %v6774_v49 = vmax.bf16 %v6689_v36, %v6474_v5  ;;  %v7223_v32 = vsel %vm9771_vm4, %v7219_v61, %v7222_v16  ;;  %v7645_v22 = vmax.bf16 %v12607_v1, %v12536_v24  ;;  %v7646_v60 = vmax.bf16 %v12611_v26, %v12548_v47  ;;  %v12782_v5 = vpop.f32.mrf.mxu1 }
 0x3e2   : > { %v7232_v51 = vor.u32 %v7231_v3, %v7228_v21  ;;  %v7333_v55 = vmax.bf16 %v7223_v32, %v6773_v56  ;;  %v6374_v4 = vshrl.u32 %v5895_v14, 16  ;;  %v7529_v52 = vsel %vm9856_vm10, %v7527_v62, %v7528_v31  ;;  %13579 = vst [vmem:[#allocation59_spill] sm:$0xff] %v12782_v5  ;;  %v6496_v3 = vld [vmem:[#allocation2 + $0xe4] sm:$0xe]  ;;  %v12785_v62 = vpop.f32.mrf.mxu0  ;;  %v6796_v5 = vld [vmem:[#allocation2 + $0xec] sm:$0x3] }
 0x3e3   : > { %v7677_v36 = vmax.bf16 %v7645_v22, %v12671_v40  ;;  %v6377_v29 = vshll.u32 %v5895_v14, 16  ;;  %v6383_v13 = vshll.u32 %v12761_v0, 16  ;;  %v7678_v25 = vmax.bf16 %v7646_v60, %v12677_v58  ;;  %13580 = vst [vmem:[#allocation60_spill] sm:$0xff] %v12785_v62 }
 0x3e4   : > { %v7233_v24 = vsel %vm9771_vm4, %v7224_v63, %v7232_v51  ;;  %v12779_v16 = vmax.bf16 %v7526_v18, %v7333_v55  ;;  %v6376_v2 = vrot.slane %v6374_v4, 4  ;;  %v6387_v31 = vshrl.u32 %v12761_v0, 16  ;;  %v12796_v45 = vpop.f32.mrf.mxu0 }
 0x3e5   : > { %v7334_v47 = vmax.bf16 %v7233_v24, %v6774_v49  ;;  %v7709_v56 = vmax.bf16 %v7677_v36, %v12728_v12  ;;  %v6379_v61 = vrot.slane %v6377_v29, 5  ;;  %v6385_v21 = vrot.slane %v6383_v13, 5  ;;  %v12793_v29 = vpop.f32.mrf.mxu1 }
 0x3e6   : > { %v7710_v32 = vmax.bf16 %v7678_v25, %v12735_v9  ;;  %v6393_v63 = vshll.u32 %v5916_v48, 16  ;;  %v8799_v18 = vrot.slane %v6496_v3, 9  ;;  %v6692_v49 = vrot.slane %v12761_v0, 5  ;;  %13581 = vst [vmem:[#allocation61_spill] sm:$0xff] %v12793_v29 }
 0x3e7   : > { %v12789_v22 = vmax.bf16 %v7529_v52, %v7334_v47  ;;  %v7741_v51 = vmax.bf16 %v7709_v56, %v12779_v16  ;;  %v6380_v55 = vor.u32 %v6379_v61, %v6376_v2  ;;  %v6389_v60 = vrot.slane %v6387_v31, 4  ;;  %v12802_v15 = vpop.f32.mrf.mxu1 }
 0x3e8   : > { %v6395_v4 = vrot.slane %v6393_v63, 5  ;;  %v7235_v36 = vshrl.u32 %v6496_v3, 16  ;;  %v6694_v25 = vrot.slane %v6692_v49, 4  ;;  %v6695_v30 = vrot.slane %v5916_v48, 5 }
 0x3e9   : > { %v7742_v24 = vmax.bf16 %v7710_v32, %v12789_v22  ;;  %v6381_v62 = vrot.slane %v6380_v55, 4  ;;  %v6390_v52 = vor.u32 %v6389_v60, %v6385_v21  ;;  %v7238_v54 = vshll.u32 %v6496_v3, 16 }
 0x3ea   : > { %v7237_v47 = vrot.slane %v7235_v36, 5  ;;  %v7243_v56 = vrot.slane %v6387_v31, 5  ;;  %v6693_v63 = vsel %vm9650_vm14, %v8799_v18, %v6692_v49  ;;  %v7244_v29 = vrot.slane %v6383_v13, 6  ;;  %v12814_v49 = vpop.f32.mrf.mxu1 }
 0x3eb   : > { %v8834_v2 = vcombine.low %v7741_v51, %v7742_v24  ;;  %v6386_v61 = vsel %vm9562_vm11, %v6381_v62, %v6385_v21  ;;  %v6391_v32 = vrot.slane %v6390_v52, 4  ;;  %v7240_v43 = vrot.slane %v7238_v54, 6  ;;  %v12810_v62 = vpop.f32.mrf.mxu0 }
 0x3ec   : > { %v6475_v55 = vmax.bf16 %v6386_v61, %v5895_v14  ;;  %v7249_v48 = vshrl.u32 %v6796_v5, 16  ;;  %v12807_v3 = vsel %vm9650_vm14, %v6694_v25, %v6695_v30  ;;  %v7245_v31 = vor.u32 %v7244_v29, %v7243_v56 }
 0x3ed   : > { %9091 = vmatprep.mubr.msk.bf16.mxu1 %vm422_vm6, %v8834_v2  ;;  %v7252_v51 = vshll.u32 %v6796_v5, 16  ;;  %v7532_v21 = vrot.slane %v12761_v0, 6  ;;  %v6396_v13 = vsel %vm9562_vm11, %v6391_v32, %v6395_v4  ;;  %v7241_v14 = vor.u32 %v7240_v43, %v7237_v47  ;;  %v12829_v47 = vpop.f32.mrf.mxu1 }
 0x3ee   : > { %v7251_v54 = vrot.slane %v7249_v48, 5  ;;  %v8819_v18 = vrot.slane %v7356_v17, 10  ;;  %v6476_v60 = vmax.bf16 %v6396_v13, %v12761_v0  ;;  %v6775_v36 = vmax.bf16 %v6693_v63, %v6475_v55  ;;  %v12822_v17 = vpop.f32.mrf.mxu0 }
 0x3ef   : > { %v7247_v10 = vrot.slane %v7245_v31, 4  ;;  %v7254_v30 = vrot.slane %v7252_v51, 6  ;;  %v7242_v24 = vrot.slane %v7241_v14, 4  ;;  %v7534_v29 = vrot.slane %v7532_v21, 4  ;;  %v12872_v32 = vpop.f32.mrf.mxu1 }
 0x3f0   : > { %v7535_v25 = vrot.slane %v6796_v5, 6  ;;  %v7647_v52 = vmax.bf16 %v12671_v40, %v12607_v1  ;;  %v6776_v56 = vmax.bf16 %v12807_v3, %v6476_v60  ;;  %v7648_v43 = vmax.bf16 %v12677_v58, %v12611_v26  ;;  %v12870_v61 = vpop.f32.mrf.mxu0 }
 0x3f1   : > { %v7255_v41 = vor.u32 %v7254_v30, %v7251_v54  ;;  %vm244_vm0 = vcmask 64512   ;;  %v7246_v0 = vsel %vm9771_vm4, %v7242_v24, %v7245_v31  ;;  %v7533_v4 = vsel %vm9856_vm10, %v8819_v18, %v7532_v21  ;;  %v12876_v14 = vpop.f32.mrf.mxu1 }
 0x3f2   : > { %v7679_v5 = vmax.bf16 %v7647_v52, %v12728_v12  ;;  %v7335_v40 = vmax.bf16 %v7246_v0, %v6775_v36  ;;  %v7536_v26 = vsel %vm9856_vm10, %v7534_v29, %v7535_v25  ;;  %v7680_v58 = vmax.bf16 %v7648_v43, %v12735_v9  ;;  %v12874_v3 = vpop.f32.mrf.mxu0 }
 0x3f3   : > { %v7256_v1 = vsel %vm9771_vm4, %v7247_v10, %v7255_v41  ;;  %v9297_v2 = vmov 0.0  }
 0x3f4   : > { %247 = vst.msk [vmem:[#allocation3 + $0x10] sm:$0xff] %vm244_vm0, %v9297_v2  ;;  %245 = vst.msk [vmem:[#allocation3] sm:$0xff] %vm244_vm0, %v9297_v2  ;;  %v7336_v44 = vmax.bf16 %v7256_v1, %v6776_v56  ;;  %v7711_v37 = vmax.bf16 %v7679_v5, %v12779_v16  ;;  %v7615_v12 = vmax.bf16 %v7533_v4, %v7335_v40  ;;  %v12891_v41 = vpop.f32.mrf.mxu0  ;;  %v12899_v4 = vpop.f32.mrf.mxu1 }
 0x3f5   : > { %246 = vst.msk [vmem:[#allocation3 + $0x8] sm:$0xff] %vm244_vm0, %v9297_v2  ;;  %248 = vst.msk [vmem:[#allocation3 + $0x18] sm:$0xff] %vm244_vm0, %v9297_v2  ;;  %v7712_v9 = vmax.bf16 %v7680_v58, %v12789_v22 }
 0x3f6   : > { %249 = vst.msk [vmem:[#allocation3 + $0x20] sm:$0xff] %vm244_vm0, %v9297_v2  ;;  %250 = vst.msk [vmem:[#allocation3 + $0x28] sm:$0xff] %vm244_vm0, %v9297_v2  ;;  %v7616_v63 = vmax.bf16 %v7536_v26, %v7336_v44  ;;  %v7743_v55 = vmax.bf16 %v7711_v37, %v7615_v12  ;;  %v13582_v12 = vld [vmem:[#allocation17_spill] sm:$0xff] }
 0x3f7   : > { %251 = vst.msk [vmem:[#allocation3 + $0x30] sm:$0xff] %vm244_vm0, %v9297_v2  ;;  %252 = vst.msk [vmem:[#allocation3 + $0x38] sm:$0xff] %vm244_vm0, %v9297_v2 }
 0x3f8   : > { %253 = vst.msk [vmem:[#allocation3 + $0x40] sm:$0xff] %vm244_vm0, %v9297_v2  ;;  %254 = vst.msk [vmem:[#allocation3 + $0x48] sm:$0xff] %vm244_vm0, %v9297_v2  ;;  %v7744_v48 = vmax.bf16 %v7712_v9, %v7616_v63 }
 0x3f9   : > { %255 = vst.msk [vmem:[#allocation3 + $0x50] sm:$0xff] %vm244_vm0, %v9297_v2  ;;  %256 = vst.msk [vmem:[#allocation3 + $0x58] sm:$0xff] %vm244_vm0, %v9297_v2 }
 0x3fa   : > { %257 = vst.msk [vmem:[#allocation3 + $0x60] sm:$0xff] %vm244_vm0, %v9297_v2  ;;  %258 = vst.msk [vmem:[#allocation3 + $0x68] sm:$0xff] %vm244_vm0, %v9297_v2  ;;  %v8835_v31 = vcombine.low %v7743_v55, %v7744_v48  ;;  %v12919_v55 = vpop.f32.mrf.mxu0 }
 0x3fb   : > { %259 = vst.msk [vmem:[#allocation3 + $0x70] sm:$0xff] %vm244_vm0, %v9297_v2  ;;  %260 = vst.msk [vmem:[#allocation3 + $0x78] sm:$0xff] %vm244_vm0, %v9297_v2  ;;  %v312_v51 = vld [vmem:[#allocation3 + $0x10] sm:$0xff]  ;;  %v310_v21 = vld [vmem:[#allocation3] sm:$0xff] }
 0x3fc   : > { %261 = vst.msk [vmem:[#allocation3 + $0x80] sm:$0xff] %vm244_vm0, %v9297_v2  ;;  %262 = vst.msk [vmem:[#allocation3 + $0x88] sm:$0xff] %vm244_vm0, %v9297_v2  ;;  %v313_v13 = vld [vmem:[#allocation3 + $0x18] sm:$0xff]  ;;  %v638_v16 = vadd.f32 %v12349_v42, %v312_v51  ;;  %v636_v54 = vadd.f32 %v12355_v20, %v310_v21  ;;  %v311_v18 = vld [vmem:[#allocation3 + $0x8] sm:$0xff]  ;;  %9092 = vmatmul.mubr.msk.bf16.gmra.mxu1 %vm422_vm6, %v8835_v31 }
 0x3fd   : > { %263 = vst.msk [vmem:[#allocation3 + $0x90] sm:$0xff] %vm244_vm0, %v9297_v2  ;;  %264 = vst.msk [vmem:[#allocation3 + $0x98] sm:$0xff] %vm244_vm0, %v9297_v2  ;;  %v639_v22 = vadd.f32 %v12360_v53, %v313_v13  ;;  %v314_v36 = vld [vmem:[#allocation3 + $0x20] sm:$0xff]  ;;  %v637_v10 = vadd.f32 %v12368_v33, %v311_v18  ;;  %v315_v25 = vld [vmem:[#allocation3 + $0x28] sm:$0xff] }
 0x3fe   : > { %265 = vst.msk [vmem:[#allocation3 + $0xa0] sm:$0xff] %vm244_vm0, %v9297_v2  ;;  %266 = vst.msk [vmem:[#allocation3 + $0xa8] sm:$0xff] %vm244_vm0, %v9297_v2  ;;  %v316_v60 = vld [vmem:[#allocation3 + $0x30] sm:$0xff]  ;;  %v640_v24 = vadd.f32 %v12391_v19, %v314_v36  ;;  %v317_v29 = vld [vmem:[#allocation3 + $0x38] sm:$0xff]  ;;  %v641_v20 = vadd.f32 %v12409_v23, %v315_v25 }
 0x3ff   : > { %267 = vst.msk [vmem:[#allocation3 + $0xb0] sm:$0xff] %vm244_vm0, %v9297_v2  ;;  %268 = vst.msk [vmem:[#allocation3 + $0xb8] sm:$0xff] %vm244_vm0, %v9297_v2  ;;  %v642_v30 = vadd.f32 %v12376_v50, %v316_v60  ;;  %v643_v42 = vadd.f32 %v12401_v6, %v317_v29  ;;  %v318_v33 = vld [vmem:[#allocation3 + $0x40] sm:$0xff]  ;;  %v319_v50 = vld [vmem:[#allocation3 + $0x48] sm:$0xff] }
 0x400   : > { %269 = vst.msk [vmem:[#allocation3 + $0xc0] sm:$0xff] %vm244_vm0, %v9297_v2  ;;  %270 = vst.msk [vmem:[#allocation3 + $0xc8] sm:$0xff] %vm244_vm0, %v9297_v2  ;;  %v320_v52 = vld [vmem:[#allocation3 + $0x50] sm:$0xff]  ;;  %v321_v56 = vld [vmem:[#allocation3 + $0x58] sm:$0xff]  ;;  %v644_v19 = vadd.f32 %v12423_v38, %v318_v33  ;;  %v645_v6 = vadd.f32 %v12441_v11, %v319_v50 }
 0x401   : > { %271 = vst.msk [vmem:[#allocation3 + $0xd0] sm:$0xff] %vm244_vm0, %v9297_v2  ;;  %272 = vst.msk [vmem:[#allocation3 + $0xd8] sm:$0xff] %vm244_vm0, %v9297_v2  ;;  %v646_v53 = vadd.f32 %v12415_v7, %v320_v52  ;;  %v647_v43 = vadd.f32 %v12433_v59, %v321_v56  ;;  %v322_v0 = vld [vmem:[#allocation3 + $0x60] sm:$0xff]  ;;  %v323_v59 = vld [vmem:[#allocation3 + $0x68] sm:$0xff] }
 0x402   : > { %273 = vst.msk [vmem:[#allocation3 + $0xe0] sm:$0xff] %vm244_vm0, %v9297_v2  ;;  %274 = vst.msk [vmem:[#allocation3 + $0xe8] sm:$0xff] %vm244_vm0, %v9297_v2  ;;  %v324_v23 = vld [vmem:[#allocation3 + $0x70] sm:$0xff]  ;;  %v325_v7 = vld [vmem:[#allocation3 + $0x78] sm:$0xff]  ;;  %v648_v1 = vadd.f32 %v12468_v8, %v322_v0  ;;  %v649_v26 = vadd.f32 %v12485_v35, %v323_v59 }
 0x403   : > { %275 = vst.msk [vmem:[#allocation3 + $0xf0] sm:$0xff] %vm244_vm0, %v9297_v2  ;;  %276 = vst.msk [vmem:[#allocation3 + $0xf8] sm:$0xff] %vm244_vm0, %v9297_v2  ;;  %v650_v5 = vadd.f32 %v12455_v28, %v324_v23  ;;  %v651_v38 = vadd.f32 %v12477_v27, %v325_v7  ;;  %v326_v11 = vld [vmem:[#allocation3 + $0x80] sm:$0xff]  ;;  %v327_v44 = vld [vmem:[#allocation3 + $0x88] sm:$0xff] }
 0x404   : > { %671 = vst.msk [vmem:[#allocation3 + $0x10] sm:$0xff] %vm244_vm0, %v638_v16  ;;  %669 = vst.msk [vmem:[#allocation3] sm:$0xff] %vm244_vm0, %v636_v54  ;;  %v328_v40 = vld [vmem:[#allocation3 + $0x90] sm:$0xff]  ;;  %v652_v2 = vadd.f32 %v12498_v46, %v326_v11  ;;  %v329_v28 = vld [vmem:[#allocation3 + $0x98] sm:$0xff]  ;;  %v653_v37 = vadd.f32 %v12516_v57, %v327_v44  ;;  %v12927_v54 = vpop.f32.mrf.mxu1  ;;  %v12947_v11 = vpop.f32.mrf.mxu0 }
 0x405   : > { %672 = vst.msk [vmem:[#allocation3 + $0x18] sm:$0xff] %vm244_vm0, %v639_v22  ;;  %670 = vst.msk [vmem:[#allocation3 + $0x8] sm:$0xff] %vm244_vm0, %v637_v10  ;;  %v654_v58 = vadd.f32 %v12490_v34, %v328_v40  ;;  %v655_v27 = vadd.f32 %v12505_v39, %v329_v28  ;;  %v330_v35 = vld [vmem:[#allocation3 + $0xa0] sm:$0xff]  ;;  %v331_v34 = vld [vmem:[#allocation3 + $0xa8] sm:$0xff] }
 0x406   : > { %675 = vst.msk [vmem:[#allocation3 + $0x30] sm:$0xff] %vm244_vm0, %v642_v30  ;;  %673 = vst.msk [vmem:[#allocation3 + $0x20] sm:$0xff] %vm244_vm0, %v640_v24  ;;  %v332_v8 = vld [vmem:[#allocation3 + $0xb0] sm:$0xff]  ;;  %v333_v63 = vld [vmem:[#allocation3 + $0xb8] sm:$0xff] }
 0x407   : > { %676 = vst.msk [vmem:[#allocation3 + $0x38] sm:$0xff] %vm244_vm0, %v643_v42  ;;  %674 = vst.msk [vmem:[#allocation3 + $0x28] sm:$0xff] %vm244_vm0, %v641_v20  ;;  %v658_v9 = vadd.f32 %v13582_v12, %v332_v8  ;;  %v13583_v46 = vld [vmem:[#allocation19_spill] sm:$0xff]  ;;  %v13584_v31 = vld [vmem:[#allocation20_spill] sm:$0xff] }
 0x408   : > { %679 = vst.msk [vmem:[#allocation3 + $0x50] sm:$0xff] %vm244_vm0, %v646_v53  ;;  %677 = vst.msk [vmem:[#allocation3 + $0x40] sm:$0xff] %vm244_vm0, %v644_v19  ;;  %v656_v48 = vadd.f32 %v13583_v46, %v330_v35  ;;  %v659_v51 = vadd.f32 %v13584_v31, %v333_v63  ;;  %v13585_v39 = vld [vmem:[#allocation22_spill] sm:$0xff]  ;;  %v334_v13 = vld [vmem:[#allocation3 + $0xc0] sm:$0xff] }
 0x409   : > { %680 = vst.msk [vmem:[#allocation3 + $0x58] sm:$0xff] %vm244_vm0, %v647_v43  ;;  %678 = vst.msk [vmem:[#allocation3 + $0x48] sm:$0xff] %vm244_vm0, %v645_v6  ;;  %v657_v21 = vadd.f32 %v13585_v39, %v331_v34  ;;  %v336_v57 = vld [vmem:[#allocation3 + $0xd0] sm:$0xff]  ;;  %v337_v16 = vld [vmem:[#allocation3 + $0xd8] sm:$0xff] }
 0x40a   : > { %683 = vst.msk [vmem:[#allocation3 + $0x70] sm:$0xff] %vm244_vm0, %v650_v5  ;;  %681 = vst.msk [vmem:[#allocation3 + $0x60] sm:$0xff] %vm244_vm0, %v648_v1  ;;  %v13586_v22 = vld [vmem:[#allocation23_spill] sm:$0xff]  ;;  %v13587_v60 = vld [vmem:[#allocation25_spill] sm:$0xff] }
 0x40b   : > { %684 = vst.msk [vmem:[#allocation3 + $0x78] sm:$0xff] %vm244_vm0, %v651_v38  ;;  %682 = vst.msk [vmem:[#allocation3 + $0x68] sm:$0xff] %vm244_vm0, %v649_v26  ;;  %v662_v18 = vadd.f32 %v13586_v22, %v336_v57  ;;  %v660_v36 = vadd.f32 %v13587_v60, %v334_v13  ;;  %v13588_v10 = vld [vmem:[#allocation26_spill] sm:$0xff]  ;;  %v335_v24 = vld [vmem:[#allocation3 + $0xc8] sm:$0xff] }
 0x40c   : > { %687 = vst.msk [vmem:[#allocation3 + $0x90] sm:$0xff] %vm244_vm0, %v654_v58  ;;  %685 = vst.msk [vmem:[#allocation3 + $0x80] sm:$0xff] %vm244_vm0, %v652_v2  ;;  %v663_v30 = vadd.f32 %v13588_v10, %v337_v16  ;;  %v340_v29 = vld [vmem:[#allocation3 + $0xf0] sm:$0xff]  ;;  %v338_v25 = vld [vmem:[#allocation3 + $0xe0] sm:$0xff] }
 0x40d   : > { %688 = vst.msk [vmem:[#allocation3 + $0x98] sm:$0xff] %vm244_vm0, %v655_v27  ;;  %686 = vst.msk [vmem:[#allocation3 + $0x88] sm:$0xff] %vm244_vm0, %v653_v37  ;;  %v2834_v52 = vld [vmem:[#allocation3 + $0x10] sm:$0xff]  ;;  %v2832_v42 = vld [vmem:[#allocation3] sm:$0xff] }
 0x40e   : > { %691 = vst.msk [vmem:[#allocation3 + $0xb0] sm:$0xff] %vm244_vm0, %v658_v9  ;;  %v2835_v20 = vld [vmem:[#allocation3 + $0x18] sm:$0xff]  ;;  %689 = vst.msk [vmem:[#allocation3 + $0xa0] sm:$0xff] %vm244_vm0, %v656_v48  ;;  %v13589_v53 = vld [vmem:[#allocation28_spill] sm:$0xff]  ;;  %v12955_v9 = vpop.f32.mrf.mxu1 }
 0x40f   : > { %692 = vst.msk [vmem:[#allocation3 + $0xb8] sm:$0xff] %vm244_vm0, %v659_v51  ;;  %690 = vst.msk [vmem:[#allocation3 + $0xa8] sm:$0xff] %vm244_vm0, %v657_v21  ;;  %v661_v33 = vadd.f32 %v13589_v53, %v335_v24  ;;  %v13590_v56 = vld [vmem:[#allocation29_spill] sm:$0xff]  ;;  %v13591_v19 = vld [vmem:[#allocation31_spill] sm:$0xff] }
 0x410   : > { %v666_v50 = vadd.f32 %v13590_v56, %v340_v29  ;;  %v664_v43 = vadd.f32 %v13591_v19, %v338_v25  ;;  %v13592_v6 = vld [vmem:[#allocation12_spill] sm:$0xff]  ;;  %v13593_v0 = vld [vmem:[#allocation7_spill] sm:$0xff]  ;;  %v13594_v5 = vld [vmem:[#allocation5_spill] sm:$0xff]  ;;  %695 = vst.msk [vmem:[#allocation3 + $0xd0] sm:$0xff] %vm244_vm0, %v662_v18 }
 0x411   : > { %v3162_v23 = vadd.f32 %v13592_v6, %v2834_v52  ;;  %v3160_v7 = vadd.f32 %v13593_v0, %v2832_v42  ;;  %v3163_v1 = vadd.f32 %v13594_v5, %v2835_v20  ;;  %v2833_v38 = vld [vmem:[#allocation3 + $0x8] sm:$0xff]  ;;  %v2838_v59 = vld [vmem:[#allocation3 + $0x30] sm:$0xff]  ;;  %v2836_v40 = vld [vmem:[#allocation3 + $0x20] sm:$0xff]  ;;  %693 = vst.msk [vmem:[#allocation3 + $0xc0] sm:$0xff] %vm244_vm0, %v660_v36 }
 0x412   : > { %696 = vst.msk [vmem:[#allocation3 + $0xd8] sm:$0xff] %vm244_vm0, %v663_v30  ;;  %v13595_v26 = vld [vmem:[#allocation6_spill] sm:$0xff]  ;;  %v13596_v2 = vld [vmem:[#allocation8_spill] sm:$0xff]  ;;  %v13597_v44 = vld [vmem:[#allocation9_spill] sm:$0xff] }
 0x413   : > { %v3161_v58 = vadd.f32 %v13595_v26, %v2833_v38  ;;  %v3166_v28 = vadd.f32 %v13596_v2, %v2838_v59  ;;  %v3164_v8 = vadd.f32 %v13597_v44, %v2836_v40  ;;  %v2839_v27 = vld [vmem:[#allocation3 + $0x38] sm:$0xff]  ;;  %v2837_v37 = vld [vmem:[#allocation3 + $0x28] sm:$0xff]  ;;  %v2842_v12 = vld [vmem:[#allocation3 + $0x50] sm:$0xff]  ;;  %694 = vst.msk [vmem:[#allocation3 + $0xc8] sm:$0xff] %vm244_vm0, %v661_v33  ;;  %v12983_v59 = vpop.f32.mrf.mxu1 }
 0x414   : > { %699 = vst.msk [vmem:[#allocation3 + $0xf0] sm:$0xff] %vm244_vm0, %v666_v50  ;;  %697 = vst.msk [vmem:[#allocation3 + $0xe0] sm:$0xff] %vm244_vm0, %v664_v43  ;;  %v13598_v35 = vld [vmem:[#allocation10_spill] sm:$0xff]  ;;  %v13599_v34 = vld [vmem:[#allocation11_spill] sm:$0xff]  ;;  %v12975_v50 = vpop.f32.mrf.mxu0 }
 0x415   : > { %3194 = vst.msk [vmem:[#allocation3 + $0x10] sm:$0xff] %vm244_vm0, %v3162_v23  ;;  %3192 = vst.msk [vmem:[#allocation3] sm:$0xff] %vm244_vm0, %v3160_v7  ;;  %v3167_v63 = vadd.f32 %v13598_v35, %v2839_v27  ;;  %v3165_v46 = vadd.f32 %v13599_v34, %v2837_v37  ;;  %v13600_v48 = vld [vmem:[#allocation4_spill] sm:$0xff]  ;;  %v2843_v39 = vld [vmem:[#allocation3 + $0x58] sm:$0xff] }
 0x416   : > { %3195 = vst.msk [vmem:[#allocation3 + $0x18] sm:$0xff] %vm244_vm0, %v3163_v1  ;;  %v3170_v31 = vadd.f32 %v13600_v48, %v2842_v12  ;;  %v2840_v51 = vld [vmem:[#allocation3 + $0x40] sm:$0xff]  ;;  %v2841_v21 = vld [vmem:[#allocation3 + $0x48] sm:$0xff]  ;;  %3193 = vst.msk [vmem:[#allocation3 + $0x8] sm:$0xff] %vm244_vm0, %v3161_v58 }
 0x417   : > { %3198 = vst.msk [vmem:[#allocation3 + $0x30] sm:$0xff] %vm244_vm0, %v3166_v28  ;;  %3196 = vst.msk [vmem:[#allocation3 + $0x20] sm:$0xff] %vm244_vm0, %v3164_v8  ;;  %v13601_v57 = vld [vmem:[#allocation13_spill] sm:$0xff]  ;;  %v13602_v16 = vld [vmem:[#allocation14_spill] sm:$0xff] }
 0x418   : > { %v3168_v13 = vadd.f32 %v13601_v57, %v2840_v51  ;;  %v3171_v22 = vadd.f32 %v13602_v16, %v2843_v39  ;;  %v13603_v18 = vld [vmem:[#allocation15_spill] sm:$0xff]  ;;  %v2846_v36 = vld [vmem:[#allocation3 + $0x70] sm:$0xff]  ;;  %v2844_v10 = vld [vmem:[#allocation3 + $0x60] sm:$0xff]  ;;  %3199 = vst.msk [vmem:[#allocation3 + $0x38] sm:$0xff] %vm244_vm0, %v3167_v63 }
 0x419   : > { %v3169_v60 = vadd.f32 %v13603_v18, %v2841_v21  ;;  %v2847_v30 = vld [vmem:[#allocation3 + $0x78] sm:$0xff]  ;;  %3197 = vst.msk [vmem:[#allocation3 + $0x28] sm:$0xff] %vm244_vm0, %v3165_v46  ;;  %3202 = vst.msk [vmem:[#allocation3 + $0x50] sm:$0xff] %vm244_vm0, %v3170_v31  ;;  %v13604_v24 = vld [vmem:[#allocation16_spill] sm:$0xff] }
 0x41a   : > { %v3174_v29 = vadd.f32 %v13604_v24, %v2846_v36  ;;  %v13605_v25 = vld [vmem:[#allocation18_spill] sm:$0xff]  ;;  %v13606_v42 = vld [vmem:[#allocation21_spill] sm:$0xff]  ;;  %v341_v53 = vld [vmem:[#allocation3 + $0xf8] sm:$0xff]  ;;  %3200 = vst.msk [vmem:[#allocation3 + $0x40] sm:$0xff] %vm244_vm0, %v3168_v13 }
 0x41b   : > { %v3172_v52 = vadd.f32 %v13605_v25, %v2844_v10  ;;  %v3175_v20 = vadd.f32 %v13606_v42, %v2847_v30  ;;  %v2845_v33 = vld [vmem:[#allocation3 + $0x68] sm:$0xff]  ;;  %3203 = vst.msk [vmem:[#allocation3 + $0x58] sm:$0xff] %vm244_vm0, %v3171_v22  ;;  %3201 = vst.msk [vmem:[#allocation3 + $0x48] sm:$0xff] %vm244_vm0, %v3169_v60  ;;  %v13607_v19 = vld [vmem:[#allocation32_spill] sm:$0xff]  ;;  %v13003_v30 = vpop.f32.mrf.mxu0 }
 0x41c   : > { %v339_v56 = vld [vmem:[#allocation3 + $0xe8] sm:$0xff]  ;;  %v667_v43 = vadd.f32 %v13607_v19, %v341_v53  ;;  %v13608_v6 = vld [vmem:[#allocation24_spill] sm:$0xff]  ;;  %v13609_v0 = vld [vmem:[#allocation34_spill] sm:$0xff]  ;;  %3206 = vst.msk [vmem:[#allocation3 + $0x70] sm:$0xff] %vm244_vm0, %v3174_v29  ;;  %v13011_v19 = vpop.f32.mrf.mxu1 }
 0x41d   : > { %v3173_v23 = vadd.f32 %v13608_v6, %v2845_v33  ;;  %v665_v7 = vadd.f32 %v13609_v0, %v339_v56  ;;  %v2850_v5 = vld [vmem:[#allocation3 + $0x90] sm:$0xff]  ;;  %v2848_v1 = vld [vmem:[#allocation3 + $0x80] sm:$0xff]  ;;  %v2851_v38 = vld [vmem:[#allocation3 + $0x98] sm:$0xff]  ;;  %3204 = vst.msk [vmem:[#allocation3 + $0x60] sm:$0xff] %vm244_vm0, %v3172_v52 }
 0x41e   : > { %3207 = vst.msk [vmem:[#allocation3 + $0x78] sm:$0xff] %vm244_vm0, %v3175_v20  ;;  %v13610_v40 = vld [vmem:[#allocation27_spill] sm:$0xff]  ;;  %v13611_v58 = vld [vmem:[#allocation30_spill] sm:$0xff]  ;;  %v13612_v28 = vld [vmem:[#allocation33_spill] sm:$0xff] }
 0x41f   : > { %v3178_v26 = vadd.f32 %v13610_v40, %v2850_v5  ;;  %v3176_v2 = vadd.f32 %v13611_v58, %v2848_v1  ;;  %v3179_v44 = vadd.f32 %v13612_v28, %v2851_v38  ;;  %v2849_v8 = vld [vmem:[#allocation3 + $0x88] sm:$0xff]  ;;  %v2854_v27 = vld [vmem:[#allocation3 + $0xb0] sm:$0xff]  ;;  %v2852_v37 = vld [vmem:[#allocation3 + $0xa0] sm:$0xff]  ;;  %700 = vst.msk [vmem:[#allocation3 + $0xf8] sm:$0xff] %vm244_vm0, %v667_v43 }
 0x420   : > { %3205 = vst.msk [vmem:[#allocation3 + $0x68] sm:$0xff] %vm244_vm0, %v3173_v23  ;;  %698 = vst.msk [vmem:[#allocation3 + $0xe8] sm:$0xff] %vm244_vm0, %v665_v7  ;;  %v13613_v12 = vld [vmem:[#allocation36_spill] sm:$0xff]  ;;  %v13614_v63 = vld [vmem:[#allocation39_spill] sm:$0xff] }
 0x421   : > { %v3177_v35 = vadd.f32 %v13613_v12, %v2849_v8  ;;  %v3182_v34 = vadd.f32 %v13614_v63, %v2854_v27  ;;  %v13615_v46 = vld [vmem:[#allocation41_spill] sm:$0xff]  ;;  %v2855_v31 = vld [vmem:[#allocation3 + $0xb8] sm:$0xff]  ;;  %v2858_v39 = vld [vmem:[#allocation3 + $0xd0] sm:$0xff]  ;;  %3210 = vst.msk [vmem:[#allocation3 + $0x90] sm:$0xff] %vm244_vm0, %v3178_v26 }
 0x422   : > { %v3180_v48 = vadd.f32 %v13615_v46, %v2852_v37  ;;  %v2853_v51 = vld [vmem:[#allocation3 + $0xa8] sm:$0xff]  ;;  %3208 = vst.msk [vmem:[#allocation3 + $0x80] sm:$0xff] %vm244_vm0, %v3176_v2  ;;  %3211 = vst.msk [vmem:[#allocation3 + $0x98] sm:$0xff] %vm244_vm0, %v3179_v44  ;;  %v13616_v21 = vld [vmem:[#allocation44_spill] sm:$0xff] }
 0x423   : > { %v3183_v57 = vadd.f32 %v13616_v21, %v2855_v31  ;;  %v13617_v13 = vld [vmem:[#allocation47_spill] sm:$0xff]  ;;  %v13618_v22 = vld [vmem:[#allocation49_spill] sm:$0xff]  ;;  %v2856_v60 = vld [vmem:[#allocation3 + $0xc0] sm:$0xff]  ;;  %3209 = vst.msk [vmem:[#allocation3 + $0x88] sm:$0xff] %vm244_vm0, %v3177_v35 }
 0x424   : > { %v3181_v16 = vadd.f32 %v13617_v13, %v2853_v51  ;;  %v3186_v18 = vadd.f32 %v13618_v22, %v2858_v39  ;;  %v2859_v36 = vld [vmem:[#allocation3 + $0xd8] sm:$0xff]  ;;  %v2857_v10 = vld [vmem:[#allocation3 + $0xc8] sm:$0xff]  ;;  %v5291_v24 = vld [vmem:[#allocation3 + $0x10] sm:$0xff]  ;;  %3214 = vst.msk [vmem:[#allocation3 + $0xb0] sm:$0xff] %vm244_vm0, %v3182_v34 }
 0x425   : > { %v5289_v29 = vld [vmem:[#allocation3] sm:$0xff]  ;;  %v5292_v25 = vld [vmem:[#allocation3 + $0x18] sm:$0xff]  ;;  %3212 = vst.msk [vmem:[#allocation3 + $0xa0] sm:$0xff] %vm244_vm0, %v3180_v48  ;;  %v13620_v20 = vld [vmem:[#allocation53_spill] sm:$0xff] }
 0x426   : > { %v13619_v52 = vld [vmem:[#allocation51_spill] sm:$0xff]  ;;  %v3187_v53 = vadd.f32 %v13620_v20, %v2859_v36  ;;  %v13623_v23 = vld [vmem:[#allocation37_spill] sm:$0xff]  ;;  %v13624_v7 = vld [vmem:[#allocation38_spill] sm:$0xff]  ;;  %3215 = vst.msk [vmem:[#allocation3 + $0xb8] sm:$0xff] %vm244_vm0, %v3183_v57  ;;  %v13031_v57 = vpop.f32.mrf.mxu0 }
 0x427   : > { %v3184_v42 = vadd.f32 %v13619_v52, %v2856_v60  ;;  %v13621_v33 = vld [vmem:[#allocation55_spill] sm:$0xff]  ;;  %v5617_v0 = vadd.f32 %v13623_v23, %v5289_v29  ;;  %v5620_v5 = vadd.f32 %v13624_v7, %v5292_v25  ;;  %v5290_v1 = vld [vmem:[#allocation3 + $0x8] sm:$0xff]  ;;  %v5295_v38 = vld [vmem:[#allocation3 + $0x30] sm:$0xff]  ;;  %3213 = vst.msk [vmem:[#allocation3 + $0xa8] sm:$0xff] %vm244_vm0, %v3181_v16  ;;  %v13039_v25 = vpop.f32.mrf.mxu1 }
 0x428   : > { %v3185_v56 = vadd.f32 %v13621_v33, %v2857_v10  ;;  %v13622_v43 = vld [vmem:[#allocation35_spill] sm:$0xff]  ;;  %v5293_v40 = vld [vmem:[#allocation3 + $0x20] sm:$0xff]  ;;  %3218 = vst.msk [vmem:[#allocation3 + $0xd0] sm:$0xff] %vm244_vm0, %v3186_v18  ;;  %v13626_v2 = vld [vmem:[#allocation42_spill] sm:$0xff] }
 0x429   : > { %v5619_v6 = vadd.f32 %v13622_v43, %v5291_v24  ;;  %v13625_v26 = vld [vmem:[#allocation40_spill] sm:$0xff]  ;;  %v5623_v28 = vadd.f32 %v13626_v2, %v5295_v38  ;;  %v13627_v44 = vld [vmem:[#allocation43_spill] sm:$0xff]  ;;  %v5294_v37 = vld [vmem:[#allocation3 + $0x28] sm:$0xff]  ;;  %3216 = vst.msk [vmem:[#allocation3 + $0xc0] sm:$0xff] %vm244_vm0, %v3184_v42 }
 0x42a   : > { %v5618_v58 = vadd.f32 %v13625_v26, %v5290_v1  ;;  %v5621_v8 = vadd.f32 %v13627_v44, %v5293_v40  ;;  %v5296_v27 = vld [vmem:[#allocation3 + $0x38] sm:$0xff]  ;;  %v5299_v12 = vld [vmem:[#allocation3 + $0x50] sm:$0xff]  ;;  %3219 = vst.msk [vmem:[#allocation3 + $0xd8] sm:$0xff] %vm244_vm0, %v3187_v53  ;;  %3217 = vst.msk [vmem:[#allocation3 + $0xc8] sm:$0xff] %vm244_vm0, %v3185_v56 }
 0x42b   : > { %5651 = vst.msk [vmem:[#allocation3 + $0x10] sm:$0xff] %vm244_vm0, %v5619_v6  ;;  %5649 = vst.msk [vmem:[#allocation3] sm:$0xff] %vm244_vm0, %v5617_v0  ;;  %v13628_v35 = vld [vmem:[#allocation45_spill] sm:$0xff]  ;;  %v13629_v34 = vld [vmem:[#allocation46_spill] sm:$0xff] }
 0x42c   : > { %5652 = vst.msk [vmem:[#allocation3 + $0x18] sm:$0xff] %vm244_vm0, %v5620_v5  ;;  %v5624_v63 = vadd.f32 %v13628_v35, %v5296_v27  ;;  %v5622_v46 = vadd.f32 %v13629_v34, %v5294_v37  ;;  %v13630_v48 = vld [vmem:[#allocation48_spill] sm:$0xff]  ;;  %v5300_v39 = vld [vmem:[#allocation3 + $0x58] sm:$0xff]  ;;  %v2862_v21 = vld [vmem:[#allocation3 + $0xf0] sm:$0xff]  ;;  %v9056_v35 = vpop.f32.mrf.mxu0 }
 0x42d   : > { %v5627_v31 = vadd.f32 %v13630_v48, %v5299_v12  ;;  %v5297_v51 = vld [vmem:[#allocation3 + $0x40] sm:$0xff]  ;;  %5650 = vst.msk [vmem:[#allocation3 + $0x8] sm:$0xff] %vm244_vm0, %v5618_v58  ;;  %5655 = vst.msk [vmem:[#allocation3 + $0x30] sm:$0xff] %vm244_vm0, %v5623_v28  ;;  %v13631_v13 = vld [vmem:[#allocation50_spill] sm:$0xff] }
 0x42e   : > { %5653 = vst.msk [vmem:[#allocation3 + $0x20] sm:$0xff] %vm244_vm0, %v5621_v8  ;;  %v5625_v16 = vadd.f32 %v13631_v13, %v5297_v51  ;;  %v13632_v22 = vld [vmem:[#allocation52_spill] sm:$0xff]  ;;  %v13633_v60 = vld [vmem:[#allocation57_spill] sm:$0xff]  ;;  %v5303_v29 = vld [vmem:[#allocation3 + $0x70] sm:$0xff] }
 0x42f   : > { %v5628_v18 = vadd.f32 %v13632_v22, %v5300_v39  ;;  %v3190_v36 = vadd.f32 %v13633_v60, %v2862_v21  ;;  %v5298_v10 = vld [vmem:[#allocation3 + $0x48] sm:$0xff]  ;;  %v2860_v24 = vld [vmem:[#allocation3 + $0xe0] sm:$0xff]  ;;  %5656 = vst.msk [vmem:[#allocation3 + $0x38] sm:$0xff] %vm244_vm0, %v5624_v63  ;;  %5654 = vst.msk [vmem:[#allocation3 + $0x28] sm:$0xff] %vm244_vm0, %v5622_v46 }
 0x430   : > { %5659 = vst.msk [vmem:[#allocation3 + $0x50] sm:$0xff] %vm244_vm0, %v5627_v31  ;;  %v13634_v52 = vld [vmem:[#allocation54_spill] sm:$0xff]  ;;  %v13635_v20 = vld [vmem:[#allocation59_spill] sm:$0xff]  ;;  %v13636_v33 = vld [vmem:[#allocation56_spill] sm:$0xff] }
 0x431   : > { %v5626_v42 = vadd.f32 %v13634_v52, %v5298_v10  ;;  %v3188_v53 = vadd.f32 %v13635_v20, %v2860_v24  ;;  %v5631_v56 = vadd.f32 %v13636_v33, %v5303_v29  ;;  %v2863_v43 = vld [vmem:[#allocation3 + $0xf8] sm:$0xff]  ;;  %v5301_v6 = vld [vmem:[#allocation3 + $0x60] sm:$0xff]  ;;  %v2861_v23 = vld [vmem:[#allocation3 + $0xe8] sm:$0xff]  ;;  %5657 = vst.msk [vmem:[#allocation3 + $0x40] sm:$0xff] %vm244_vm0, %v5625_v16 }
 0x432   : > { %5660 = vst.msk [vmem:[#allocation3 + $0x58] sm:$0xff] %vm244_vm0, %v5628_v18  ;;  %3222 = vst.msk [vmem:[#allocation3 + $0xf0] sm:$0xff] %vm244_vm0, %v3190_v36  ;;  %v13637_v0 = vld [vmem:[#allocation61_spill] sm:$0xff]  ;;  %v13638_v5 = vld [vmem:[#allocation58_spill] sm:$0xff]  ;;  %v3189_v38 = vadd.f32 %v12802_v15, %v2861_v23 }
 0x433   : > { %v3191_v7 = vadd.f32 %v13637_v0, %v2863_v43  ;;  %v5629_v1 = vadd.f32 %v13638_v5, %v5301_v6  ;;  %v5304_v40 = vld [vmem:[#allocation3 + $0x78] sm:$0xff]  ;;  %v5302_v26 = vld [vmem:[#allocation3 + $0x68] sm:$0xff]  ;;  %v5307_v58 = vld [vmem:[#allocation3 + $0x90] sm:$0xff]  ;;  %5658 = vst.msk [vmem:[#allocation3 + $0x48] sm:$0xff] %vm244_vm0, %v5626_v42 }
 0x434   : > { %3220 = vst.msk [vmem:[#allocation3 + $0xe0] sm:$0xff] %vm244_vm0, %v3188_v53  ;;  %5663 = vst.msk [vmem:[#allocation3 + $0x70] sm:$0xff] %vm244_vm0, %v5631_v56  ;;  %v13639_v2 = vld [vmem:[#allocation60_spill] sm:$0xff]  ;;  %v5630_v44 = vadd.f32 %v12796_v45, %v5302_v26  ;;  %v5635_v8 = vadd.f32 %v12810_v62, %v5307_v58  ;;  %v5308_v37 = vld [vmem:[#allocation3 + $0x98] sm:$0xff]  ;;  %v9074_v62 = vpop.f32.mrf.mxu1 }
 0x435   : > { %v5632_v28 = vadd.f32 %v13639_v2, %v5304_v40  ;;  %v5305_v27 = vld [vmem:[#allocation3 + $0x80] sm:$0xff]  ;;  %v5306_v12 = vld [vmem:[#allocation3 + $0x88] sm:$0xff]  ;;  %3223 = vst.msk [vmem:[#allocation3 + $0xf8] sm:$0xff] %vm244_vm0, %v3191_v7  ;;  %5661 = vst.msk [vmem:[#allocation3 + $0x60] sm:$0xff] %vm244_vm0, %v5629_v1  ;;  %v5636_v63 = vadd.f32 %v12870_v61, %v5308_v37 }
 0x436   : > { %3221 = vst.msk [vmem:[#allocation3 + $0xe8] sm:$0xff] %vm244_vm0, %v3189_v38  ;;  %v5633_v15 = vadd.f32 %v12822_v17, %v5305_v27  ;;  %v5634_v34 = vadd.f32 %v12874_v3, %v5306_v12  ;;  %v5311_v46 = vld [vmem:[#allocation3 + $0xb0] sm:$0xff]  ;;  %v5309_v45 = vld [vmem:[#allocation3 + $0xa0] sm:$0xff]  ;;  %v5312_v48 = vld [vmem:[#allocation3 + $0xb8] sm:$0xff]  ;;  %v7982_v52 = vpop.f32.mrf.mxu1 }
 0x437   : > { %5664 = vst.msk [vmem:[#allocation3 + $0x78] sm:$0xff] %vm244_vm0, %v5632_v28  ;;  %5662 = vst.msk [vmem:[#allocation3 + $0x68] sm:$0xff] %vm244_vm0, %v5630_v44  ;;  %v5639_v31 = vadd.f32 %v12891_v41, %v5311_v46  ;;  %v5637_v51 = vadd.f32 %v12919_v55, %v5309_v45  ;;  %v5640_v17 = vadd.f32 %v12947_v11, %v5312_v48  ;;  %v5310_v39 = vld [vmem:[#allocation3 + $0xa8] sm:$0xff]  ;;  %v5315_v61 = vld [vmem:[#allocation3 + $0xd0] sm:$0xff] }
 0x438   : > { %5667 = vst.msk [vmem:[#allocation3 + $0x90] sm:$0xff] %vm244_vm0, %v5635_v8  ;;  %v5313_v21 = vld [vmem:[#allocation3 + $0xc0] sm:$0xff]  ;;  %5665 = vst.msk [vmem:[#allocation3 + $0x80] sm:$0xff] %vm244_vm0, %v5633_v15  ;;  %v7748_v3 = vld [vmem:[#allocation3 + $0x10] sm:$0xff]  ;;  %v5638_v22 = vadd.f32 %v12975_v50, %v5310_v39  ;;  %v5643_v41 = vadd.f32 %v13003_v30, %v5315_v61  ;;  %v5589_v50 = vpop.f32.mrf.mxu0 }
 0x439   : > { %5668 = vst.msk [vmem:[#allocation3 + $0x98] sm:$0xff] %vm244_vm0, %v5636_v63  ;;  %v7746_v13 = vld [vmem:[#allocation3] sm:$0xff]  ;;  %5666 = vst.msk [vmem:[#allocation3 + $0x88] sm:$0xff] %vm244_vm0, %v5634_v34  ;;  %v7749_v16 = vld [vmem:[#allocation3 + $0x18] sm:$0xff]  ;;  %v5641_v55 = vadd.f32 %v13031_v57, %v5313_v21  ;;  %v8076_v11 = vadd.f32 %v12814_v49, %v7748_v3 }
 0x43a   : > { %v8074_v18 = vadd.f32 %v12829_v47, %v7746_v13  ;;  %v8077_v60 = vadd.f32 %v12872_v32, %v7749_v16  ;;  %5671 = vst.msk [vmem:[#allocation3 + $0xb0] sm:$0xff] %vm244_vm0, %v5639_v31  ;;  %v7747_v36 = vld [vmem:[#allocation3 + $0x8] sm:$0xff]  ;;  %5669 = vst.msk [vmem:[#allocation3 + $0xa0] sm:$0xff] %vm244_vm0, %v5637_v51  ;;  %v7752_v10 = vld [vmem:[#allocation3 + $0x30] sm:$0xff]  ;;  %v9059_v0 = vpop.f32.mrf.mxu0 }
 0x43b   : > { %5672 = vst.msk [vmem:[#allocation3 + $0xb8] sm:$0xff] %vm244_vm0, %v5640_v17  ;;  %v7750_v24 = vld [vmem:[#allocation3 + $0x20] sm:$0xff]  ;;  %v8075_v30 = vadd.f32 %v12876_v14, %v7747_v36  ;;  %v8080_v57 = vadd.f32 %v12899_v4, %v7752_v10  ;;  %5670 = vst.msk [vmem:[#allocation3 + $0xa8] sm:$0xff] %vm244_vm0, %v5638_v22  ;;  %v7753_v47 = vld [vmem:[#allocation3 + $0x38] sm:$0xff] }
 0x43c   : > { %v8078_v49 = vadd.f32 %v12927_v54, %v7750_v24  ;;  %5675 = vst.msk [vmem:[#allocation3 + $0xd0] sm:$0xff] %vm244_vm0, %v5643_v41  ;;  %v7751_v32 = vld [vmem:[#allocation3 + $0x28] sm:$0xff]  ;;  %5673 = vst.msk [vmem:[#allocation3 + $0xc0] sm:$0xff] %vm244_vm0, %v5641_v55  ;;  %v7756_v29 = vld [vmem:[#allocation3 + $0x50] sm:$0xff]  ;;  %v8081_v14 = vadd.f32 %v12955_v9, %v7753_v47  ;;  %v5602_v58 = vpop.f32.mrf.mxu0 }
 0x43d   : > { %8108 = vst.msk [vmem:[#allocation3 + $0x10] sm:$0xff] %vm244_vm0, %v8076_v11  ;;  %8106 = vst.msk [vmem:[#allocation3] sm:$0xff] %vm244_vm0, %v8074_v18  ;;  %v8079_v4 = vadd.f32 %v12983_v59, %v7751_v32  ;;  %v8084_v54 = vadd.f32 %v13011_v19, %v7756_v29  ;;  %v5316_v42 = vld [vmem:[#allocation3 + $0xd8] sm:$0xff]  ;;  %v7754_v20 = vld [vmem:[#allocation3 + $0x40] sm:$0xff] }
 0x43e   : > { %8109 = vst.msk [vmem:[#allocation3 + $0x18] sm:$0xff] %vm244_vm0, %v8077_v60  ;;  %v5314_v53 = vld [vmem:[#allocation3 + $0xc8] sm:$0xff]  ;;  %8107 = vst.msk [vmem:[#allocation3 + $0x8] sm:$0xff] %vm244_vm0, %v8075_v30  ;;  %v5644_v33 = vadd.f32 %v9056_v35, %v5316_v42  ;;  %v8082_v56 = vadd.f32 %v13039_v25, %v7754_v20  ;;  %v7757_v6 = vld [vmem:[#allocation3 + $0x58] sm:$0xff]  ;;  %v9060_v17 = vpop.f32.mrf.mxu0 }
 0x43f   : > { %8112 = vst.msk [vmem:[#allocation3 + $0x30] sm:$0xff] %vm244_vm0, %v8080_v57  ;;  %8110 = vst.msk [vmem:[#allocation3 + $0x20] sm:$0xff] %vm244_vm0, %v8078_v49  ;;  %v5642_v43 = vadd.f32 %v5589_v50, %v5314_v53  ;;  %v7755_v23 = vld [vmem:[#allocation3 + $0x48] sm:$0xff]  ;;  %v8085_v9 = vadd.f32 %v9074_v62, %v7757_v6  ;;  %v13110_v19 = vld [vmem:[%s13394_s2] ss:$0 sm:$0xff] }
 0x440   : > { %8113 = vst.msk [vmem:[#allocation3 + $0x38] sm:$0xff] %vm244_vm0, %v8081_v14  ;;  %8111 = vst.msk [vmem:[#allocation3 + $0x28] sm:$0xff] %vm244_vm0, %v8079_v4  ;;  %v8083_v59 = vadd.f32 %v7982_v52, %v7755_v23  ;;  %v5319_v25 = vld [vmem:[#allocation3 + $0xf0] sm:$0xff]  ;;  %v5317_v1 = vld [vmem:[#allocation3 + $0xe0] sm:$0xff]  ;;  %v5605_v49 = vpop.f32.mrf.mxu0 }
 0x441   : > { %8116 = vst.msk [vmem:[#allocation3 + $0x50] sm:$0xff] %vm244_vm0, %v8084_v54  ;;  %5676 = vst.msk [vmem:[#allocation3 + $0xd8] sm:$0xff] %vm244_vm0, %v5644_v33  ;;  %v13115_v7 = vld [vmem:[%s13395_s3] ss:$0 sm:$0xff]  ;;  %v5647_v5 = vadd.f32 %v9059_v0, %v5319_v25  ;;  %v5645_v12 = vadd.f32 %v5602_v58, %v5317_v1  ;;  %v5320_v52 = vld [vmem:[#allocation3 + $0xf8] sm:$0xff] }
 0x442   : > { %8114 = vst.msk [vmem:[#allocation3 + $0x40] sm:$0xff] %vm244_vm0, %v8082_v56  ;;  %5674 = vst.msk [vmem:[#allocation3 + $0xc8] sm:$0xff] %vm244_vm0, %v5642_v43  ;;  %v5648_v54 = vadd.f32 %v9060_v17, %v5320_v52  ;;  %v5318_v42 = vld [vmem:[#allocation3 + $0xe8] sm:$0xff] }
 0x443   : > { %8117 = vst.msk [vmem:[#allocation3 + $0x58] sm:$0xff] %vm244_vm0, %v8085_v9  ;;  %8115 = vst.msk [vmem:[#allocation3 + $0x48] sm:$0xff] %vm244_vm0, %v8083_v59  ;;  %v5646_v33 = vadd.f32 %v5605_v49, %v5318_v42 }
 0x444   : > { %v8143_v38 = vld [vmem:[#allocation3 + $0x10] sm:$0xff]  ;;  %v8141_v40 = vld [vmem:[#allocation3] sm:$0xff]  ;;  %5679 = vst.msk [vmem:[#allocation3 + $0xf0] sm:$0xff] %vm244_vm0, %v5647_v5  ;;  %5677 = vst.msk [vmem:[#allocation3 + $0xe0] sm:$0xff] %vm244_vm0, %v5645_v12 }
 0x445   : > { %v8144_v26 = vld [vmem:[#allocation3 + $0x18] sm:$0xff]  ;;  %v8182_v2 = vmul.f32 %v13110_v19, %v8143_v38  ;;  %v8180_v28 = vmul.f32 %v13110_v19, %v8141_v40  ;;  %v8142_v8 = vld [vmem:[#allocation3 + $0x8] sm:$0xff]  ;;  %5680 = vst.msk [vmem:[#allocation3 + $0xf8] sm:$0xff] %vm244_vm0, %v5648_v54  ;;  %5678 = vst.msk [vmem:[#allocation3 + $0xe8] sm:$0xff] %vm244_vm0, %v5646_v33 }
 0x446   : > { %v8183_v44 = vmul.f32 %v13110_v19, %v8144_v26  ;;  %v8147_v27 = vld [vmem:[#allocation3 + $0x30] sm:$0xff]  ;;  %v8145_v37 = vld [vmem:[#allocation3 + $0x20] sm:$0xff]  ;;  %v8181_v35 = vmul.f32 %v13110_v19, %v8142_v8 }
 0x447   : > { %v8186_v15 = vmul.f32 %v13110_v19, %v8147_v27  ;;  %v8184_v63 = vmul.f32 %v13110_v19, %v8145_v37  ;;  %v8148_v34 = vld [vmem:[#allocation3 + $0x38] sm:$0xff]  ;;  %v8146_v46 = vld [vmem:[#allocation3 + $0x28] sm:$0xff]  ;;  %v13125_v45 = vadd.f32 %v13115_v7, %v8182_v2  ;;  %v13128_v48 = vadd.f32 %v13115_v7, %v8180_v28 }
 0x448   : > { %v13131_v62 = vadd.f32 %v13115_v7, %v8183_v44  ;;  %v8187_v31 = vmul.f32 %v13110_v19, %v8148_v34  ;;  %v8151_v51 = vld [vmem:[#allocation3 + $0x50] sm:$0xff]  ;;  %v13136_v39 = vadd.f32 %v13115_v7, %v8181_v35  ;;  %v8185_v3 = vmul.f32 %v13110_v19, %v8146_v46 }
 0x449   : > { %v13139_v61 = vadd.f32 %v13115_v7, %v8186_v15  ;;  %v13142_v21 = vadd.f32 %v13115_v7, %v8184_v63  ;;  %v8149_v13 = vld [vmem:[#allocation3 + $0x40] sm:$0xff]  ;;  %v8857_v41 = vmul.f32 -1.442695, %v13125_v45  ;;  %v8855_v55 = vmul.f32 -1.442695, %v13128_v48  ;;  %v7760_v46 = vld [vmem:[#allocation3 + $0x70] sm:$0xff] }
 0x44a   : > { %v8152_v16 = vld [vmem:[#allocation3 + $0x58] sm:$0xff]  ;;  %v8150_v22 = vld [vmem:[#allocation3 + $0x48] sm:$0xff]  ;;  %v8858_v11 = vmul.f32 -1.442695, %v13131_v62  ;;  %v13149_v18 = vadd.f32 %v13115_v7, %v8187_v31  ;;  %v8856_v60 = vmul.f32 -1.442695, %v13136_v39  ;;  %v13155_v24 = vadd.f32 %v13115_v7, %v8185_v3  ;;  %v9077_v31 = vpop.f32.mrf.mxu1 }
 0x44b   : > { %v8861_v36 = vmul.f32 -1.442695, %v13139_v61  ;;  %v8859_v10 = vmul.f32 -1.442695, %v13142_v21  ;;  %9144 = vpow2.f32 %v8857_v41  ;;  %v8190_v30 = vmul.f32 %v13110_v19, %v8151_v51 }
 0x44c   : > { %v8862_v50 = vmul.f32 -1.442695, %v13149_v18  ;;  %v8188_v57 = vmul.f32 %v13110_v19, %v8149_v13  ;;  %9146 = vpow2.f32 %v8855_v55  ;;  %v8860_v47 = vmul.f32 -1.442695, %v13155_v24  ;;  %v7761_v55 = vld [vmem:[#allocation3 + $0x78] sm:$0xff] }
 0x44d   : > { %v8191_v32 = vmul.f32 %v13110_v19, %v8152_v16  ;;  %v8189_v29 = vmul.f32 %v13110_v19, %v8150_v22  ;;  %9148 = vpow2.f32 %v8858_v11  ;;  %v13164_v14 = vadd.f32 %v13115_v7, %v8190_v30  ;;  %v7758_v16 = vld [vmem:[#allocation3 + $0x60] sm:$0xff]  ;;  %v7995_v22 = vpop.f32.mrf.mxu1 }
 0x44e   : > { %v13167_v4 = vadd.f32 %v13115_v7, %v8188_v57  ;;  %9150 = vpow2.f32 %v8856_v60  ;;  %v8088_v3 = vadd.f32 %v9077_v31, %v7760_v46  ;;  %v8086_v41 = vadd.f32 %v7995_v22, %v7758_v16  ;;  %v7762_v46 = vld [vmem:[#allocation3 + $0x80] sm:$0xff] }
 0x44f   : > { %v13170_v20 = vadd.f32 %v13115_v7, %v8191_v32  ;;  %v13173_v53 = vadd.f32 %v13115_v7, %v8189_v29  ;;  %9152 = vpow2.f32 %v8861_v36  ;;  %v8865_v56 = vmul.f32 -1.442695, %v13164_v14  ;;  %v9078_v11 = vpop.f32.mrf.mxu1 }
 0x450   : > { %9154 = vpow2.f32 %v8859_v10  ;;  %v8863_v43 = vmul.f32 -1.442695, %v13167_v4  ;;  %8120 = vst.msk [vmem:[#allocation3 + $0x70] sm:$0xff] %vm244_vm0, %v8088_v3  ;;  %8118 = vst.msk [vmem:[#allocation3 + $0x60] sm:$0xff] %vm244_vm0, %v8086_v41  ;;  %v8089_v60 = vadd.f32 %v9078_v11, %v7761_v55  ;;  %v7759_v10 = vld [vmem:[#allocation3 + $0x68] sm:$0xff] }
 0x451   : > { %9156 = vpow2.f32 %v8862_v50  ;;  %v8866_v6 = vmul.f32 -1.442695, %v13170_v20  ;;  %v8864_v23 = vmul.f32 -1.442695, %v13173_v53  ;;  %v7998_v50 = vpop.f32.mrf.mxu1  ;;  %v7763_v55 = vld [vmem:[#allocation3 + $0x88] sm:$0xff] }
 0x452   : > { %9158 = vpow2.f32 %v8860_v47  ;;  %8121 = vst.msk [vmem:[#allocation3 + $0x78] sm:$0xff] %vm244_vm0, %v8089_v60  ;;  %v8087_v49 = vadd.f32 %v7998_v50, %v7759_v10 }
 0x453   : > { %9160 = vpow2.f32 %v8865_v56 }
 0x454   : > { %9162 = vpow2.f32 %v8863_v43  ;;  %8119 = vst.msk [vmem:[#allocation3 + $0x68] sm:$0xff] %vm244_vm0, %v8087_v49 }
 0x455   : > { %9164 = vpow2.f32 %v8866_v6 }
 0x456   : > { %9166 = vpow2.f32 %v8864_v23 }
 0x457   : > { %v8155_v42 = vld [vmem:[#allocation3 + $0x70] sm:$0xff]  ;;  %v8153_v6 = vld [vmem:[#allocation3 + $0x60] sm:$0xff] }
 0x458   : > { %v9145_v9 = vpop.eup %9144  ;;  %v8194_v56 = vmul.f32 %v13110_v19, %v8155_v42 }
 0x459   : > { %v9147_v59 = vpop.eup %9146  ;;  %v8349_v25 = vadd.f32 1.0, %v9145_v9 }
 0x45a   : > { %v9149_v0 = vpop.eup %9148  ;;  %v8347_v5 = vadd.f32 1.0, %v9147_v59  ;;  %v13210_v9 = vadd.f32 %v13115_v7, %v8194_v56 }
 0x45b   : > { %v9151_v1 = vpop.eup %9150  ;;  %9168 = vrcp.f32 %v8349_v25  ;;  %v8350_v38 = vadd.f32 1.0, %v9149_v0  ;;  %v8156_v0 = vld [vmem:[#allocation3 + $0x78] sm:$0xff] }
 0x45c   : > { %v9153_v40 = vpop.eup %9152  ;;  %9170 = vrcp.f32 %v8347_v5  ;;  %v8348_v26 = vadd.f32 1.0, %v9151_v1 }
 0x45d   : > { %v9155_v58 = vpop.eup %9154  ;;  %9172 = vrcp.f32 %v8350_v38  ;;  %v8353_v2 = vadd.f32 1.0, %v9153_v40  ;;  %v8195_v38 = vmul.f32 %v13110_v19, %v8156_v0 }
 0x45e   : > { %v9157_v28 = vpop.eup %9156  ;;  %9174 = vrcp.f32 %v8348_v26  ;;  %v8351_v44 = vadd.f32 1.0, %v9155_v58  ;;  %v8154_v26 = vld [vmem:[#allocation3 + $0x68] sm:$0xff] }
 0x45f   : > { %v9159_v8 = vpop.eup %9158  ;;  %9176 = vrcp.f32 %v8353_v2  ;;  %v8354_v27 = vadd.f32 1.0, %v9157_v28  ;;  %v13232_v28 = vadd.f32 %v13115_v7, %v8195_v38 }
 0x460   : > { %v9161_v37 = vpop.eup %9160  ;;  %9178 = vrcp.f32 %v8351_v44  ;;  %v8352_v12 = vadd.f32 1.0, %v9159_v8  ;;  %v8193_v8 = vmul.f32 %v13110_v19, %v8154_v26 }
 0x461   : > { %v9163_v35 = vpop.eup %9162  ;;  %9180 = vrcp.f32 %v8354_v27  ;;  %v8357_v15 = vadd.f32 1.0, %v9161_v37 }
 0x462   : > { %v9165_v63 = vpop.eup %9164  ;;  %9182 = vrcp.f32 %v8352_v12  ;;  %v8355_v34 = vadd.f32 1.0, %v9163_v35  ;;  %v7764_v35 = vld [vmem:[#allocation3 + $0x90] sm:$0xff] }
 0x463   : > { %v9167_v51 = vpop.eup %9166  ;;  %9184 = vrcp.f32 %v8357_v15  ;;  %v8358_v17 = vadd.f32 1.0, %v9165_v63  ;;  %v9081_v15 = vpop.f32.mrf.mxu1 }
 0x464   : > { %9186 = vrcp.f32 %v8355_v34  ;;  %v8356_v13 = vadd.f32 1.0, %v9167_v51 }
 0x465   : > { %9188 = vrcp.f32 %v8358_v17  ;;  %v8011_v31 = vpop.f32.mrf.mxu1 }
 0x466   : > { %9190 = vrcp.f32 %v8356_v13  ;;  %v8090_v17 = vadd.f32 %v8011_v31, %v7762_v46  ;;  %v7765_v13 = vld [vmem:[#allocation3 + $0x98] sm:$0xff] }
 0x467   : > { %v9082_v16 = vpop.f32.mrf.mxu1 }
 0x468   : > { %v9169_v36 = vpop.eup %9168  ;;  %8122 = vst.msk [vmem:[#allocation3 + $0x80] sm:$0xff] %vm244_vm0, %v8090_v17  ;;  %v8093_v22 = vadd.f32 %v9082_v16, %v7765_v13 }
 0x469   : > { %v9171_v30 = vpop.eup %9170  ;;  %v8445_v57 = vmul.f32 %v9169_v36, %v13125_v45  ;;  %v8014_v11 = vpop.f32.mrf.mxu1 }
 0x46a   : > { %v9173_v47 = vpop.eup %9172  ;;  %v8443_v32 = vmul.f32 %v9171_v30, %v13128_v48  ;;  %8125 = vst.msk [vmem:[#allocation3 + $0x98] sm:$0xff] %vm244_vm0, %v8093_v22  ;;  %v8091_v36 = vadd.f32 %v8014_v11, %v7763_v55 }
 0x46b   : > { %v9175_v29 = vpop.eup %9174  ;;  %8477 = vst.msk [vmem:[%s13187_s12 + $0x10] sm:$0xff] %vm244_vm0, %v8445_v57  ;;  %v8446_v52 = vmul.f32 %v9173_v47, %v13131_v62 }
 0x46c   : > { %v9177_v54 = vpop.eup %9176  ;;  %8475 = vst.msk [vmem:[%s13187_s12] sm:$0xff] %vm244_vm0, %v8443_v32  ;;  %v8444_v45 = vmul.f32 %v9175_v29, %v13136_v39  ;;  %8123 = vst.msk [vmem:[#allocation3 + $0x88] sm:$0xff] %vm244_vm0, %v8091_v36 }
 0x46d   : > { %v9179_v33 = vpop.eup %9178  ;;  %8478 = vst.msk [vmem:[%s13187_s12 + $0x18] sm:$0xff] %vm244_vm0, %v8446_v52  ;;  %v8449_v48 = vmul.f32 %v9177_v54, %v13139_v61  ;;  %v8192_v61 = vmul.f32 %v13110_v19, %v8153_v6 }
 0x46e   : > { %v9181_v43 = vpop.eup %9180  ;;  %8476 = vst.msk [vmem:[%s13187_s12 + $0x8] sm:$0xff] %vm244_vm0, %v8444_v45  ;;  %v8447_v62 = vmul.f32 %v9179_v33, %v13142_v21 }
 0x46f   : > { %v9183_v23 = vpop.eup %9182  ;;  %8481 = vst.msk [vmem:[%s13187_s12 + $0x30] sm:$0xff] %vm244_vm0, %v8449_v48  ;;  %v8450_v39 = vmul.f32 %v9181_v43, %v13149_v18  ;;  %v8869_v18 = vmul.f32 -1.442695, %v13210_v9  ;;  %v13221_v1 = vadd.f32 %v13115_v7, %v8192_v61  ;;  %v8157_v30 = vld [vmem:[#allocation3 + $0x80] sm:$0xff] }
 0x470   : > { %v9185_v59 = vpop.eup %9184  ;;  %8479 = vst.msk [vmem:[%s13187_s12 + $0x20] sm:$0xff] %vm244_vm0, %v8447_v62  ;;  %v8448_v25 = vmul.f32 %v9183_v23, %v13155_v24  ;;  %v8196_v49 = vmul.f32 %v13110_v19, %v8157_v30 }
 0x471   : > { %v9187_v21 = vpop.eup %9186  ;;  %8482 = vst.msk [vmem:[%s13187_s12 + $0x38] sm:$0xff] %vm244_vm0, %v8450_v39  ;;  %v8453_v5 = vmul.f32 %v9185_v59, %v13164_v14  ;;  %9192 = vpow2.f32 %v8869_v18  ;;  %v8867_v2 = vmul.f32 -1.442695, %v13221_v1  ;;  %v8160_v47 = vld [vmem:[#allocation3 + $0x98] sm:$0xff] }
 0x472   : > { %v9189_v40 = vpop.eup %9188  ;;  %8480 = vst.msk [vmem:[%s13187_s12 + $0x28] sm:$0xff] %vm244_vm0, %v8448_v25  ;;  %v8451_v24 = vmul.f32 %v9187_v21, %v13167_v4  ;;  %v8870_v4 = vmul.f32 -1.442695, %v13232_v28  ;;  %v13255_v52 = vadd.f32 %v13115_v7, %v8196_v49  ;;  %v8199_v54 = vmul.f32 %v13110_v19, %v8160_v47 }
 0x473   : > { %v9191_v58 = vpop.eup %9190  ;;  %8485 = vst.msk [vmem:[%s13187_s12 + $0x50] sm:$0xff] %vm244_vm0, %v8453_v5  ;;  %v8454_v14 = vmul.f32 %v9189_v40, %v13170_v20  ;;  %9194 = vpow2.f32 %v8867_v2  ;;  %v8232_v20 = vadd.f32 %v13115_v7, %v8193_v8  ;;  %v8158_v42 = vld [vmem:[#allocation3 + $0x88] sm:$0xff]  ;;  %v7768_v5 = vld [vmem:[#allocation3 + $0xb0] sm:$0xff] }
 0x474   : > { %8483 = vst.msk [vmem:[%s13187_s12 + $0x40] sm:$0xff] %vm244_vm0, %v8451_v24  ;;  %v8452_v44 = vmul.f32 %v9191_v58, %v13173_v53  ;;  %9196 = vpow2.f32 %v8870_v4  ;;  %v8092_v53 = vadd.f32 %v9081_v15, %v7764_v35  ;;  %v8871_v48 = vmul.f32 -1.442695, %v13255_v52  ;;  %v7766_v24 = vld [vmem:[#allocation3 + $0xa0] sm:$0xff] }
 0x475   : > { %8486 = vst.msk [vmem:[%s13187_s12 + $0x58] sm:$0xff] %vm244_vm0, %v8454_v14  ;;  %v8868_v27 = vmul.f32 -1.442695, %v8232_v20  ;;  %v13261_v56 = vadd.f32 %v13115_v7, %v8199_v54  ;;  %v8197_v43 = vmul.f32 %v13110_v19, %v8158_v42 }
 0x476   : > { %8484 = vst.msk [vmem:[%s13187_s12 + $0x48] sm:$0xff] %vm244_vm0, %v8452_v44  ;;  %8124 = vst.msk [vmem:[#allocation3 + $0x90] sm:$0xff] %vm244_vm0, %v8092_v53 }
 0x477   : > { %9198 = vpow2.f32 %v8868_v27  ;;  %v8874_v23 = vmul.f32 -1.442695, %v13261_v56  ;;  %v13269_v39 = vadd.f32 %v13115_v7, %v8197_v43  ;;  %v7767_v27 = vld [vmem:[#allocation3 + $0xa8] sm:$0xff] }
 0x479   : > { %v8872_v61 = vmul.f32 -1.442695, %v13269_v39 }
 0x47d   : > { %v8159_v10 = vld [vmem:[#allocation3 + $0x90] sm:$0xff] }
 0x47e   : > { %v9193_v37 = vpop.eup %9192  ;;  %v8198_v50 = vmul.f32 %v13110_v19, %v8159_v10  ;;  %v9085_v18 = vpop.f32.mrf.mxu1 }
 0x47f   : > { %v8361_v12 = vadd.f32 1.0, %v9193_v37  ;;  %v8096_v38 = vadd.f32 %v9085_v18, %v7768_v5 }
 0x480   : > { %v9195_v63 = vpop.eup %9194  ;;  %v13250_v57 = vadd.f32 %v13115_v7, %v8198_v50  ;;  %v8027_v26 = vpop.f32.mrf.mxu1 }
 0x481   : > { %9200 = vrcp.f32 %v8361_v12  ;;  %v8359_v34 = vadd.f32 1.0, %v9195_v63  ;;  %v9197_v51 = vpop.eup %9196  ;;  %8128 = vst.msk [vmem:[#allocation3 + $0xb0] sm:$0xff] %vm244_vm0, %v8096_v38  ;;  %v8094_v14 = vadd.f32 %v8027_v26, %v7766_v24 }
 0x482   : > { %v8362_v3 = vadd.f32 1.0, %v9197_v51  ;;  %v8873_v29 = vmul.f32 -1.442695, %v13250_v57  ;;  %v9086_v44 = vpop.f32.mrf.mxu1 }
 0x483   : > { %9202 = vrcp.f32 %v8359_v34  ;;  %8126 = vst.msk [vmem:[#allocation3 + $0xa0] sm:$0xff] %vm244_vm0, %v8094_v14 }
 0x484   : > { %v9199_v41 = vpop.eup %9198  ;;  %9204 = vrcp.f32 %v8362_v3  ;;  %v8030_v37 = vpop.f32.mrf.mxu1 }
 0x485   : > { %v8360_v60 = vadd.f32 1.0, %v9199_v41  ;;  %v8095_v12 = vadd.f32 %v8030_v37, %v7767_v27 }
 0x487   : > { %9206 = vrcp.f32 %v8360_v60  ;;  %8127 = vst.msk [vmem:[#allocation3 + $0xa8] sm:$0xff] %vm244_vm0, %v8095_v12 }
 0x488   : > { %9208 = vpow2.f32 %v8873_v29  ;;  %v8163_v35 = vld [vmem:[#allocation3 + $0xb0] sm:$0xff] }
 0x489   : > { %9210 = vpow2.f32 %v8871_v48  ;;  %v8202_v15 = vmul.f32 %v13110_v19, %v8163_v35  ;;  %v7770_v48 = vld [vmem:[#allocation3 + $0xc0] sm:$0xff] }
 0x48a   : > { %9212 = vpow2.f32 %v8874_v23  ;;  %v8161_v63 = vld [vmem:[#allocation3 + $0xa0] sm:$0xff]  ;;  %v7773_v23 = vld [vmem:[#allocation3 + $0xd8] sm:$0xff] }
 0x48b   : > { %9214 = vpow2.f32 %v8872_v61  ;;  %v13285_v53 = vadd.f32 %v13115_v7, %v8202_v15  ;;  %v8200_v34 = vmul.f32 %v13110_v19, %v8161_v63 }
 0x48d   : > { %v8877_v51 = vmul.f32 -1.442695, %v13285_v53  ;;  %v13290_v17 = vadd.f32 %v13115_v7, %v8200_v34 }
 0x48e   : > { %v9201_v32 = vpop.eup %9200  ;;  %v8162_v16 = vld [vmem:[#allocation3 + $0xa8] sm:$0xff] }
 0x48f   : > { %v8457_v45 = vmul.f32 %v9201_v32, %v13210_v9  ;;  %v8875_v41 = vmul.f32 -1.442695, %v13290_v17  ;;  %v8201_v11 = vmul.f32 %v13110_v19, %v8162_v16 }
 0x490   : > { %v9203_v33 = vpop.eup %9202 }
 0x491   : > { %8489 = vst.msk [vmem:[%s13187_s12 + $0x70] sm:$0xff] %vm244_vm0, %v8457_v45  ;;  %v8455_v62 = vmul.f32 %v9203_v33, %v13221_v1  ;;  %v9205_v6 = vpop.eup %9204  ;;  %v13304_v50 = vadd.f32 %v13115_v7, %v8201_v11 }
 0x492   : > { %v8458_v9 = vmul.f32 %v9205_v6, %v13232_v28  ;;  %v7769_v28 = vld [vmem:[#allocation3 + $0xb8] sm:$0xff] }
 0x493   : > { %8487 = vst.msk [vmem:[%s13187_s12 + $0x60] sm:$0xff] %vm244_vm0, %v8455_v62  ;;  %v8097_v4 = vadd.f32 %v9086_v44, %v7769_v28  ;;  %v8876_v49 = vmul.f32 -1.442695, %v13304_v50 }
 0x494   : > { %v9207_v59 = vpop.eup %9206  ;;  %8490 = vst.msk [vmem:[%s13187_s12 + $0x78] sm:$0xff] %vm244_vm0, %v8458_v9 }
 0x495   : > { %v8456_v25 = vmul.f32 %v9207_v59, %v8232_v20  ;;  %v9209_v0 = vpop.eup %9208  ;;  %8129 = vst.msk [vmem:[#allocation3 + $0xb8] sm:$0xff] %vm244_vm0, %v8097_v4 }
 0x496   : > { %v8365_v21 = vadd.f32 1.0, %v9209_v0  ;;  %v9211_v1 = vpop.eup %9210 }
 0x497   : > { %8488 = vst.msk [vmem:[%s13187_s12 + $0x68] sm:$0xff] %vm244_vm0, %v8456_v25  ;;  %v8363_v40 = vadd.f32 1.0, %v9211_v1  ;;  %v9213_v58 = vpop.eup %9212  ;;  %v7771_v25 = vld [vmem:[#allocation3 + $0xc8] sm:$0xff] }
 0x498   : > { %9216 = vrcp.f32 %v8365_v21  ;;  %v8366_v2 = vadd.f32 1.0, %v9213_v58  ;;  %v9215_v8 = vpop.eup %9214 }
 0x499   : > { %9218 = vrcp.f32 %v8363_v40  ;;  %v8364_v20 = vadd.f32 1.0, %v9215_v8 }
 0x49a   : > { %9220 = vrcp.f32 %v8366_v2 }
 0x49b   : > { %9222 = vrcp.f32 %v8364_v20 }
 0x49c   : > { %v8164_v46 = vld [vmem:[#allocation3 + $0xb8] sm:$0xff]  ;;  %9224 = vpow2.f32 %v8877_v51  ;;  %v9089_v54 = vpop.f32.mrf.mxu1 }
 0x49d   : > { %v8203_v3 = vmul.f32 %v13110_v19, %v8164_v46  ;;  %9226 = vpow2.f32 %v8875_v41  ;;  %v7774_v41 = vld [vmem:[#allocation3 + $0xe0] sm:$0xff] }
 0x49f   : > { %v13296_v55 = vadd.f32 %v13115_v7, %v8203_v3 }
 0x4a1   : > { %v8878_v10 = vmul.f32 -1.442695, %v13296_v55 }
 0x4a3   : > { %9228 = vpow2.f32 %v8878_v10  ;;  %v7777_v10 = vld [vmem:[#allocation3 + $0xf8] sm:$0xff] }
 0x4a4   : > { %9230 = vpow2.f32 %v8876_v49 }
 0x4a5   : > { %v9217_v31 = vpop.eup %9216 }
 0x4a6   : > { %v8461_v13 = vmul.f32 %v9217_v31, %v13250_v57  ;;  %v9219_v22 = vpop.eup %9218 }
 0x4a7   : > { %v8459_v60 = vmul.f32 %v9219_v22, %v13255_v52  ;;  %v9221_v36 = vpop.eup %9220  ;;  %v7772_v52 = vld [vmem:[#allocation3 + $0xd0] sm:$0xff] }
 0x4a8   : > { %8493 = vst.msk [vmem:[%s13187_s12 + $0x90] sm:$0xff] %vm244_vm0, %v8461_v13  ;;  %v8462_v30 = vmul.f32 %v9221_v36, %v13261_v56  ;;  %v9223_v57 = vpop.eup %9222  ;;  %v8100_v42 = vadd.f32 %v9089_v54, %v7772_v52  ;;  %v8043_v56 = vpop.f32.mrf.mxu1 }
 0x4a9   : > { %8491 = vst.msk [vmem:[%s13187_s12 + $0x80] sm:$0xff] %vm244_vm0, %v8459_v60  ;;  %v8460_v47 = vmul.f32 %v9223_v57, %v13269_v39  ;;  %v9225_v32 = vpop.eup %9224  ;;  %v8098_v62 = vadd.f32 %v8043_v56, %v7770_v48 }
 0x4aa   : > { %8494 = vst.msk [vmem:[%s13187_s12 + $0x98] sm:$0xff] %vm244_vm0, %v8462_v30  ;;  %v8369_v29 = vadd.f32 1.0, %v9225_v32  ;;  %v9227_v45 = vpop.eup %9226  ;;  %8132 = vst.msk [vmem:[#allocation3 + $0xd0] sm:$0xff] %vm244_vm0, %v8100_v42  ;;  %v9090_v39 = vpop.f32.mrf.mxu1 }
 0x4ab   : > { %8492 = vst.msk [vmem:[%s13187_s12 + $0x88] sm:$0xff] %vm244_vm0, %v8460_v47  ;;  %v8367_v33 = vadd.f32 1.0, %v9227_v45  ;;  %8130 = vst.msk [vmem:[#allocation3 + $0xc0] sm:$0xff] %vm244_vm0, %v8098_v62  ;;  %v8101_v61 = vadd.f32 %v9090_v39, %v7773_v23  ;;  %v7775_v47 = vld [vmem:[#allocation3 + $0xe8] sm:$0xff] }
 0x4ac   : > { %9232 = vrcp.f32 %v8369_v29  ;;  %v8046_v0 = vpop.f32.mrf.mxu1 }
 0x4ad   : > { %9234 = vrcp.f32 %v8367_v33  ;;  %8133 = vst.msk [vmem:[#allocation3 + $0xd8] sm:$0xff] %vm244_vm0, %v8101_v61  ;;  %v8099_v21 = vadd.f32 %v8046_v0, %v7771_v25 }
 0x4af   : > { %8131 = vst.msk [vmem:[#allocation3 + $0xc8] sm:$0xff] %vm244_vm0, %v8099_v21 }
 0x4b0   : > { %v9229_v43 = vpop.eup %9228 }
 0x4b1   : > { %v8370_v6 = vadd.f32 1.0, %v9229_v43  ;;  %v9231_v9 = vpop.eup %9230  ;;  %v8167_v5 = vld [vmem:[#allocation3 + $0xd0] sm:$0xff] }
 0x4b2   : > { %v8368_v59 = vadd.f32 1.0, %v9231_v9  ;;  %v8206_v18 = vmul.f32 %v13110_v19, %v8167_v5  ;;  %v8165_v1 = vld [vmem:[#allocation3 + $0xc0] sm:$0xff] }
 0x4b3   : > { %9236 = vrcp.f32 %v8370_v6  ;;  %v8204_v40 = vmul.f32 %v13110_v19, %v8165_v1 }
 0x4b4   : > { %9238 = vrcp.f32 %v8368_v59  ;;  %v13321_v38 = vadd.f32 %v13115_v7, %v8206_v18  ;;  %v8168_v24 = vld [vmem:[#allocation3 + $0xd8] sm:$0xff] }
 0x4b5   : > { %v13326_v14 = vadd.f32 %v13115_v7, %v8204_v40  ;;  %v8207_v2 = vmul.f32 %v13110_v19, %v8168_v24 }
 0x4b6   : > { %v8881_v58 = vmul.f32 -1.442695, %v13321_v38  ;;  %v8166_v44 = vld [vmem:[#allocation3 + $0xc8] sm:$0xff] }
 0x4b7   : > { %v8879_v4 = vmul.f32 -1.442695, %v13326_v14  ;;  %v13332_v20 = vadd.f32 %v13115_v7, %v8207_v2  ;;  %v8205_v27 = vmul.f32 %v13110_v19, %v8166_v44 }
 0x4b8   : > { %9240 = vpow2.f32 %v8881_v58 }
 0x4b9   : > { %v9233_v26 = vpop.eup %9232  ;;  %9242 = vpow2.f32 %v8879_v4  ;;  %v8882_v35 = vmul.f32 -1.442695, %v13332_v20  ;;  %v13340_v15 = vadd.f32 %v13115_v7, %v8205_v27 }
 0x4ba   : > { %v8465_v28 = vmul.f32 %v9233_v26, %v13285_v53  ;;  %v9235_v8 = vpop.eup %9234 }
 0x4bb   : > { %v8463_v37 = vmul.f32 %v9235_v8, %v13290_v17  ;;  %9244 = vpow2.f32 %v8882_v35  ;;  %v8880_v34 = vmul.f32 -1.442695, %v13340_v15  ;;  %v7776_v17 = vld [vmem:[#allocation3 + $0xf0] sm:$0xff] }
 0x4bc   : > { %8497 = vst.msk [vmem:[%s13187_s12 + $0xb0] sm:$0xff] %vm244_vm0, %v8465_v28  ;;  %v9093_v3 = vpop.f32.mrf.mxu1 }
 0x4bd   : > { %8495 = vst.msk [vmem:[%s13187_s12 + $0xa0] sm:$0xff] %vm244_vm0, %v8463_v37  ;;  %9246 = vpow2.f32 %v8880_v34  ;;  %v8104_v16 = vadd.f32 %v9093_v3, %v7776_v17 }
 0x4bf   : > { %8136 = vst.msk [vmem:[#allocation3 + $0xf0] sm:$0xff] %vm244_vm0, %v8104_v16 }
 0x4c0   : > { %v9237_v12 = vpop.eup %9236 }
 0x4c1   : > { %v8466_v63 = vmul.f32 %v9237_v12, %v13296_v55  ;;  %v9239_v53 = vpop.eup %9238  ;;  %v8059_v55 = vpop.f32.mrf.mxu1 }
 0x4c2   : > { %v8464_v46 = vmul.f32 %v9239_v53, %v13304_v50  ;;  %v8102_v60 = vadd.f32 %v8059_v55, %v7774_v41 }
 0x4c3   : > { %8498 = vst.msk [vmem:[%s13187_s12 + $0xb8] sm:$0xff] %vm244_vm0, %v8466_v63  ;;  %v9094_v50 = vpop.f32.mrf.mxu1 }
 0x4c4   : > { %8496 = vst.msk [vmem:[%s13187_s12 + $0xa8] sm:$0xff] %vm244_vm0, %v8464_v46  ;;  %8134 = vst.msk [vmem:[#allocation3 + $0xe0] sm:$0xff] %vm244_vm0, %v8102_v60  ;;  %v8105_v57 = vadd.f32 %v9094_v50, %v7777_v10 }
 0x4c5   : > { %v9241_v31 = vpop.eup %9240  ;;  %v8062_v32 = vpop.f32.mrf.mxu1 }
 0x4c6   : > { %v8373_v51 = vadd.f32 1.0, %v9241_v31  ;;  %v9243_v13 = vpop.eup %9242  ;;  %8137 = vst.msk [vmem:[#allocation3 + $0xf8] sm:$0xff] %vm244_vm0, %v8105_v57  ;;  %v8103_v29 = vadd.f32 %v8062_v32, %v7775_v47  ;;  %v8171_v52 = vld [vmem:[#allocation3 + $0xf0] sm:$0xff] }
 0x4c7   : > { %v8371_v22 = vadd.f32 1.0, %v9243_v13  ;;  %v8210_v54 = vmul.f32 %v13110_v19, %v8171_v52 }
 0x4c8   : > { %9248 = vrcp.f32 %v8373_v51  ;;  %v9245_v11 = vpop.eup %9244  ;;  %8135 = vst.msk [vmem:[#allocation3 + $0xe8] sm:$0xff] %vm244_vm0, %v8103_v29 }
 0x4c9   : > { %9250 = vrcp.f32 %v8371_v22  ;;  %v8374_v36 = vadd.f32 1.0, %v9245_v11  ;;  %v8249_v42 = vadd.f32 %v13115_v7, %v8210_v54 }
 0x4ca   : > { %v9247_v30 = vpop.eup %9246 }
 0x4cb   : > { %9252 = vrcp.f32 %v8374_v36  ;;  %v8372_v49 = vadd.f32 1.0, %v9247_v30  ;;  %v8169_v45 = vld [vmem:[#allocation3 + $0xe0] sm:$0xff]  ;;  %v8885_v43 = vmul.f32 -1.442695, %v8249_v42 }
 0x4cc   : > { %v8208_v33 = vmul.f32 %v13110_v19, %v8169_v45 }
 0x4cd   : > { %9254 = vrcp.f32 %v8372_v49  ;;  %v8172_v48 = vld [vmem:[#allocation3 + $0xf8] sm:$0xff] }
 0x4ce   : > { %v8247_v62 = vadd.f32 %v13115_v7, %v8208_v33  ;;  %v8211_v6 = vmul.f32 %v13110_v19, %v8172_v48  ;;  %9256 = vpow2.f32 %v8885_v43 }
 0x4cf   : > { %v8170_v39 = vld [vmem:[#allocation3 + $0xe8] sm:$0xff] }
 0x4d0   : > { %v8883_v61 = vmul.f32 -1.442695, %v8247_v62  ;;  %v8250_v59 = vadd.f32 %v13115_v7, %v8211_v6  ;;  %v8209_v25 = vmul.f32 %v13110_v19, %v8170_v39 }
 0x4d2   : > { %9258 = vpow2.f32 %v8883_v61  ;;  %v8886_v5 = vmul.f32 -1.442695, %v8250_v59  ;;  %v8248_v18 = vadd.f32 %v13115_v7, %v8209_v25 }
 0x4d4   : > { %9260 = vpow2.f32 %v8886_v5  ;;  %v8884_v40 = vmul.f32 -1.442695, %v8248_v18 }
 0x4d5   : > { %v9249_v56 = vpop.eup %9248 }
 0x4d6   : > { %v8469_v23 = vmul.f32 %v9249_v56, %v13321_v38  ;;  %v9251_v9 = vpop.eup %9250  ;;  %9262 = vpow2.f32 %v8884_v40 }
 0x4d7   : > { %v8467_v0 = vmul.f32 %v9251_v9, %v13326_v14 }
 0x4d8   : > { %8501 = vst.msk [vmem:[%s13187_s12 + $0xd0] sm:$0xff] %vm244_vm0, %v8469_v23  ;;  %v9253_v21 = vpop.eup %9252 }
 0x4d9   : > { %8499 = vst.msk [vmem:[%s13187_s12 + $0xc0] sm:$0xff] %vm244_vm0, %v8467_v0  ;;  %v8470_v1 = vmul.f32 %v9253_v21, %v13332_v20 }
 0x4da   : > { %v9255_v38 = vpop.eup %9254 }
 0x4db   : > { %8502 = vst.msk [vmem:[%s13187_s12 + $0xd8] sm:$0xff] %vm244_vm0, %v8470_v1  ;;  %v8468_v19 = vmul.f32 %v9255_v38, %v13340_v15  ;;  %v9257_v24 = vpop.eup %9256 }
 0x4dc   : > { %v8377_v26 = vadd.f32 1.0, %v9257_v24 }
 0x4dd   : > { %8500 = vst.msk [vmem:[%s13187_s12 + $0xc8] sm:$0xff] %vm244_vm0, %v8468_v19 }
 0x4de   : > { %9264 = vrcp.f32 %v8377_v26 }
 0x4df   : > { %v9259_v58 = vpop.eup %9258 }
 0x4e0   : > { %v8375_v7 = vadd.f32 1.0, %v9259_v58 }
 0x4e1   : > { %v9261_v14 = vpop.eup %9260 }
 0x4e2   : > { %9266 = vrcp.f32 %v8375_v7  ;;  %v8378_v2 = vadd.f32 1.0, %v9261_v14 }
 0x4e3   : > { %v9263_v28 = vpop.eup %9262 }
 0x4e4   : > { %9268 = vrcp.f32 %v8378_v2  ;;  %v8376_v44 = vadd.f32 1.0, %v9263_v28 }
 0x4e6   : > { %9270 = vrcp.f32 %v8376_v44 }
 0x4eb   : > { %v9265_v8 = vpop.eup %9264 }
 0x4ec   : > { %v8473_v4 = vmul.f32 %v9265_v8, %v8249_v42 }
 0x4ee   : > { %8505 = vst.msk [vmem:[%s13187_s12 + $0xf0] sm:$0xff] %vm244_vm0, %v8473_v4 }
 0x4ef   : > { %v9267_v20 = vpop.eup %9266 }
 0x4f0   : > { %v8471_v27 = vmul.f32 %v9267_v20, %v8247_v62 }
 0x4f1   : > { %v9269_v37 = vpop.eup %9268 }
 0x4f2   : > { %8503 = vst.msk [vmem:[%s13187_s12 + $0xe0] sm:$0xff] %vm244_vm0, %v8471_v27  ;;  %v8474_v12 = vmul.f32 %v9269_v37, %v8250_v59 }
 0x4f3   : > { %v9271_v35 = vpop.eup %9270 }
 0x4f4   : > { %8506 = vst.msk [vmem:[%s13187_s12 + $0xf8] sm:$0xff] %vm244_vm0, %v8474_v12  ;;  %v8472_v15 = vmul.f32 %v9271_v35, %v8248_v18 }
 0x4f6   : > { %8504 = vst.msk [vmem:[%s13187_s12 + $0xe8] sm:$0xff] %vm244_vm0, %v8472_v15 }
 0x4f7 PF: > { %s14_s17 = sadd.s32 1, %s9294_s17   ;;  %s13640_s15 = smov %s9290_s16 }
 0x4f8   : > { %p11_p5 = scmp.ge.s32.totalorder %s14_s17, 4   ;;  %s13641_s16 = smov %s13643_s18 }
 0x4fa   :  { %13 = sbr.rel (!%p11_p5) target bundleno = 2 (0x2), region = 79 }

</bundles_post_ra>
